<compile_context>
chip_gen: v5e
topology: v5e:2x2
jax: 0.10.0
libtpu: 0.0.40
codegen_flags: <defaults>
</compile_context>

<pallas_src>
import functools
import math

import jax
import jax.numpy as jnp
from jax.experimental import pallas as pl
from jax.experimental.pallas import tpu as pltpu

D_MODEL = 32
D_FF = 64
N_HEADS = 4
D_HEAD = D_MODEL // N_HEADS
N_LAYERS = 2
VOCAB = 11
VOCAB_PAD = 16          # pad the one-hot / embedding contraction dim (zero rows never selected)
EPS = 1e-6
NEG_INF = -1e9

# ----------------------- static packing / index bookkeeping (trace-time) -----------------------

ATT_NAMES = ([f'e{l}' for l in range(N_LAYERS)]
             + [f'ds{l}' for l in range(N_LAYERS)]
             + [f'dc{l}' for l in range(N_LAYERS)])
ATT_IDX = {n: i for i, n in enumerate(ATT_NAMES)}

FFN_NAMES = [f'e{l}' for l in range(N_LAYERS)] + [f'd{l}' for l in range(N_LAYERS)]
FFN_IDX = {n: i for i, n in enumerate(FFN_NAMES)}

D_ROW_NAMES = []
for _l in range(N_LAYERS):
    D_ROW_NAMES += [f'e{_l}_ln1_g', f'e{_l}_ln1_b', f'e{_l}_ln2_g', f'e{_l}_ln2_b',
                    f'e{_l}_bo', f'e{_l}_b2']
for _l in range(N_LAYERS):
    D_ROW_NAMES += [f'd{_l}_ln1_g', f'd{_l}_ln1_b', f'd{_l}_ln2_g', f'd{_l}_ln2_b',
                    f'd{_l}_ln3_g', f'd{_l}_ln3_b',
                    f'ds{_l}_bo', f'dc{_l}_bo', f'd{_l}_b2']
D_ROW_NAMES += ['e_norm_g', 'e_norm_b', 'd_norm_g', 'd_norm_b']
D_ROW = {n: i for i, n in enumerate(D_ROW_NAMES)}

F_ROW_NAMES = [f'{n}_b1' for n in FFN_NAMES]
F_ROW = {n: i for i, n in enumerate(F_ROW_NAMES)}


# ----------------------------- in-kernel building blocks -----------------------------

def _layer_norm(x, g_row, b_row):
    # annotated-transformer LayerNorm: unbiased std (divide by d-1), normalize by (std + eps)
    mean = jnp.mean(x, axis=-1, keepdims=True)
    diff = x - mean
    var = jnp.sum(diff * diff, axis=-1, keepdims=True) * (1.0 / (D_MODEL - 1))
    std = jnp.sqrt(var)
    return g_row * diff / (std + EPS) + b_row


def _mha(xq, xkv, mask_add, m, w_ref, b_ref, wo_ref, bo_row):
    # xq: (Nq, D), xkv: (Nk, D); w_ref: (18, H, D, dk); b_ref: (18, H, 1, dk);
    # wo_ref: (6, H, dk, D); bo_row: (1, D); mask_add: (Nq, Nk) block-diagonal additive mask.
    scale = 1.0 / math.sqrt(D_HEAD)

    def proj(x, p):
        i = 3 * m + p
        heads = [jnp.dot(x, w_ref[i, h], preferred_element_type=jnp.float32) + b_ref[i, h]
                 for h in range(N_HEADS)]
        return jnp.stack(heads, axis=0)                               # (H, N, dk)

    q = proj(xq, 0)
    k = proj(xkv, 1)
    v = proj(xkv, 2)

    s = jnp.einsum('hqd,hkd->hqk', q, k, preferred_element_type=jnp.float32) * scale
    s = s + mask_add                              # broadcast over heads; -1e9 kills cross-batch/masked
    s = s - jnp.max(s, axis=-1, keepdims=True)
    e = jnp.exp(s)
    p_attn = e / jnp.sum(e, axis=-1, keepdims=True)                   # one batched softmax
    ctx = jnp.einsum('hqk,hkd->hqd', p_attn, v, preferred_element_type=jnp.float32)

    out = bo_row
    for h in range(N_HEADS):       # per-head output projection, accumulated (== concat + (D,D) wo)
        out = out + jnp.dot(ctx[h], wo_ref[m, h], preferred_element_type=jnp.float32)
    return out                                                        # (Nq, D)


def _ffn(x, f, w1_ref, w2_ref, b1_row, b2_row):
    h = jnp.maximum(jnp.dot(x, w1_ref[f], preferred_element_type=jnp.float32) + b1_row, 0.0)
    return jnp.dot(h, w2_ref[f], preferred_element_type=jnp.float32) + b2_row


def _embed(tok, table, pe_rows, batch):
    # Embeddings: one-hot @ table * sqrt(d_model); PositionalEncoding: + pe (dropout = identity)
    iota = jax.lax.broadcasted_iota(jnp.int32, (tok.shape[0], VOCAB_PAD), 1)
    onehot = (tok == iota).astype(jnp.float32)                        # (B*S, Vpad)
    x = jnp.dot(onehot, table, preferred_element_type=jnp.float32) * math.sqrt(D_MODEL)
    return x + jnp.concatenate([pe_rows] * batch, axis=0)             # sublane-axis tile of pe


# ----------------------------- the single fused kernel -----------------------------

def _fused_kernel(batch, s_src, s_tgt,
                  src_tok_ref, tgt_tok_ref,
                  enc_mask_ref, self_mask_ref, cross_mask_ref,
                  emb_ref, pe_ref,
                  attn_w_ref, attn_b_ref, attn_wo_ref,
                  w1_ref, w2_ref, vec_d_ref, vec_f_ref,
                  o_ref):
    vec_d = vec_d_ref[...]                      # (R_d, D)  all LN gains/betas + D-wide biases
    vec_f = vec_f_ref[...]                      # (R_f, F)  FFN hidden biases
    pe = pe_ref[...]                            # (S_max, D)

    def drow(name):
        r = D_ROW[name]
        return vec_d[r:r + 1, :]

    def frow(name):
        r = F_ROW[name]
        return vec_f[r:r + 1, :]

    def mha(xq, xkv, mask_add, name):
        return _mha(xq, xkv, mask_add, ATT_IDX[name],
                    attn_w_ref, attn_b_ref, attn_wo_ref, drow(name + '_bo'))

    def ffn(x, name):
        return _ffn(x, FFN_IDX[name], w1_ref, w2_ref,
                    frow(name + '_b1'), drow(name + '_b2'))

    enc_mask = enc_mask_ref[...]                # (B*S_src, B*S_src) additive block-diagonal
    self_mask = self_mask_ref[...]              # (B*S_tgt, B*S_tgt)
    cross_mask = cross_mask_ref[...]            # (B*S_tgt, B*S_src)

    # -------- encoder: x + self_attn(norm(x)); x + ffn(norm(x)) --------
    x = _embed(src_tok_ref[...], emb_ref[0], pe[:s_src, :], batch)
    for l in range(N_LAYERS):
        nm = f'e{l}'
        y = _layer_norm(x, drow(nm + '_ln1_g'), drow(nm + '_ln1_b'))
        x = x + mha(y, y, enc_mask, nm)
        y = _layer_norm(x, drow(nm + '_ln2_g'), drow(nm + '_ln2_b'))
        x = x + ffn(y, nm)
    memory = _layer_norm(x, drow('e_norm_g'), drow('e_norm_b'))

    # -------- decoder: self-attn, cross-attn (memory), ffn --------
    x = _embed(tgt_tok_ref[...], emb_ref[1], pe[:s_tgt, :], batch)
    for l in range(N_LAYERS):
        nm = f'd{l}'
        y = _layer_norm(x, drow(nm + '_ln1_g'), drow(nm + '_ln1_b'))
        x = x + mha(y, y, self_mask, f'ds{l}')
        y = _layer_norm(x, drow(nm + '_ln2_g'), drow(nm + '_ln2_b'))
        x = x + mha(y, memory, cross_mask, f'dc{l}')
        y = _layer_norm(x, drow(nm + '_ln3_g'), drow(nm + '_ln3_b'))
        x = x + ffn(y, nm)
    o_ref[...] = _layer_norm(x, drow('d_norm_g'), drow('d_norm_b'))


# ----------------------------- wrapper (one pallas_call total) -----------------------------

def _blockdiag_additive(per_batch_mask):
    """(B, Sq, Sk) 0/1 mask -> (B*Sq, B*Sk) additive mask: 0 where attend, -1e9 where
    masked or in a cross-batch block (so the batch dim can be folded into the row axis)."""
    b_, sq, sk = per_batch_mask.shape
    full = jnp.full((b_ * sq, b_ * sk), NEG_INF, jnp.float32)
    for b in range(b_):
        blk = jnp.where(per_batch_mask[b] != 0, 0.0, NEG_INF).astype(jnp.float32)
        full = jax.lax.dynamic_update_slice(full, blk, (b * sq, b * sk))
    return full


def encoder_decoder_forward(params, source, source_mask, target, target_mask):
    B, S_src = source.shape
    S_tgt = target.shape[1]

    sm = source_mask.astype(jnp.float32)                               # (B, 1, S_src)
    enc_mask = _blockdiag_additive(jnp.broadcast_to(sm, (B, S_src, S_src)))
    cross_mask = _blockdiag_additive(jnp.broadcast_to(sm, (B, S_tgt, S_src)))
    self_mask = _blockdiag_additive(target_mask.astype(jnp.float32))

    pe = params['pe'][:max(S_src, S_tgt)]                              # (S_max, D), passed once

    inputs = [
        source.reshape(B * S_src, 1).astype(jnp.int32),
        target.reshape(B * S_tgt, 1).astype(jnp.int32),
        enc_mask, self_mask, cross_mask,
        params['emb'], pe,
        params['attn_w'], params['attn_b'], params['attn_wo'],
        params['ffn_w1'], params['ffn_w2'],
        params['vec_d'], params['vec_f'],
    ]

    kernel = functools.partial(_fused_kernel, B, S_src, S_tgt)
    vmem = pl.BlockSpec(memory_space=pltpu.MemorySpace.VMEM)
    out = pl.pallas_call(
        kernel,
        out_shape=jax.ShapeDtypeStruct((B * S_tgt, D_MODEL), jnp.float32),
        in_specs=[vmem] * len(inputs),
        out_specs=vmem,
    )(*inputs)
    return out.reshape(B, S_tgt, D_MODEL)


# ----------------------------- deterministic parameter init -----------------------------

def positional_encoding(max_len, d_model):
    pos = jnp.arange(max_len, dtype=jnp.float32)[:, None]
    i = jnp.arange(0, d_model, 2, dtype=jnp.float32)[None, :]
    div = jnp.exp(-math.log(10000.0) * i / d_model)
    pe = jnp.zeros((max_len, d_model), jnp.float32)
    pe = pe.at[:, 0::2].set(jnp.sin(pos * div))
    pe = pe.at[:, 1::2].set(jnp.cos(pos * div))
    return pe


def init_params(key, max_len=64):
    keys = iter(jax.random.split(key, 128))

    def nrm(shape):
        return jax.random.normal(next(keys), shape, jnp.float32) * 0.02

    D, F, H, DK = D_MODEL, D_FF, N_HEADS, D_HEAD

    attn_w = jnp.zeros((3 * len(ATT_NAMES), H, D, DK), jnp.float32)
    attn_b = jnp.zeros((3 * len(ATT_NAMES), H, 1, DK), jnp.float32)
    attn_wo = jnp.zeros((len(ATT_NAMES), H, DK, D), jnp.float32)
    rows_d, rows_f = {}, {}

    for name in ATT_NAMES:
        m = ATT_IDX[name]
        for p in range(3):                                     # q, k, v projections
            w = nrm((D, D)).reshape(D, H, DK).transpose(1, 0, 2)      # -> (H, D, dk)
            b = nrm((D,)).reshape(H, 1, DK)
            attn_w = attn_w.at[3 * m + p].set(w)
            attn_b = attn_b.at[3 * m + p].set(b)
        attn_wo = attn_wo.at[m].set(nrm((D, D)).reshape(H, DK, D))    # (H, dk, D)
        rows_d[name + '_bo'] = nrm((D,))

    ffn_w1 = jnp.zeros((len(FFN_NAMES), D, F), jnp.float32)
    ffn_w2 = jnp.zeros((len(FFN_NAMES), F, D), jnp.float32)
    for name in FFN_NAMES:
        f = FFN_IDX[name]
        ffn_w1 = ffn_w1.at[f].set(nrm((D, F)))
        ffn_w2 = ffn_w2.at[f].set(nrm((F, D)))
        rows_f[name + '_b1'] = nrm((F,))
        rows_d[name + '_b2'] = nrm((D,))

    for n in D_ROW_NAMES:                                      # LayerNorm gains/betas
        if n not in rows_d:
            rows_d[n] = jnp.ones((D,), jnp.float32) if n.endswith('_g') \
                else jnp.zeros((D,), jnp.float32)

    vec_d = jnp.stack([rows_d[n] for n in D_ROW_NAMES], axis=0)       # (34, D)
    vec_f = jnp.stack([rows_f[n] for n in F_ROW_NAMES], axis=0)       # (4, F)

    def emb_table():
        t = nrm((VOCAB, D))
        return jnp.pad(t, ((0, VOCAB_PAD - VOCAB), (0, 0)))           # padded rows never selected

    emb = jnp.stack([emb_table(), emb_table()], axis=0)               # (2, Vpad, D): src, tgt

    return {
        'attn_w': attn_w, 'attn_b': attn_b, 'attn_wo': attn_wo,
        'ffn_w1': ffn_w1, 'ffn_w2': ffn_w2,
        'vec_d': vec_d, 'vec_f': vec_f,
        'emb': emb, 'pe': positional_encoding(max_len, D),
    }


if __name__ == "__main__":
    key = jax.random.PRNGKey(0)
    pkey, skey, tkey = jax.random.split(key, 3)

    B, S_SRC, S_TGT = 2, 8, 8
    params = init_params(pkey)

    source = jax.random.randint(skey, (B, S_SRC), 1, VOCAB, dtype=jnp.int32)
    target = jax.random.randint(tkey, (B, S_TGT), 1, VOCAB, dtype=jnp.int32)

    # source_mask: (B, 1, S_src) pad mask; target_mask: (B, S_tgt, S_tgt) = pad & subsequent mask
    source_mask = jnp.ones((B, 1, S_SRC), jnp.float32)
    causal = jnp.tril(jnp.ones((S_TGT, S_TGT), jnp.float32))
    target_mask = jnp.broadcast_to(causal[None, :, :], (B, S_TGT, S_TGT))

    fwd = jax.jit(encoder_decoder_forward)
    out = fwd(params, source, source_mask, target, target_mask)
    jax.block_until_ready(out)
    assert out.shape == (B, S_TGT, D_MODEL) and out.dtype == jnp.float32
    assert bool(jnp.all(jnp.isfinite(out)))
    print("KERNEL_OK")
</pallas_src>

<mosaic_0001>
module attributes {stable_mosaic.version = 11 : i64} {
  func.func @_fused_kernel(%arg0: memref<16x1xi32, #tpu.memory_space<vmem>>, %arg1: memref<16x1xi32, #tpu.memory_space<vmem>>, %arg2: memref<16x16xf32, #tpu.memory_space<vmem>>, %arg3: memref<16x16xf32, #tpu.memory_space<vmem>>, %arg4: memref<16x16xf32, #tpu.memory_space<vmem>>, %arg5: memref<2x16x32xf32, #tpu.memory_space<vmem>>, %arg6: memref<8x32xf32, #tpu.memory_space<vmem>>, %arg7: memref<18x4x32x8xf32, #tpu.memory_space<vmem>>, %arg8: memref<18x4x1x8xf32, #tpu.memory_space<vmem>>, %arg9: memref<6x4x8x32xf32, #tpu.memory_space<vmem>>, %arg10: memref<4x32x64xf32, #tpu.memory_space<vmem>>, %arg11: memref<4x64x32xf32, #tpu.memory_space<vmem>>, %arg12: memref<34x32xf32, #tpu.memory_space<vmem>>, %arg13: memref<4x64xf32, #tpu.memory_space<vmem>>, %arg14: memref<16x32xf32, #tpu.memory_space<vmem>>) attributes {dimension_semantics = [], scalar_prefetch = 0 : i64, scratch_operands = 0 : i64, tpu.core_type = #tpu.core_type<tc>} {
    %c0 = arith.constant 0 : index
    %c0_0 = arith.constant 0 : index
    %0 = vector.load %arg12[%c0, %c0_0] : memref<34x32xf32, #tpu.memory_space<vmem>>, vector<34x32xf32>
    %c0_1 = arith.constant 0 : index
    %c0_2 = arith.constant 0 : index
    %1 = vector.load %arg13[%c0_1, %c0_2] : memref<4x64xf32, #tpu.memory_space<vmem>>, vector<4x64xf32>
    %c0_3 = arith.constant 0 : index
    %c0_4 = arith.constant 0 : index
    %2 = vector.load %arg6[%c0_3, %c0_4] : memref<8x32xf32, #tpu.memory_space<vmem>>, vector<8x32xf32>
    %c0_5 = arith.constant 0 : index
    %c0_6 = arith.constant 0 : index
    %3 = vector.load %arg2[%c0_5, %c0_6] : memref<16x16xf32, #tpu.memory_space<vmem>>, vector<16x16xf32>
    %c0_7 = arith.constant 0 : index
    %c0_8 = arith.constant 0 : index
    %4 = vector.load %arg3[%c0_7, %c0_8] : memref<16x16xf32, #tpu.memory_space<vmem>>, vector<16x16xf32>
    %c0_9 = arith.constant 0 : index
    %c0_10 = arith.constant 0 : index
    %5 = vector.load %arg4[%c0_9, %c0_10] : memref<16x16xf32, #tpu.memory_space<vmem>>, vector<16x16xf32>
    %c0_11 = arith.constant 0 : index
    %c0_12 = arith.constant 0 : index
    %6 = vector.load %arg0[%c0_11, %c0_12] : memref<16x1xi32, #tpu.memory_space<vmem>>, vector<16x1xi32>
    %c0_13 = arith.constant 0 : index
    %c0_14 = arith.constant 0 : index
    %c0_15 = arith.constant 0 : index
    %7 = vector.load %arg5[%c0_13, %c0_14, %c0_15] : memref<2x16x32xf32, #tpu.memory_space<vmem>>, vector<1x16x32xf32>
    %8 = vector.shape_cast %7 : vector<1x16x32xf32> to vector<16x32xf32>
    %9 = tpu.iota {dimensions = array<i32: 1>} : vector<16x16xi32>
    %10 = vector.broadcast %6 : vector<16x1xi32> to vector<16x16xi32>
    %11 = arith.cmpi eq, %10, %9 : vector<16x16xi32>
    %12 = arith.extui %11 : vector<16x16xi1> to vector<16x16xi32>
    %13 = arith.sitofp %12 : vector<16x16xi32> to vector<16x16xf32>
    %cst = arith.constant dense<0.000000e+00> : vector<16x32xf32>
    %14 = tpu.matmul %13, %8, %cst {dimension_numbers = #tpu.dot_dimension_numbers<[1], [0], [0], [1], [0, 0, 1, 1], [], []>} : vector<16x16xf32>, vector<16x32xf32>, vector<16x32xf32> -> vector<16x32xf32>
    %cst_16 = arith.constant 5.65685415 : f32
    %15 = vector.broadcast %cst_16 : f32 to vector<16x32xf32>
    %16 = arith.mulf %14, %15 : vector<16x32xf32>
    %17 = tpu.concatenate %2, %2 in 0 : vector<8x32xf32>, vector<8x32xf32> -> vector<16x32xf32>
    %18 = arith.addf %16, %17 : vector<16x32xf32>
    %19 = vector.extract_strided_slice %0 {offsets = [0, 0], sizes = [1, 32], strides = [1, 1]} : vector<34x32xf32> to vector<1x32xf32>
    %20 = vector.extract_strided_slice %0 {offsets = [1, 0], sizes = [1, 32], strides = [1, 1]} : vector<34x32xf32> to vector<1x32xf32>
    %cst_17 = arith.constant dense<0.000000e+00> : vector<16xf32>
    %21 = vector.multi_reduction <add>, %18, %cst_17 [1] : vector<16x32xf32> to vector<16xf32>
    %22 = vector.shape_cast %21 : vector<16xf32> to vector<16x1xf32>
    %cst_18 = arith.constant 3.200000e+01 : f32
    %23 = vector.broadcast %cst_18 : f32 to vector<16x1xf32>
    %24 = arith.divf %22, %23 : vector<16x1xf32>
    %25 = vector.broadcast %24 : vector<16x1xf32> to vector<16x32xf32>
    %26 = arith.subf %18, %25 : vector<16x32xf32>
    %27 = arith.mulf %26, %26 : vector<16x32xf32>
    %cst_19 = arith.constant dense<0.000000e+00> : vector<16xf32>
    %28 = vector.multi_reduction <add>, %27, %cst_19 [1] : vector<16x32xf32> to vector<16xf32>
    %29 = vector.shape_cast %28 : vector<16xf32> to vector<16x1xf32>
    %cst_20 = arith.constant 0.0322580636 : f32
    %30 = vector.broadcast %cst_20 : f32 to vector<16x1xf32>
    %31 = arith.mulf %29, %30 : vector<16x1xf32>
    %32 = math.sqrt %31 : vector<16x1xf32>
    %33 = vector.broadcast %19 : vector<1x32xf32> to vector<16x32xf32>
    %34 = arith.mulf %33, %26 : vector<16x32xf32>
    %cst_21 = arith.constant 9.99999997E-7 : f32
    %35 = vector.broadcast %cst_21 : f32 to vector<16x1xf32>
    %36 = arith.addf %32, %35 : vector<16x1xf32>
    %37 = vector.broadcast %36 : vector<16x1xf32> to vector<16x32xf32>
    %38 = arith.divf %34, %37 : vector<16x32xf32>
    %39 = vector.broadcast %20 : vector<1x32xf32> to vector<16x32xf32>
    %40 = arith.addf %38, %39 : vector<16x32xf32>
    %41 = vector.extract_strided_slice %0 {offsets = [4, 0], sizes = [1, 32], strides = [1, 1]} : vector<34x32xf32> to vector<1x32xf32>
    %c0_22 = arith.constant 0 : index
    %c0_23 = arith.constant 0 : index
    %c0_24 = arith.constant 0 : index
    %c0_25 = arith.constant 0 : index
    %42 = vector.load %arg7[%c0_22, %c0_23, %c0_24, %c0_25] : memref<18x4x32x8xf32, #tpu.memory_space<vmem>>, vector<1x1x32x8xf32>
    %43 = vector.shape_cast %42 : vector<1x1x32x8xf32> to vector<32x8xf32>
    %cst_26 = arith.constant dense<0.000000e+00> : vector<16x8xf32>
    %44 = tpu.matmul %40, %43, %cst_26 {dimension_numbers = #tpu.dot_dimension_numbers<[1], [0], [0], [1], [0, 0, 1, 1], [], []>} : vector<16x32xf32>, vector<32x8xf32>, vector<16x8xf32> -> vector<16x8xf32>
    %c0_27 = arith.constant 0 : index
    %c0_28 = arith.constant 0 : index
    %c0_29 = arith.constant 0 : index
    %c0_30 = arith.constant 0 : index
    %45 = vector.load %arg8[%c0_27, %c0_28, %c0_29, %c0_30] : memref<18x4x1x8xf32, #tpu.memory_space<vmem>>, vector<1x1x1x8xf32>
    %46 = vector.shape_cast %45 : vector<1x1x1x8xf32> to vector<1x8xf32>
    %47 = vector.broadcast %46 : vector<1x8xf32> to vector<16x8xf32>
    %48 = arith.addf %44, %47 : vector<16x8xf32>
    %c0_31 = arith.constant 0 : index
    %c1 = arith.constant 1 : index
    %c0_32 = arith.constant 0 : index
    %c0_33 = arith.constant 0 : index
    %49 = vector.load %arg7[%c0_31, %c1, %c0_32, %c0_33] : memref<18x4x32x8xf32, #tpu.memory_space<vmem>>, vector<1x1x32x8xf32>
    %50 = vector.shape_cast %49 : vector<1x1x32x8xf32> to vector<32x8xf32>
    %cst_34 = arith.constant dense<0.000000e+00> : vector<16x8xf32>
    %51 = tpu.matmul %40, %50, %cst_34 {dimension_numbers = #tpu.dot_dimension_numbers<[1], [0], [0], [1], [0, 0, 1, 1], [], []>} : vector<16x32xf32>, vector<32x8xf32>, vector<16x8xf32> -> vector<16x8xf32>
    %c0_35 = arith.constant 0 : index
    %c1_36 = arith.constant 1 : index
    %c0_37 = arith.constant 0 : index
    %c0_38 = arith.constant 0 : index
    %52 = vector.load %arg8[%c0_35, %c1_36, %c0_37, %c0_38] : memref<18x4x1x8xf32, #tpu.memory_space<vmem>>, vector<1x1x1x8xf32>
    %53 = vector.shape_cast %52 : vector<1x1x1x8xf32> to vector<1x8xf32>
    %54 = vector.broadcast %53 : vector<1x8xf32> to vector<16x8xf32>
    %55 = arith.addf %51, %54 : vector<16x8xf32>
    %c0_39 = arith.constant 0 : index
    %c2 = arith.constant 2 : index
    %c0_40 = arith.constant 0 : index
    %c0_41 = arith.constant 0 : index
    %56 = vector.load %arg7[%c0_39, %c2, %c0_40, %c0_41] : memref<18x4x32x8xf32, #tpu.memory_space<vmem>>, vector<1x1x32x8xf32>
    %57 = vector.shape_cast %56 : vector<1x1x32x8xf32> to vector<32x8xf32>
    %cst_42 = arith.constant dense<0.000000e+00> : vector<16x8xf32>
    %58 = tpu.matmul %40, %57, %cst_42 {dimension_numbers = #tpu.dot_dimension_numbers<[1], [0], [0], [1], [0, 0, 1, 1], [], []>} : vector<16x32xf32>, vector<32x8xf32>, vector<16x8xf32> -> vector<16x8xf32>
    %c0_43 = arith.constant 0 : index
    %c2_44 = arith.constant 2 : index
    %c0_45 = arith.constant 0 : index
    %c0_46 = arith.constant 0 : index
    %59 = vector.load %arg8[%c0_43, %c2_44, %c0_45, %c0_46] : memref<18x4x1x8xf32, #tpu.memory_space<vmem>>, vector<1x1x1x8xf32>
    %60 = vector.shape_cast %59 : vector<1x1x1x8xf32> to vector<1x8xf32>
    %61 = vector.broadcast %60 : vector<1x8xf32> to vector<16x8xf32>
    %62 = arith.addf %58, %61 : vector<16x8xf32>
    %c0_47 = arith.constant 0 : index
    %c3 = arith.constant 3 : index
    %c0_48 = arith.constant 0 : index
    %c0_49 = arith.constant 0 : index
    %63 = vector.load %arg7[%c0_47, %c3, %c0_48, %c0_49] : memref<18x4x32x8xf32, #tpu.memory_space<vmem>>, vector<1x1x32x8xf32>
    %64 = vector.shape_cast %63 : vector<1x1x32x8xf32> to vector<32x8xf32>
    %cst_50 = arith.constant dense<0.000000e+00> : vector<16x8xf32>
    %65 = tpu.matmul %40, %64, %cst_50 {dimension_numbers = #tpu.dot_dimension_numbers<[1], [0], [0], [1], [0, 0, 1, 1], [], []>} : vector<16x32xf32>, vector<32x8xf32>, vector<16x8xf32> -> vector<16x8xf32>
    %c0_51 = arith.constant 0 : index
    %c3_52 = arith.constant 3 : index
    %c0_53 = arith.constant 0 : index
    %c0_54 = arith.constant 0 : index
    %66 = vector.load %arg8[%c0_51, %c3_52, %c0_53, %c0_54] : memref<18x4x1x8xf32, #tpu.memory_space<vmem>>, vector<1x1x1x8xf32>
    %67 = vector.shape_cast %66 : vector<1x1x1x8xf32> to vector<1x8xf32>
    %68 = vector.broadcast %67 : vector<1x8xf32> to vector<16x8xf32>
    %69 = arith.addf %65, %68 : vector<16x8xf32>
    %70 = vector.shape_cast %48 : vector<16x8xf32> to vector<1x16x8xf32>
    %71 = vector.shape_cast %55 : vector<16x8xf32> to vector<1x16x8xf32>
    %72 = vector.shape_cast %62 : vector<16x8xf32> to vector<1x16x8xf32>
    %73 = vector.shape_cast %69 : vector<16x8xf32> to vector<1x16x8xf32>
    %74 = tpu.concatenate %70, %71, %72, %73 in 0 : vector<1x16x8xf32>, vector<1x16x8xf32>, vector<1x16x8xf32>, vector<1x16x8xf32> -> vector<4x16x8xf32>
    %c1_55 = arith.constant 1 : index
    %c0_56 = arith.constant 0 : index
    %c0_57 = arith.constant 0 : index
    %c0_58 = arith.constant 0 : index
    %75 = vector.load %arg7[%c1_55, %c0_56, %c0_57, %c0_58] : memref<18x4x32x8xf32, #tpu.memory_space<vmem>>, vector<1x1x32x8xf32>
    %76 = vector.shape_cast %75 : vector<1x1x32x8xf32> to vector<32x8xf32>
    %cst_59 = arith.constant dense<0.000000e+00> : vector<16x8xf32>
    %77 = tpu.matmul %40, %76, %cst_59 {dimension_numbers = #tpu.dot_dimension_numbers<[1], [0], [0], [1], [0, 0, 1, 1], [], []>} : vector<16x32xf32>, vector<32x8xf32>, vector<16x8xf32> -> vector<16x8xf32>
    %c1_60 = arith.constant 1 : index
    %c0_61 = arith.constant 0 : index
    %c0_62 = arith.constant 0 : index
    %c0_63 = arith.constant 0 : index
    %78 = vector.load %arg8[%c1_60, %c0_61, %c0_62, %c0_63] : memref<18x4x1x8xf32, #tpu.memory_space<vmem>>, vector<1x1x1x8xf32>
    %79 = vector.shape_cast %78 : vector<1x1x1x8xf32> to vector<1x8xf32>
    %80 = vector.broadcast %79 : vector<1x8xf32> to vector<16x8xf32>
    %81 = arith.addf %77, %80 : vector<16x8xf32>
    %c1_64 = arith.constant 1 : index
    %c1_65 = arith.constant 1 : index
    %c0_66 = arith.constant 0 : index
    %c0_67 = arith.constant 0 : index
    %82 = vector.load %arg7[%c1_64, %c1_65, %c0_66, %c0_67] : memref<18x4x32x8xf32, #tpu.memory_space<vmem>>, vector<1x1x32x8xf32>
    %83 = vector.shape_cast %82 : vector<1x1x32x8xf32> to vector<32x8xf32>
    %cst_68 = arith.constant dense<0.000000e+00> : vector<16x8xf32>
    %84 = tpu.matmul %40, %83, %cst_68 {dimension_numbers = #tpu.dot_dimension_numbers<[1], [0], [0], [1], [0, 0, 1, 1], [], []>} : vector<16x32xf32>, vector<32x8xf32>, vector<16x8xf32> -> vector<16x8xf32>
    %c1_69 = arith.constant 1 : index
    %c1_70 = arith.constant 1 : index
    %c0_71 = arith.constant 0 : index
    %c0_72 = arith.constant 0 : index
    %85 = vector.load %arg8[%c1_69, %c1_70, %c0_71, %c0_72] : memref<18x4x1x8xf32, #tpu.memory_space<vmem>>, vector<1x1x1x8xf32>
    %86 = vector.shape_cast %85 : vector<1x1x1x8xf32> to vector<1x8xf32>
    %87 = vector.broadcast %86 : vector<1x8xf32> to vector<16x8xf32>
    %88 = arith.addf %84, %87 : vector<16x8xf32>
    %c1_73 = arith.constant 1 : index
    %c2_74 = arith.constant 2 : index
    %c0_75 = arith.constant 0 : index
    %c0_76 = arith.constant 0 : index
    %89 = vector.load %arg7[%c1_73, %c2_74, %c0_75, %c0_76] : memref<18x4x32x8xf32, #tpu.memory_space<vmem>>, vector<1x1x32x8xf32>
    %90 = vector.shape_cast %89 : vector<1x1x32x8xf32> to vector<32x8xf32>
    %cst_77 = arith.constant dense<0.000000e+00> : vector<16x8xf32>
    %91 = tpu.matmul %40, %90, %cst_77 {dimension_numbers = #tpu.dot_dimension_numbers<[1], [0], [0], [1], [0, 0, 1, 1], [], []>} : vector<16x32xf32>, vector<32x8xf32>, vector<16x8xf32> -> vector<16x8xf32>
    %c1_78 = arith.constant 1 : index
    %c2_79 = arith.constant 2 : index
    %c0_80 = arith.constant 0 : index
    %c0_81 = arith.constant 0 : index
    %92 = vector.load %arg8[%c1_78, %c2_79, %c0_80, %c0_81] : memref<18x4x1x8xf32, #tpu.memory_space<vmem>>, vector<1x1x1x8xf32>
    %93 = vector.shape_cast %92 : vector<1x1x1x8xf32> to vector<1x8xf32>
    %94 = vector.broadcast %93 : vector<1x8xf32> to vector<16x8xf32>
    %95 = arith.addf %91, %94 : vector<16x8xf32>
    %c1_82 = arith.constant 1 : index
    %c3_83 = arith.constant 3 : index
    %c0_84 = arith.constant 0 : index
    %c0_85 = arith.constant 0 : index
    %96 = vector.load %arg7[%c1_82, %c3_83, %c0_84, %c0_85] : memref<18x4x32x8xf32, #tpu.memory_space<vmem>>, vector<1x1x32x8xf32>
    %97 = vector.shape_cast %96 : vector<1x1x32x8xf32> to vector<32x8xf32>
    %cst_86 = arith.constant dense<0.000000e+00> : vector<16x8xf32>
    %98 = tpu.matmul %40, %97, %cst_86 {dimension_numbers = #tpu.dot_dimension_numbers<[1], [0], [0], [1], [0, 0, 1, 1], [], []>} : vector<16x32xf32>, vector<32x8xf32>, vector<16x8xf32> -> vector<16x8xf32>
    %c1_87 = arith.constant 1 : index
    %c3_88 = arith.constant 3 : index
    %c0_89 = arith.constant 0 : index
    %c0_90 = arith.constant 0 : index
    %99 = vector.load %arg8[%c1_87, %c3_88, %c0_89, %c0_90] : memref<18x4x1x8xf32, #tpu.memory_space<vmem>>, vector<1x1x1x8xf32>
    %100 = vector.shape_cast %99 : vector<1x1x1x8xf32> to vector<1x8xf32>
    %101 = vector.broadcast %100 : vector<1x8xf32> to vector<16x8xf32>
    %102 = arith.addf %98, %101 : vector<16x8xf32>
    %103 = vector.shape_cast %81 : vector<16x8xf32> to vector<1x16x8xf32>
    %104 = vector.shape_cast %88 : vector<16x8xf32> to vector<1x16x8xf32>
    %105 = vector.shape_cast %95 : vector<16x8xf32> to vector<1x16x8xf32>
    %106 = vector.shape_cast %102 : vector<16x8xf32> to vector<1x16x8xf32>
    %107 = tpu.concatenate %103, %104, %105, %106 in 0 : vector<1x16x8xf32>, vector<1x16x8xf32>, vector<1x16x8xf32>, vector<1x16x8xf32> -> vector<4x16x8xf32>
    %c2_91 = arith.constant 2 : index
    %c0_92 = arith.constant 0 : index
    %c0_93 = arith.constant 0 : index
    %c0_94 = arith.constant 0 : index
    %108 = vector.load %arg7[%c2_91, %c0_92, %c0_93, %c0_94] : memref<18x4x32x8xf32, #tpu.memory_space<vmem>>, vector<1x1x32x8xf32>
    %109 = vector.shape_cast %108 : vector<1x1x32x8xf32> to vector<32x8xf32>
    %cst_95 = arith.constant dense<0.000000e+00> : vector<16x8xf32>
    %110 = tpu.matmul %40, %109, %cst_95 {dimension_numbers = #tpu.dot_dimension_numbers<[1], [0], [0], [1], [0, 0, 1, 1], [], []>} : vector<16x32xf32>, vector<32x8xf32>, vector<16x8xf32> -> vector<16x8xf32>
    %c2_96 = arith.constant 2 : index
    %c0_97 = arith.constant 0 : index
    %c0_98 = arith.constant 0 : index
    %c0_99 = arith.constant 0 : index
    %111 = vector.load %arg8[%c2_96, %c0_97, %c0_98, %c0_99] : memref<18x4x1x8xf32, #tpu.memory_space<vmem>>, vector<1x1x1x8xf32>
    %112 = vector.shape_cast %111 : vector<1x1x1x8xf32> to vector<1x8xf32>
    %113 = vector.broadcast %112 : vector<1x8xf32> to vector<16x8xf32>
    %114 = arith.addf %110, %113 : vector<16x8xf32>
    %c2_100 = arith.constant 2 : index
    %c1_101 = arith.constant 1 : index
    %c0_102 = arith.constant 0 : index
    %c0_103 = arith.constant 0 : index
    %115 = vector.load %arg7[%c2_100, %c1_101, %c0_102, %c0_103] : memref<18x4x32x8xf32, #tpu.memory_space<vmem>>, vector<1x1x32x8xf32>
    %116 = vector.shape_cast %115 : vector<1x1x32x8xf32> to vector<32x8xf32>
    %cst_104 = arith.constant dense<0.000000e+00> : vector<16x8xf32>
    %117 = tpu.matmul %40, %116, %cst_104 {dimension_numbers = #tpu.dot_dimension_numbers<[1], [0], [0], [1], [0, 0, 1, 1], [], []>} : vector<16x32xf32>, vector<32x8xf32>, vector<16x8xf32> -> vector<16x8xf32>
    %c2_105 = arith.constant 2 : index
    %c1_106 = arith.constant 1 : index
    %c0_107 = arith.constant 0 : index
    %c0_108 = arith.constant 0 : index
    %118 = vector.load %arg8[%c2_105, %c1_106, %c0_107, %c0_108] : memref<18x4x1x8xf32, #tpu.memory_space<vmem>>, vector<1x1x1x8xf32>
    %119 = vector.shape_cast %118 : vector<1x1x1x8xf32> to vector<1x8xf32>
    %120 = vector.broadcast %119 : vector<1x8xf32> to vector<16x8xf32>
    %121 = arith.addf %117, %120 : vector<16x8xf32>
    %c2_109 = arith.constant 2 : index
    %c2_110 = arith.constant 2 : index
    %c0_111 = arith.constant 0 : index
    %c0_112 = arith.constant 0 : index
    %122 = vector.load %arg7[%c2_109, %c2_110, %c0_111, %c0_112] : memref<18x4x32x8xf32, #tpu.memory_space<vmem>>, vector<1x1x32x8xf32>
    %123 = vector.shape_cast %122 : vector<1x1x32x8xf32> to vector<32x8xf32>
    %cst_113 = arith.constant dense<0.000000e+00> : vector<16x8xf32>
    %124 = tpu.matmul %40, %123, %cst_113 {dimension_numbers = #tpu.dot_dimension_numbers<[1], [0], [0], [1], [0, 0, 1, 1], [], []>} : vector<16x32xf32>, vector<32x8xf32>, vector<16x8xf32> -> vector<16x8xf32>
    %c2_114 = arith.constant 2 : index
    %c2_115 = arith.constant 2 : index
    %c0_116 = arith.constant 0 : index
    %c0_117 = arith.constant 0 : index
    %125 = vector.load %arg8[%c2_114, %c2_115, %c0_116, %c0_117] : memref<18x4x1x8xf32, #tpu.memory_space<vmem>>, vector<1x1x1x8xf32>
    %126 = vector.shape_cast %125 : vector<1x1x1x8xf32> to vector<1x8xf32>
    %127 = vector.broadcast %126 : vector<1x8xf32> to vector<16x8xf32>
    %128 = arith.addf %124, %127 : vector<16x8xf32>
    %c2_118 = arith.constant 2 : index
    %c3_119 = arith.constant 3 : index
    %c0_120 = arith.constant 0 : index
    %c0_121 = arith.constant 0 : index
    %129 = vector.load %arg7[%c2_118, %c3_119, %c0_120, %c0_121] : memref<18x4x32x8xf32, #tpu.memory_space<vmem>>, vector<1x1x32x8xf32>
    %130 = vector.shape_cast %129 : vector<1x1x32x8xf32> to vector<32x8xf32>
    %cst_122 = arith.constant dense<0.000000e+00> : vector<16x8xf32>
    %131 = tpu.matmul %40, %130, %cst_122 {dimension_numbers = #tpu.dot_dimension_numbers<[1], [0], [0], [1], [0, 0, 1, 1], [], []>} : vector<16x32xf32>, vector<32x8xf32>, vector<16x8xf32> -> vector<16x8xf32>
    %c2_123 = arith.constant 2 : index
    %c3_124 = arith.constant 3 : index
    %c0_125 = arith.constant 0 : index
    %c0_126 = arith.constant 0 : index
    %132 = vector.load %arg8[%c2_123, %c3_124, %c0_125, %c0_126] : memref<18x4x1x8xf32, #tpu.memory_space<vmem>>, vector<1x1x1x8xf32>
    %133 = vector.shape_cast %132 : vector<1x1x1x8xf32> to vector<1x8xf32>
    %134 = vector.broadcast %133 : vector<1x8xf32> to vector<16x8xf32>
    %135 = arith.addf %131, %134 : vector<16x8xf32>
    %136 = vector.shape_cast %114 : vector<16x8xf32> to vector<1x16x8xf32>
    %137 = vector.shape_cast %121 : vector<16x8xf32> to vector<1x16x8xf32>
    %138 = vector.shape_cast %128 : vector<16x8xf32> to vector<1x16x8xf32>
    %139 = vector.shape_cast %135 : vector<16x8xf32> to vector<1x16x8xf32>
    %140 = tpu.concatenate %136, %137, %138, %139 in 0 : vector<1x16x8xf32>, vector<1x16x8xf32>, vector<1x16x8xf32>, vector<1x16x8xf32> -> vector<4x16x8xf32>
    "tpu.trace_start"() <{level = 10 : i32, message = "hqd,hkd->hqk"}> : () -> ()
    %cst_127 = arith.constant dense<0.000000e+00> : vector<4x16x16xf32>
    %141 = tpu.matmul %74, %107, %cst_127 {dimension_numbers = #tpu.dot_dimension_numbers<[2], [2], [1], [1], [0, 0, 0, 1, 1, 1], [0], [0]>} : vector<4x16x8xf32>, vector<4x16x8xf32>, vector<4x16x16xf32> -> vector<4x16x16xf32>
    "tpu.trace_stop"() : () -> ()
    %cst_128 = arith.constant 0.353553385 : f32
    %142 = vector.broadcast %cst_128 : f32 to vector<4x16x16xf32>
    %143 = arith.mulf %141, %142 : vector<4x16x16xf32>
    %144 = vector.shape_cast %3 : vector<16x16xf32> to vector<1x16x16xf32>
    %145 = vector.broadcast %144 : vector<1x16x16xf32> to vector<4x16x16xf32>
    %146 = arith.addf %143, %145 : vector<4x16x16xf32>
    %cst_129 = arith.constant dense<0xFF800000> : vector<4x16xf32>
    %147 = vector.multi_reduction <maximumf>, %146, %cst_129 [2] : vector<4x16x16xf32> to vector<4x16xf32>
    %148 = vector.shape_cast %147 : vector<4x16xf32> to vector<4x16x1xf32>
    %149 = vector.broadcast %148 : vector<4x16x1xf32> to vector<4x16x16xf32>
    %150 = arith.subf %146, %149 : vector<4x16x16xf32>
    %151 = math.exp %150 : vector<4x16x16xf32>
    %cst_130 = arith.constant dense<0.000000e+00> : vector<4x16xf32>
    %152 = vector.multi_reduction <add>, %151, %cst_130 [2] : vector<4x16x16xf32> to vector<4x16xf32>
    %153 = vector.shape_cast %152 : vector<4x16xf32> to vector<4x16x1xf32>
    %154 = vector.broadcast %153 : vector<4x16x1xf32> to vector<4x16x16xf32>
    %155 = arith.divf %151, %154 : vector<4x16x16xf32>
    "tpu.trace_start"() <{level = 10 : i32, message = "hqk,hkd->hqd"}> : () -> ()
    %cst_131 = arith.constant dense<0.000000e+00> : vector<4x16x8xf32>
    %156 = tpu.matmul %155, %140, %cst_131 {dimension_numbers = #tpu.dot_dimension_numbers<[2], [1], [1], [2], [0, 0, 0, 1, 1, 2], [0], [0]>} : vector<4x16x16xf32>, vector<4x16x8xf32>, vector<4x16x8xf32> -> vector<4x16x8xf32>
    "tpu.trace_stop"() : () -> ()
    %157 = vector.extract_strided_slice %156 {offsets = [0, 0, 0], sizes = [1, 16, 8], strides = [1, 1, 1]} : vector<4x16x8xf32> to vector<1x16x8xf32>
    %158 = vector.shape_cast %157 : vector<1x16x8xf32> to vector<16x8xf32>
    %c0_132 = arith.constant 0 : index
    %c0_133 = arith.constant 0 : index
    %c0_134 = arith.constant 0 : index
    %c0_135 = arith.constant 0 : index
    %159 = vector.load %arg9[%c0_132, %c0_133, %c0_134, %c0_135] : memref<6x4x8x32xf32, #tpu.memory_space<vmem>>, vector<1x1x8x32xf32>
    %160 = vector.shape_cast %159 : vector<1x1x8x32xf32> to vector<8x32xf32>
    %cst_136 = arith.constant dense<0.000000e+00> : vector<16x32xf32>
    %161 = tpu.matmul %158, %160, %cst_136 {dimension_numbers = #tpu.dot_dimension_numbers<[1], [0], [0], [1], [0, 0, 1, 1], [], []>} : vector<16x8xf32>, vector<8x32xf32>, vector<16x32xf32> -> vector<16x32xf32>
    %162 = vector.broadcast %41 : vector<1x32xf32> to vector<16x32xf32>
    %163 = arith.addf %162, %161 : vector<16x32xf32>
    %164 = vector.extract_strided_slice %156 {offsets = [1, 0, 0], sizes = [1, 16, 8], strides = [1, 1, 1]} : vector<4x16x8xf32> to vector<1x16x8xf32>
    %165 = vector.shape_cast %164 : vector<1x16x8xf32> to vector<16x8xf32>
    %c0_137 = arith.constant 0 : index
    %c1_138 = arith.constant 1 : index
    %c0_139 = arith.constant 0 : index
    %c0_140 = arith.constant 0 : index
    %166 = vector.load %arg9[%c0_137, %c1_138, %c0_139, %c0_140] : memref<6x4x8x32xf32, #tpu.memory_space<vmem>>, vector<1x1x8x32xf32>
    %167 = vector.shape_cast %166 : vector<1x1x8x32xf32> to vector<8x32xf32>
    %cst_141 = arith.constant dense<0.000000e+00> : vector<16x32xf32>
    %168 = tpu.matmul %165, %167, %cst_141 {dimension_numbers = #tpu.dot_dimension_numbers<[1], [0], [0], [1], [0, 0, 1, 1], [], []>} : vector<16x8xf32>, vector<8x32xf32>, vector<16x32xf32> -> vector<16x32xf32>
    %169 = arith.addf %163, %168 : vector<16x32xf32>
    %170 = vector.extract_strided_slice %156 {offsets = [2, 0, 0], sizes = [1, 16, 8], strides = [1, 1, 1]} : vector<4x16x8xf32> to vector<1x16x8xf32>
    %171 = vector.shape_cast %170 : vector<1x16x8xf32> to vector<16x8xf32>
    %c0_142 = arith.constant 0 : index
    %c2_143 = arith.constant 2 : index
    %c0_144 = arith.constant 0 : index
    %c0_145 = arith.constant 0 : index
    %172 = vector.load %arg9[%c0_142, %c2_143, %c0_144, %c0_145] : memref<6x4x8x32xf32, #tpu.memory_space<vmem>>, vector<1x1x8x32xf32>
    %173 = vector.shape_cast %172 : vector<1x1x8x32xf32> to vector<8x32xf32>
    %cst_146 = arith.constant dense<0.000000e+00> : vector<16x32xf32>
    %174 = tpu.matmul %171, %173, %cst_146 {dimension_numbers = #tpu.dot_dimension_numbers<[1], [0], [0], [1], [0, 0, 1, 1], [], []>} : vector<16x8xf32>, vector<8x32xf32>, vector<16x32xf32> -> vector<16x32xf32>
    %175 = arith.addf %169, %174 : vector<16x32xf32>
    %176 = vector.extract_strided_slice %156 {offsets = [3, 0, 0], sizes = [1, 16, 8], strides = [1, 1, 1]} : vector<4x16x8xf32> to vector<1x16x8xf32>
    %177 = vector.shape_cast %176 : vector<1x16x8xf32> to vector<16x8xf32>
    %c0_147 = arith.constant 0 : index
    %c3_148 = arith.constant 3 : index
    %c0_149 = arith.constant 0 : index
    %c0_150 = arith.constant 0 : index
    %178 = vector.load %arg9[%c0_147, %c3_148, %c0_149, %c0_150] : memref<6x4x8x32xf32, #tpu.memory_space<vmem>>, vector<1x1x8x32xf32>
    %179 = vector.shape_cast %178 : vector<1x1x8x32xf32> to vector<8x32xf32>
    %cst_151 = arith.constant dense<0.000000e+00> : vector<16x32xf32>
    %180 = tpu.matmul %177, %179, %cst_151 {dimension_numbers = #tpu.dot_dimension_numbers<[1], [0], [0], [1], [0, 0, 1, 1], [], []>} : vector<16x8xf32>, vector<8x32xf32>, vector<16x32xf32> -> vector<16x32xf32>
    %181 = arith.addf %175, %180 : vector<16x32xf32>
    %182 = arith.addf %18, %181 : vector<16x32xf32>
    %183 = vector.extract_strided_slice %0 {offsets = [2, 0], sizes = [1, 32], strides = [1, 1]} : vector<34x32xf32> to vector<1x32xf32>
    %184 = vector.extract_strided_slice %0 {offsets = [3, 0], sizes = [1, 32], strides = [1, 1]} : vector<34x32xf32> to vector<1x32xf32>
    %cst_152 = arith.constant dense<0.000000e+00> : vector<16xf32>
    %185 = vector.multi_reduction <add>, %182, %cst_152 [1] : vector<16x32xf32> to vector<16xf32>
    %186 = vector.shape_cast %185 : vector<16xf32> to vector<16x1xf32>
    %cst_153 = arith.constant 3.200000e+01 : f32
    %187 = vector.broadcast %cst_153 : f32 to vector<16x1xf32>
    %188 = arith.divf %186, %187 : vector<16x1xf32>
    %189 = vector.broadcast %188 : vector<16x1xf32> to vector<16x32xf32>
    %190 = arith.subf %182, %189 : vector<16x32xf32>
    %191 = arith.mulf %190, %190 : vector<16x32xf32>
    %cst_154 = arith.constant dense<0.000000e+00> : vector<16xf32>
    %192 = vector.multi_reduction <add>, %191, %cst_154 [1] : vector<16x32xf32> to vector<16xf32>
    %193 = vector.shape_cast %192 : vector<16xf32> to vector<16x1xf32>
    %cst_155 = arith.constant 0.0322580636 : f32
    %194 = vector.broadcast %cst_155 : f32 to vector<16x1xf32>
    %195 = arith.mulf %193, %194 : vector<16x1xf32>
    %196 = math.sqrt %195 : vector<16x1xf32>
    %197 = vector.broadcast %183 : vector<1x32xf32> to vector<16x32xf32>
    %198 = arith.mulf %197, %190 : vector<16x32xf32>
    %cst_156 = arith.constant 9.99999997E-7 : f32
    %199 = vector.broadcast %cst_156 : f32 to vector<16x1xf32>
    %200 = arith.addf %196, %199 : vector<16x1xf32>
    %201 = vector.broadcast %200 : vector<16x1xf32> to vector<16x32xf32>
    %202 = arith.divf %198, %201 : vector<16x32xf32>
    %203 = vector.broadcast %184 : vector<1x32xf32> to vector<16x32xf32>
    %204 = arith.addf %202, %203 : vector<16x32xf32>
    %205 = vector.extract_strided_slice %1 {offsets = [0, 0], sizes = [1, 64], strides = [1, 1]} : vector<4x64xf32> to vector<1x64xf32>
    %206 = vector.extract_strided_slice %0 {offsets = [5, 0], sizes = [1, 32], strides = [1, 1]} : vector<34x32xf32> to vector<1x32xf32>
    %c0_157 = arith.constant 0 : index
    %c0_158 = arith.constant 0 : index
    %c0_159 = arith.constant 0 : index
    %207 = vector.load %arg10[%c0_157, %c0_158, %c0_159] : memref<4x32x64xf32, #tpu.memory_space<vmem>>, vector<1x32x64xf32>
    %208 = vector.shape_cast %207 : vector<1x32x64xf32> to vector<32x64xf32>
    %cst_160 = arith.constant dense<0.000000e+00> : vector<16x64xf32>
    %209 = tpu.matmul %204, %208, %cst_160 {dimension_numbers = #tpu.dot_dimension_numbers<[1], [0], [0], [1], [0, 0, 1, 1], [], []>} : vector<16x32xf32>, vector<32x64xf32>, vector<16x64xf32> -> vector<16x64xf32>
    %210 = vector.broadcast %205 : vector<1x64xf32> to vector<16x64xf32>
    %211 = arith.addf %209, %210 : vector<16x64xf32>
    %cst_161 = arith.constant 0.000000e+00 : f32
    %212 = vector.broadcast %cst_161 : f32 to vector<16x64xf32>
    %213 = arith.maximumf %211, %212 : vector<16x64xf32>
    %c0_162 = arith.constant 0 : index
    %c0_163 = arith.constant 0 : index
    %c0_164 = arith.constant 0 : index
    %214 = vector.load %arg11[%c0_162, %c0_163, %c0_164] : memref<4x64x32xf32, #tpu.memory_space<vmem>>, vector<1x64x32xf32>
    %215 = vector.shape_cast %214 : vector<1x64x32xf32> to vector<64x32xf32>
    %cst_165 = arith.constant dense<0.000000e+00> : vector<16x32xf32>
    %216 = tpu.matmul %213, %215, %cst_165 {dimension_numbers = #tpu.dot_dimension_numbers<[1], [0], [0], [1], [0, 0, 1, 1], [], []>} : vector<16x64xf32>, vector<64x32xf32>, vector<16x32xf32> -> vector<16x32xf32>
    %217 = vector.broadcast %206 : vector<1x32xf32> to vector<16x32xf32>
    %218 = arith.addf %216, %217 : vector<16x32xf32>
    %219 = arith.addf %182, %218 : vector<16x32xf32>
    %220 = vector.extract_strided_slice %0 {offsets = [6, 0], sizes = [1, 32], strides = [1, 1]} : vector<34x32xf32> to vector<1x32xf32>
    %221 = vector.extract_strided_slice %0 {offsets = [7, 0], sizes = [1, 32], strides = [1, 1]} : vector<34x32xf32> to vector<1x32xf32>
    %cst_166 = arith.constant dense<0.000000e+00> : vector<16xf32>
    %222 = vector.multi_reduction <add>, %219, %cst_166 [1] : vector<16x32xf32> to vector<16xf32>
    %223 = vector.shape_cast %222 : vector<16xf32> to vector<16x1xf32>
    %cst_167 = arith.constant 3.200000e+01 : f32
    %224 = vector.broadcast %cst_167 : f32 to vector<16x1xf32>
    %225 = arith.divf %223, %224 : vector<16x1xf32>
    %226 = vector.broadcast %225 : vector<16x1xf32> to vector<16x32xf32>
    %227 = arith.subf %219, %226 : vector<16x32xf32>
    %228 = arith.mulf %227, %227 : vector<16x32xf32>
    %cst_168 = arith.constant dense<0.000000e+00> : vector<16xf32>
    %229 = vector.multi_reduction <add>, %228, %cst_168 [1] : vector<16x32xf32> to vector<16xf32>
    %230 = vector.shape_cast %229 : vector<16xf32> to vector<16x1xf32>
    %cst_169 = arith.constant 0.0322580636 : f32
    %231 = vector.broadcast %cst_169 : f32 to vector<16x1xf32>
    %232 = arith.mulf %230, %231 : vector<16x1xf32>
    %233 = math.sqrt %232 : vector<16x1xf32>
    %234 = vector.broadcast %220 : vector<1x32xf32> to vector<16x32xf32>
    %235 = arith.mulf %234, %227 : vector<16x32xf32>
    %cst_170 = arith.constant 9.99999997E-7 : f32
    %236 = vector.broadcast %cst_170 : f32 to vector<16x1xf32>
    %237 = arith.addf %233, %236 : vector<16x1xf32>
    %238 = vector.broadcast %237 : vector<16x1xf32> to vector<16x32xf32>
    %239 = arith.divf %235, %238 : vector<16x32xf32>
    %240 = vector.broadcast %221 : vector<1x32xf32> to vector<16x32xf32>
    %241 = arith.addf %239, %240 : vector<16x32xf32>
    %242 = vector.extract_strided_slice %0 {offsets = [10, 0], sizes = [1, 32], strides = [1, 1]} : vector<34x32xf32> to vector<1x32xf32>
    %c3_171 = arith.constant 3 : index
    %c0_172 = arith.constant 0 : index
    %c0_173 = arith.constant 0 : index
    %c0_174 = arith.constant 0 : index
    %243 = vector.load %arg7[%c3_171, %c0_172, %c0_173, %c0_174] : memref<18x4x32x8xf32, #tpu.memory_space<vmem>>, vector<1x1x32x8xf32>
    %244 = vector.shape_cast %243 : vector<1x1x32x8xf32> to vector<32x8xf32>
    %cst_175 = arith.constant dense<0.000000e+00> : vector<16x8xf32>
    %245 = tpu.matmul %241, %244, %cst_175 {dimension_numbers = #tpu.dot_dimension_numbers<[1], [0], [0], [1], [0, 0, 1, 1], [], []>} : vector<16x32xf32>, vector<32x8xf32>, vector<16x8xf32> -> vector<16x8xf32>
    %c3_176 = arith.constant 3 : index
    %c0_177 = arith.constant 0 : index
    %c0_178 = arith.constant 0 : index
    %c0_179 = arith.constant 0 : index
    %246 = vector.load %arg8[%c3_176, %c0_177, %c0_178, %c0_179] : memref<18x4x1x8xf32, #tpu.memory_space<vmem>>, vector<1x1x1x8xf32>
    %247 = vector.shape_cast %246 : vector<1x1x1x8xf32> to vector<1x8xf32>
    %248 = vector.broadcast %247 : vector<1x8xf32> to vector<16x8xf32>
    %249 = arith.addf %245, %248 : vector<16x8xf32>
    %c3_180 = arith.constant 3 : index
    %c1_181 = arith.constant 1 : index
    %c0_182 = arith.constant 0 : index
    %c0_183 = arith.constant 0 : index
    %250 = vector.load %arg7[%c3_180, %c1_181, %c0_182, %c0_183] : memref<18x4x32x8xf32, #tpu.memory_space<vmem>>, vector<1x1x32x8xf32>
    %251 = vector.shape_cast %250 : vector<1x1x32x8xf32> to vector<32x8xf32>
    %cst_184 = arith.constant dense<0.000000e+00> : vector<16x8xf32>
    %252 = tpu.matmul %241, %251, %cst_184 {dimension_numbers = #tpu.dot_dimension_numbers<[1], [0], [0], [1], [0, 0, 1, 1], [], []>} : vector<16x32xf32>, vector<32x8xf32>, vector<16x8xf32> -> vector<16x8xf32>
    %c3_185 = arith.constant 3 : index
    %c1_186 = arith.constant 1 : index
    %c0_187 = arith.constant 0 : index
    %c0_188 = arith.constant 0 : index
    %253 = vector.load %arg8[%c3_185, %c1_186, %c0_187, %c0_188] : memref<18x4x1x8xf32, #tpu.memory_space<vmem>>, vector<1x1x1x8xf32>
    %254 = vector.shape_cast %253 : vector<1x1x1x8xf32> to vector<1x8xf32>
    %255 = vector.broadcast %254 : vector<1x8xf32> to vector<16x8xf32>
    %256 = arith.addf %252, %255 : vector<16x8xf32>
    %c3_189 = arith.constant 3 : index
    %c2_190 = arith.constant 2 : index
    %c0_191 = arith.constant 0 : index
    %c0_192 = arith.constant 0 : index
    %257 = vector.load %arg7[%c3_189, %c2_190, %c0_191, %c0_192] : memref<18x4x32x8xf32, #tpu.memory_space<vmem>>, vector<1x1x32x8xf32>
    %258 = vector.shape_cast %257 : vector<1x1x32x8xf32> to vector<32x8xf32>
    %cst_193 = arith.constant dense<0.000000e+00> : vector<16x8xf32>
    %259 = tpu.matmul %241, %258, %cst_193 {dimension_numbers = #tpu.dot_dimension_numbers<[1], [0], [0], [1], [0, 0, 1, 1], [], []>} : vector<16x32xf32>, vector<32x8xf32>, vector<16x8xf32> -> vector<16x8xf32>
    %c3_194 = arith.constant 3 : index
    %c2_195 = arith.constant 2 : index
    %c0_196 = arith.constant 0 : index
    %c0_197 = arith.constant 0 : index
    %260 = vector.load %arg8[%c3_194, %c2_195, %c0_196, %c0_197] : memref<18x4x1x8xf32, #tpu.memory_space<vmem>>, vector<1x1x1x8xf32>
    %261 = vector.shape_cast %260 : vector<1x1x1x8xf32> to vector<1x8xf32>
    %262 = vector.broadcast %261 : vector<1x8xf32> to vector<16x8xf32>
    %263 = arith.addf %259, %262 : vector<16x8xf32>
    %c3_198 = arith.constant 3 : index
    %c3_199 = arith.constant 3 : index
    %c0_200 = arith.constant 0 : index
    %c0_201 = arith.constant 0 : index
    %264 = vector.load %arg7[%c3_198, %c3_199, %c0_200, %c0_201] : memref<18x4x32x8xf32, #tpu.memory_space<vmem>>, vector<1x1x32x8xf32>
    %265 = vector.shape_cast %264 : vector<1x1x32x8xf32> to vector<32x8xf32>
    %cst_202 = arith.constant dense<0.000000e+00> : vector<16x8xf32>
    %266 = tpu.matmul %241, %265, %cst_202 {dimension_numbers = #tpu.dot_dimension_numbers<[1], [0], [0], [1], [0, 0, 1, 1], [], []>} : vector<16x32xf32>, vector<32x8xf32>, vector<16x8xf32> -> vector<16x8xf32>
    %c3_203 = arith.constant 3 : index
    %c3_204 = arith.constant 3 : index
    %c0_205 = arith.constant 0 : index
    %c0_206 = arith.constant 0 : index
    %267 = vector.load %arg8[%c3_203, %c3_204, %c0_205, %c0_206] : memref<18x4x1x8xf32, #tpu.memory_space<vmem>>, vector<1x1x1x8xf32>
    %268 = vector.shape_cast %267 : vector<1x1x1x8xf32> to vector<1x8xf32>
    %269 = vector.broadcast %268 : vector<1x8xf32> to vector<16x8xf32>
    %270 = arith.addf %266, %269 : vector<16x8xf32>
    %271 = vector.shape_cast %249 : vector<16x8xf32> to vector<1x16x8xf32>
    %272 = vector.shape_cast %256 : vector<16x8xf32> to vector<1x16x8xf32>
    %273 = vector.shape_cast %263 : vector<16x8xf32> to vector<1x16x8xf32>
    %274 = vector.shape_cast %270 : vector<16x8xf32> to vector<1x16x8xf32>
    %275 = tpu.concatenate %271, %272, %273, %274 in 0 : vector<1x16x8xf32>, vector<1x16x8xf32>, vector<1x16x8xf32>, vector<1x16x8xf32> -> vector<4x16x8xf32>
    %c4 = arith.constant 4 : index
    %c0_207 = arith.constant 0 : index
    %c0_208 = arith.constant 0 : index
    %c0_209 = arith.constant 0 : index
    %276 = vector.load %arg7[%c4, %c0_207, %c0_208, %c0_209] : memref<18x4x32x8xf32, #tpu.memory_space<vmem>>, vector<1x1x32x8xf32>
    %277 = vector.shape_cast %276 : vector<1x1x32x8xf32> to vector<32x8xf32>
    %cst_210 = arith.constant dense<0.000000e+00> : vector<16x8xf32>
    %278 = tpu.matmul %241, %277, %cst_210 {dimension_numbers = #tpu.dot_dimension_numbers<[1], [0], [0], [1], [0, 0, 1, 1], [], []>} : vector<16x32xf32>, vector<32x8xf32>, vector<16x8xf32> -> vector<16x8xf32>
    %c4_211 = arith.constant 4 : index
    %c0_212 = arith.constant 0 : index
    %c0_213 = arith.constant 0 : index
    %c0_214 = arith.constant 0 : index
    %279 = vector.load %arg8[%c4_211, %c0_212, %c0_213, %c0_214] : memref<18x4x1x8xf32, #tpu.memory_space<vmem>>, vector<1x1x1x8xf32>
    %280 = vector.shape_cast %279 : vector<1x1x1x8xf32> to vector<1x8xf32>
    %281 = vector.broadcast %280 : vector<1x8xf32> to vector<16x8xf32>
    %282 = arith.addf %278, %281 : vector<16x8xf32>
    %c4_215 = arith.constant 4 : index
    %c1_216 = arith.constant 1 : index
    %c0_217 = arith.constant 0 : index
    %c0_218 = arith.constant 0 : index
    %283 = vector.load %arg7[%c4_215, %c1_216, %c0_217, %c0_218] : memref<18x4x32x8xf32, #tpu.memory_space<vmem>>, vector<1x1x32x8xf32>
    %284 = vector.shape_cast %283 : vector<1x1x32x8xf32> to vector<32x8xf32>
    %cst_219 = arith.constant dense<0.000000e+00> : vector<16x8xf32>
    %285 = tpu.matmul %241, %284, %cst_219 {dimension_numbers = #tpu.dot_dimension_numbers<[1], [0], [0], [1], [0, 0, 1, 1], [], []>} : vector<16x32xf32>, vector<32x8xf32>, vector<16x8xf32> -> vector<16x8xf32>
    %c4_220 = arith.constant 4 : index
    %c1_221 = arith.constant 1 : index
    %c0_222 = arith.constant 0 : index
    %c0_223 = arith.constant 0 : index
    %286 = vector.load %arg8[%c4_220, %c1_221, %c0_222, %c0_223] : memref<18x4x1x8xf32, #tpu.memory_space<vmem>>, vector<1x1x1x8xf32>
    %287 = vector.shape_cast %286 : vector<1x1x1x8xf32> to vector<1x8xf32>
    %288 = vector.broadcast %287 : vector<1x8xf32> to vector<16x8xf32>
    %289 = arith.addf %285, %288 : vector<16x8xf32>
    %c4_224 = arith.constant 4 : index
    %c2_225 = arith.constant 2 : index
    %c0_226 = arith.constant 0 : index
    %c0_227 = arith.constant 0 : index
    %290 = vector.load %arg7[%c4_224, %c2_225, %c0_226, %c0_227] : memref<18x4x32x8xf32, #tpu.memory_space<vmem>>, vector<1x1x32x8xf32>
    %291 = vector.shape_cast %290 : vector<1x1x32x8xf32> to vector<32x8xf32>
    %cst_228 = arith.constant dense<0.000000e+00> : vector<16x8xf32>
    %292 = tpu.matmul %241, %291, %cst_228 {dimension_numbers = #tpu.dot_dimension_numbers<[1], [0], [0], [1], [0, 0, 1, 1], [], []>} : vector<16x32xf32>, vector<32x8xf32>, vector<16x8xf32> -> vector<16x8xf32>
    %c4_229 = arith.constant 4 : index
    %c2_230 = arith.constant 2 : index
    %c0_231 = arith.constant 0 : index
    %c0_232 = arith.constant 0 : index
    %293 = vector.load %arg8[%c4_229, %c2_230, %c0_231, %c0_232] : memref<18x4x1x8xf32, #tpu.memory_space<vmem>>, vector<1x1x1x8xf32>
    %294 = vector.shape_cast %293 : vector<1x1x1x8xf32> to vector<1x8xf32>
    %295 = vector.broadcast %294 : vector<1x8xf32> to vector<16x8xf32>
    %296 = arith.addf %292, %295 : vector<16x8xf32>
    %c4_233 = arith.constant 4 : index
    %c3_234 = arith.constant 3 : index
    %c0_235 = arith.constant 0 : index
    %c0_236 = arith.constant 0 : index
    %297 = vector.load %arg7[%c4_233, %c3_234, %c0_235, %c0_236] : memref<18x4x32x8xf32, #tpu.memory_space<vmem>>, vector<1x1x32x8xf32>
    %298 = vector.shape_cast %297 : vector<1x1x32x8xf32> to vector<32x8xf32>
    %cst_237 = arith.constant dense<0.000000e+00> : vector<16x8xf32>
    %299 = tpu.matmul %241, %298, %cst_237 {dimension_numbers = #tpu.dot_dimension_numbers<[1], [0], [0], [1], [0, 0, 1, 1], [], []>} : vector<16x32xf32>, vector<32x8xf32>, vector<16x8xf32> -> vector<16x8xf32>
    %c4_238 = arith.constant 4 : index
    %c3_239 = arith.constant 3 : index
    %c0_240 = arith.constant 0 : index
    %c0_241 = arith.constant 0 : index
    %300 = vector.load %arg8[%c4_238, %c3_239, %c0_240, %c0_241] : memref<18x4x1x8xf32, #tpu.memory_space<vmem>>, vector<1x1x1x8xf32>
    %301 = vector.shape_cast %300 : vector<1x1x1x8xf32> to vector<1x8xf32>
    %302 = vector.broadcast %301 : vector<1x8xf32> to vector<16x8xf32>
    %303 = arith.addf %299, %302 : vector<16x8xf32>
    %304 = vector.shape_cast %282 : vector<16x8xf32> to vector<1x16x8xf32>
    %305 = vector.shape_cast %289 : vector<16x8xf32> to vector<1x16x8xf32>
    %306 = vector.shape_cast %296 : vector<16x8xf32> to vector<1x16x8xf32>
    %307 = vector.shape_cast %303 : vector<16x8xf32> to vector<1x16x8xf32>
    %308 = tpu.concatenate %304, %305, %306, %307 in 0 : vector<1x16x8xf32>, vector<1x16x8xf32>, vector<1x16x8xf32>, vector<1x16x8xf32> -> vector<4x16x8xf32>
    %c5 = arith.constant 5 : index
    %c0_242 = arith.constant 0 : index
    %c0_243 = arith.constant 0 : index
    %c0_244 = arith.constant 0 : index
    %309 = vector.load %arg7[%c5, %c0_242, %c0_243, %c0_244] : memref<18x4x32x8xf32, #tpu.memory_space<vmem>>, vector<1x1x32x8xf32>
    %310 = vector.shape_cast %309 : vector<1x1x32x8xf32> to vector<32x8xf32>
    %cst_245 = arith.constant dense<0.000000e+00> : vector<16x8xf32>
    %311 = tpu.matmul %241, %310, %cst_245 {dimension_numbers = #tpu.dot_dimension_numbers<[1], [0], [0], [1], [0, 0, 1, 1], [], []>} : vector<16x32xf32>, vector<32x8xf32>, vector<16x8xf32> -> vector<16x8xf32>
    %c5_246 = arith.constant 5 : index
    %c0_247 = arith.constant 0 : index
    %c0_248 = arith.constant 0 : index
    %c0_249 = arith.constant 0 : index
    %312 = vector.load %arg8[%c5_246, %c0_247, %c0_248, %c0_249] : memref<18x4x1x8xf32, #tpu.memory_space<vmem>>, vector<1x1x1x8xf32>
    %313 = vector.shape_cast %312 : vector<1x1x1x8xf32> to vector<1x8xf32>
    %314 = vector.broadcast %313 : vector<1x8xf32> to vector<16x8xf32>
    %315 = arith.addf %311, %314 : vector<16x8xf32>
    %c5_250 = arith.constant 5 : index
    %c1_251 = arith.constant 1 : index
    %c0_252 = arith.constant 0 : index
    %c0_253 = arith.constant 0 : index
    %316 = vector.load %arg7[%c5_250, %c1_251, %c0_252, %c0_253] : memref<18x4x32x8xf32, #tpu.memory_space<vmem>>, vector<1x1x32x8xf32>
    %317 = vector.shape_cast %316 : vector<1x1x32x8xf32> to vector<32x8xf32>
    %cst_254 = arith.constant dense<0.000000e+00> : vector<16x8xf32>
    %318 = tpu.matmul %241, %317, %cst_254 {dimension_numbers = #tpu.dot_dimension_numbers<[1], [0], [0], [1], [0, 0, 1, 1], [], []>} : vector<16x32xf32>, vector<32x8xf32>, vector<16x8xf32> -> vector<16x8xf32>
    %c5_255 = arith.constant 5 : index
    %c1_256 = arith.constant 1 : index
    %c0_257 = arith.constant 0 : index
    %c0_258 = arith.constant 0 : index
    %319 = vector.load %arg8[%c5_255, %c1_256, %c0_257, %c0_258] : memref<18x4x1x8xf32, #tpu.memory_space<vmem>>, vector<1x1x1x8xf32>
    %320 = vector.shape_cast %319 : vector<1x1x1x8xf32> to vector<1x8xf32>
    %321 = vector.broadcast %320 : vector<1x8xf32> to vector<16x8xf32>
    %322 = arith.addf %318, %321 : vector<16x8xf32>
    %c5_259 = arith.constant 5 : index
    %c2_260 = arith.constant 2 : index
    %c0_261 = arith.constant 0 : index
    %c0_262 = arith.constant 0 : index
    %323 = vector.load %arg7[%c5_259, %c2_260, %c0_261, %c0_262] : memref<18x4x32x8xf32, #tpu.memory_space<vmem>>, vector<1x1x32x8xf32>
    %324 = vector.shape_cast %323 : vector<1x1x32x8xf32> to vector<32x8xf32>
    %cst_263 = arith.constant dense<0.000000e+00> : vector<16x8xf32>
    %325 = tpu.matmul %241, %324, %cst_263 {dimension_numbers = #tpu.dot_dimension_numbers<[1], [0], [0], [1], [0, 0, 1, 1], [], []>} : vector<16x32xf32>, vector<32x8xf32>, vector<16x8xf32> -> vector<16x8xf32>
    %c5_264 = arith.constant 5 : index
    %c2_265 = arith.constant 2 : index
    %c0_266 = arith.constant 0 : index
    %c0_267 = arith.constant 0 : index
    %326 = vector.load %arg8[%c5_264, %c2_265, %c0_266, %c0_267] : memref<18x4x1x8xf32, #tpu.memory_space<vmem>>, vector<1x1x1x8xf32>
    %327 = vector.shape_cast %326 : vector<1x1x1x8xf32> to vector<1x8xf32>
    %328 = vector.broadcast %327 : vector<1x8xf32> to vector<16x8xf32>
    %329 = arith.addf %325, %328 : vector<16x8xf32>
    %c5_268 = arith.constant 5 : index
    %c3_269 = arith.constant 3 : index
    %c0_270 = arith.constant 0 : index
    %c0_271 = arith.constant 0 : index
    %330 = vector.load %arg7[%c5_268, %c3_269, %c0_270, %c0_271] : memref<18x4x32x8xf32, #tpu.memory_space<vmem>>, vector<1x1x32x8xf32>
    %331 = vector.shape_cast %330 : vector<1x1x32x8xf32> to vector<32x8xf32>
    %cst_272 = arith.constant dense<0.000000e+00> : vector<16x8xf32>
    %332 = tpu.matmul %241, %331, %cst_272 {dimension_numbers = #tpu.dot_dimension_numbers<[1], [0], [0], [1], [0, 0, 1, 1], [], []>} : vector<16x32xf32>, vector<32x8xf32>, vector<16x8xf32> -> vector<16x8xf32>
    %c5_273 = arith.constant 5 : index
    %c3_274 = arith.constant 3 : index
    %c0_275 = arith.constant 0 : index
    %c0_276 = arith.constant 0 : index
    %333 = vector.load %arg8[%c5_273, %c3_274, %c0_275, %c0_276] : memref<18x4x1x8xf32, #tpu.memory_space<vmem>>, vector<1x1x1x8xf32>
    %334 = vector.shape_cast %333 : vector<1x1x1x8xf32> to vector<1x8xf32>
    %335 = vector.broadcast %334 : vector<1x8xf32> to vector<16x8xf32>
    %336 = arith.addf %332, %335 : vector<16x8xf32>
    %337 = vector.shape_cast %315 : vector<16x8xf32> to vector<1x16x8xf32>
    %338 = vector.shape_cast %322 : vector<16x8xf32> to vector<1x16x8xf32>
    %339 = vector.shape_cast %329 : vector<16x8xf32> to vector<1x16x8xf32>
    %340 = vector.shape_cast %336 : vector<16x8xf32> to vector<1x16x8xf32>
    %341 = tpu.concatenate %337, %338, %339, %340 in 0 : vector<1x16x8xf32>, vector<1x16x8xf32>, vector<1x16x8xf32>, vector<1x16x8xf32> -> vector<4x16x8xf32>
    "tpu.trace_start"() <{level = 10 : i32, message = "hqd,hkd->hqk"}> : () -> ()
    %cst_277 = arith.constant dense<0.000000e+00> : vector<4x16x16xf32>
    %342 = tpu.matmul %275, %308, %cst_277 {dimension_numbers = #tpu.dot_dimension_numbers<[2], [2], [1], [1], [0, 0, 0, 1, 1, 1], [0], [0]>} : vector<4x16x8xf32>, vector<4x16x8xf32>, vector<4x16x16xf32> -> vector<4x16x16xf32>
    "tpu.trace_stop"() : () -> ()
    %cst_278 = arith.constant 0.353553385 : f32
    %343 = vector.broadcast %cst_278 : f32 to vector<4x16x16xf32>
    %344 = arith.mulf %342, %343 : vector<4x16x16xf32>
    %345 = vector.shape_cast %3 : vector<16x16xf32> to vector<1x16x16xf32>
    %346 = vector.broadcast %345 : vector<1x16x16xf32> to vector<4x16x16xf32>
    %347 = arith.addf %344, %346 : vector<4x16x16xf32>
    %cst_279 = arith.constant dense<0xFF800000> : vector<4x16xf32>
    %348 = vector.multi_reduction <maximumf>, %347, %cst_279 [2] : vector<4x16x16xf32> to vector<4x16xf32>
    %349 = vector.shape_cast %348 : vector<4x16xf32> to vector<4x16x1xf32>
    %350 = vector.broadcast %349 : vector<4x16x1xf32> to vector<4x16x16xf32>
    %351 = arith.subf %347, %350 : vector<4x16x16xf32>
    %352 = math.exp %351 : vector<4x16x16xf32>
    %cst_280 = arith.constant dense<0.000000e+00> : vector<4x16xf32>
    %353 = vector.multi_reduction <add>, %352, %cst_280 [2] : vector<4x16x16xf32> to vector<4x16xf32>
    %354 = vector.shape_cast %353 : vector<4x16xf32> to vector<4x16x1xf32>
    %355 = vector.broadcast %354 : vector<4x16x1xf32> to vector<4x16x16xf32>
    %356 = arith.divf %352, %355 : vector<4x16x16xf32>
    "tpu.trace_start"() <{level = 10 : i32, message = "hqk,hkd->hqd"}> : () -> ()
    %cst_281 = arith.constant dense<0.000000e+00> : vector<4x16x8xf32>
    %357 = tpu.matmul %356, %341, %cst_281 {dimension_numbers = #tpu.dot_dimension_numbers<[2], [1], [1], [2], [0, 0, 0, 1, 1, 2], [0], [0]>} : vector<4x16x16xf32>, vector<4x16x8xf32>, vector<4x16x8xf32> -> vector<4x16x8xf32>
    "tpu.trace_stop"() : () -> ()
    %358 = vector.extract_strided_slice %357 {offsets = [0, 0, 0], sizes = [1, 16, 8], strides = [1, 1, 1]} : vector<4x16x8xf32> to vector<1x16x8xf32>
    %359 = vector.shape_cast %358 : vector<1x16x8xf32> to vector<16x8xf32>
    %c1_282 = arith.constant 1 : index
    %c0_283 = arith.constant 0 : index
    %c0_284 = arith.constant 0 : index
    %c0_285 = arith.constant 0 : index
    %360 = vector.load %arg9[%c1_282, %c0_283, %c0_284, %c0_285] : memref<6x4x8x32xf32, #tpu.memory_space<vmem>>, vector<1x1x8x32xf32>
    %361 = vector.shape_cast %360 : vector<1x1x8x32xf32> to vector<8x32xf32>
    %cst_286 = arith.constant dense<0.000000e+00> : vector<16x32xf32>
    %362 = tpu.matmul %359, %361, %cst_286 {dimension_numbers = #tpu.dot_dimension_numbers<[1], [0], [0], [1], [0, 0, 1, 1], [], []>} : vector<16x8xf32>, vector<8x32xf32>, vector<16x32xf32> -> vector<16x32xf32>
    %363 = vector.broadcast %242 : vector<1x32xf32> to vector<16x32xf32>
    %364 = arith.addf %363, %362 : vector<16x32xf32>
    %365 = vector.extract_strided_slice %357 {offsets = [1, 0, 0], sizes = [1, 16, 8], strides = [1, 1, 1]} : vector<4x16x8xf32> to vector<1x16x8xf32>
    %366 = vector.shape_cast %365 : vector<1x16x8xf32> to vector<16x8xf32>
    %c1_287 = arith.constant 1 : index
    %c1_288 = arith.constant 1 : index
    %c0_289 = arith.constant 0 : index
    %c0_290 = arith.constant 0 : index
    %367 = vector.load %arg9[%c1_287, %c1_288, %c0_289, %c0_290] : memref<6x4x8x32xf32, #tpu.memory_space<vmem>>, vector<1x1x8x32xf32>
    %368 = vector.shape_cast %367 : vector<1x1x8x32xf32> to vector<8x32xf32>
    %cst_291 = arith.constant dense<0.000000e+00> : vector<16x32xf32>
    %369 = tpu.matmul %366, %368, %cst_291 {dimension_numbers = #tpu.dot_dimension_numbers<[1], [0], [0], [1], [0, 0, 1, 1], [], []>} : vector<16x8xf32>, vector<8x32xf32>, vector<16x32xf32> -> vector<16x32xf32>
    %370 = arith.addf %364, %369 : vector<16x32xf32>
    %371 = vector.extract_strided_slice %357 {offsets = [2, 0, 0], sizes = [1, 16, 8], strides = [1, 1, 1]} : vector<4x16x8xf32> to vector<1x16x8xf32>
    %372 = vector.shape_cast %371 : vector<1x16x8xf32> to vector<16x8xf32>
    %c1_292 = arith.constant 1 : index
    %c2_293 = arith.constant 2 : index
    %c0_294 = arith.constant 0 : index
    %c0_295 = arith.constant 0 : index
    %373 = vector.load %arg9[%c1_292, %c2_293, %c0_294, %c0_295] : memref<6x4x8x32xf32, #tpu.memory_space<vmem>>, vector<1x1x8x32xf32>
    %374 = vector.shape_cast %373 : vector<1x1x8x32xf32> to vector<8x32xf32>
    %cst_296 = arith.constant dense<0.000000e+00> : vector<16x32xf32>
    %375 = tpu.matmul %372, %374, %cst_296 {dimension_numbers = #tpu.dot_dimension_numbers<[1], [0], [0], [1], [0, 0, 1, 1], [], []>} : vector<16x8xf32>, vector<8x32xf32>, vector<16x32xf32> -> vector<16x32xf32>
    %376 = arith.addf %370, %375 : vector<16x32xf32>
    %377 = vector.extract_strided_slice %357 {offsets = [3, 0, 0], sizes = [1, 16, 8], strides = [1, 1, 1]} : vector<4x16x8xf32> to vector<1x16x8xf32>
    %378 = vector.shape_cast %377 : vector<1x16x8xf32> to vector<16x8xf32>
    %c1_297 = arith.constant 1 : index
    %c3_298 = arith.constant 3 : index
    %c0_299 = arith.constant 0 : index
    %c0_300 = arith.constant 0 : index
    %379 = vector.load %arg9[%c1_297, %c3_298, %c0_299, %c0_300] : memref<6x4x8x32xf32, #tpu.memory_space<vmem>>, vector<1x1x8x32xf32>
    %380 = vector.shape_cast %379 : vector<1x1x8x32xf32> to vector<8x32xf32>
    %cst_301 = arith.constant dense<0.000000e+00> : vector<16x32xf32>
    %381 = tpu.matmul %378, %380, %cst_301 {dimension_numbers = #tpu.dot_dimension_numbers<[1], [0], [0], [1], [0, 0, 1, 1], [], []>} : vector<16x8xf32>, vector<8x32xf32>, vector<16x32xf32> -> vector<16x32xf32>
    %382 = arith.addf %376, %381 : vector<16x32xf32>
    %383 = arith.addf %219, %382 : vector<16x32xf32>
    %384 = vector.extract_strided_slice %0 {offsets = [8, 0], sizes = [1, 32], strides = [1, 1]} : vector<34x32xf32> to vector<1x32xf32>
    %385 = vector.extract_strided_slice %0 {offsets = [9, 0], sizes = [1, 32], strides = [1, 1]} : vector<34x32xf32> to vector<1x32xf32>
    %cst_302 = arith.constant dense<0.000000e+00> : vector<16xf32>
    %386 = vector.multi_reduction <add>, %383, %cst_302 [1] : vector<16x32xf32> to vector<16xf32>
    %387 = vector.shape_cast %386 : vector<16xf32> to vector<16x1xf32>
    %cst_303 = arith.constant 3.200000e+01 : f32
    %388 = vector.broadcast %cst_303 : f32 to vector<16x1xf32>
    %389 = arith.divf %387, %388 : vector<16x1xf32>
    %390 = vector.broadcast %389 : vector<16x1xf32> to vector<16x32xf32>
    %391 = arith.subf %383, %390 : vector<16x32xf32>
    %392 = arith.mulf %391, %391 : vector<16x32xf32>
    %cst_304 = arith.constant dense<0.000000e+00> : vector<16xf32>
    %393 = vector.multi_reduction <add>, %392, %cst_304 [1] : vector<16x32xf32> to vector<16xf32>
    %394 = vector.shape_cast %393 : vector<16xf32> to vector<16x1xf32>
    %cst_305 = arith.constant 0.0322580636 : f32
    %395 = vector.broadcast %cst_305 : f32 to vector<16x1xf32>
    %396 = arith.mulf %394, %395 : vector<16x1xf32>
    %397 = math.sqrt %396 : vector<16x1xf32>
    %398 = vector.broadcast %384 : vector<1x32xf32> to vector<16x32xf32>
    %399 = arith.mulf %398, %391 : vector<16x32xf32>
    %cst_306 = arith.constant 9.99999997E-7 : f32
    %400 = vector.broadcast %cst_306 : f32 to vector<16x1xf32>
    %401 = arith.addf %397, %400 : vector<16x1xf32>
    %402 = vector.broadcast %401 : vector<16x1xf32> to vector<16x32xf32>
    %403 = arith.divf %399, %402 : vector<16x32xf32>
    %404 = vector.broadcast %385 : vector<1x32xf32> to vector<16x32xf32>
    %405 = arith.addf %403, %404 : vector<16x32xf32>
    %406 = vector.extract_strided_slice %1 {offsets = [1, 0], sizes = [1, 64], strides = [1, 1]} : vector<4x64xf32> to vector<1x64xf32>
    %407 = vector.extract_strided_slice %0 {offsets = [11, 0], sizes = [1, 32], strides = [1, 1]} : vector<34x32xf32> to vector<1x32xf32>
    %c1_307 = arith.constant 1 : index
    %c0_308 = arith.constant 0 : index
    %c0_309 = arith.constant 0 : index
    %408 = vector.load %arg10[%c1_307, %c0_308, %c0_309] : memref<4x32x64xf32, #tpu.memory_space<vmem>>, vector<1x32x64xf32>
    %409 = vector.shape_cast %408 : vector<1x32x64xf32> to vector<32x64xf32>
    %cst_310 = arith.constant dense<0.000000e+00> : vector<16x64xf32>
    %410 = tpu.matmul %405, %409, %cst_310 {dimension_numbers = #tpu.dot_dimension_numbers<[1], [0], [0], [1], [0, 0, 1, 1], [], []>} : vector<16x32xf32>, vector<32x64xf32>, vector<16x64xf32> -> vector<16x64xf32>
    %411 = vector.broadcast %406 : vector<1x64xf32> to vector<16x64xf32>
    %412 = arith.addf %410, %411 : vector<16x64xf32>
    %cst_311 = arith.constant 0.000000e+00 : f32
    %413 = vector.broadcast %cst_311 : f32 to vector<16x64xf32>
    %414 = arith.maximumf %412, %413 : vector<16x64xf32>
    %c1_312 = arith.constant 1 : index
    %c0_313 = arith.constant 0 : index
    %c0_314 = arith.constant 0 : index
    %415 = vector.load %arg11[%c1_312, %c0_313, %c0_314] : memref<4x64x32xf32, #tpu.memory_space<vmem>>, vector<1x64x32xf32>
    %416 = vector.shape_cast %415 : vector<1x64x32xf32> to vector<64x32xf32>
    %cst_315 = arith.constant dense<0.000000e+00> : vector<16x32xf32>
    %417 = tpu.matmul %414, %416, %cst_315 {dimension_numbers = #tpu.dot_dimension_numbers<[1], [0], [0], [1], [0, 0, 1, 1], [], []>} : vector<16x64xf32>, vector<64x32xf32>, vector<16x32xf32> -> vector<16x32xf32>
    %418 = vector.broadcast %407 : vector<1x32xf32> to vector<16x32xf32>
    %419 = arith.addf %417, %418 : vector<16x32xf32>
    %420 = arith.addf %383, %419 : vector<16x32xf32>
    %421 = vector.extract_strided_slice %0 {offsets = [30, 0], sizes = [1, 32], strides = [1, 1]} : vector<34x32xf32> to vector<1x32xf32>
    %422 = vector.extract_strided_slice %0 {offsets = [31, 0], sizes = [1, 32], strides = [1, 1]} : vector<34x32xf32> to vector<1x32xf32>
    %cst_316 = arith.constant dense<0.000000e+00> : vector<16xf32>
    %423 = vector.multi_reduction <add>, %420, %cst_316 [1] : vector<16x32xf32> to vector<16xf32>
    %424 = vector.shape_cast %423 : vector<16xf32> to vector<16x1xf32>
    %cst_317 = arith.constant 3.200000e+01 : f32
    %425 = vector.broadcast %cst_317 : f32 to vector<16x1xf32>
    %426 = arith.divf %424, %425 : vector<16x1xf32>
    %427 = vector.broadcast %426 : vector<16x1xf32> to vector<16x32xf32>
    %428 = arith.subf %420, %427 : vector<16x32xf32>
    %429 = arith.mulf %428, %428 : vector<16x32xf32>
    %cst_318 = arith.constant dense<0.000000e+00> : vector<16xf32>
    %430 = vector.multi_reduction <add>, %429, %cst_318 [1] : vector<16x32xf32> to vector<16xf32>
    %431 = vector.shape_cast %430 : vector<16xf32> to vector<16x1xf32>
    %cst_319 = arith.constant 0.0322580636 : f32
    %432 = vector.broadcast %cst_319 : f32 to vector<16x1xf32>
    %433 = arith.mulf %431, %432 : vector<16x1xf32>
    %434 = math.sqrt %433 : vector<16x1xf32>
    %435 = vector.broadcast %421 : vector<1x32xf32> to vector<16x32xf32>
    %436 = arith.mulf %435, %428 : vector<16x32xf32>
    %cst_320 = arith.constant 9.99999997E-7 : f32
    %437 = vector.broadcast %cst_320 : f32 to vector<16x1xf32>
    %438 = arith.addf %434, %437 : vector<16x1xf32>
    %439 = vector.broadcast %438 : vector<16x1xf32> to vector<16x32xf32>
    %440 = arith.divf %436, %439 : vector<16x32xf32>
    %441 = vector.broadcast %422 : vector<1x32xf32> to vector<16x32xf32>
    %442 = arith.addf %440, %441 : vector<16x32xf32>
    %c0_321 = arith.constant 0 : index
    %c0_322 = arith.constant 0 : index
    %443 = vector.load %arg1[%c0_321, %c0_322] : memref<16x1xi32, #tpu.memory_space<vmem>>, vector<16x1xi32>
    %c1_323 = arith.constant 1 : index
    %c0_324 = arith.constant 0 : index
    %c0_325 = arith.constant 0 : index
    %444 = vector.load %arg5[%c1_323, %c0_324, %c0_325] : memref<2x16x32xf32, #tpu.memory_space<vmem>>, vector<1x16x32xf32>
    %445 = vector.shape_cast %444 : vector<1x16x32xf32> to vector<16x32xf32>
    %446 = tpu.iota {dimensions = array<i32: 1>} : vector<16x16xi32>
    %447 = vector.broadcast %443 : vector<16x1xi32> to vector<16x16xi32>
    %448 = arith.cmpi eq, %447, %446 : vector<16x16xi32>
    %449 = arith.extui %448 : vector<16x16xi1> to vector<16x16xi32>
    %450 = arith.sitofp %449 : vector<16x16xi32> to vector<16x16xf32>
    %cst_326 = arith.constant dense<0.000000e+00> : vector<16x32xf32>
    %451 = tpu.matmul %450, %445, %cst_326 {dimension_numbers = #tpu.dot_dimension_numbers<[1], [0], [0], [1], [0, 0, 1, 1], [], []>} : vector<16x16xf32>, vector<16x32xf32>, vector<16x32xf32> -> vector<16x32xf32>
    %cst_327 = arith.constant 5.65685415 : f32
    %452 = vector.broadcast %cst_327 : f32 to vector<16x32xf32>
    %453 = arith.mulf %451, %452 : vector<16x32xf32>
    %454 = tpu.concatenate %2, %2 in 0 : vector<8x32xf32>, vector<8x32xf32> -> vector<16x32xf32>
    %455 = arith.addf %453, %454 : vector<16x32xf32>
    %456 = vector.extract_strided_slice %0 {offsets = [12, 0], sizes = [1, 32], strides = [1, 1]} : vector<34x32xf32> to vector<1x32xf32>
    %457 = vector.extract_strided_slice %0 {offsets = [13, 0], sizes = [1, 32], strides = [1, 1]} : vector<34x32xf32> to vector<1x32xf32>
    %cst_328 = arith.constant dense<0.000000e+00> : vector<16xf32>
    %458 = vector.multi_reduction <add>, %455, %cst_328 [1] : vector<16x32xf32> to vector<16xf32>
    %459 = vector.shape_cast %458 : vector<16xf32> to vector<16x1xf32>
    %cst_329 = arith.constant 3.200000e+01 : f32
    %460 = vector.broadcast %cst_329 : f32 to vector<16x1xf32>
    %461 = arith.divf %459, %460 : vector<16x1xf32>
    %462 = vector.broadcast %461 : vector<16x1xf32> to vector<16x32xf32>
    %463 = arith.subf %455, %462 : vector<16x32xf32>
    %464 = arith.mulf %463, %463 : vector<16x32xf32>
    %cst_330 = arith.constant dense<0.000000e+00> : vector<16xf32>
    %465 = vector.multi_reduction <add>, %464, %cst_330 [1] : vector<16x32xf32> to vector<16xf32>
    %466 = vector.shape_cast %465 : vector<16xf32> to vector<16x1xf32>
    %cst_331 = arith.constant 0.0322580636 : f32
    %467 = vector.broadcast %cst_331 : f32 to vector<16x1xf32>
    %468 = arith.mulf %466, %467 : vector<16x1xf32>
    %469 = math.sqrt %468 : vector<16x1xf32>
    %470 = vector.broadcast %456 : vector<1x32xf32> to vector<16x32xf32>
    %471 = arith.mulf %470, %463 : vector<16x32xf32>
    %cst_332 = arith.constant 9.99999997E-7 : f32
    %472 = vector.broadcast %cst_332 : f32 to vector<16x1xf32>
    %473 = arith.addf %469, %472 : vector<16x1xf32>
    %474 = vector.broadcast %473 : vector<16x1xf32> to vector<16x32xf32>
    %475 = arith.divf %471, %474 : vector<16x32xf32>
    %476 = vector.broadcast %457 : vector<1x32xf32> to vector<16x32xf32>
    %477 = arith.addf %475, %476 : vector<16x32xf32>
    %478 = vector.extract_strided_slice %0 {offsets = [18, 0], sizes = [1, 32], strides = [1, 1]} : vector<34x32xf32> to vector<1x32xf32>
    %c6 = arith.constant 6 : index
    %c0_333 = arith.constant 0 : index
    %c0_334 = arith.constant 0 : index
    %c0_335 = arith.constant 0 : index
    %479 = vector.load %arg7[%c6, %c0_333, %c0_334, %c0_335] : memref<18x4x32x8xf32, #tpu.memory_space<vmem>>, vector<1x1x32x8xf32>
    %480 = vector.shape_cast %479 : vector<1x1x32x8xf32> to vector<32x8xf32>
    %cst_336 = arith.constant dense<0.000000e+00> : vector<16x8xf32>
    %481 = tpu.matmul %477, %480, %cst_336 {dimension_numbers = #tpu.dot_dimension_numbers<[1], [0], [0], [1], [0, 0, 1, 1], [], []>} : vector<16x32xf32>, vector<32x8xf32>, vector<16x8xf32> -> vector<16x8xf32>
    %c6_337 = arith.constant 6 : index
    %c0_338 = arith.constant 0 : index
    %c0_339 = arith.constant 0 : index
    %c0_340 = arith.constant 0 : index
    %482 = vector.load %arg8[%c6_337, %c0_338, %c0_339, %c0_340] : memref<18x4x1x8xf32, #tpu.memory_space<vmem>>, vector<1x1x1x8xf32>
    %483 = vector.shape_cast %482 : vector<1x1x1x8xf32> to vector<1x8xf32>
    %484 = vector.broadcast %483 : vector<1x8xf32> to vector<16x8xf32>
    %485 = arith.addf %481, %484 : vector<16x8xf32>
    %c6_341 = arith.constant 6 : index
    %c1_342 = arith.constant 1 : index
    %c0_343 = arith.constant 0 : index
    %c0_344 = arith.constant 0 : index
    %486 = vector.load %arg7[%c6_341, %c1_342, %c0_343, %c0_344] : memref<18x4x32x8xf32, #tpu.memory_space<vmem>>, vector<1x1x32x8xf32>
    %487 = vector.shape_cast %486 : vector<1x1x32x8xf32> to vector<32x8xf32>
    %cst_345 = arith.constant dense<0.000000e+00> : vector<16x8xf32>
    %488 = tpu.matmul %477, %487, %cst_345 {dimension_numbers = #tpu.dot_dimension_numbers<[1], [0], [0], [1], [0, 0, 1, 1], [], []>} : vector<16x32xf32>, vector<32x8xf32>, vector<16x8xf32> -> vector<16x8xf32>
    %c6_346 = arith.constant 6 : index
    %c1_347 = arith.constant 1 : index
    %c0_348 = arith.constant 0 : index
    %c0_349 = arith.constant 0 : index
    %489 = vector.load %arg8[%c6_346, %c1_347, %c0_348, %c0_349] : memref<18x4x1x8xf32, #tpu.memory_space<vmem>>, vector<1x1x1x8xf32>
    %490 = vector.shape_cast %489 : vector<1x1x1x8xf32> to vector<1x8xf32>
    %491 = vector.broadcast %490 : vector<1x8xf32> to vector<16x8xf32>
    %492 = arith.addf %488, %491 : vector<16x8xf32>
    %c6_350 = arith.constant 6 : index
    %c2_351 = arith.constant 2 : index
    %c0_352 = arith.constant 0 : index
    %c0_353 = arith.constant 0 : index
    %493 = vector.load %arg7[%c6_350, %c2_351, %c0_352, %c0_353] : memref<18x4x32x8xf32, #tpu.memory_space<vmem>>, vector<1x1x32x8xf32>
    %494 = vector.shape_cast %493 : vector<1x1x32x8xf32> to vector<32x8xf32>
    %cst_354 = arith.constant dense<0.000000e+00> : vector<16x8xf32>
    %495 = tpu.matmul %477, %494, %cst_354 {dimension_numbers = #tpu.dot_dimension_numbers<[1], [0], [0], [1], [0, 0, 1, 1], [], []>} : vector<16x32xf32>, vector<32x8xf32>, vector<16x8xf32> -> vector<16x8xf32>
    %c6_355 = arith.constant 6 : index
    %c2_356 = arith.constant 2 : index
    %c0_357 = arith.constant 0 : index
    %c0_358 = arith.constant 0 : index
    %496 = vector.load %arg8[%c6_355, %c2_356, %c0_357, %c0_358] : memref<18x4x1x8xf32, #tpu.memory_space<vmem>>, vector<1x1x1x8xf32>
    %497 = vector.shape_cast %496 : vector<1x1x1x8xf32> to vector<1x8xf32>
    %498 = vector.broadcast %497 : vector<1x8xf32> to vector<16x8xf32>
    %499 = arith.addf %495, %498 : vector<16x8xf32>
    %c6_359 = arith.constant 6 : index
    %c3_360 = arith.constant 3 : index
    %c0_361 = arith.constant 0 : index
    %c0_362 = arith.constant 0 : index
    %500 = vector.load %arg7[%c6_359, %c3_360, %c0_361, %c0_362] : memref<18x4x32x8xf32, #tpu.memory_space<vmem>>, vector<1x1x32x8xf32>
    %501 = vector.shape_cast %500 : vector<1x1x32x8xf32> to vector<32x8xf32>
    %cst_363 = arith.constant dense<0.000000e+00> : vector<16x8xf32>
    %502 = tpu.matmul %477, %501, %cst_363 {dimension_numbers = #tpu.dot_dimension_numbers<[1], [0], [0], [1], [0, 0, 1, 1], [], []>} : vector<16x32xf32>, vector<32x8xf32>, vector<16x8xf32> -> vector<16x8xf32>
    %c6_364 = arith.constant 6 : index
    %c3_365 = arith.constant 3 : index
    %c0_366 = arith.constant 0 : index
    %c0_367 = arith.constant 0 : index
    %503 = vector.load %arg8[%c6_364, %c3_365, %c0_366, %c0_367] : memref<18x4x1x8xf32, #tpu.memory_space<vmem>>, vector<1x1x1x8xf32>
    %504 = vector.shape_cast %503 : vector<1x1x1x8xf32> to vector<1x8xf32>
    %505 = vector.broadcast %504 : vector<1x8xf32> to vector<16x8xf32>
    %506 = arith.addf %502, %505 : vector<16x8xf32>
    %507 = vector.shape_cast %485 : vector<16x8xf32> to vector<1x16x8xf32>
    %508 = vector.shape_cast %492 : vector<16x8xf32> to vector<1x16x8xf32>
    %509 = vector.shape_cast %499 : vector<16x8xf32> to vector<1x16x8xf32>
    %510 = vector.shape_cast %506 : vector<16x8xf32> to vector<1x16x8xf32>
    %511 = tpu.concatenate %507, %508, %509, %510 in 0 : vector<1x16x8xf32>, vector<1x16x8xf32>, vector<1x16x8xf32>, vector<1x16x8xf32> -> vector<4x16x8xf32>
    %c7 = arith.constant 7 : index
    %c0_368 = arith.constant 0 : index
    %c0_369 = arith.constant 0 : index
    %c0_370 = arith.constant 0 : index
    %512 = vector.load %arg7[%c7, %c0_368, %c0_369, %c0_370] : memref<18x4x32x8xf32, #tpu.memory_space<vmem>>, vector<1x1x32x8xf32>
    %513 = vector.shape_cast %512 : vector<1x1x32x8xf32> to vector<32x8xf32>
    %cst_371 = arith.constant dense<0.000000e+00> : vector<16x8xf32>
    %514 = tpu.matmul %477, %513, %cst_371 {dimension_numbers = #tpu.dot_dimension_numbers<[1], [0], [0], [1], [0, 0, 1, 1], [], []>} : vector<16x32xf32>, vector<32x8xf32>, vector<16x8xf32> -> vector<16x8xf32>
    %c7_372 = arith.constant 7 : index
    %c0_373 = arith.constant 0 : index
    %c0_374 = arith.constant 0 : index
    %c0_375 = arith.constant 0 : index
    %515 = vector.load %arg8[%c7_372, %c0_373, %c0_374, %c0_375] : memref<18x4x1x8xf32, #tpu.memory_space<vmem>>, vector<1x1x1x8xf32>
    %516 = vector.shape_cast %515 : vector<1x1x1x8xf32> to vector<1x8xf32>
    %517 = vector.broadcast %516 : vector<1x8xf32> to vector<16x8xf32>
    %518 = arith.addf %514, %517 : vector<16x8xf32>
    %c7_376 = arith.constant 7 : index
    %c1_377 = arith.constant 1 : index
    %c0_378 = arith.constant 0 : index
    %c0_379 = arith.constant 0 : index
    %519 = vector.load %arg7[%c7_376, %c1_377, %c0_378, %c0_379] : memref<18x4x32x8xf32, #tpu.memory_space<vmem>>, vector<1x1x32x8xf32>
    %520 = vector.shape_cast %519 : vector<1x1x32x8xf32> to vector<32x8xf32>
    %cst_380 = arith.constant dense<0.000000e+00> : vector<16x8xf32>
    %521 = tpu.matmul %477, %520, %cst_380 {dimension_numbers = #tpu.dot_dimension_numbers<[1], [0], [0], [1], [0, 0, 1, 1], [], []>} : vector<16x32xf32>, vector<32x8xf32>, vector<16x8xf32> -> vector<16x8xf32>
    %c7_381 = arith.constant 7 : index
    %c1_382 = arith.constant 1 : index
    %c0_383 = arith.constant 0 : index
    %c0_384 = arith.constant 0 : index
    %522 = vector.load %arg8[%c7_381, %c1_382, %c0_383, %c0_384] : memref<18x4x1x8xf32, #tpu.memory_space<vmem>>, vector<1x1x1x8xf32>
    %523 = vector.shape_cast %522 : vector<1x1x1x8xf32> to vector<1x8xf32>
    %524 = vector.broadcast %523 : vector<1x8xf32> to vector<16x8xf32>
    %525 = arith.addf %521, %524 : vector<16x8xf32>
    %c7_385 = arith.constant 7 : index
    %c2_386 = arith.constant 2 : index
    %c0_387 = arith.constant 0 : index
    %c0_388 = arith.constant 0 : index
    %526 = vector.load %arg7[%c7_385, %c2_386, %c0_387, %c0_388] : memref<18x4x32x8xf32, #tpu.memory_space<vmem>>, vector<1x1x32x8xf32>
    %527 = vector.shape_cast %526 : vector<1x1x32x8xf32> to vector<32x8xf32>
    %cst_389 = arith.constant dense<0.000000e+00> : vector<16x8xf32>
    %528 = tpu.matmul %477, %527, %cst_389 {dimension_numbers = #tpu.dot_dimension_numbers<[1], [0], [0], [1], [0, 0, 1, 1], [], []>} : vector<16x32xf32>, vector<32x8xf32>, vector<16x8xf32> -> vector<16x8xf32>
    %c7_390 = arith.constant 7 : index
    %c2_391 = arith.constant 2 : index
    %c0_392 = arith.constant 0 : index
    %c0_393 = arith.constant 0 : index
    %529 = vector.load %arg8[%c7_390, %c2_391, %c0_392, %c0_393] : memref<18x4x1x8xf32, #tpu.memory_space<vmem>>, vector<1x1x1x8xf32>
    %530 = vector.shape_cast %529 : vector<1x1x1x8xf32> to vector<1x8xf32>
    %531 = vector.broadcast %530 : vector<1x8xf32> to vector<16x8xf32>
    %532 = arith.addf %528, %531 : vector<16x8xf32>
    %c7_394 = arith.constant 7 : index
    %c3_395 = arith.constant 3 : index
    %c0_396 = arith.constant 0 : index
    %c0_397 = arith.constant 0 : index
    %533 = vector.load %arg7[%c7_394, %c3_395, %c0_396, %c0_397] : memref<18x4x32x8xf32, #tpu.memory_space<vmem>>, vector<1x1x32x8xf32>
    %534 = vector.shape_cast %533 : vector<1x1x32x8xf32> to vector<32x8xf32>
    %cst_398 = arith.constant dense<0.000000e+00> : vector<16x8xf32>
    %535 = tpu.matmul %477, %534, %cst_398 {dimension_numbers = #tpu.dot_dimension_numbers<[1], [0], [0], [1], [0, 0, 1, 1], [], []>} : vector<16x32xf32>, vector<32x8xf32>, vector<16x8xf32> -> vector<16x8xf32>
    %c7_399 = arith.constant 7 : index
    %c3_400 = arith.constant 3 : index
    %c0_401 = arith.constant 0 : index
    %c0_402 = arith.constant 0 : index
    %536 = vector.load %arg8[%c7_399, %c3_400, %c0_401, %c0_402] : memref<18x4x1x8xf32, #tpu.memory_space<vmem>>, vector<1x1x1x8xf32>
    %537 = vector.shape_cast %536 : vector<1x1x1x8xf32> to vector<1x8xf32>
    %538 = vector.broadcast %537 : vector<1x8xf32> to vector<16x8xf32>
    %539 = arith.addf %535, %538 : vector<16x8xf32>
    %540 = vector.shape_cast %518 : vector<16x8xf32> to vector<1x16x8xf32>
    %541 = vector.shape_cast %525 : vector<16x8xf32> to vector<1x16x8xf32>
    %542 = vector.shape_cast %532 : vector<16x8xf32> to vector<1x16x8xf32>
    %543 = vector.shape_cast %539 : vector<16x8xf32> to vector<1x16x8xf32>
    %544 = tpu.concatenate %540, %541, %542, %543 in 0 : vector<1x16x8xf32>, vector<1x16x8xf32>, vector<1x16x8xf32>, vector<1x16x8xf32> -> vector<4x16x8xf32>
    %c8 = arith.constant 8 : index
    %c0_403 = arith.constant 0 : index
    %c0_404 = arith.constant 0 : index
    %c0_405 = arith.constant 0 : index
    %545 = vector.load %arg7[%c8, %c0_403, %c0_404, %c0_405] : memref<18x4x32x8xf32, #tpu.memory_space<vmem>>, vector<1x1x32x8xf32>
    %546 = vector.shape_cast %545 : vector<1x1x32x8xf32> to vector<32x8xf32>
    %cst_406 = arith.constant dense<0.000000e+00> : vector<16x8xf32>
    %547 = tpu.matmul %477, %546, %cst_406 {dimension_numbers = #tpu.dot_dimension_numbers<[1], [0], [0], [1], [0, 0, 1, 1], [], []>} : vector<16x32xf32>, vector<32x8xf32>, vector<16x8xf32> -> vector<16x8xf32>
    %c8_407 = arith.constant 8 : index
    %c0_408 = arith.constant 0 : index
    %c0_409 = arith.constant 0 : index
    %c0_410 = arith.constant 0 : index
    %548 = vector.load %arg8[%c8_407, %c0_408, %c0_409, %c0_410] : memref<18x4x1x8xf32, #tpu.memory_space<vmem>>, vector<1x1x1x8xf32>
    %549 = vector.shape_cast %548 : vector<1x1x1x8xf32> to vector<1x8xf32>
    %550 = vector.broadcast %549 : vector<1x8xf32> to vector<16x8xf32>
    %551 = arith.addf %547, %550 : vector<16x8xf32>
    %c8_411 = arith.constant 8 : index
    %c1_412 = arith.constant 1 : index
    %c0_413 = arith.constant 0 : index
    %c0_414 = arith.constant 0 : index
    %552 = vector.load %arg7[%c8_411, %c1_412, %c0_413, %c0_414] : memref<18x4x32x8xf32, #tpu.memory_space<vmem>>, vector<1x1x32x8xf32>
    %553 = vector.shape_cast %552 : vector<1x1x32x8xf32> to vector<32x8xf32>
    %cst_415 = arith.constant dense<0.000000e+00> : vector<16x8xf32>
    %554 = tpu.matmul %477, %553, %cst_415 {dimension_numbers = #tpu.dot_dimension_numbers<[1], [0], [0], [1], [0, 0, 1, 1], [], []>} : vector<16x32xf32>, vector<32x8xf32>, vector<16x8xf32> -> vector<16x8xf32>
    %c8_416 = arith.constant 8 : index
    %c1_417 = arith.constant 1 : index
    %c0_418 = arith.constant 0 : index
    %c0_419 = arith.constant 0 : index
    %555 = vector.load %arg8[%c8_416, %c1_417, %c0_418, %c0_419] : memref<18x4x1x8xf32, #tpu.memory_space<vmem>>, vector<1x1x1x8xf32>
    %556 = vector.shape_cast %555 : vector<1x1x1x8xf32> to vector<1x8xf32>
    %557 = vector.broadcast %556 : vector<1x8xf32> to vector<16x8xf32>
    %558 = arith.addf %554, %557 : vector<16x8xf32>
    %c8_420 = arith.constant 8 : index
    %c2_421 = arith.constant 2 : index
    %c0_422 = arith.constant 0 : index
    %c0_423 = arith.constant 0 : index
    %559 = vector.load %arg7[%c8_420, %c2_421, %c0_422, %c0_423] : memref<18x4x32x8xf32, #tpu.memory_space<vmem>>, vector<1x1x32x8xf32>
    %560 = vector.shape_cast %559 : vector<1x1x32x8xf32> to vector<32x8xf32>
    %cst_424 = arith.constant dense<0.000000e+00> : vector<16x8xf32>
    %561 = tpu.matmul %477, %560, %cst_424 {dimension_numbers = #tpu.dot_dimension_numbers<[1], [0], [0], [1], [0, 0, 1, 1], [], []>} : vector<16x32xf32>, vector<32x8xf32>, vector<16x8xf32> -> vector<16x8xf32>
    %c8_425 = arith.constant 8 : index
    %c2_426 = arith.constant 2 : index
    %c0_427 = arith.constant 0 : index
    %c0_428 = arith.constant 0 : index
    %562 = vector.load %arg8[%c8_425, %c2_426, %c0_427, %c0_428] : memref<18x4x1x8xf32, #tpu.memory_space<vmem>>, vector<1x1x1x8xf32>
    %563 = vector.shape_cast %562 : vector<1x1x1x8xf32> to vector<1x8xf32>
    %564 = vector.broadcast %563 : vector<1x8xf32> to vector<16x8xf32>
    %565 = arith.addf %561, %564 : vector<16x8xf32>
    %c8_429 = arith.constant 8 : index
    %c3_430 = arith.constant 3 : index
    %c0_431 = arith.constant 0 : index
    %c0_432 = arith.constant 0 : index
    %566 = vector.load %arg7[%c8_429, %c3_430, %c0_431, %c0_432] : memref<18x4x32x8xf32, #tpu.memory_space<vmem>>, vector<1x1x32x8xf32>
    %567 = vector.shape_cast %566 : vector<1x1x32x8xf32> to vector<32x8xf32>
    %cst_433 = arith.constant dense<0.000000e+00> : vector<16x8xf32>
    %568 = tpu.matmul %477, %567, %cst_433 {dimension_numbers = #tpu.dot_dimension_numbers<[1], [0], [0], [1], [0, 0, 1, 1], [], []>} : vector<16x32xf32>, vector<32x8xf32>, vector<16x8xf32> -> vector<16x8xf32>
    %c8_434 = arith.constant 8 : index
    %c3_435 = arith.constant 3 : index
    %c0_436 = arith.constant 0 : index
    %c0_437 = arith.constant 0 : index
    %569 = vector.load %arg8[%c8_434, %c3_435, %c0_436, %c0_437] : memref<18x4x1x8xf32, #tpu.memory_space<vmem>>, vector<1x1x1x8xf32>
    %570 = vector.shape_cast %569 : vector<1x1x1x8xf32> to vector<1x8xf32>
    %571 = vector.broadcast %570 : vector<1x8xf32> to vector<16x8xf32>
    %572 = arith.addf %568, %571 : vector<16x8xf32>
    %573 = vector.shape_cast %551 : vector<16x8xf32> to vector<1x16x8xf32>
    %574 = vector.shape_cast %558 : vector<16x8xf32> to vector<1x16x8xf32>
    %575 = vector.shape_cast %565 : vector<16x8xf32> to vector<1x16x8xf32>
    %576 = vector.shape_cast %572 : vector<16x8xf32> to vector<1x16x8xf32>
    %577 = tpu.concatenate %573, %574, %575, %576 in 0 : vector<1x16x8xf32>, vector<1x16x8xf32>, vector<1x16x8xf32>, vector<1x16x8xf32> -> vector<4x16x8xf32>
    "tpu.trace_start"() <{level = 10 : i32, message = "hqd,hkd->hqk"}> : () -> ()
    %cst_438 = arith.constant dense<0.000000e+00> : vector<4x16x16xf32>
    %578 = tpu.matmul %511, %544, %cst_438 {dimension_numbers = #tpu.dot_dimension_numbers<[2], [2], [1], [1], [0, 0, 0, 1, 1, 1], [0], [0]>} : vector<4x16x8xf32>, vector<4x16x8xf32>, vector<4x16x16xf32> -> vector<4x16x16xf32>
    "tpu.trace_stop"() : () -> ()
    %cst_439 = arith.constant 0.353553385 : f32
    %579 = vector.broadcast %cst_439 : f32 to vector<4x16x16xf32>
    %580 = arith.mulf %578, %579 : vector<4x16x16xf32>
    %581 = vector.shape_cast %4 : vector<16x16xf32> to vector<1x16x16xf32>
    %582 = vector.broadcast %581 : vector<1x16x16xf32> to vector<4x16x16xf32>
    %583 = arith.addf %580, %582 : vector<4x16x16xf32>
    %cst_440 = arith.constant dense<0xFF800000> : vector<4x16xf32>
    %584 = vector.multi_reduction <maximumf>, %583, %cst_440 [2] : vector<4x16x16xf32> to vector<4x16xf32>
    %585 = vector.shape_cast %584 : vector<4x16xf32> to vector<4x16x1xf32>
    %586 = vector.broadcast %585 : vector<4x16x1xf32> to vector<4x16x16xf32>
    %587 = arith.subf %583, %586 : vector<4x16x16xf32>
    %588 = math.exp %587 : vector<4x16x16xf32>
    %cst_441 = arith.constant dense<0.000000e+00> : vector<4x16xf32>
    %589 = vector.multi_reduction <add>, %588, %cst_441 [2] : vector<4x16x16xf32> to vector<4x16xf32>
    %590 = vector.shape_cast %589 : vector<4x16xf32> to vector<4x16x1xf32>
    %591 = vector.broadcast %590 : vector<4x16x1xf32> to vector<4x16x16xf32>
    %592 = arith.divf %588, %591 : vector<4x16x16xf32>
    "tpu.trace_start"() <{level = 10 : i32, message = "hqk,hkd->hqd"}> : () -> ()
    %cst_442 = arith.constant dense<0.000000e+00> : vector<4x16x8xf32>
    %593 = tpu.matmul %592, %577, %cst_442 {dimension_numbers = #tpu.dot_dimension_numbers<[2], [1], [1], [2], [0, 0, 0, 1, 1, 2], [0], [0]>} : vector<4x16x16xf32>, vector<4x16x8xf32>, vector<4x16x8xf32> -> vector<4x16x8xf32>
    "tpu.trace_stop"() : () -> ()
    %594 = vector.extract_strided_slice %593 {offsets = [0, 0, 0], sizes = [1, 16, 8], strides = [1, 1, 1]} : vector<4x16x8xf32> to vector<1x16x8xf32>
    %595 = vector.shape_cast %594 : vector<1x16x8xf32> to vector<16x8xf32>
    %c2_443 = arith.constant 2 : index
    %c0_444 = arith.constant 0 : index
    %c0_445 = arith.constant 0 : index
    %c0_446 = arith.constant 0 : index
    %596 = vector.load %arg9[%c2_443, %c0_444, %c0_445, %c0_446] : memref<6x4x8x32xf32, #tpu.memory_space<vmem>>, vector<1x1x8x32xf32>
    %597 = vector.shape_cast %596 : vector<1x1x8x32xf32> to vector<8x32xf32>
    %cst_447 = arith.constant dense<0.000000e+00> : vector<16x32xf32>
    %598 = tpu.matmul %595, %597, %cst_447 {dimension_numbers = #tpu.dot_dimension_numbers<[1], [0], [0], [1], [0, 0, 1, 1], [], []>} : vector<16x8xf32>, vector<8x32xf32>, vector<16x32xf32> -> vector<16x32xf32>
    %599 = vector.broadcast %478 : vector<1x32xf32> to vector<16x32xf32>
    %600 = arith.addf %599, %598 : vector<16x32xf32>
    %601 = vector.extract_strided_slice %593 {offsets = [1, 0, 0], sizes = [1, 16, 8], strides = [1, 1, 1]} : vector<4x16x8xf32> to vector<1x16x8xf32>
    %602 = vector.shape_cast %601 : vector<1x16x8xf32> to vector<16x8xf32>
    %c2_448 = arith.constant 2 : index
    %c1_449 = arith.constant 1 : index
    %c0_450 = arith.constant 0 : index
    %c0_451 = arith.constant 0 : index
    %603 = vector.load %arg9[%c2_448, %c1_449, %c0_450, %c0_451] : memref<6x4x8x32xf32, #tpu.memory_space<vmem>>, vector<1x1x8x32xf32>
    %604 = vector.shape_cast %603 : vector<1x1x8x32xf32> to vector<8x32xf32>
    %cst_452 = arith.constant dense<0.000000e+00> : vector<16x32xf32>
    %605 = tpu.matmul %602, %604, %cst_452 {dimension_numbers = #tpu.dot_dimension_numbers<[1], [0], [0], [1], [0, 0, 1, 1], [], []>} : vector<16x8xf32>, vector<8x32xf32>, vector<16x32xf32> -> vector<16x32xf32>
    %606 = arith.addf %600, %605 : vector<16x32xf32>
    %607 = vector.extract_strided_slice %593 {offsets = [2, 0, 0], sizes = [1, 16, 8], strides = [1, 1, 1]} : vector<4x16x8xf32> to vector<1x16x8xf32>
    %608 = vector.shape_cast %607 : vector<1x16x8xf32> to vector<16x8xf32>
    %c2_453 = arith.constant 2 : index
    %c2_454 = arith.constant 2 : index
    %c0_455 = arith.constant 0 : index
    %c0_456 = arith.constant 0 : index
    %609 = vector.load %arg9[%c2_453, %c2_454, %c0_455, %c0_456] : memref<6x4x8x32xf32, #tpu.memory_space<vmem>>, vector<1x1x8x32xf32>
    %610 = vector.shape_cast %609 : vector<1x1x8x32xf32> to vector<8x32xf32>
    %cst_457 = arith.constant dense<0.000000e+00> : vector<16x32xf32>
    %611 = tpu.matmul %608, %610, %cst_457 {dimension_numbers = #tpu.dot_dimension_numbers<[1], [0], [0], [1], [0, 0, 1, 1], [], []>} : vector<16x8xf32>, vector<8x32xf32>, vector<16x32xf32> -> vector<16x32xf32>
    %612 = arith.addf %606, %611 : vector<16x32xf32>
    %613 = vector.extract_strided_slice %593 {offsets = [3, 0, 0], sizes = [1, 16, 8], strides = [1, 1, 1]} : vector<4x16x8xf32> to vector<1x16x8xf32>
    %614 = vector.shape_cast %613 : vector<1x16x8xf32> to vector<16x8xf32>
    %c2_458 = arith.constant 2 : index
    %c3_459 = arith.constant 3 : index
    %c0_460 = arith.constant 0 : index
    %c0_461 = arith.constant 0 : index
    %615 = vector.load %arg9[%c2_458, %c3_459, %c0_460, %c0_461] : memref<6x4x8x32xf32, #tpu.memory_space<vmem>>, vector<1x1x8x32xf32>
    %616 = vector.shape_cast %615 : vector<1x1x8x32xf32> to vector<8x32xf32>
    %cst_462 = arith.constant dense<0.000000e+00> : vector<16x32xf32>
    %617 = tpu.matmul %614, %616, %cst_462 {dimension_numbers = #tpu.dot_dimension_numbers<[1], [0], [0], [1], [0, 0, 1, 1], [], []>} : vector<16x8xf32>, vector<8x32xf32>, vector<16x32xf32> -> vector<16x32xf32>
    %618 = arith.addf %612, %617 : vector<16x32xf32>
    %619 = arith.addf %455, %618 : vector<16x32xf32>
    %620 = vector.extract_strided_slice %0 {offsets = [14, 0], sizes = [1, 32], strides = [1, 1]} : vector<34x32xf32> to vector<1x32xf32>
    %621 = vector.extract_strided_slice %0 {offsets = [15, 0], sizes = [1, 32], strides = [1, 1]} : vector<34x32xf32> to vector<1x32xf32>
    %cst_463 = arith.constant dense<0.000000e+00> : vector<16xf32>
    %622 = vector.multi_reduction <add>, %619, %cst_463 [1] : vector<16x32xf32> to vector<16xf32>
    %623 = vector.shape_cast %622 : vector<16xf32> to vector<16x1xf32>
    %cst_464 = arith.constant 3.200000e+01 : f32
    %624 = vector.broadcast %cst_464 : f32 to vector<16x1xf32>
    %625 = arith.divf %623, %624 : vector<16x1xf32>
    %626 = vector.broadcast %625 : vector<16x1xf32> to vector<16x32xf32>
    %627 = arith.subf %619, %626 : vector<16x32xf32>
    %628 = arith.mulf %627, %627 : vector<16x32xf32>
    %cst_465 = arith.constant dense<0.000000e+00> : vector<16xf32>
    %629 = vector.multi_reduction <add>, %628, %cst_465 [1] : vector<16x32xf32> to vector<16xf32>
    %630 = vector.shape_cast %629 : vector<16xf32> to vector<16x1xf32>
    %cst_466 = arith.constant 0.0322580636 : f32
    %631 = vector.broadcast %cst_466 : f32 to vector<16x1xf32>
    %632 = arith.mulf %630, %631 : vector<16x1xf32>
    %633 = math.sqrt %632 : vector<16x1xf32>
    %634 = vector.broadcast %620 : vector<1x32xf32> to vector<16x32xf32>
    %635 = arith.mulf %634, %627 : vector<16x32xf32>
    %cst_467 = arith.constant 9.99999997E-7 : f32
    %636 = vector.broadcast %cst_467 : f32 to vector<16x1xf32>
    %637 = arith.addf %633, %636 : vector<16x1xf32>
    %638 = vector.broadcast %637 : vector<16x1xf32> to vector<16x32xf32>
    %639 = arith.divf %635, %638 : vector<16x32xf32>
    %640 = vector.broadcast %621 : vector<1x32xf32> to vector<16x32xf32>
    %641 = arith.addf %639, %640 : vector<16x32xf32>
    %642 = vector.extract_strided_slice %0 {offsets = [19, 0], sizes = [1, 32], strides = [1, 1]} : vector<34x32xf32> to vector<1x32xf32>
    %c12 = arith.constant 12 : index
    %c0_468 = arith.constant 0 : index
    %c0_469 = arith.constant 0 : index
    %c0_470 = arith.constant 0 : index
    %643 = vector.load %arg7[%c12, %c0_468, %c0_469, %c0_470] : memref<18x4x32x8xf32, #tpu.memory_space<vmem>>, vector<1x1x32x8xf32>
    %644 = vector.shape_cast %643 : vector<1x1x32x8xf32> to vector<32x8xf32>
    %cst_471 = arith.constant dense<0.000000e+00> : vector<16x8xf32>
    %645 = tpu.matmul %641, %644, %cst_471 {dimension_numbers = #tpu.dot_dimension_numbers<[1], [0], [0], [1], [0, 0, 1, 1], [], []>} : vector<16x32xf32>, vector<32x8xf32>, vector<16x8xf32> -> vector<16x8xf32>
    %c12_472 = arith.constant 12 : index
    %c0_473 = arith.constant 0 : index
    %c0_474 = arith.constant 0 : index
    %c0_475 = arith.constant 0 : index
    %646 = vector.load %arg8[%c12_472, %c0_473, %c0_474, %c0_475] : memref<18x4x1x8xf32, #tpu.memory_space<vmem>>, vector<1x1x1x8xf32>
    %647 = vector.shape_cast %646 : vector<1x1x1x8xf32> to vector<1x8xf32>
    %648 = vector.broadcast %647 : vector<1x8xf32> to vector<16x8xf32>
    %649 = arith.addf %645, %648 : vector<16x8xf32>
    %c12_476 = arith.constant 12 : index
    %c1_477 = arith.constant 1 : index
    %c0_478 = arith.constant 0 : index
    %c0_479 = arith.constant 0 : index
    %650 = vector.load %arg7[%c12_476, %c1_477, %c0_478, %c0_479] : memref<18x4x32x8xf32, #tpu.memory_space<vmem>>, vector<1x1x32x8xf32>
    %651 = vector.shape_cast %650 : vector<1x1x32x8xf32> to vector<32x8xf32>
    %cst_480 = arith.constant dense<0.000000e+00> : vector<16x8xf32>
    %652 = tpu.matmul %641, %651, %cst_480 {dimension_numbers = #tpu.dot_dimension_numbers<[1], [0], [0], [1], [0, 0, 1, 1], [], []>} : vector<16x32xf32>, vector<32x8xf32>, vector<16x8xf32> -> vector<16x8xf32>
    %c12_481 = arith.constant 12 : index
    %c1_482 = arith.constant 1 : index
    %c0_483 = arith.constant 0 : index
    %c0_484 = arith.constant 0 : index
    %653 = vector.load %arg8[%c12_481, %c1_482, %c0_483, %c0_484] : memref<18x4x1x8xf32, #tpu.memory_space<vmem>>, vector<1x1x1x8xf32>
    %654 = vector.shape_cast %653 : vector<1x1x1x8xf32> to vector<1x8xf32>
    %655 = vector.broadcast %654 : vector<1x8xf32> to vector<16x8xf32>
    %656 = arith.addf %652, %655 : vector<16x8xf32>
    %c12_485 = arith.constant 12 : index
    %c2_486 = arith.constant 2 : index
    %c0_487 = arith.constant 0 : index
    %c0_488 = arith.constant 0 : index
    %657 = vector.load %arg7[%c12_485, %c2_486, %c0_487, %c0_488] : memref<18x4x32x8xf32, #tpu.memory_space<vmem>>, vector<1x1x32x8xf32>
    %658 = vector.shape_cast %657 : vector<1x1x32x8xf32> to vector<32x8xf32>
    %cst_489 = arith.constant dense<0.000000e+00> : vector<16x8xf32>
    %659 = tpu.matmul %641, %658, %cst_489 {dimension_numbers = #tpu.dot_dimension_numbers<[1], [0], [0], [1], [0, 0, 1, 1], [], []>} : vector<16x32xf32>, vector<32x8xf32>, vector<16x8xf32> -> vector<16x8xf32>
    %c12_490 = arith.constant 12 : index
    %c2_491 = arith.constant 2 : index
    %c0_492 = arith.constant 0 : index
    %c0_493 = arith.constant 0 : index
    %660 = vector.load %arg8[%c12_490, %c2_491, %c0_492, %c0_493] : memref<18x4x1x8xf32, #tpu.memory_space<vmem>>, vector<1x1x1x8xf32>
    %661 = vector.shape_cast %660 : vector<1x1x1x8xf32> to vector<1x8xf32>
    %662 = vector.broadcast %661 : vector<1x8xf32> to vector<16x8xf32>
    %663 = arith.addf %659, %662 : vector<16x8xf32>
    %c12_494 = arith.constant 12 : index
    %c3_495 = arith.constant 3 : index
    %c0_496 = arith.constant 0 : index
    %c0_497 = arith.constant 0 : index
    %664 = vector.load %arg7[%c12_494, %c3_495, %c0_496, %c0_497] : memref<18x4x32x8xf32, #tpu.memory_space<vmem>>, vector<1x1x32x8xf32>
    %665 = vector.shape_cast %664 : vector<1x1x32x8xf32> to vector<32x8xf32>
    %cst_498 = arith.constant dense<0.000000e+00> : vector<16x8xf32>
    %666 = tpu.matmul %641, %665, %cst_498 {dimension_numbers = #tpu.dot_dimension_numbers<[1], [0], [0], [1], [0, 0, 1, 1], [], []>} : vector<16x32xf32>, vector<32x8xf32>, vector<16x8xf32> -> vector<16x8xf32>
    %c12_499 = arith.constant 12 : index
    %c3_500 = arith.constant 3 : index
    %c0_501 = arith.constant 0 : index
    %c0_502 = arith.constant 0 : index
    %667 = vector.load %arg8[%c12_499, %c3_500, %c0_501, %c0_502] : memref<18x4x1x8xf32, #tpu.memory_space<vmem>>, vector<1x1x1x8xf32>
    %668 = vector.shape_cast %667 : vector<1x1x1x8xf32> to vector<1x8xf32>
    %669 = vector.broadcast %668 : vector<1x8xf32> to vector<16x8xf32>
    %670 = arith.addf %666, %669 : vector<16x8xf32>
    %671 = vector.shape_cast %649 : vector<16x8xf32> to vector<1x16x8xf32>
    %672 = vector.shape_cast %656 : vector<16x8xf32> to vector<1x16x8xf32>
    %673 = vector.shape_cast %663 : vector<16x8xf32> to vector<1x16x8xf32>
    %674 = vector.shape_cast %670 : vector<16x8xf32> to vector<1x16x8xf32>
    %675 = tpu.concatenate %671, %672, %673, %674 in 0 : vector<1x16x8xf32>, vector<1x16x8xf32>, vector<1x16x8xf32>, vector<1x16x8xf32> -> vector<4x16x8xf32>
    %c13 = arith.constant 13 : index
    %c0_503 = arith.constant 0 : index
    %c0_504 = arith.constant 0 : index
    %c0_505 = arith.constant 0 : index
    %676 = vector.load %arg7[%c13, %c0_503, %c0_504, %c0_505] : memref<18x4x32x8xf32, #tpu.memory_space<vmem>>, vector<1x1x32x8xf32>
    %677 = vector.shape_cast %676 : vector<1x1x32x8xf32> to vector<32x8xf32>
    %cst_506 = arith.constant dense<0.000000e+00> : vector<16x8xf32>
    %678 = tpu.matmul %442, %677, %cst_506 {dimension_numbers = #tpu.dot_dimension_numbers<[1], [0], [0], [1], [0, 0, 1, 1], [], []>} : vector<16x32xf32>, vector<32x8xf32>, vector<16x8xf32> -> vector<16x8xf32>
    %c13_507 = arith.constant 13 : index
    %c0_508 = arith.constant 0 : index
    %c0_509 = arith.constant 0 : index
    %c0_510 = arith.constant 0 : index
    %679 = vector.load %arg8[%c13_507, %c0_508, %c0_509, %c0_510] : memref<18x4x1x8xf32, #tpu.memory_space<vmem>>, vector<1x1x1x8xf32>
    %680 = vector.shape_cast %679 : vector<1x1x1x8xf32> to vector<1x8xf32>
    %681 = vector.broadcast %680 : vector<1x8xf32> to vector<16x8xf32>
    %682 = arith.addf %678, %681 : vector<16x8xf32>
    %c13_511 = arith.constant 13 : index
    %c1_512 = arith.constant 1 : index
    %c0_513 = arith.constant 0 : index
    %c0_514 = arith.constant 0 : index
    %683 = vector.load %arg7[%c13_511, %c1_512, %c0_513, %c0_514] : memref<18x4x32x8xf32, #tpu.memory_space<vmem>>, vector<1x1x32x8xf32>
    %684 = vector.shape_cast %683 : vector<1x1x32x8xf32> to vector<32x8xf32>
    %cst_515 = arith.constant dense<0.000000e+00> : vector<16x8xf32>
    %685 = tpu.matmul %442, %684, %cst_515 {dimension_numbers = #tpu.dot_dimension_numbers<[1], [0], [0], [1], [0, 0, 1, 1], [], []>} : vector<16x32xf32>, vector<32x8xf32>, vector<16x8xf32> -> vector<16x8xf32>
    %c13_516 = arith.constant 13 : index
    %c1_517 = arith.constant 1 : index
    %c0_518 = arith.constant 0 : index
    %c0_519 = arith.constant 0 : index
    %686 = vector.load %arg8[%c13_516, %c1_517, %c0_518, %c0_519] : memref<18x4x1x8xf32, #tpu.memory_space<vmem>>, vector<1x1x1x8xf32>
    %687 = vector.shape_cast %686 : vector<1x1x1x8xf32> to vector<1x8xf32>
    %688 = vector.broadcast %687 : vector<1x8xf32> to vector<16x8xf32>
    %689 = arith.addf %685, %688 : vector<16x8xf32>
    %c13_520 = arith.constant 13 : index
    %c2_521 = arith.constant 2 : index
    %c0_522 = arith.constant 0 : index
    %c0_523 = arith.constant 0 : index
    %690 = vector.load %arg7[%c13_520, %c2_521, %c0_522, %c0_523] : memref<18x4x32x8xf32, #tpu.memory_space<vmem>>, vector<1x1x32x8xf32>
    %691 = vector.shape_cast %690 : vector<1x1x32x8xf32> to vector<32x8xf32>
    %cst_524 = arith.constant dense<0.000000e+00> : vector<16x8xf32>
    %692 = tpu.matmul %442, %691, %cst_524 {dimension_numbers = #tpu.dot_dimension_numbers<[1], [0], [0], [1], [0, 0, 1, 1], [], []>} : vector<16x32xf32>, vector<32x8xf32>, vector<16x8xf32> -> vector<16x8xf32>
    %c13_525 = arith.constant 13 : index
    %c2_526 = arith.constant 2 : index
    %c0_527 = arith.constant 0 : index
    %c0_528 = arith.constant 0 : index
    %693 = vector.load %arg8[%c13_525, %c2_526, %c0_527, %c0_528] : memref<18x4x1x8xf32, #tpu.memory_space<vmem>>, vector<1x1x1x8xf32>
    %694 = vector.shape_cast %693 : vector<1x1x1x8xf32> to vector<1x8xf32>
    %695 = vector.broadcast %694 : vector<1x8xf32> to vector<16x8xf32>
    %696 = arith.addf %692, %695 : vector<16x8xf32>
    %c13_529 = arith.constant 13 : index
    %c3_530 = arith.constant 3 : index
    %c0_531 = arith.constant 0 : index
    %c0_532 = arith.constant 0 : index
    %697 = vector.load %arg7[%c13_529, %c3_530, %c0_531, %c0_532] : memref<18x4x32x8xf32, #tpu.memory_space<vmem>>, vector<1x1x32x8xf32>
    %698 = vector.shape_cast %697 : vector<1x1x32x8xf32> to vector<32x8xf32>
    %cst_533 = arith.constant dense<0.000000e+00> : vector<16x8xf32>
    %699 = tpu.matmul %442, %698, %cst_533 {dimension_numbers = #tpu.dot_dimension_numbers<[1], [0], [0], [1], [0, 0, 1, 1], [], []>} : vector<16x32xf32>, vector<32x8xf32>, vector<16x8xf32> -> vector<16x8xf32>
    %c13_534 = arith.constant 13 : index
    %c3_535 = arith.constant 3 : index
    %c0_536 = arith.constant 0 : index
    %c0_537 = arith.constant 0 : index
    %700 = vector.load %arg8[%c13_534, %c3_535, %c0_536, %c0_537] : memref<18x4x1x8xf32, #tpu.memory_space<vmem>>, vector<1x1x1x8xf32>
    %701 = vector.shape_cast %700 : vector<1x1x1x8xf32> to vector<1x8xf32>
    %702 = vector.broadcast %701 : vector<1x8xf32> to vector<16x8xf32>
    %703 = arith.addf %699, %702 : vector<16x8xf32>
    %704 = vector.shape_cast %682 : vector<16x8xf32> to vector<1x16x8xf32>
    %705 = vector.shape_cast %689 : vector<16x8xf32> to vector<1x16x8xf32>
    %706 = vector.shape_cast %696 : vector<16x8xf32> to vector<1x16x8xf32>
    %707 = vector.shape_cast %703 : vector<16x8xf32> to vector<1x16x8xf32>
    %708 = tpu.concatenate %704, %705, %706, %707 in 0 : vector<1x16x8xf32>, vector<1x16x8xf32>, vector<1x16x8xf32>, vector<1x16x8xf32> -> vector<4x16x8xf32>
    %c14 = arith.constant 14 : index
    %c0_538 = arith.constant 0 : index
    %c0_539 = arith.constant 0 : index
    %c0_540 = arith.constant 0 : index
    %709 = vector.load %arg7[%c14, %c0_538, %c0_539, %c0_540] : memref<18x4x32x8xf32, #tpu.memory_space<vmem>>, vector<1x1x32x8xf32>
    %710 = vector.shape_cast %709 : vector<1x1x32x8xf32> to vector<32x8xf32>
    %cst_541 = arith.constant dense<0.000000e+00> : vector<16x8xf32>
    %711 = tpu.matmul %442, %710, %cst_541 {dimension_numbers = #tpu.dot_dimension_numbers<[1], [0], [0], [1], [0, 0, 1, 1], [], []>} : vector<16x32xf32>, vector<32x8xf32>, vector<16x8xf32> -> vector<16x8xf32>
    %c14_542 = arith.constant 14 : index
    %c0_543 = arith.constant 0 : index
    %c0_544 = arith.constant 0 : index
    %c0_545 = arith.constant 0 : index
    %712 = vector.load %arg8[%c14_542, %c0_543, %c0_544, %c0_545] : memref<18x4x1x8xf32, #tpu.memory_space<vmem>>, vector<1x1x1x8xf32>
    %713 = vector.shape_cast %712 : vector<1x1x1x8xf32> to vector<1x8xf32>
    %714 = vector.broadcast %713 : vector<1x8xf32> to vector<16x8xf32>
    %715 = arith.addf %711, %714 : vector<16x8xf32>
    %c14_546 = arith.constant 14 : index
    %c1_547 = arith.constant 1 : index
    %c0_548 = arith.constant 0 : index
    %c0_549 = arith.constant 0 : index
    %716 = vector.load %arg7[%c14_546, %c1_547, %c0_548, %c0_549] : memref<18x4x32x8xf32, #tpu.memory_space<vmem>>, vector<1x1x32x8xf32>
    %717 = vector.shape_cast %716 : vector<1x1x32x8xf32> to vector<32x8xf32>
    %cst_550 = arith.constant dense<0.000000e+00> : vector<16x8xf32>
    %718 = tpu.matmul %442, %717, %cst_550 {dimension_numbers = #tpu.dot_dimension_numbers<[1], [0], [0], [1], [0, 0, 1, 1], [], []>} : vector<16x32xf32>, vector<32x8xf32>, vector<16x8xf32> -> vector<16x8xf32>
    %c14_551 = arith.constant 14 : index
    %c1_552 = arith.constant 1 : index
    %c0_553 = arith.constant 0 : index
    %c0_554 = arith.constant 0 : index
    %719 = vector.load %arg8[%c14_551, %c1_552, %c0_553, %c0_554] : memref<18x4x1x8xf32, #tpu.memory_space<vmem>>, vector<1x1x1x8xf32>
    %720 = vector.shape_cast %719 : vector<1x1x1x8xf32> to vector<1x8xf32>
    %721 = vector.broadcast %720 : vector<1x8xf32> to vector<16x8xf32>
    %722 = arith.addf %718, %721 : vector<16x8xf32>
    %c14_555 = arith.constant 14 : index
    %c2_556 = arith.constant 2 : index
    %c0_557 = arith.constant 0 : index
    %c0_558 = arith.constant 0 : index
    %723 = vector.load %arg7[%c14_555, %c2_556, %c0_557, %c0_558] : memref<18x4x32x8xf32, #tpu.memory_space<vmem>>, vector<1x1x32x8xf32>
    %724 = vector.shape_cast %723 : vector<1x1x32x8xf32> to vector<32x8xf32>
    %cst_559 = arith.constant dense<0.000000e+00> : vector<16x8xf32>
    %725 = tpu.matmul %442, %724, %cst_559 {dimension_numbers = #tpu.dot_dimension_numbers<[1], [0], [0], [1], [0, 0, 1, 1], [], []>} : vector<16x32xf32>, vector<32x8xf32>, vector<16x8xf32> -> vector<16x8xf32>
    %c14_560 = arith.constant 14 : index
    %c2_561 = arith.constant 2 : index
    %c0_562 = arith.constant 0 : index
    %c0_563 = arith.constant 0 : index
    %726 = vector.load %arg8[%c14_560, %c2_561, %c0_562, %c0_563] : memref<18x4x1x8xf32, #tpu.memory_space<vmem>>, vector<1x1x1x8xf32>
    %727 = vector.shape_cast %726 : vector<1x1x1x8xf32> to vector<1x8xf32>
    %728 = vector.broadcast %727 : vector<1x8xf32> to vector<16x8xf32>
    %729 = arith.addf %725, %728 : vector<16x8xf32>
    %c14_564 = arith.constant 14 : index
    %c3_565 = arith.constant 3 : index
    %c0_566 = arith.constant 0 : index
    %c0_567 = arith.constant 0 : index
    %730 = vector.load %arg7[%c14_564, %c3_565, %c0_566, %c0_567] : memref<18x4x32x8xf32, #tpu.memory_space<vmem>>, vector<1x1x32x8xf32>
    %731 = vector.shape_cast %730 : vector<1x1x32x8xf32> to vector<32x8xf32>
    %cst_568 = arith.constant dense<0.000000e+00> : vector<16x8xf32>
    %732 = tpu.matmul %442, %731, %cst_568 {dimension_numbers = #tpu.dot_dimension_numbers<[1], [0], [0], [1], [0, 0, 1, 1], [], []>} : vector<16x32xf32>, vector<32x8xf32>, vector<16x8xf32> -> vector<16x8xf32>
    %c14_569 = arith.constant 14 : index
    %c3_570 = arith.constant 3 : index
    %c0_571 = arith.constant 0 : index
    %c0_572 = arith.constant 0 : index
    %733 = vector.load %arg8[%c14_569, %c3_570, %c0_571, %c0_572] : memref<18x4x1x8xf32, #tpu.memory_space<vmem>>, vector<1x1x1x8xf32>
    %734 = vector.shape_cast %733 : vector<1x1x1x8xf32> to vector<1x8xf32>
    %735 = vector.broadcast %734 : vector<1x8xf32> to vector<16x8xf32>
    %736 = arith.addf %732, %735 : vector<16x8xf32>
    %737 = vector.shape_cast %715 : vector<16x8xf32> to vector<1x16x8xf32>
    %738 = vector.shape_cast %722 : vector<16x8xf32> to vector<1x16x8xf32>
    %739 = vector.shape_cast %729 : vector<16x8xf32> to vector<1x16x8xf32>
    %740 = vector.shape_cast %736 : vector<16x8xf32> to vector<1x16x8xf32>
    %741 = tpu.concatenate %737, %738, %739, %740 in 0 : vector<1x16x8xf32>, vector<1x16x8xf32>, vector<1x16x8xf32>, vector<1x16x8xf32> -> vector<4x16x8xf32>
    "tpu.trace_start"() <{level = 10 : i32, message = "hqd,hkd->hqk"}> : () -> ()
    %cst_573 = arith.constant dense<0.000000e+00> : vector<4x16x16xf32>
    %742 = tpu.matmul %675, %708, %cst_573 {dimension_numbers = #tpu.dot_dimension_numbers<[2], [2], [1], [1], [0, 0, 0, 1, 1, 1], [0], [0]>} : vector<4x16x8xf32>, vector<4x16x8xf32>, vector<4x16x16xf32> -> vector<4x16x16xf32>
    "tpu.trace_stop"() : () -> ()
    %cst_574 = arith.constant 0.353553385 : f32
    %743 = vector.broadcast %cst_574 : f32 to vector<4x16x16xf32>
    %744 = arith.mulf %742, %743 : vector<4x16x16xf32>
    %745 = vector.shape_cast %5 : vector<16x16xf32> to vector<1x16x16xf32>
    %746 = vector.broadcast %745 : vector<1x16x16xf32> to vector<4x16x16xf32>
    %747 = arith.addf %744, %746 : vector<4x16x16xf32>
    %cst_575 = arith.constant dense<0xFF800000> : vector<4x16xf32>
    %748 = vector.multi_reduction <maximumf>, %747, %cst_575 [2] : vector<4x16x16xf32> to vector<4x16xf32>
    %749 = vector.shape_cast %748 : vector<4x16xf32> to vector<4x16x1xf32>
    %750 = vector.broadcast %749 : vector<4x16x1xf32> to vector<4x16x16xf32>
    %751 = arith.subf %747, %750 : vector<4x16x16xf32>
    %752 = math.exp %751 : vector<4x16x16xf32>
    %cst_576 = arith.constant dense<0.000000e+00> : vector<4x16xf32>
    %753 = vector.multi_reduction <add>, %752, %cst_576 [2] : vector<4x16x16xf32> to vector<4x16xf32>
    %754 = vector.shape_cast %753 : vector<4x16xf32> to vector<4x16x1xf32>
    %755 = vector.broadcast %754 : vector<4x16x1xf32> to vector<4x16x16xf32>
    %756 = arith.divf %752, %755 : vector<4x16x16xf32>
    "tpu.trace_start"() <{level = 10 : i32, message = "hqk,hkd->hqd"}> : () -> ()
    %cst_577 = arith.constant dense<0.000000e+00> : vector<4x16x8xf32>
    %757 = tpu.matmul %756, %741, %cst_577 {dimension_numbers = #tpu.dot_dimension_numbers<[2], [1], [1], [2], [0, 0, 0, 1, 1, 2], [0], [0]>} : vector<4x16x16xf32>, vector<4x16x8xf32>, vector<4x16x8xf32> -> vector<4x16x8xf32>
    "tpu.trace_stop"() : () -> ()
    %758 = vector.extract_strided_slice %757 {offsets = [0, 0, 0], sizes = [1, 16, 8], strides = [1, 1, 1]} : vector<4x16x8xf32> to vector<1x16x8xf32>
    %759 = vector.shape_cast %758 : vector<1x16x8xf32> to vector<16x8xf32>
    %c4_578 = arith.constant 4 : index
    %c0_579 = arith.constant 0 : index
    %c0_580 = arith.constant 0 : index
    %c0_581 = arith.constant 0 : index
    %760 = vector.load %arg9[%c4_578, %c0_579, %c0_580, %c0_581] : memref<6x4x8x32xf32, #tpu.memory_space<vmem>>, vector<1x1x8x32xf32>
    %761 = vector.shape_cast %760 : vector<1x1x8x32xf32> to vector<8x32xf32>
    %cst_582 = arith.constant dense<0.000000e+00> : vector<16x32xf32>
    %762 = tpu.matmul %759, %761, %cst_582 {dimension_numbers = #tpu.dot_dimension_numbers<[1], [0], [0], [1], [0, 0, 1, 1], [], []>} : vector<16x8xf32>, vector<8x32xf32>, vector<16x32xf32> -> vector<16x32xf32>
    %763 = vector.broadcast %642 : vector<1x32xf32> to vector<16x32xf32>
    %764 = arith.addf %763, %762 : vector<16x32xf32>
    %765 = vector.extract_strided_slice %757 {offsets = [1, 0, 0], sizes = [1, 16, 8], strides = [1, 1, 1]} : vector<4x16x8xf32> to vector<1x16x8xf32>
    %766 = vector.shape_cast %765 : vector<1x16x8xf32> to vector<16x8xf32>
    %c4_583 = arith.constant 4 : index
    %c1_584 = arith.constant 1 : index
    %c0_585 = arith.constant 0 : index
    %c0_586 = arith.constant 0 : index
    %767 = vector.load %arg9[%c4_583, %c1_584, %c0_585, %c0_586] : memref<6x4x8x32xf32, #tpu.memory_space<vmem>>, vector<1x1x8x32xf32>
    %768 = vector.shape_cast %767 : vector<1x1x8x32xf32> to vector<8x32xf32>
    %cst_587 = arith.constant dense<0.000000e+00> : vector<16x32xf32>
    %769 = tpu.matmul %766, %768, %cst_587 {dimension_numbers = #tpu.dot_dimension_numbers<[1], [0], [0], [1], [0, 0, 1, 1], [], []>} : vector<16x8xf32>, vector<8x32xf32>, vector<16x32xf32> -> vector<16x32xf32>
    %770 = arith.addf %764, %769 : vector<16x32xf32>
    %771 = vector.extract_strided_slice %757 {offsets = [2, 0, 0], sizes = [1, 16, 8], strides = [1, 1, 1]} : vector<4x16x8xf32> to vector<1x16x8xf32>
    %772 = vector.shape_cast %771 : vector<1x16x8xf32> to vector<16x8xf32>
    %c4_588 = arith.constant 4 : index
    %c2_589 = arith.constant 2 : index
    %c0_590 = arith.constant 0 : index
    %c0_591 = arith.constant 0 : index
    %773 = vector.load %arg9[%c4_588, %c2_589, %c0_590, %c0_591] : memref<6x4x8x32xf32, #tpu.memory_space<vmem>>, vector<1x1x8x32xf32>
    %774 = vector.shape_cast %773 : vector<1x1x8x32xf32> to vector<8x32xf32>
    %cst_592 = arith.constant dense<0.000000e+00> : vector<16x32xf32>
    %775 = tpu.matmul %772, %774, %cst_592 {dimension_numbers = #tpu.dot_dimension_numbers<[1], [0], [0], [1], [0, 0, 1, 1], [], []>} : vector<16x8xf32>, vector<8x32xf32>, vector<16x32xf32> -> vector<16x32xf32>
    %776 = arith.addf %770, %775 : vector<16x32xf32>
    %777 = vector.extract_strided_slice %757 {offsets = [3, 0, 0], sizes = [1, 16, 8], strides = [1, 1, 1]} : vector<4x16x8xf32> to vector<1x16x8xf32>
    %778 = vector.shape_cast %777 : vector<1x16x8xf32> to vector<16x8xf32>
    %c4_593 = arith.constant 4 : index
    %c3_594 = arith.constant 3 : index
    %c0_595 = arith.constant 0 : index
    %c0_596 = arith.constant 0 : index
    %779 = vector.load %arg9[%c4_593, %c3_594, %c0_595, %c0_596] : memref<6x4x8x32xf32, #tpu.memory_space<vmem>>, vector<1x1x8x32xf32>
    %780 = vector.shape_cast %779 : vector<1x1x8x32xf32> to vector<8x32xf32>
    %cst_597 = arith.constant dense<0.000000e+00> : vector<16x32xf32>
    %781 = tpu.matmul %778, %780, %cst_597 {dimension_numbers = #tpu.dot_dimension_numbers<[1], [0], [0], [1], [0, 0, 1, 1], [], []>} : vector<16x8xf32>, vector<8x32xf32>, vector<16x32xf32> -> vector<16x32xf32>
    %782 = arith.addf %776, %781 : vector<16x32xf32>
    %783 = arith.addf %619, %782 : vector<16x32xf32>
    %784 = vector.extract_strided_slice %0 {offsets = [16, 0], sizes = [1, 32], strides = [1, 1]} : vector<34x32xf32> to vector<1x32xf32>
    %785 = vector.extract_strided_slice %0 {offsets = [17, 0], sizes = [1, 32], strides = [1, 1]} : vector<34x32xf32> to vector<1x32xf32>
    %cst_598 = arith.constant dense<0.000000e+00> : vector<16xf32>
    %786 = vector.multi_reduction <add>, %783, %cst_598 [1] : vector<16x32xf32> to vector<16xf32>
    %787 = vector.shape_cast %786 : vector<16xf32> to vector<16x1xf32>
    %cst_599 = arith.constant 3.200000e+01 : f32
    %788 = vector.broadcast %cst_599 : f32 to vector<16x1xf32>
    %789 = arith.divf %787, %788 : vector<16x1xf32>
    %790 = vector.broadcast %789 : vector<16x1xf32> to vector<16x32xf32>
    %791 = arith.subf %783, %790 : vector<16x32xf32>
    %792 = arith.mulf %791, %791 : vector<16x32xf32>
    %cst_600 = arith.constant dense<0.000000e+00> : vector<16xf32>
    %793 = vector.multi_reduction <add>, %792, %cst_600 [1] : vector<16x32xf32> to vector<16xf32>
    %794 = vector.shape_cast %793 : vector<16xf32> to vector<16x1xf32>
    %cst_601 = arith.constant 0.0322580636 : f32
    %795 = vector.broadcast %cst_601 : f32 to vector<16x1xf32>
    %796 = arith.mulf %794, %795 : vector<16x1xf32>
    %797 = math.sqrt %796 : vector<16x1xf32>
    %798 = vector.broadcast %784 : vector<1x32xf32> to vector<16x32xf32>
    %799 = arith.mulf %798, %791 : vector<16x32xf32>
    %cst_602 = arith.constant 9.99999997E-7 : f32
    %800 = vector.broadcast %cst_602 : f32 to vector<16x1xf32>
    %801 = arith.addf %797, %800 : vector<16x1xf32>
    %802 = vector.broadcast %801 : vector<16x1xf32> to vector<16x32xf32>
    %803 = arith.divf %799, %802 : vector<16x32xf32>
    %804 = vector.broadcast %785 : vector<1x32xf32> to vector<16x32xf32>
    %805 = arith.addf %803, %804 : vector<16x32xf32>
    %806 = vector.extract_strided_slice %1 {offsets = [2, 0], sizes = [1, 64], strides = [1, 1]} : vector<4x64xf32> to vector<1x64xf32>
    %807 = vector.extract_strided_slice %0 {offsets = [20, 0], sizes = [1, 32], strides = [1, 1]} : vector<34x32xf32> to vector<1x32xf32>
    %c2_603 = arith.constant 2 : index
    %c0_604 = arith.constant 0 : index
    %c0_605 = arith.constant 0 : index
    %808 = vector.load %arg10[%c2_603, %c0_604, %c0_605] : memref<4x32x64xf32, #tpu.memory_space<vmem>>, vector<1x32x64xf32>
    %809 = vector.shape_cast %808 : vector<1x32x64xf32> to vector<32x64xf32>
    %cst_606 = arith.constant dense<0.000000e+00> : vector<16x64xf32>
    %810 = tpu.matmul %805, %809, %cst_606 {dimension_numbers = #tpu.dot_dimension_numbers<[1], [0], [0], [1], [0, 0, 1, 1], [], []>} : vector<16x32xf32>, vector<32x64xf32>, vector<16x64xf32> -> vector<16x64xf32>
    %811 = vector.broadcast %806 : vector<1x64xf32> to vector<16x64xf32>
    %812 = arith.addf %810, %811 : vector<16x64xf32>
    %cst_607 = arith.constant 0.000000e+00 : f32
    %813 = vector.broadcast %cst_607 : f32 to vector<16x64xf32>
    %814 = arith.maximumf %812, %813 : vector<16x64xf32>
    %c2_608 = arith.constant 2 : index
    %c0_609 = arith.constant 0 : index
    %c0_610 = arith.constant 0 : index
    %815 = vector.load %arg11[%c2_608, %c0_609, %c0_610] : memref<4x64x32xf32, #tpu.memory_space<vmem>>, vector<1x64x32xf32>
    %816 = vector.shape_cast %815 : vector<1x64x32xf32> to vector<64x32xf32>
    %cst_611 = arith.constant dense<0.000000e+00> : vector<16x32xf32>
    %817 = tpu.matmul %814, %816, %cst_611 {dimension_numbers = #tpu.dot_dimension_numbers<[1], [0], [0], [1], [0, 0, 1, 1], [], []>} : vector<16x64xf32>, vector<64x32xf32>, vector<16x32xf32> -> vector<16x32xf32>
    %818 = vector.broadcast %807 : vector<1x32xf32> to vector<16x32xf32>
    %819 = arith.addf %817, %818 : vector<16x32xf32>
    %820 = arith.addf %783, %819 : vector<16x32xf32>
    %821 = vector.extract_strided_slice %0 {offsets = [21, 0], sizes = [1, 32], strides = [1, 1]} : vector<34x32xf32> to vector<1x32xf32>
    %822 = vector.extract_strided_slice %0 {offsets = [22, 0], sizes = [1, 32], strides = [1, 1]} : vector<34x32xf32> to vector<1x32xf32>
    %cst_612 = arith.constant dense<0.000000e+00> : vector<16xf32>
    %823 = vector.multi_reduction <add>, %820, %cst_612 [1] : vector<16x32xf32> to vector<16xf32>
    %824 = vector.shape_cast %823 : vector<16xf32> to vector<16x1xf32>
    %cst_613 = arith.constant 3.200000e+01 : f32
    %825 = vector.broadcast %cst_613 : f32 to vector<16x1xf32>
    %826 = arith.divf %824, %825 : vector<16x1xf32>
    %827 = vector.broadcast %826 : vector<16x1xf32> to vector<16x32xf32>
    %828 = arith.subf %820, %827 : vector<16x32xf32>
    %829 = arith.mulf %828, %828 : vector<16x32xf32>
    %cst_614 = arith.constant dense<0.000000e+00> : vector<16xf32>
    %830 = vector.multi_reduction <add>, %829, %cst_614 [1] : vector<16x32xf32> to vector<16xf32>
    %831 = vector.shape_cast %830 : vector<16xf32> to vector<16x1xf32>
    %cst_615 = arith.constant 0.0322580636 : f32
    %832 = vector.broadcast %cst_615 : f32 to vector<16x1xf32>
    %833 = arith.mulf %831, %832 : vector<16x1xf32>
    %834 = math.sqrt %833 : vector<16x1xf32>
    %835 = vector.broadcast %821 : vector<1x32xf32> to vector<16x32xf32>
    %836 = arith.mulf %835, %828 : vector<16x32xf32>
    %cst_616 = arith.constant 9.99999997E-7 : f32
    %837 = vector.broadcast %cst_616 : f32 to vector<16x1xf32>
    %838 = arith.addf %834, %837 : vector<16x1xf32>
    %839 = vector.broadcast %838 : vector<16x1xf32> to vector<16x32xf32>
    %840 = arith.divf %836, %839 : vector<16x32xf32>
    %841 = vector.broadcast %822 : vector<1x32xf32> to vector<16x32xf32>
    %842 = arith.addf %840, %841 : vector<16x32xf32>
    %843 = vector.extract_strided_slice %0 {offsets = [27, 0], sizes = [1, 32], strides = [1, 1]} : vector<34x32xf32> to vector<1x32xf32>
    %c9 = arith.constant 9 : index
    %c0_617 = arith.constant 0 : index
    %c0_618 = arith.constant 0 : index
    %c0_619 = arith.constant 0 : index
    %844 = vector.load %arg7[%c9, %c0_617, %c0_618, %c0_619] : memref<18x4x32x8xf32, #tpu.memory_space<vmem>>, vector<1x1x32x8xf32>
    %845 = vector.shape_cast %844 : vector<1x1x32x8xf32> to vector<32x8xf32>
    %cst_620 = arith.constant dense<0.000000e+00> : vector<16x8xf32>
    %846 = tpu.matmul %842, %845, %cst_620 {dimension_numbers = #tpu.dot_dimension_numbers<[1], [0], [0], [1], [0, 0, 1, 1], [], []>} : vector<16x32xf32>, vector<32x8xf32>, vector<16x8xf32> -> vector<16x8xf32>
    %c9_621 = arith.constant 9 : index
    %c0_622 = arith.constant 0 : index
    %c0_623 = arith.constant 0 : index
    %c0_624 = arith.constant 0 : index
    %847 = vector.load %arg8[%c9_621, %c0_622, %c0_623, %c0_624] : memref<18x4x1x8xf32, #tpu.memory_space<vmem>>, vector<1x1x1x8xf32>
    %848 = vector.shape_cast %847 : vector<1x1x1x8xf32> to vector<1x8xf32>
    %849 = vector.broadcast %848 : vector<1x8xf32> to vector<16x8xf32>
    %850 = arith.addf %846, %849 : vector<16x8xf32>
    %c9_625 = arith.constant 9 : index
    %c1_626 = arith.constant 1 : index
    %c0_627 = arith.constant 0 : index
    %c0_628 = arith.constant 0 : index
    %851 = vector.load %arg7[%c9_625, %c1_626, %c0_627, %c0_628] : memref<18x4x32x8xf32, #tpu.memory_space<vmem>>, vector<1x1x32x8xf32>
    %852 = vector.shape_cast %851 : vector<1x1x32x8xf32> to vector<32x8xf32>
    %cst_629 = arith.constant dense<0.000000e+00> : vector<16x8xf32>
    %853 = tpu.matmul %842, %852, %cst_629 {dimension_numbers = #tpu.dot_dimension_numbers<[1], [0], [0], [1], [0, 0, 1, 1], [], []>} : vector<16x32xf32>, vector<32x8xf32>, vector<16x8xf32> -> vector<16x8xf32>
    %c9_630 = arith.constant 9 : index
    %c1_631 = arith.constant 1 : index
    %c0_632 = arith.constant 0 : index
    %c0_633 = arith.constant 0 : index
    %854 = vector.load %arg8[%c9_630, %c1_631, %c0_632, %c0_633] : memref<18x4x1x8xf32, #tpu.memory_space<vmem>>, vector<1x1x1x8xf32>
    %855 = vector.shape_cast %854 : vector<1x1x1x8xf32> to vector<1x8xf32>
    %856 = vector.broadcast %855 : vector<1x8xf32> to vector<16x8xf32>
    %857 = arith.addf %853, %856 : vector<16x8xf32>
    %c9_634 = arith.constant 9 : index
    %c2_635 = arith.constant 2 : index
    %c0_636 = arith.constant 0 : index
    %c0_637 = arith.constant 0 : index
    %858 = vector.load %arg7[%c9_634, %c2_635, %c0_636, %c0_637] : memref<18x4x32x8xf32, #tpu.memory_space<vmem>>, vector<1x1x32x8xf32>
    %859 = vector.shape_cast %858 : vector<1x1x32x8xf32> to vector<32x8xf32>
    %cst_638 = arith.constant dense<0.000000e+00> : vector<16x8xf32>
    %860 = tpu.matmul %842, %859, %cst_638 {dimension_numbers = #tpu.dot_dimension_numbers<[1], [0], [0], [1], [0, 0, 1, 1], [], []>} : vector<16x32xf32>, vector<32x8xf32>, vector<16x8xf32> -> vector<16x8xf32>
    %c9_639 = arith.constant 9 : index
    %c2_640 = arith.constant 2 : index
    %c0_641 = arith.constant 0 : index
    %c0_642 = arith.constant 0 : index
    %861 = vector.load %arg8[%c9_639, %c2_640, %c0_641, %c0_642] : memref<18x4x1x8xf32, #tpu.memory_space<vmem>>, vector<1x1x1x8xf32>
    %862 = vector.shape_cast %861 : vector<1x1x1x8xf32> to vector<1x8xf32>
    %863 = vector.broadcast %862 : vector<1x8xf32> to vector<16x8xf32>
    %864 = arith.addf %860, %863 : vector<16x8xf32>
    %c9_643 = arith.constant 9 : index
    %c3_644 = arith.constant 3 : index
    %c0_645 = arith.constant 0 : index
    %c0_646 = arith.constant 0 : index
    %865 = vector.load %arg7[%c9_643, %c3_644, %c0_645, %c0_646] : memref<18x4x32x8xf32, #tpu.memory_space<vmem>>, vector<1x1x32x8xf32>
    %866 = vector.shape_cast %865 : vector<1x1x32x8xf32> to vector<32x8xf32>
    %cst_647 = arith.constant dense<0.000000e+00> : vector<16x8xf32>
    %867 = tpu.matmul %842, %866, %cst_647 {dimension_numbers = #tpu.dot_dimension_numbers<[1], [0], [0], [1], [0, 0, 1, 1], [], []>} : vector<16x32xf32>, vector<32x8xf32>, vector<16x8xf32> -> vector<16x8xf32>
    %c9_648 = arith.constant 9 : index
    %c3_649 = arith.constant 3 : index
    %c0_650 = arith.constant 0 : index
    %c0_651 = arith.constant 0 : index
    %868 = vector.load %arg8[%c9_648, %c3_649, %c0_650, %c0_651] : memref<18x4x1x8xf32, #tpu.memory_space<vmem>>, vector<1x1x1x8xf32>
    %869 = vector.shape_cast %868 : vector<1x1x1x8xf32> to vector<1x8xf32>
    %870 = vector.broadcast %869 : vector<1x8xf32> to vector<16x8xf32>
    %871 = arith.addf %867, %870 : vector<16x8xf32>
    %872 = vector.shape_cast %850 : vector<16x8xf32> to vector<1x16x8xf32>
    %873 = vector.shape_cast %857 : vector<16x8xf32> to vector<1x16x8xf32>
    %874 = vector.shape_cast %864 : vector<16x8xf32> to vector<1x16x8xf32>
    %875 = vector.shape_cast %871 : vector<16x8xf32> to vector<1x16x8xf32>
    %876 = tpu.concatenate %872, %873, %874, %875 in 0 : vector<1x16x8xf32>, vector<1x16x8xf32>, vector<1x16x8xf32>, vector<1x16x8xf32> -> vector<4x16x8xf32>
    %c10 = arith.constant 10 : index
    %c0_652 = arith.constant 0 : index
    %c0_653 = arith.constant 0 : index
    %c0_654 = arith.constant 0 : index
    %877 = vector.load %arg7[%c10, %c0_652, %c0_653, %c0_654] : memref<18x4x32x8xf32, #tpu.memory_space<vmem>>, vector<1x1x32x8xf32>
    %878 = vector.shape_cast %877 : vector<1x1x32x8xf32> to vector<32x8xf32>
    %cst_655 = arith.constant dense<0.000000e+00> : vector<16x8xf32>
    %879 = tpu.matmul %842, %878, %cst_655 {dimension_numbers = #tpu.dot_dimension_numbers<[1], [0], [0], [1], [0, 0, 1, 1], [], []>} : vector<16x32xf32>, vector<32x8xf32>, vector<16x8xf32> -> vector<16x8xf32>
    %c10_656 = arith.constant 10 : index
    %c0_657 = arith.constant 0 : index
    %c0_658 = arith.constant 0 : index
    %c0_659 = arith.constant 0 : index
    %880 = vector.load %arg8[%c10_656, %c0_657, %c0_658, %c0_659] : memref<18x4x1x8xf32, #tpu.memory_space<vmem>>, vector<1x1x1x8xf32>
    %881 = vector.shape_cast %880 : vector<1x1x1x8xf32> to vector<1x8xf32>
    %882 = vector.broadcast %881 : vector<1x8xf32> to vector<16x8xf32>
    %883 = arith.addf %879, %882 : vector<16x8xf32>
    %c10_660 = arith.constant 10 : index
    %c1_661 = arith.constant 1 : index
    %c0_662 = arith.constant 0 : index
    %c0_663 = arith.constant 0 : index
    %884 = vector.load %arg7[%c10_660, %c1_661, %c0_662, %c0_663] : memref<18x4x32x8xf32, #tpu.memory_space<vmem>>, vector<1x1x32x8xf32>
    %885 = vector.shape_cast %884 : vector<1x1x32x8xf32> to vector<32x8xf32>
    %cst_664 = arith.constant dense<0.000000e+00> : vector<16x8xf32>
    %886 = tpu.matmul %842, %885, %cst_664 {dimension_numbers = #tpu.dot_dimension_numbers<[1], [0], [0], [1], [0, 0, 1, 1], [], []>} : vector<16x32xf32>, vector<32x8xf32>, vector<16x8xf32> -> vector<16x8xf32>
    %c10_665 = arith.constant 10 : index
    %c1_666 = arith.constant 1 : index
    %c0_667 = arith.constant 0 : index
    %c0_668 = arith.constant 0 : index
    %887 = vector.load %arg8[%c10_665, %c1_666, %c0_667, %c0_668] : memref<18x4x1x8xf32, #tpu.memory_space<vmem>>, vector<1x1x1x8xf32>
    %888 = vector.shape_cast %887 : vector<1x1x1x8xf32> to vector<1x8xf32>
    %889 = vector.broadcast %888 : vector<1x8xf32> to vector<16x8xf32>
    %890 = arith.addf %886, %889 : vector<16x8xf32>
    %c10_669 = arith.constant 10 : index
    %c2_670 = arith.constant 2 : index
    %c0_671 = arith.constant 0 : index
    %c0_672 = arith.constant 0 : index
    %891 = vector.load %arg7[%c10_669, %c2_670, %c0_671, %c0_672] : memref<18x4x32x8xf32, #tpu.memory_space<vmem>>, vector<1x1x32x8xf32>
    %892 = vector.shape_cast %891 : vector<1x1x32x8xf32> to vector<32x8xf32>
    %cst_673 = arith.constant dense<0.000000e+00> : vector<16x8xf32>
    %893 = tpu.matmul %842, %892, %cst_673 {dimension_numbers = #tpu.dot_dimension_numbers<[1], [0], [0], [1], [0, 0, 1, 1], [], []>} : vector<16x32xf32>, vector<32x8xf32>, vector<16x8xf32> -> vector<16x8xf32>
    %c10_674 = arith.constant 10 : index
    %c2_675 = arith.constant 2 : index
    %c0_676 = arith.constant 0 : index
    %c0_677 = arith.constant 0 : index
    %894 = vector.load %arg8[%c10_674, %c2_675, %c0_676, %c0_677] : memref<18x4x1x8xf32, #tpu.memory_space<vmem>>, vector<1x1x1x8xf32>
    %895 = vector.shape_cast %894 : vector<1x1x1x8xf32> to vector<1x8xf32>
    %896 = vector.broadcast %895 : vector<1x8xf32> to vector<16x8xf32>
    %897 = arith.addf %893, %896 : vector<16x8xf32>
    %c10_678 = arith.constant 10 : index
    %c3_679 = arith.constant 3 : index
    %c0_680 = arith.constant 0 : index
    %c0_681 = arith.constant 0 : index
    %898 = vector.load %arg7[%c10_678, %c3_679, %c0_680, %c0_681] : memref<18x4x32x8xf32, #tpu.memory_space<vmem>>, vector<1x1x32x8xf32>
    %899 = vector.shape_cast %898 : vector<1x1x32x8xf32> to vector<32x8xf32>
    %cst_682 = arith.constant dense<0.000000e+00> : vector<16x8xf32>
    %900 = tpu.matmul %842, %899, %cst_682 {dimension_numbers = #tpu.dot_dimension_numbers<[1], [0], [0], [1], [0, 0, 1, 1], [], []>} : vector<16x32xf32>, vector<32x8xf32>, vector<16x8xf32> -> vector<16x8xf32>
    %c10_683 = arith.constant 10 : index
    %c3_684 = arith.constant 3 : index
    %c0_685 = arith.constant 0 : index
    %c0_686 = arith.constant 0 : index
    %901 = vector.load %arg8[%c10_683, %c3_684, %c0_685, %c0_686] : memref<18x4x1x8xf32, #tpu.memory_space<vmem>>, vector<1x1x1x8xf32>
    %902 = vector.shape_cast %901 : vector<1x1x1x8xf32> to vector<1x8xf32>
    %903 = vector.broadcast %902 : vector<1x8xf32> to vector<16x8xf32>
    %904 = arith.addf %900, %903 : vector<16x8xf32>
    %905 = vector.shape_cast %883 : vector<16x8xf32> to vector<1x16x8xf32>
    %906 = vector.shape_cast %890 : vector<16x8xf32> to vector<1x16x8xf32>
    %907 = vector.shape_cast %897 : vector<16x8xf32> to vector<1x16x8xf32>
    %908 = vector.shape_cast %904 : vector<16x8xf32> to vector<1x16x8xf32>
    %909 = tpu.concatenate %905, %906, %907, %908 in 0 : vector<1x16x8xf32>, vector<1x16x8xf32>, vector<1x16x8xf32>, vector<1x16x8xf32> -> vector<4x16x8xf32>
    %c11 = arith.constant 11 : index
    %c0_687 = arith.constant 0 : index
    %c0_688 = arith.constant 0 : index
    %c0_689 = arith.constant 0 : index
    %910 = vector.load %arg7[%c11, %c0_687, %c0_688, %c0_689] : memref<18x4x32x8xf32, #tpu.memory_space<vmem>>, vector<1x1x32x8xf32>
    %911 = vector.shape_cast %910 : vector<1x1x32x8xf32> to vector<32x8xf32>
    %cst_690 = arith.constant dense<0.000000e+00> : vector<16x8xf32>
    %912 = tpu.matmul %842, %911, %cst_690 {dimension_numbers = #tpu.dot_dimension_numbers<[1], [0], [0], [1], [0, 0, 1, 1], [], []>} : vector<16x32xf32>, vector<32x8xf32>, vector<16x8xf32> -> vector<16x8xf32>
    %c11_691 = arith.constant 11 : index
    %c0_692 = arith.constant 0 : index
    %c0_693 = arith.constant 0 : index
    %c0_694 = arith.constant 0 : index
    %913 = vector.load %arg8[%c11_691, %c0_692, %c0_693, %c0_694] : memref<18x4x1x8xf32, #tpu.memory_space<vmem>>, vector<1x1x1x8xf32>
    %914 = vector.shape_cast %913 : vector<1x1x1x8xf32> to vector<1x8xf32>
    %915 = vector.broadcast %914 : vector<1x8xf32> to vector<16x8xf32>
    %916 = arith.addf %912, %915 : vector<16x8xf32>
    %c11_695 = arith.constant 11 : index
    %c1_696 = arith.constant 1 : index
    %c0_697 = arith.constant 0 : index
    %c0_698 = arith.constant 0 : index
    %917 = vector.load %arg7[%c11_695, %c1_696, %c0_697, %c0_698] : memref<18x4x32x8xf32, #tpu.memory_space<vmem>>, vector<1x1x32x8xf32>
    %918 = vector.shape_cast %917 : vector<1x1x32x8xf32> to vector<32x8xf32>
    %cst_699 = arith.constant dense<0.000000e+00> : vector<16x8xf32>
    %919 = tpu.matmul %842, %918, %cst_699 {dimension_numbers = #tpu.dot_dimension_numbers<[1], [0], [0], [1], [0, 0, 1, 1], [], []>} : vector<16x32xf32>, vector<32x8xf32>, vector<16x8xf32> -> vector<16x8xf32>
    %c11_700 = arith.constant 11 : index
    %c1_701 = arith.constant 1 : index
    %c0_702 = arith.constant 0 : index
    %c0_703 = arith.constant 0 : index
    %920 = vector.load %arg8[%c11_700, %c1_701, %c0_702, %c0_703] : memref<18x4x1x8xf32, #tpu.memory_space<vmem>>, vector<1x1x1x8xf32>
    %921 = vector.shape_cast %920 : vector<1x1x1x8xf32> to vector<1x8xf32>
    %922 = vector.broadcast %921 : vector<1x8xf32> to vector<16x8xf32>
    %923 = arith.addf %919, %922 : vector<16x8xf32>
    %c11_704 = arith.constant 11 : index
    %c2_705 = arith.constant 2 : index
    %c0_706 = arith.constant 0 : index
    %c0_707 = arith.constant 0 : index
    %924 = vector.load %arg7[%c11_704, %c2_705, %c0_706, %c0_707] : memref<18x4x32x8xf32, #tpu.memory_space<vmem>>, vector<1x1x32x8xf32>
    %925 = vector.shape_cast %924 : vector<1x1x32x8xf32> to vector<32x8xf32>
    %cst_708 = arith.constant dense<0.000000e+00> : vector<16x8xf32>
    %926 = tpu.matmul %842, %925, %cst_708 {dimension_numbers = #tpu.dot_dimension_numbers<[1], [0], [0], [1], [0, 0, 1, 1], [], []>} : vector<16x32xf32>, vector<32x8xf32>, vector<16x8xf32> -> vector<16x8xf32>
    %c11_709 = arith.constant 11 : index
    %c2_710 = arith.constant 2 : index
    %c0_711 = arith.constant 0 : index
    %c0_712 = arith.constant 0 : index
    %927 = vector.load %arg8[%c11_709, %c2_710, %c0_711, %c0_712] : memref<18x4x1x8xf32, #tpu.memory_space<vmem>>, vector<1x1x1x8xf32>
    %928 = vector.shape_cast %927 : vector<1x1x1x8xf32> to vector<1x8xf32>
    %929 = vector.broadcast %928 : vector<1x8xf32> to vector<16x8xf32>
    %930 = arith.addf %926, %929 : vector<16x8xf32>
    %c11_713 = arith.constant 11 : index
    %c3_714 = arith.constant 3 : index
    %c0_715 = arith.constant 0 : index
    %c0_716 = arith.constant 0 : index
    %931 = vector.load %arg7[%c11_713, %c3_714, %c0_715, %c0_716] : memref<18x4x32x8xf32, #tpu.memory_space<vmem>>, vector<1x1x32x8xf32>
    %932 = vector.shape_cast %931 : vector<1x1x32x8xf32> to vector<32x8xf32>
    %cst_717 = arith.constant dense<0.000000e+00> : vector<16x8xf32>
    %933 = tpu.matmul %842, %932, %cst_717 {dimension_numbers = #tpu.dot_dimension_numbers<[1], [0], [0], [1], [0, 0, 1, 1], [], []>} : vector<16x32xf32>, vector<32x8xf32>, vector<16x8xf32> -> vector<16x8xf32>
    %c11_718 = arith.constant 11 : index
    %c3_719 = arith.constant 3 : index
    %c0_720 = arith.constant 0 : index
    %c0_721 = arith.constant 0 : index
    %934 = vector.load %arg8[%c11_718, %c3_719, %c0_720, %c0_721] : memref<18x4x1x8xf32, #tpu.memory_space<vmem>>, vector<1x1x1x8xf32>
    %935 = vector.shape_cast %934 : vector<1x1x1x8xf32> to vector<1x8xf32>
    %936 = vector.broadcast %935 : vector<1x8xf32> to vector<16x8xf32>
    %937 = arith.addf %933, %936 : vector<16x8xf32>
    %938 = vector.shape_cast %916 : vector<16x8xf32> to vector<1x16x8xf32>
    %939 = vector.shape_cast %923 : vector<16x8xf32> to vector<1x16x8xf32>
    %940 = vector.shape_cast %930 : vector<16x8xf32> to vector<1x16x8xf32>
    %941 = vector.shape_cast %937 : vector<16x8xf32> to vector<1x16x8xf32>
    %942 = tpu.concatenate %938, %939, %940, %941 in 0 : vector<1x16x8xf32>, vector<1x16x8xf32>, vector<1x16x8xf32>, vector<1x16x8xf32> -> vector<4x16x8xf32>
    "tpu.trace_start"() <{level = 10 : i32, message = "hqd,hkd->hqk"}> : () -> ()
    %cst_722 = arith.constant dense<0.000000e+00> : vector<4x16x16xf32>
    %943 = tpu.matmul %876, %909, %cst_722 {dimension_numbers = #tpu.dot_dimension_numbers<[2], [2], [1], [1], [0, 0, 0, 1, 1, 1], [0], [0]>} : vector<4x16x8xf32>, vector<4x16x8xf32>, vector<4x16x16xf32> -> vector<4x16x16xf32>
    "tpu.trace_stop"() : () -> ()
    %cst_723 = arith.constant 0.353553385 : f32
    %944 = vector.broadcast %cst_723 : f32 to vector<4x16x16xf32>
    %945 = arith.mulf %943, %944 : vector<4x16x16xf32>
    %946 = vector.shape_cast %4 : vector<16x16xf32> to vector<1x16x16xf32>
    %947 = vector.broadcast %946 : vector<1x16x16xf32> to vector<4x16x16xf32>
    %948 = arith.addf %945, %947 : vector<4x16x16xf32>
    %cst_724 = arith.constant dense<0xFF800000> : vector<4x16xf32>
    %949 = vector.multi_reduction <maximumf>, %948, %cst_724 [2] : vector<4x16x16xf32> to vector<4x16xf32>
    %950 = vector.shape_cast %949 : vector<4x16xf32> to vector<4x16x1xf32>
    %951 = vector.broadcast %950 : vector<4x16x1xf32> to vector<4x16x16xf32>
    %952 = arith.subf %948, %951 : vector<4x16x16xf32>
    %953 = math.exp %952 : vector<4x16x16xf32>
    %cst_725 = arith.constant dense<0.000000e+00> : vector<4x16xf32>
    %954 = vector.multi_reduction <add>, %953, %cst_725 [2] : vector<4x16x16xf32> to vector<4x16xf32>
    %955 = vector.shape_cast %954 : vector<4x16xf32> to vector<4x16x1xf32>
    %956 = vector.broadcast %955 : vector<4x16x1xf32> to vector<4x16x16xf32>
    %957 = arith.divf %953, %956 : vector<4x16x16xf32>
    "tpu.trace_start"() <{level = 10 : i32, message = "hqk,hkd->hqd"}> : () -> ()
    %cst_726 = arith.constant dense<0.000000e+00> : vector<4x16x8xf32>
    %958 = tpu.matmul %957, %942, %cst_726 {dimension_numbers = #tpu.dot_dimension_numbers<[2], [1], [1], [2], [0, 0, 0, 1, 1, 2], [0], [0]>} : vector<4x16x16xf32>, vector<4x16x8xf32>, vector<4x16x8xf32> -> vector<4x16x8xf32>
    "tpu.trace_stop"() : () -> ()
    %959 = vector.extract_strided_slice %958 {offsets = [0, 0, 0], sizes = [1, 16, 8], strides = [1, 1, 1]} : vector<4x16x8xf32> to vector<1x16x8xf32>
    %960 = vector.shape_cast %959 : vector<1x16x8xf32> to vector<16x8xf32>
    %c3_727 = arith.constant 3 : index
    %c0_728 = arith.constant 0 : index
    %c0_729 = arith.constant 0 : index
    %c0_730 = arith.constant 0 : index
    %961 = vector.load %arg9[%c3_727, %c0_728, %c0_729, %c0_730] : memref<6x4x8x32xf32, #tpu.memory_space<vmem>>, vector<1x1x8x32xf32>
    %962 = vector.shape_cast %961 : vector<1x1x8x32xf32> to vector<8x32xf32>
    %cst_731 = arith.constant dense<0.000000e+00> : vector<16x32xf32>
    %963 = tpu.matmul %960, %962, %cst_731 {dimension_numbers = #tpu.dot_dimension_numbers<[1], [0], [0], [1], [0, 0, 1, 1], [], []>} : vector<16x8xf32>, vector<8x32xf32>, vector<16x32xf32> -> vector<16x32xf32>
    %964 = vector.broadcast %843 : vector<1x32xf32> to vector<16x32xf32>
    %965 = arith.addf %964, %963 : vector<16x32xf32>
    %966 = vector.extract_strided_slice %958 {offsets = [1, 0, 0], sizes = [1, 16, 8], strides = [1, 1, 1]} : vector<4x16x8xf32> to vector<1x16x8xf32>
    %967 = vector.shape_cast %966 : vector<1x16x8xf32> to vector<16x8xf32>
    %c3_732 = arith.constant 3 : index
    %c1_733 = arith.constant 1 : index
    %c0_734 = arith.constant 0 : index
    %c0_735 = arith.constant 0 : index
    %968 = vector.load %arg9[%c3_732, %c1_733, %c0_734, %c0_735] : memref<6x4x8x32xf32, #tpu.memory_space<vmem>>, vector<1x1x8x32xf32>
    %969 = vector.shape_cast %968 : vector<1x1x8x32xf32> to vector<8x32xf32>
    %cst_736 = arith.constant dense<0.000000e+00> : vector<16x32xf32>
    %970 = tpu.matmul %967, %969, %cst_736 {dimension_numbers = #tpu.dot_dimension_numbers<[1], [0], [0], [1], [0, 0, 1, 1], [], []>} : vector<16x8xf32>, vector<8x32xf32>, vector<16x32xf32> -> vector<16x32xf32>
    %971 = arith.addf %965, %970 : vector<16x32xf32>
    %972 = vector.extract_strided_slice %958 {offsets = [2, 0, 0], sizes = [1, 16, 8], strides = [1, 1, 1]} : vector<4x16x8xf32> to vector<1x16x8xf32>
    %973 = vector.shape_cast %972 : vector<1x16x8xf32> to vector<16x8xf32>
    %c3_737 = arith.constant 3 : index
    %c2_738 = arith.constant 2 : index
    %c0_739 = arith.constant 0 : index
    %c0_740 = arith.constant 0 : index
    %974 = vector.load %arg9[%c3_737, %c2_738, %c0_739, %c0_740] : memref<6x4x8x32xf32, #tpu.memory_space<vmem>>, vector<1x1x8x32xf32>
    %975 = vector.shape_cast %974 : vector<1x1x8x32xf32> to vector<8x32xf32>
    %cst_741 = arith.constant dense<0.000000e+00> : vector<16x32xf32>
    %976 = tpu.matmul %973, %975, %cst_741 {dimension_numbers = #tpu.dot_dimension_numbers<[1], [0], [0], [1], [0, 0, 1, 1], [], []>} : vector<16x8xf32>, vector<8x32xf32>, vector<16x32xf32> -> vector<16x32xf32>
    %977 = arith.addf %971, %976 : vector<16x32xf32>
    %978 = vector.extract_strided_slice %958 {offsets = [3, 0, 0], sizes = [1, 16, 8], strides = [1, 1, 1]} : vector<4x16x8xf32> to vector<1x16x8xf32>
    %979 = vector.shape_cast %978 : vector<1x16x8xf32> to vector<16x8xf32>
    %c3_742 = arith.constant 3 : index
    %c3_743 = arith.constant 3 : index
    %c0_744 = arith.constant 0 : index
    %c0_745 = arith.constant 0 : index
    %980 = vector.load %arg9[%c3_742, %c3_743, %c0_744, %c0_745] : memref<6x4x8x32xf32, #tpu.memory_space<vmem>>, vector<1x1x8x32xf32>
    %981 = vector.shape_cast %980 : vector<1x1x8x32xf32> to vector<8x32xf32>
    %cst_746 = arith.constant dense<0.000000e+00> : vector<16x32xf32>
    %982 = tpu.matmul %979, %981, %cst_746 {dimension_numbers = #tpu.dot_dimension_numbers<[1], [0], [0], [1], [0, 0, 1, 1], [], []>} : vector<16x8xf32>, vector<8x32xf32>, vector<16x32xf32> -> vector<16x32xf32>
    %983 = arith.addf %977, %982 : vector<16x32xf32>
    %984 = arith.addf %820, %983 : vector<16x32xf32>
    %985 = vector.extract_strided_slice %0 {offsets = [23, 0], sizes = [1, 32], strides = [1, 1]} : vector<34x32xf32> to vector<1x32xf32>
    %986 = vector.extract_strided_slice %0 {offsets = [24, 0], sizes = [1, 32], strides = [1, 1]} : vector<34x32xf32> to vector<1x32xf32>
    %cst_747 = arith.constant dense<0.000000e+00> : vector<16xf32>
    %987 = vector.multi_reduction <add>, %984, %cst_747 [1] : vector<16x32xf32> to vector<16xf32>
    %988 = vector.shape_cast %987 : vector<16xf32> to vector<16x1xf32>
    %cst_748 = arith.constant 3.200000e+01 : f32
    %989 = vector.broadcast %cst_748 : f32 to vector<16x1xf32>
    %990 = arith.divf %988, %989 : vector<16x1xf32>
    %991 = vector.broadcast %990 : vector<16x1xf32> to vector<16x32xf32>
    %992 = arith.subf %984, %991 : vector<16x32xf32>
    %993 = arith.mulf %992, %992 : vector<16x32xf32>
    %cst_749 = arith.constant dense<0.000000e+00> : vector<16xf32>
    %994 = vector.multi_reduction <add>, %993, %cst_749 [1] : vector<16x32xf32> to vector<16xf32>
    %995 = vector.shape_cast %994 : vector<16xf32> to vector<16x1xf32>
    %cst_750 = arith.constant 0.0322580636 : f32
    %996 = vector.broadcast %cst_750 : f32 to vector<16x1xf32>
    %997 = arith.mulf %995, %996 : vector<16x1xf32>
    %998 = math.sqrt %997 : vector<16x1xf32>
    %999 = vector.broadcast %985 : vector<1x32xf32> to vector<16x32xf32>
    %1000 = arith.mulf %999, %992 : vector<16x32xf32>
    %cst_751 = arith.constant 9.99999997E-7 : f32
    %1001 = vector.broadcast %cst_751 : f32 to vector<16x1xf32>
    %1002 = arith.addf %998, %1001 : vector<16x1xf32>
    %1003 = vector.broadcast %1002 : vector<16x1xf32> to vector<16x32xf32>
    %1004 = arith.divf %1000, %1003 : vector<16x32xf32>
    %1005 = vector.broadcast %986 : vector<1x32xf32> to vector<16x32xf32>
    %1006 = arith.addf %1004, %1005 : vector<16x32xf32>
    %1007 = vector.extract_strided_slice %0 {offsets = [28, 0], sizes = [1, 32], strides = [1, 1]} : vector<34x32xf32> to vector<1x32xf32>
    %c15 = arith.constant 15 : index
    %c0_752 = arith.constant 0 : index
    %c0_753 = arith.constant 0 : index
    %c0_754 = arith.constant 0 : index
    %1008 = vector.load %arg7[%c15, %c0_752, %c0_753, %c0_754] : memref<18x4x32x8xf32, #tpu.memory_space<vmem>>, vector<1x1x32x8xf32>
    %1009 = vector.shape_cast %1008 : vector<1x1x32x8xf32> to vector<32x8xf32>
    %cst_755 = arith.constant dense<0.000000e+00> : vector<16x8xf32>
    %1010 = tpu.matmul %1006, %1009, %cst_755 {dimension_numbers = #tpu.dot_dimension_numbers<[1], [0], [0], [1], [0, 0, 1, 1], [], []>} : vector<16x32xf32>, vector<32x8xf32>, vector<16x8xf32> -> vector<16x8xf32>
    %c15_756 = arith.constant 15 : index
    %c0_757 = arith.constant 0 : index
    %c0_758 = arith.constant 0 : index
    %c0_759 = arith.constant 0 : index
    %1011 = vector.load %arg8[%c15_756, %c0_757, %c0_758, %c0_759] : memref<18x4x1x8xf32, #tpu.memory_space<vmem>>, vector<1x1x1x8xf32>
    %1012 = vector.shape_cast %1011 : vector<1x1x1x8xf32> to vector<1x8xf32>
    %1013 = vector.broadcast %1012 : vector<1x8xf32> to vector<16x8xf32>
    %1014 = arith.addf %1010, %1013 : vector<16x8xf32>
    %c15_760 = arith.constant 15 : index
    %c1_761 = arith.constant 1 : index
    %c0_762 = arith.constant 0 : index
    %c0_763 = arith.constant 0 : index
    %1015 = vector.load %arg7[%c15_760, %c1_761, %c0_762, %c0_763] : memref<18x4x32x8xf32, #tpu.memory_space<vmem>>, vector<1x1x32x8xf32>
    %1016 = vector.shape_cast %1015 : vector<1x1x32x8xf32> to vector<32x8xf32>
    %cst_764 = arith.constant dense<0.000000e+00> : vector<16x8xf32>
    %1017 = tpu.matmul %1006, %1016, %cst_764 {dimension_numbers = #tpu.dot_dimension_numbers<[1], [0], [0], [1], [0, 0, 1, 1], [], []>} : vector<16x32xf32>, vector<32x8xf32>, vector<16x8xf32> -> vector<16x8xf32>
    %c15_765 = arith.constant 15 : index
    %c1_766 = arith.constant 1 : index
    %c0_767 = arith.constant 0 : index
    %c0_768 = arith.constant 0 : index
    %1018 = vector.load %arg8[%c15_765, %c1_766, %c0_767, %c0_768] : memref<18x4x1x8xf32, #tpu.memory_space<vmem>>, vector<1x1x1x8xf32>
    %1019 = vector.shape_cast %1018 : vector<1x1x1x8xf32> to vector<1x8xf32>
    %1020 = vector.broadcast %1019 : vector<1x8xf32> to vector<16x8xf32>
    %1021 = arith.addf %1017, %1020 : vector<16x8xf32>
    %c15_769 = arith.constant 15 : index
    %c2_770 = arith.constant 2 : index
    %c0_771 = arith.constant 0 : index
    %c0_772 = arith.constant 0 : index
    %1022 = vector.load %arg7[%c15_769, %c2_770, %c0_771, %c0_772] : memref<18x4x32x8xf32, #tpu.memory_space<vmem>>, vector<1x1x32x8xf32>
    %1023 = vector.shape_cast %1022 : vector<1x1x32x8xf32> to vector<32x8xf32>
    %cst_773 = arith.constant dense<0.000000e+00> : vector<16x8xf32>
    %1024 = tpu.matmul %1006, %1023, %cst_773 {dimension_numbers = #tpu.dot_dimension_numbers<[1], [0], [0], [1], [0, 0, 1, 1], [], []>} : vector<16x32xf32>, vector<32x8xf32>, vector<16x8xf32> -> vector<16x8xf32>
    %c15_774 = arith.constant 15 : index
    %c2_775 = arith.constant 2 : index
    %c0_776 = arith.constant 0 : index
    %c0_777 = arith.constant 0 : index
    %1025 = vector.load %arg8[%c15_774, %c2_775, %c0_776, %c0_777] : memref<18x4x1x8xf32, #tpu.memory_space<vmem>>, vector<1x1x1x8xf32>
    %1026 = vector.shape_cast %1025 : vector<1x1x1x8xf32> to vector<1x8xf32>
    %1027 = vector.broadcast %1026 : vector<1x8xf32> to vector<16x8xf32>
    %1028 = arith.addf %1024, %1027 : vector<16x8xf32>
    %c15_778 = arith.constant 15 : index
    %c3_779 = arith.constant 3 : index
    %c0_780 = arith.constant 0 : index
    %c0_781 = arith.constant 0 : index
    %1029 = vector.load %arg7[%c15_778, %c3_779, %c0_780, %c0_781] : memref<18x4x32x8xf32, #tpu.memory_space<vmem>>, vector<1x1x32x8xf32>
    %1030 = vector.shape_cast %1029 : vector<1x1x32x8xf32> to vector<32x8xf32>
    %cst_782 = arith.constant dense<0.000000e+00> : vector<16x8xf32>
    %1031 = tpu.matmul %1006, %1030, %cst_782 {dimension_numbers = #tpu.dot_dimension_numbers<[1], [0], [0], [1], [0, 0, 1, 1], [], []>} : vector<16x32xf32>, vector<32x8xf32>, vector<16x8xf32> -> vector<16x8xf32>
    %c15_783 = arith.constant 15 : index
    %c3_784 = arith.constant 3 : index
    %c0_785 = arith.constant 0 : index
    %c0_786 = arith.constant 0 : index
    %1032 = vector.load %arg8[%c15_783, %c3_784, %c0_785, %c0_786] : memref<18x4x1x8xf32, #tpu.memory_space<vmem>>, vector<1x1x1x8xf32>
    %1033 = vector.shape_cast %1032 : vector<1x1x1x8xf32> to vector<1x8xf32>
    %1034 = vector.broadcast %1033 : vector<1x8xf32> to vector<16x8xf32>
    %1035 = arith.addf %1031, %1034 : vector<16x8xf32>
    %1036 = vector.shape_cast %1014 : vector<16x8xf32> to vector<1x16x8xf32>
    %1037 = vector.shape_cast %1021 : vector<16x8xf32> to vector<1x16x8xf32>
    %1038 = vector.shape_cast %1028 : vector<16x8xf32> to vector<1x16x8xf32>
    %1039 = vector.shape_cast %1035 : vector<16x8xf32> to vector<1x16x8xf32>
    %1040 = tpu.concatenate %1036, %1037, %1038, %1039 in 0 : vector<1x16x8xf32>, vector<1x16x8xf32>, vector<1x16x8xf32>, vector<1x16x8xf32> -> vector<4x16x8xf32>
    %c16 = arith.constant 16 : index
    %c0_787 = arith.constant 0 : index
    %c0_788 = arith.constant 0 : index
    %c0_789 = arith.constant 0 : index
    %1041 = vector.load %arg7[%c16, %c0_787, %c0_788, %c0_789] : memref<18x4x32x8xf32, #tpu.memory_space<vmem>>, vector<1x1x32x8xf32>
    %1042 = vector.shape_cast %1041 : vector<1x1x32x8xf32> to vector<32x8xf32>
    %cst_790 = arith.constant dense<0.000000e+00> : vector<16x8xf32>
    %1043 = tpu.matmul %442, %1042, %cst_790 {dimension_numbers = #tpu.dot_dimension_numbers<[1], [0], [0], [1], [0, 0, 1, 1], [], []>} : vector<16x32xf32>, vector<32x8xf32>, vector<16x8xf32> -> vector<16x8xf32>
    %c16_791 = arith.constant 16 : index
    %c0_792 = arith.constant 0 : index
    %c0_793 = arith.constant 0 : index
    %c0_794 = arith.constant 0 : index
    %1044 = vector.load %arg8[%c16_791, %c0_792, %c0_793, %c0_794] : memref<18x4x1x8xf32, #tpu.memory_space<vmem>>, vector<1x1x1x8xf32>
    %1045 = vector.shape_cast %1044 : vector<1x1x1x8xf32> to vector<1x8xf32>
    %1046 = vector.broadcast %1045 : vector<1x8xf32> to vector<16x8xf32>
    %1047 = arith.addf %1043, %1046 : vector<16x8xf32>
    %c16_795 = arith.constant 16 : index
    %c1_796 = arith.constant 1 : index
    %c0_797 = arith.constant 0 : index
    %c0_798 = arith.constant 0 : index
    %1048 = vector.load %arg7[%c16_795, %c1_796, %c0_797, %c0_798] : memref<18x4x32x8xf32, #tpu.memory_space<vmem>>, vector<1x1x32x8xf32>
    %1049 = vector.shape_cast %1048 : vector<1x1x32x8xf32> to vector<32x8xf32>
    %cst_799 = arith.constant dense<0.000000e+00> : vector<16x8xf32>
    %1050 = tpu.matmul %442, %1049, %cst_799 {dimension_numbers = #tpu.dot_dimension_numbers<[1], [0], [0], [1], [0, 0, 1, 1], [], []>} : vector<16x32xf32>, vector<32x8xf32>, vector<16x8xf32> -> vector<16x8xf32>
    %c16_800 = arith.constant 16 : index
    %c1_801 = arith.constant 1 : index
    %c0_802 = arith.constant 0 : index
    %c0_803 = arith.constant 0 : index
    %1051 = vector.load %arg8[%c16_800, %c1_801, %c0_802, %c0_803] : memref<18x4x1x8xf32, #tpu.memory_space<vmem>>, vector<1x1x1x8xf32>
    %1052 = vector.shape_cast %1051 : vector<1x1x1x8xf32> to vector<1x8xf32>
    %1053 = vector.broadcast %1052 : vector<1x8xf32> to vector<16x8xf32>
    %1054 = arith.addf %1050, %1053 : vector<16x8xf32>
    %c16_804 = arith.constant 16 : index
    %c2_805 = arith.constant 2 : index
    %c0_806 = arith.constant 0 : index
    %c0_807 = arith.constant 0 : index
    %1055 = vector.load %arg7[%c16_804, %c2_805, %c0_806, %c0_807] : memref<18x4x32x8xf32, #tpu.memory_space<vmem>>, vector<1x1x32x8xf32>
    %1056 = vector.shape_cast %1055 : vector<1x1x32x8xf32> to vector<32x8xf32>
    %cst_808 = arith.constant dense<0.000000e+00> : vector<16x8xf32>
    %1057 = tpu.matmul %442, %1056, %cst_808 {dimension_numbers = #tpu.dot_dimension_numbers<[1], [0], [0], [1], [0, 0, 1, 1], [], []>} : vector<16x32xf32>, vector<32x8xf32>, vector<16x8xf32> -> vector<16x8xf32>
    %c16_809 = arith.constant 16 : index
    %c2_810 = arith.constant 2 : index
    %c0_811 = arith.constant 0 : index
    %c0_812 = arith.constant 0 : index
    %1058 = vector.load %arg8[%c16_809, %c2_810, %c0_811, %c0_812] : memref<18x4x1x8xf32, #tpu.memory_space<vmem>>, vector<1x1x1x8xf32>
    %1059 = vector.shape_cast %1058 : vector<1x1x1x8xf32> to vector<1x8xf32>
    %1060 = vector.broadcast %1059 : vector<1x8xf32> to vector<16x8xf32>
    %1061 = arith.addf %1057, %1060 : vector<16x8xf32>
    %c16_813 = arith.constant 16 : index
    %c3_814 = arith.constant 3 : index
    %c0_815 = arith.constant 0 : index
    %c0_816 = arith.constant 0 : index
    %1062 = vector.load %arg7[%c16_813, %c3_814, %c0_815, %c0_816] : memref<18x4x32x8xf32, #tpu.memory_space<vmem>>, vector<1x1x32x8xf32>
    %1063 = vector.shape_cast %1062 : vector<1x1x32x8xf32> to vector<32x8xf32>
    %cst_817 = arith.constant dense<0.000000e+00> : vector<16x8xf32>
    %1064 = tpu.matmul %442, %1063, %cst_817 {dimension_numbers = #tpu.dot_dimension_numbers<[1], [0], [0], [1], [0, 0, 1, 1], [], []>} : vector<16x32xf32>, vector<32x8xf32>, vector<16x8xf32> -> vector<16x8xf32>
    %c16_818 = arith.constant 16 : index
    %c3_819 = arith.constant 3 : index
    %c0_820 = arith.constant 0 : index
    %c0_821 = arith.constant 0 : index
    %1065 = vector.load %arg8[%c16_818, %c3_819, %c0_820, %c0_821] : memref<18x4x1x8xf32, #tpu.memory_space<vmem>>, vector<1x1x1x8xf32>
    %1066 = vector.shape_cast %1065 : vector<1x1x1x8xf32> to vector<1x8xf32>
    %1067 = vector.broadcast %1066 : vector<1x8xf32> to vector<16x8xf32>
    %1068 = arith.addf %1064, %1067 : vector<16x8xf32>
    %1069 = vector.shape_cast %1047 : vector<16x8xf32> to vector<1x16x8xf32>
    %1070 = vector.shape_cast %1054 : vector<16x8xf32> to vector<1x16x8xf32>
    %1071 = vector.shape_cast %1061 : vector<16x8xf32> to vector<1x16x8xf32>
    %1072 = vector.shape_cast %1068 : vector<16x8xf32> to vector<1x16x8xf32>
    %1073 = tpu.concatenate %1069, %1070, %1071, %1072 in 0 : vector<1x16x8xf32>, vector<1x16x8xf32>, vector<1x16x8xf32>, vector<1x16x8xf32> -> vector<4x16x8xf32>
    %c17 = arith.constant 17 : index
    %c0_822 = arith.constant 0 : index
    %c0_823 = arith.constant 0 : index
    %c0_824 = arith.constant 0 : index
    %1074 = vector.load %arg7[%c17, %c0_822, %c0_823, %c0_824] : memref<18x4x32x8xf32, #tpu.memory_space<vmem>>, vector<1x1x32x8xf32>
    %1075 = vector.shape_cast %1074 : vector<1x1x32x8xf32> to vector<32x8xf32>
    %cst_825 = arith.constant dense<0.000000e+00> : vector<16x8xf32>
    %1076 = tpu.matmul %442, %1075, %cst_825 {dimension_numbers = #tpu.dot_dimension_numbers<[1], [0], [0], [1], [0, 0, 1, 1], [], []>} : vector<16x32xf32>, vector<32x8xf32>, vector<16x8xf32> -> vector<16x8xf32>
    %c17_826 = arith.constant 17 : index
    %c0_827 = arith.constant 0 : index
    %c0_828 = arith.constant 0 : index
    %c0_829 = arith.constant 0 : index
    %1077 = vector.load %arg8[%c17_826, %c0_827, %c0_828, %c0_829] : memref<18x4x1x8xf32, #tpu.memory_space<vmem>>, vector<1x1x1x8xf32>
    %1078 = vector.shape_cast %1077 : vector<1x1x1x8xf32> to vector<1x8xf32>
    %1079 = vector.broadcast %1078 : vector<1x8xf32> to vector<16x8xf32>
    %1080 = arith.addf %1076, %1079 : vector<16x8xf32>
    %c17_830 = arith.constant 17 : index
    %c1_831 = arith.constant 1 : index
    %c0_832 = arith.constant 0 : index
    %c0_833 = arith.constant 0 : index
    %1081 = vector.load %arg7[%c17_830, %c1_831, %c0_832, %c0_833] : memref<18x4x32x8xf32, #tpu.memory_space<vmem>>, vector<1x1x32x8xf32>
    %1082 = vector.shape_cast %1081 : vector<1x1x32x8xf32> to vector<32x8xf32>
    %cst_834 = arith.constant dense<0.000000e+00> : vector<16x8xf32>
    %1083 = tpu.matmul %442, %1082, %cst_834 {dimension_numbers = #tpu.dot_dimension_numbers<[1], [0], [0], [1], [0, 0, 1, 1], [], []>} : vector<16x32xf32>, vector<32x8xf32>, vector<16x8xf32> -> vector<16x8xf32>
    %c17_835 = arith.constant 17 : index
    %c1_836 = arith.constant 1 : index
    %c0_837 = arith.constant 0 : index
    %c0_838 = arith.constant 0 : index
    %1084 = vector.load %arg8[%c17_835, %c1_836, %c0_837, %c0_838] : memref<18x4x1x8xf32, #tpu.memory_space<vmem>>, vector<1x1x1x8xf32>
    %1085 = vector.shape_cast %1084 : vector<1x1x1x8xf32> to vector<1x8xf32>
    %1086 = vector.broadcast %1085 : vector<1x8xf32> to vector<16x8xf32>
    %1087 = arith.addf %1083, %1086 : vector<16x8xf32>
    %c17_839 = arith.constant 17 : index
    %c2_840 = arith.constant 2 : index
    %c0_841 = arith.constant 0 : index
    %c0_842 = arith.constant 0 : index
    %1088 = vector.load %arg7[%c17_839, %c2_840, %c0_841, %c0_842] : memref<18x4x32x8xf32, #tpu.memory_space<vmem>>, vector<1x1x32x8xf32>
    %1089 = vector.shape_cast %1088 : vector<1x1x32x8xf32> to vector<32x8xf32>
    %cst_843 = arith.constant dense<0.000000e+00> : vector<16x8xf32>
    %1090 = tpu.matmul %442, %1089, %cst_843 {dimension_numbers = #tpu.dot_dimension_numbers<[1], [0], [0], [1], [0, 0, 1, 1], [], []>} : vector<16x32xf32>, vector<32x8xf32>, vector<16x8xf32> -> vector<16x8xf32>
    %c17_844 = arith.constant 17 : index
    %c2_845 = arith.constant 2 : index
    %c0_846 = arith.constant 0 : index
    %c0_847 = arith.constant 0 : index
    %1091 = vector.load %arg8[%c17_844, %c2_845, %c0_846, %c0_847] : memref<18x4x1x8xf32, #tpu.memory_space<vmem>>, vector<1x1x1x8xf32>
    %1092 = vector.shape_cast %1091 : vector<1x1x1x8xf32> to vector<1x8xf32>
    %1093 = vector.broadcast %1092 : vector<1x8xf32> to vector<16x8xf32>
    %1094 = arith.addf %1090, %1093 : vector<16x8xf32>
    %c17_848 = arith.constant 17 : index
    %c3_849 = arith.constant 3 : index
    %c0_850 = arith.constant 0 : index
    %c0_851 = arith.constant 0 : index
    %1095 = vector.load %arg7[%c17_848, %c3_849, %c0_850, %c0_851] : memref<18x4x32x8xf32, #tpu.memory_space<vmem>>, vector<1x1x32x8xf32>
    %1096 = vector.shape_cast %1095 : vector<1x1x32x8xf32> to vector<32x8xf32>
    %cst_852 = arith.constant dense<0.000000e+00> : vector<16x8xf32>
    %1097 = tpu.matmul %442, %1096, %cst_852 {dimension_numbers = #tpu.dot_dimension_numbers<[1], [0], [0], [1], [0, 0, 1, 1], [], []>} : vector<16x32xf32>, vector<32x8xf32>, vector<16x8xf32> -> vector<16x8xf32>
    %c17_853 = arith.constant 17 : index
    %c3_854 = arith.constant 3 : index
    %c0_855 = arith.constant 0 : index
    %c0_856 = arith.constant 0 : index
    %1098 = vector.load %arg8[%c17_853, %c3_854, %c0_855, %c0_856] : memref<18x4x1x8xf32, #tpu.memory_space<vmem>>, vector<1x1x1x8xf32>
    %1099 = vector.shape_cast %1098 : vector<1x1x1x8xf32> to vector<1x8xf32>
    %1100 = vector.broadcast %1099 : vector<1x8xf32> to vector<16x8xf32>
    %1101 = arith.addf %1097, %1100 : vector<16x8xf32>
    %1102 = vector.shape_cast %1080 : vector<16x8xf32> to vector<1x16x8xf32>
    %1103 = vector.shape_cast %1087 : vector<16x8xf32> to vector<1x16x8xf32>
    %1104 = vector.shape_cast %1094 : vector<16x8xf32> to vector<1x16x8xf32>
    %1105 = vector.shape_cast %1101 : vector<16x8xf32> to vector<1x16x8xf32>
    %1106 = tpu.concatenate %1102, %1103, %1104, %1105 in 0 : vector<1x16x8xf32>, vector<1x16x8xf32>, vector<1x16x8xf32>, vector<1x16x8xf32> -> vector<4x16x8xf32>
    "tpu.trace_start"() <{level = 10 : i32, message = "hqd,hkd->hqk"}> : () -> ()
    %cst_857 = arith.constant dense<0.000000e+00> : vector<4x16x16xf32>
    %1107 = tpu.matmul %1040, %1073, %cst_857 {dimension_numbers = #tpu.dot_dimension_numbers<[2], [2], [1], [1], [0, 0, 0, 1, 1, 1], [0], [0]>} : vector<4x16x8xf32>, vector<4x16x8xf32>, vector<4x16x16xf32> -> vector<4x16x16xf32>
    "tpu.trace_stop"() : () -> ()
    %cst_858 = arith.constant 0.353553385 : f32
    %1108 = vector.broadcast %cst_858 : f32 to vector<4x16x16xf32>
    %1109 = arith.mulf %1107, %1108 : vector<4x16x16xf32>
    %1110 = vector.shape_cast %5 : vector<16x16xf32> to vector<1x16x16xf32>
    %1111 = vector.broadcast %1110 : vector<1x16x16xf32> to vector<4x16x16xf32>
    %1112 = arith.addf %1109, %1111 : vector<4x16x16xf32>
    %cst_859 = arith.constant dense<0xFF800000> : vector<4x16xf32>
    %1113 = vector.multi_reduction <maximumf>, %1112, %cst_859 [2] : vector<4x16x16xf32> to vector<4x16xf32>
    %1114 = vector.shape_cast %1113 : vector<4x16xf32> to vector<4x16x1xf32>
    %1115 = vector.broadcast %1114 : vector<4x16x1xf32> to vector<4x16x16xf32>
    %1116 = arith.subf %1112, %1115 : vector<4x16x16xf32>
    %1117 = math.exp %1116 : vector<4x16x16xf32>
    %cst_860 = arith.constant dense<0.000000e+00> : vector<4x16xf32>
    %1118 = vector.multi_reduction <add>, %1117, %cst_860 [2] : vector<4x16x16xf32> to vector<4x16xf32>
    %1119 = vector.shape_cast %1118 : vector<4x16xf32> to vector<4x16x1xf32>
    %1120 = vector.broadcast %1119 : vector<4x16x1xf32> to vector<4x16x16xf32>
    %1121 = arith.divf %1117, %1120 : vector<4x16x16xf32>
    "tpu.trace_start"() <{level = 10 : i32, message = "hqk,hkd->hqd"}> : () -> ()
    %cst_861 = arith.constant dense<0.000000e+00> : vector<4x16x8xf32>
    %1122 = tpu.matmul %1121, %1106, %cst_861 {dimension_numbers = #tpu.dot_dimension_numbers<[2], [1], [1], [2], [0, 0, 0, 1, 1, 2], [0], [0]>} : vector<4x16x16xf32>, vector<4x16x8xf32>, vector<4x16x8xf32> -> vector<4x16x8xf32>
    "tpu.trace_stop"() : () -> ()
    %1123 = vector.extract_strided_slice %1122 {offsets = [0, 0, 0], sizes = [1, 16, 8], strides = [1, 1, 1]} : vector<4x16x8xf32> to vector<1x16x8xf32>
    %1124 = vector.shape_cast %1123 : vector<1x16x8xf32> to vector<16x8xf32>
    %c5_862 = arith.constant 5 : index
    %c0_863 = arith.constant 0 : index
    %c0_864 = arith.constant 0 : index
    %c0_865 = arith.constant 0 : index
    %1125 = vector.load %arg9[%c5_862, %c0_863, %c0_864, %c0_865] : memref<6x4x8x32xf32, #tpu.memory_space<vmem>>, vector<1x1x8x32xf32>
    %1126 = vector.shape_cast %1125 : vector<1x1x8x32xf32> to vector<8x32xf32>
    %cst_866 = arith.constant dense<0.000000e+00> : vector<16x32xf32>
    %1127 = tpu.matmul %1124, %1126, %cst_866 {dimension_numbers = #tpu.dot_dimension_numbers<[1], [0], [0], [1], [0, 0, 1, 1], [], []>} : vector<16x8xf32>, vector<8x32xf32>, vector<16x32xf32> -> vector<16x32xf32>
    %1128 = vector.broadcast %1007 : vector<1x32xf32> to vector<16x32xf32>
    %1129 = arith.addf %1128, %1127 : vector<16x32xf32>
    %1130 = vector.extract_strided_slice %1122 {offsets = [1, 0, 0], sizes = [1, 16, 8], strides = [1, 1, 1]} : vector<4x16x8xf32> to vector<1x16x8xf32>
    %1131 = vector.shape_cast %1130 : vector<1x16x8xf32> to vector<16x8xf32>
    %c5_867 = arith.constant 5 : index
    %c1_868 = arith.constant 1 : index
    %c0_869 = arith.constant 0 : index
    %c0_870 = arith.constant 0 : index
    %1132 = vector.load %arg9[%c5_867, %c1_868, %c0_869, %c0_870] : memref<6x4x8x32xf32, #tpu.memory_space<vmem>>, vector<1x1x8x32xf32>
    %1133 = vector.shape_cast %1132 : vector<1x1x8x32xf32> to vector<8x32xf32>
    %cst_871 = arith.constant dense<0.000000e+00> : vector<16x32xf32>
    %1134 = tpu.matmul %1131, %1133, %cst_871 {dimension_numbers = #tpu.dot_dimension_numbers<[1], [0], [0], [1], [0, 0, 1, 1], [], []>} : vector<16x8xf32>, vector<8x32xf32>, vector<16x32xf32> -> vector<16x32xf32>
    %1135 = arith.addf %1129, %1134 : vector<16x32xf32>
    %1136 = vector.extract_strided_slice %1122 {offsets = [2, 0, 0], sizes = [1, 16, 8], strides = [1, 1, 1]} : vector<4x16x8xf32> to vector<1x16x8xf32>
    %1137 = vector.shape_cast %1136 : vector<1x16x8xf32> to vector<16x8xf32>
    %c5_872 = arith.constant 5 : index
    %c2_873 = arith.constant 2 : index
    %c0_874 = arith.constant 0 : index
    %c0_875 = arith.constant 0 : index
    %1138 = vector.load %arg9[%c5_872, %c2_873, %c0_874, %c0_875] : memref<6x4x8x32xf32, #tpu.memory_space<vmem>>, vector<1x1x8x32xf32>
    %1139 = vector.shape_cast %1138 : vector<1x1x8x32xf32> to vector<8x32xf32>
    %cst_876 = arith.constant dense<0.000000e+00> : vector<16x32xf32>
    %1140 = tpu.matmul %1137, %1139, %cst_876 {dimension_numbers = #tpu.dot_dimension_numbers<[1], [0], [0], [1], [0, 0, 1, 1], [], []>} : vector<16x8xf32>, vector<8x32xf32>, vector<16x32xf32> -> vector<16x32xf32>
    %1141 = arith.addf %1135, %1140 : vector<16x32xf32>
    %1142 = vector.extract_strided_slice %1122 {offsets = [3, 0, 0], sizes = [1, 16, 8], strides = [1, 1, 1]} : vector<4x16x8xf32> to vector<1x16x8xf32>
    %1143 = vector.shape_cast %1142 : vector<1x16x8xf32> to vector<16x8xf32>
    %c5_877 = arith.constant 5 : index
    %c3_878 = arith.constant 3 : index
    %c0_879 = arith.constant 0 : index
    %c0_880 = arith.constant 0 : index
    %1144 = vector.load %arg9[%c5_877, %c3_878, %c0_879, %c0_880] : memref<6x4x8x32xf32, #tpu.memory_space<vmem>>, vector<1x1x8x32xf32>
    %1145 = vector.shape_cast %1144 : vector<1x1x8x32xf32> to vector<8x32xf32>
    %cst_881 = arith.constant dense<0.000000e+00> : vector<16x32xf32>
    %1146 = tpu.matmul %1143, %1145, %cst_881 {dimension_numbers = #tpu.dot_dimension_numbers<[1], [0], [0], [1], [0, 0, 1, 1], [], []>} : vector<16x8xf32>, vector<8x32xf32>, vector<16x32xf32> -> vector<16x32xf32>
    %1147 = arith.addf %1141, %1146 : vector<16x32xf32>
    %1148 = arith.addf %984, %1147 : vector<16x32xf32>
    %1149 = vector.extract_strided_slice %0 {offsets = [25, 0], sizes = [1, 32], strides = [1, 1]} : vector<34x32xf32> to vector<1x32xf32>
    %1150 = vector.extract_strided_slice %0 {offsets = [26, 0], sizes = [1, 32], strides = [1, 1]} : vector<34x32xf32> to vector<1x32xf32>
    %cst_882 = arith.constant dense<0.000000e+00> : vector<16xf32>
    %1151 = vector.multi_reduction <add>, %1148, %cst_882 [1] : vector<16x32xf32> to vector<16xf32>
    %1152 = vector.shape_cast %1151 : vector<16xf32> to vector<16x1xf32>
    %cst_883 = arith.constant 3.200000e+01 : f32
    %1153 = vector.broadcast %cst_883 : f32 to vector<16x1xf32>
    %1154 = arith.divf %1152, %1153 : vector<16x1xf32>
    %1155 = vector.broadcast %1154 : vector<16x1xf32> to vector<16x32xf32>
    %1156 = arith.subf %1148, %1155 : vector<16x32xf32>
    %1157 = arith.mulf %1156, %1156 : vector<16x32xf32>
    %cst_884 = arith.constant dense<0.000000e+00> : vector<16xf32>
    %1158 = vector.multi_reduction <add>, %1157, %cst_884 [1] : vector<16x32xf32> to vector<16xf32>
    %1159 = vector.shape_cast %1158 : vector<16xf32> to vector<16x1xf32>
    %cst_885 = arith.constant 0.0322580636 : f32
    %1160 = vector.broadcast %cst_885 : f32 to vector<16x1xf32>
    %1161 = arith.mulf %1159, %1160 : vector<16x1xf32>
    %1162 = math.sqrt %1161 : vector<16x1xf32>
    %1163 = vector.broadcast %1149 : vector<1x32xf32> to vector<16x32xf32>
    %1164 = arith.mulf %1163, %1156 : vector<16x32xf32>
    %cst_886 = arith.constant 9.99999997E-7 : f32
    %1165 = vector.broadcast %cst_886 : f32 to vector<16x1xf32>
    %1166 = arith.addf %1162, %1165 : vector<16x1xf32>
    %1167 = vector.broadcast %1166 : vector<16x1xf32> to vector<16x32xf32>
    %1168 = arith.divf %1164, %1167 : vector<16x32xf32>
    %1169 = vector.broadcast %1150 : vector<1x32xf32> to vector<16x32xf32>
    %1170 = arith.addf %1168, %1169 : vector<16x32xf32>
    %1171 = vector.extract_strided_slice %1 {offsets = [3, 0], sizes = [1, 64], strides = [1, 1]} : vector<4x64xf32> to vector<1x64xf32>
    %1172 = vector.extract_strided_slice %0 {offsets = [29, 0], sizes = [1, 32], strides = [1, 1]} : vector<34x32xf32> to vector<1x32xf32>
    %c3_887 = arith.constant 3 : index
    %c0_888 = arith.constant 0 : index
    %c0_889 = arith.constant 0 : index
    %1173 = vector.load %arg10[%c3_887, %c0_888, %c0_889] : memref<4x32x64xf32, #tpu.memory_space<vmem>>, vector<1x32x64xf32>
    %1174 = vector.shape_cast %1173 : vector<1x32x64xf32> to vector<32x64xf32>
    %cst_890 = arith.constant dense<0.000000e+00> : vector<16x64xf32>
    %1175 = tpu.matmul %1170, %1174, %cst_890 {dimension_numbers = #tpu.dot_dimension_numbers<[1], [0], [0], [1], [0, 0, 1, 1], [], []>} : vector<16x32xf32>, vector<32x64xf32>, vector<16x64xf32> -> vector<16x64xf32>
    %1176 = vector.broadcast %1171 : vector<1x64xf32> to vector<16x64xf32>
    %1177 = arith.addf %1175, %1176 : vector<16x64xf32>
    %cst_891 = arith.constant 0.000000e+00 : f32
    %1178 = vector.broadcast %cst_891 : f32 to vector<16x64xf32>
    %1179 = arith.maximumf %1177, %1178 : vector<16x64xf32>
    %c3_892 = arith.constant 3 : index
    %c0_893 = arith.constant 0 : index
    %c0_894 = arith.constant 0 : index
    %1180 = vector.load %arg11[%c3_892, %c0_893, %c0_894] : memref<4x64x32xf32, #tpu.memory_space<vmem>>, vector<1x64x32xf32>
    %1181 = vector.shape_cast %1180 : vector<1x64x32xf32> to vector<64x32xf32>
    %cst_895 = arith.constant dense<0.000000e+00> : vector<16x32xf32>
    %1182 = tpu.matmul %1179, %1181, %cst_895 {dimension_numbers = #tpu.dot_dimension_numbers<[1], [0], [0], [1], [0, 0, 1, 1], [], []>} : vector<16x64xf32>, vector<64x32xf32>, vector<16x32xf32> -> vector<16x32xf32>
    %1183 = vector.broadcast %1172 : vector<1x32xf32> to vector<16x32xf32>
    %1184 = arith.addf %1182, %1183 : vector<16x32xf32>
    %1185 = arith.addf %1148, %1184 : vector<16x32xf32>
    %1186 = vector.extract_strided_slice %0 {offsets = [32, 0], sizes = [1, 32], strides = [1, 1]} : vector<34x32xf32> to vector<1x32xf32>
    %1187 = vector.extract_strided_slice %0 {offsets = [33, 0], sizes = [1, 32], strides = [1, 1]} : vector<34x32xf32> to vector<1x32xf32>
    %cst_896 = arith.constant dense<0.000000e+00> : vector<16xf32>
    %1188 = vector.multi_reduction <add>, %1185, %cst_896 [1] : vector<16x32xf32> to vector<16xf32>
    %1189 = vector.shape_cast %1188 : vector<16xf32> to vector<16x1xf32>
    %cst_897 = arith.constant 3.200000e+01 : f32
    %1190 = vector.broadcast %cst_897 : f32 to vector<16x1xf32>
    %1191 = arith.divf %1189, %1190 : vector<16x1xf32>
    %1192 = vector.broadcast %1191 : vector<16x1xf32> to vector<16x32xf32>
    %1193 = arith.subf %1185, %1192 : vector<16x32xf32>
    %1194 = arith.mulf %1193, %1193 : vector<16x32xf32>
    %cst_898 = arith.constant dense<0.000000e+00> : vector<16xf32>
    %1195 = vector.multi_reduction <add>, %1194, %cst_898 [1] : vector<16x32xf32> to vector<16xf32>
    %1196 = vector.shape_cast %1195 : vector<16xf32> to vector<16x1xf32>
    %cst_899 = arith.constant 0.0322580636 : f32
    %1197 = vector.broadcast %cst_899 : f32 to vector<16x1xf32>
    %1198 = arith.mulf %1196, %1197 : vector<16x1xf32>
    %1199 = math.sqrt %1198 : vector<16x1xf32>
    %1200 = vector.broadcast %1186 : vector<1x32xf32> to vector<16x32xf32>
    %1201 = arith.mulf %1200, %1193 : vector<16x32xf32>
    %cst_900 = arith.constant 9.99999997E-7 : f32
    %1202 = vector.broadcast %cst_900 : f32 to vector<16x1xf32>
    %1203 = arith.addf %1199, %1202 : vector<16x1xf32>
    %1204 = vector.broadcast %1203 : vector<16x1xf32> to vector<16x32xf32>
    %1205 = arith.divf %1201, %1204 : vector<16x32xf32>
    %1206 = vector.broadcast %1187 : vector<1x32xf32> to vector<16x32xf32>
    %1207 = arith.addf %1205, %1206 : vector<16x32xf32>
    %c0_901 = arith.constant 0 : index
    %c0_902 = arith.constant 0 : index
    %1208 = vector.load %arg14[%c0_901, %c0_902] : memref<16x32xf32, #tpu.memory_space<vmem>>, vector<16x32xf32>
    tpu.vector_store %arg14[%c0_901, %c0_902], %1207 {strides = array<i32>} : memref<16x32xf32, #tpu.memory_space<vmem>>, vector<16x32xf32>,
    return
  }
}

</mosaic_0001>

<bundles_post_ra>
// kernel: encoder_decoder_forward.1
= control target key start
LH: loop header
LB: loop body
LE: loop exit
PB: predicated region body
PF: predicated region fallthrough
CT: control target
= control target key end

     0   :  { %v8690_v2 = vmov 0   ;;  %s11878_s0 = inlined_call_operand.vmem [shape: s32[16,1], index: 0, kind: input, shape index: {}]   ;;  %s11879_s1 = inlined_call_operand.vmem [shape: s32[16,1], index: 1, kind: input, shape index: {}]   ;;  %s11880_s2 = inlined_call_operand.vmem [shape: f32[16,16], index: 2, kind: input, shape index: {}, may-alias: {2,4}]   ;;  %s11881_s3 = inlined_call_operand.vmem [shape: f32[16,16], index: 3, kind: input, shape index: {}]   ;;  %s11882_s4 = inlined_call_operand.vmem [shape: f32[16,16], index: 4, kind: input, shape index: {}, may-alias: {2,4}]   ;;  %s11883_s5 = inlined_call_operand.vmem [shape: f32[2,16,32], index: 5, kind: input, shape index: {}]   ;;  %s11884_s6 = inlined_call_operand.vmem [shape: f32[8,32], index: 6, kind: input, shape index: {}]   ;;  %s11885_s7 = inlined_call_operand.vmem [shape: f32[18,4,32,8], index: 7, kind: input, shape index: {}]   ;;  %s11886_s8 = inlined_call_operand.vmem [shape: f32[18,4,1,8], index: 8, kind: input, shape index: {}]   ;;  %s11887_s9 = inlined_call_operand.vmem [shape: f32[6,4,8,32], index: 9, kind: input, shape index: {}]   ;;  %s11888_s10 = inlined_call_operand.vmem [shape: f32[4,32,64], index: 10, kind: input, shape index: {}]   ;;  %s11889_s11 = inlined_call_operand.vmem [shape: f32[4,64,32], index: 11, kind: input, shape index: {}]   ;;  %s11890_s12 = inlined_call_operand.vmem [shape: f32[34,32], index: 12, kind: input, shape index: {}]   ;;  %s11891_s13 = inlined_call_operand.vmem [shape: f32[4,64], index: 13, kind: input, shape index: {}]   ;;  %s11892_s14 = inlined_call_operand.hbm [shape: f32[16,32], index: 14, kind: output, shape index: {}]  }
   0x1   :  { %v62_v0 = vld [vmem:[%s11878_s0 + $0x8] sm:$0xff]  ;;  %8284 = vset.pattern.permute.xlu0 %v8690_v2  ;;  %8285 = vset.pattern.permute.xlu1 %v8690_v2  ;;  %v61_v3 = vld [vmem:[%s11878_s0] sm:$0xff] }
   0x2   :  { %v64_v1 = vld [vmem:[%s11883_s5 + $0x8] sm:$0xff]  ;;  %71 = vperm.xlu0 %8284, %v62_v0  }
   0x3   :  { %8272 = vmatpush.msra.mxu3 %v64_v1  ;;  %100 = vmatpush.msra.mxu0 %v64_v1 }
   0xa   :  { %68 = vperm.xlu0 %8284, %v61_v3  }
   0xb   :  { %19 = vsyncpa [#allocation3], 0  ;;  %v63_v4 = vld [vmem:[%s11883_s5] sm:$0xff]  ;;  %v65_v5 = vlaneseq  ;;  %vm79_vm0 = vcmask 130048   ;;  %v8691_v8 = vmov 0.0   ;;  %vm113_vm3 = vcmask 261120  }
   0xc   :  { %8273 = vmatpush.msra.mxu3 %v63_v4  ;;  %101 = vmatpush.msra.mxu0 %v63_v4  ;;  %v54_v12 = vld [vmem:[%s11884_s6] sm:$0xff]  ;;  %v8692_v21 = vmov 32.0   ;;  %v206_v43 = vld [vmem:[%s11885_s7 + $0x18] sm:$0xff]  ;;  %v205_v45 = vld [vmem:[%s11885_s7 + $0x10] sm:$0xff]  ;;  %s8694_s17 = smov 128   ;;  %s8695_s18 = smov 8  }
   0xd   :  { %v8783_v6 = vand.u32 127, %v65_v5  ;;  %8358 = vrcp.f32 %v8692_v21  ;;  %8274 = vmatpush.msra.mxu2 %v206_v43  ;;  %229 = vmatpush.msra.mxu1 %v206_v43  ;;  %v204_v47 = vld [vmem:[%s11885_s7 + $0x8] sm:$0xff]  ;;  %v203_v49 = vld [vmem:[%s11885_s7] sm:$0xff]  ;;  %v7505_v52 = vld [vmem:[%s11885_s7 + $0x38] sm:$0xff] }
   0xe   :  { %v7512_v53 = vld [vmem:[%s11885_s7 + $0x58] sm:$0xff]  ;;  %v7504_v57 = vld [vmem:[%s11885_s7 + $0x30] sm:$0xff]  ;;  %v7503_v63 = vld [vmem:[%s11885_s7 + $0x28] sm:$0xff] }
   0xf   :  { %8275 = vmatpush.msra.mxu2 %v205_v45  ;;  %230 = vmatpush.msra.mxu1 %v205_v45  ;;  %v7519_v54 = vld [vmem:[%s11885_s7 + $0x78] sm:$0xff]  ;;  %v7511_v58 = vld [vmem:[%s11885_s7 + $0x50] sm:$0xff]  ;;  %v7510_v0 = vld [vmem:[%s11885_s7 + $0x48] sm:$0xff] }
  0x10   :  { %295 = vmatpush.msrb.mxu3 %v7512_v53  ;;  %328 = vmatpush.msrb.mxu0 %v7519_v54  ;;  %v7518_v59 = vld [vmem:[%s11885_s7 + $0x70] sm:$0xff]  ;;  %v7517_v1 = vld [vmem:[%s11885_s7 + $0x68] sm:$0xff]  ;;  %v7502_v4 = vld [vmem:[%s11885_s7 + $0x20] sm:$0xff] }
  0x11   :  { %8276 = vmatpush.msra.mxu2 %v204_v47  ;;  %231 = vmatpush.msra.mxu1 %v204_v47  ;;  %v7509_v5 = vld [vmem:[%s11885_s7 + $0x40] sm:$0xff] }
  0x12   :  { %296 = vmatpush.msrb.mxu3 %v7511_v58  ;;  %329 = vmatpush.msrb.mxu0 %v7518_v59 }
  0x13   :  { %v8359_v22 = vpop.eup %8358  ;;  %8277 = vmatpush.msra.mxu2 %v203_v49  ;;  %232 = vmatpush.msra.mxu1 %v203_v49 }
  0x14   :  { %v121_v23 = vmul.f32 32.0, %v8359_v22  ;;  %vm125_vm4 = vweird.f32 %v8359_v22  ;;  %297 = vmatpush.msrb.mxu3 %v7510_v0  ;;  %330 = vmatpush.msrb.mxu0 %v7517_v1  ;;  %v7530_v0 = vld [vmem:[%s11885_s7 + $0xa0] sm:$0xff] }
  0x15   :  { %262 = vmatpush.msrb.mxu2 %v7505_v52 }
  0x16   :  { %v122_v24 = vsub.f32 1.0, %v121_v23  ;;  %298 = vmatpush.msrb.mxu3 %v7509_v5  ;;  %v7575_v5 = vld [vmem:[%s11885_s7 + $0x178] sm:$0xff] }
  0x17   :  { %263 = vmatpush.msrb.mxu2 %v7504_v57 }
  0x18   :  { %v123_v25 = vmul.f32 %v8359_v22, %v122_v24 }
  0x19   :  { %264 = vmatpush.msrb.mxu2 %v7503_v63 }
  0x1a   :  { %v124_v26 = vadd.f32 %v8359_v22, %v123_v25 }
  0x1b   :  { %265 = vmatpush.msrb.mxu2 %v7502_v4  ;;  %v7568_v4 = vld [vmem:[%s11885_s7 + $0x158] sm:$0xff] }
  0x1c   :  { %v8802_v27 = vsel %vm125_vm4, %v8359_v22, %v124_v26  ;;  %v7540_v26 = vld [vmem:[%s11885_s7 + $0xd8] sm:$0xff] }
  0x74   :  { %v72_v7 = vpop.permute.xlu0 %71 }
  0x75   :  { %vm74_vm1 = vcmp.eq.s32.totalorder %v72_v7, %v8783_v6  ;;  %v7516_v7 = vld [vmem:[%s11885_s7 + $0x60] sm:$0xff] }
  0x76   :  { %v7497_v9 = vsel %vm74_vm1, 1.0, %v8691_v8  ;;  %331 = vmatpush.msrb.mxu0 %v7516_v7  ;;  %v7553_v7 = vld [vmem:[%s11885_s7 + $0x110] sm:$0xff] }
  0x77   :  { %7499 = vmatmul.msk.f32.vlgmr.msra.gmra.mxu3 %vm79_vm0, %v7497_v9 }
  0x78   :  { %427 = vmatpush.msra.mxu3 %v7540_v26 }
  0x7c   :  { %v69_v10 = vpop.permute.xlu0 %68 }
  0x7d   :  { %vm73_vm2 = vcmp.eq.s32.totalorder %v69_v10, %v8783_v6 }
  0x7e   :  { %v7496_v11 = vsel %vm73_vm2, 1.0, %v8691_v8  ;;  %vm603_vm2 = vcmask 64512  }
  0x7f   :  { %7498 = vmatmul.msk.f32.vlgmr.msra.gmra.mxu0 %vm79_vm0, %v7496_v11 }
  0xfa   :  { %v106_v13 = vpop.f32.mrf.mxu3 }
  0xfb   :  { %v110_v14 = vmul.f32 5.656854, %v106_v13  ;;  %v7525_v13 = vld [vmem:[%s11885_s7 + $0x90] sm:$0xff] }
  0xfc   :  { %v103_v15 = vpop.f32.mrf.mxu0 }
  0xfd   :  { %v8794_v16 = vadd.f32 %v110_v14, %v54_v12  ;;  %v109_v17 = vmul.f32 5.656854, %v103_v15  ;;  %v7524_v15 = vld [vmem:[%s11885_s7 + $0x88] sm:$0xff] }
  0xff   :  { %v117_v18 = vsel %vm113_vm3, %v8794_v16, 0.0  ;;  %v8798_v19 = vadd.f32 %v109_v17, %v54_v12  ;;  %v7526_v12 = vld [vmem:[%s11885_s7 + $0x98] sm:$0xff] }
 0x100   :  { %118 = vadd.xlane.f32.xlu1 %v117_v18  ;;  %361 = vmatpush.msrb.mxu1 %v7526_v12  ;;  %v7523_v18 = vld [vmem:[%s11885_s7 + $0x80] sm:$0xff]  ;;  %v7552_v12 = vld [vmem:[%s11885_s7 + $0x108] sm:$0xff] }
 0x101   :  { %v114_v20 = vsel %vm113_vm3, %v8798_v19, 0.0 }
 0x102   :  { %362 = vmatpush.msrb.mxu1 %v7525_v13  ;;  %v7559_v13 = vld [vmem:[%s11885_s7 + $0x128] sm:$0xff] }
 0x104   :  { %363 = vmatpush.msrb.mxu1 %v7524_v15  ;;  %v7573_v15 = vld [vmem:[%s11885_s7 + $0x168] sm:$0xff] }
 0x106   :  { %364 = vmatpush.msrb.mxu1 %v7523_v18  ;;  %v7558_v18 = vld [vmem:[%s11885_s7 + $0x120] sm:$0xff] }
 0x108   :  { %115 = vadd.xlane.f32.xlu1 %v114_v20 }
 0x173   :  { %v119_v28 = vpop.xlane.xlu1 %118 }
 0x174   :  { %v128_v29 = vmul.f32 %v8802_v27, %v119_v28  ;;  %v7547_v28 = vld [vmem:[%s11885_s7 + $0xf8] sm:$0xff] }
 0x175   :  { %460 = vmatpush.msra.mxu0 %v7547_v28 }
 0x176   :  { %v8806_v30 = vsub.f32 %v8794_v16, %v128_v29  ;;  %v8896_v29 = vld [vmem:[%s11890_s12] sm:$0xff] }
 0x177   :  { %v200_v47 = vperm.slane %v8896_v29, 1 }
 0x178   :  { %v132_v31 = vmul.f32 %v8806_v30, %v8806_v30 }
 0x17a   :  { %v136_v32 = vsel %vm113_vm3, %v132_v31, 0.0  ;;  %v7539_v31 = vld [vmem:[%s11885_s7 + $0xd0] sm:$0xff] }
 0x17b   :  { %137 = vadd.xlane.f32.xlu2 %v136_v32  ;;  %v116_v33 = vpop.xlane.xlu1 %115  ;;  %428 = vmatpush.msra.mxu3 %v7539_v31 }
 0x17c   :  { %v127_v34 = vmul.f32 %v8802_v27, %v116_v33  ;;  %v7546_v33 = vld [vmem:[%s11885_s7 + $0xf0] sm:$0xff] }
 0x17d   :  { %461 = vmatpush.msra.mxu0 %v7546_v33  ;;  %v8290_v33 = vld [vmem:[%s11886_s8 + $0x4] ss:$0 sm:$0xff] }
 0x17e   :  { %v8813_v35 = vsub.f32 %v8798_v19, %v127_v34  ;;  %v7538_v34 = vld [vmem:[%s11885_s7 + $0xc8] sm:$0xff] }
 0x17f   :  { %429 = vmatpush.msra.mxu3 %v7538_v34 }
 0x180   :  { %v131_v36 = vmul.f32 %v8813_v35, %v8813_v35 }
 0x182   :  { %v133_v37 = vsel %vm113_vm3, %v131_v36, 0.0 }
 0x183   :  { %134 = vadd.xlane.f32.xlu2 %v133_v37  ;;  %v7545_v37 = vld [vmem:[%s11885_s7 + $0xe8] sm:$0xff] }
 0x184   :  { %462 = vmatpush.msra.mxu0 %v7545_v37 }
 0x1ee   :  { %v138_v38 = vpop.xlane.xlu2 %137 }
 0x1ef   :  { %v140_v39 = vmul.f32 0.032258064, %v138_v38  ;;  %v165_v38 = vperm.slane %v8896_v29, 0 }
 0x1f1   :  { %8360 = vrsqrt.f32 %v140_v39  ;;  %vm160_vm5 = vcmp.eq.f32.partialorder %v140_v39, inf  ;;  %v163_v62 = vand.u32 2147483648, %v140_v39  ;;  %vm162_vm6 = vcmp.eq.f32.partialorder %v140_v39, 0.0 }
 0x1f6   :  { %v135_v40 = vpop.xlane.xlu2 %134 }
 0x1f7   :  { %v8361_v41 = vpop.eup %8360  ;;  %v8818_v42 = vmul.f32 0.032258064, %v135_v40 }
 0x1f8   :  { %v154_v44 = vmul.f32 %v8361_v41, %v140_v39 }
 0x1f9   :  { %8362 = vrsqrt.f32 %v8818_v42  ;;  %vm148_vm7 = vcmp.eq.f32.partialorder %v8818_v42, inf  ;;  %v151_v20 = vand.u32 2147483648, %v8818_v42  ;;  %vm150_vm8 = vcmp.eq.f32.partialorder %v8818_v42, 0.0 }
 0x1fa   :  { %v155_v46 = vmul.f32 %v8361_v41, %v154_v44 }
 0x1fc   :  { %v156_v48 = vmul.f32 0.5, %v155_v46  ;;  %v167_v46 = vmul.f32 %v165_v38, %v8806_v30  ;;  %v7532_v30 = vld [vmem:[%s11885_s7 + $0xb0] sm:$0xff] }
 0x1fe   :  { %v157_v50 = vsub.f32 1.5, %v156_v48 }
 0x1ff   :  { %v8363_v51 = vpop.eup %8362 }
 0x200   :  { %v158_v55 = vmul.f32 %v8361_v41, %v157_v50  ;;  %v142_v56 = vmul.f32 %v8363_v51, %v8818_v42  ;;  %v7537_v41 = vld [vmem:[%s11885_s7 + $0xc0] sm:$0xff] }
 0x201   :  { %430 = vmatpush.msra.mxu3 %v7537_v41 }
 0x202   :  { %v159_v60 = vmul.f32 %v158_v55, %v140_v39  ;;  %v143_v61 = vmul.f32 %v8363_v51, %v142_v56  ;;  %v7533_v55 = vld [vmem:[%s11885_s7 + $0xb8] sm:$0xff] }
 0x204   :  { %v161_v2 = vsel %vm160_vm5, %v140_v39, %v159_v60  ;;  %v144_v3 = vmul.f32 0.5, %v143_v61  ;;  %v7531_v60 = vld [vmem:[%s11885_s7 + $0xa8] sm:$0xff]  ;;  %v166_v61 = vmul.f32 %v165_v38, %v8813_v35  ;;  %v7561_v35 = vld [vmem:[%s11885_s7 + $0x138] sm:$0xff] }
 0x205   :  { %v164_v9 = vsel %vm162_vm6, %v163_v62, %v161_v2 }
 0x206   :  { %v169_v10 = vadd.f32 1e-06, %v164_v9  ;;  %v145_v11 = vsub.f32 1.5, %v144_v3  ;;  %v7554_v3 = vld [vmem:[%s11885_s7 + $0x118] sm:$0xff]  ;;  %v7560_v9 = vld [vmem:[%s11885_s7 + $0x130] sm:$0xff] }
 0x208   :  { %8364 = vrcp.f32 %v169_v10  ;;  %v146_v14 = vmul.f32 %v8363_v51, %v145_v11  ;;  %v196_v36 = vand.u32 2147483648, %v169_v10  ;;  %v194_v40 = vand.u32 2147483647, %v169_v10  ;;  %v7574_v11 = vld [vmem:[%s11885_s7 + $0x170] sm:$0xff] }
 0x209   :  { %vm190_vm10 = vweird.f32 %v169_v10 }
 0x20a   :  { %v147_v17 = vmul.f32 %v146_v14, %v8818_v42  ;;  %v197_v44 = vor.u32 1.1754944e-38, %v196_v36  ;;  %vm195_vm12 = vcmp.eq.f32.partialorder %v194_v40, 8.507059e+37  ;;  %v7566_v14 = vld [vmem:[%s11885_s7 + $0x148] sm:$0xff]  ;;  %v8286_v40 = vld [vmem:[%s11886_s8] ss:$0 sm:$0xff] }
 0x20c   :  { %v149_v21 = vsel %vm148_vm7, %v8818_v42, %v147_v17  ;;  %v7544_v42 = vld [vmem:[%s11885_s7 + $0xe0] sm:$0xff] }
 0x20d   :  { %v152_v23 = vsel %vm150_vm8, %v151_v20, %v149_v21  ;;  %463 = vmatpush.msra.mxu0 %v7544_v42  ;;  %v7551_v17 = vld [vmem:[%s11885_s7 + $0x100] sm:$0xff] }
 0x20e   :  { %v8365_v22 = vpop.eup %8364  ;;  %v168_v25 = vadd.f32 1e-06, %v152_v23  ;;  %v7565_v20 = vld [vmem:[%s11885_s7 + $0x140] sm:$0xff] }
 0x20f   :  { %v186_v24 = vmul.f32 %v8365_v22, %v169_v10  ;;  %vm191_vm9 = vweird.f32 %v8365_v22  ;;  %v7567_v10 = vld [vmem:[%s11885_s7 + $0x150] sm:$0xff]  ;;  %v7572_v21 = vld [vmem:[%s11885_s7 + $0x160] sm:$0xff] }
 0x210   :  { %8366 = vrcp.f32 %v168_v25  ;;  %vm192_vm11 = vmor %vm190_vm10, %vm191_vm9  ;;  %v181_v54 = vand.u32 2147483648, %v168_v25  ;;  %v179_v57 = vand.u32 2147483647, %v168_v25  ;;  %vm175_vm14 = vweird.f32 %v168_v25 }
 0x211   :  { %v187_v32 = vsub.f32 1.0, %v186_v24 }
 0x212   :  { %v182_v59 = vor.u32 1.1754944e-38, %v181_v54  ;;  %vm180_vm1 = vcmp.eq.f32.partialorder %v179_v57, 8.507059e+37 }
 0x213   :  { %v188_v39 = vmul.f32 %v8365_v22, %v187_v32 }
 0x215   :  { %v189_v43 = vadd.f32 %v8365_v22, %v188_v39 }
 0x216   :  { %v8367_v45 = vpop.eup %8366 }
 0x217   :  { %v193_v48 = vsel %vm192_vm11, %v8365_v22, %v189_v43  ;;  %v171_v50 = vmul.f32 %v8367_v45, %v168_v25  ;;  %vm176_vm13 = vweird.f32 %v8367_v45 }
 0x218   :  { %v198_v49 = vsel %vm195_vm12, %v197_v44, %v193_v48  ;;  %vm177_vm15 = vmor %vm175_vm14, %vm176_vm13  ;;  %v8291_v44 = vld [vmem:[%s11886_s8 + $0x7] ss:$0 sm:$0xff]  ;;  %v8287_v48 = vld [vmem:[%s11886_s8 + $0x3] ss:$0 sm:$0xff] }
 0x219   :  { %v199_v51 = vmul.f32 %v198_v49, %v167_v46  ;;  %v172_v52 = vsub.f32 1.0, %v171_v50  ;;  %v8292_v49 = vld [vmem:[%s11886_s8 + $0x5] ss:$0 sm:$0xff] }
 0x21b   :  { %v8919_v53 = vadd.f32 %v200_v47, %v199_v51  ;;  %v173_v56 = vmul.f32 %v8367_v45, %v172_v52  ;;  %v8293_v51 = vld [vmem:[%s11886_s8 + $0x6] ss:$0 sm:$0xff] }
 0x21d   :  { %7501 = vmatmul.msk.f32.vlgmr.msra.gmra.mxu2 %vm113_vm3, %v8919_v53  ;;  %v174_v58 = vadd.f32 %v8367_v45, %v173_v56 }
 0x21e   :  { %394 = vmatpush.msra.mxu2 %v7533_v55 }
 0x21f   :  { %v178_v62 = vsel %vm177_vm15, %v8367_v45, %v174_v58 }
 0x220   :  { %395 = vmatpush.msra.mxu2 %v7532_v30  ;;  %v183_v63 = vsel %vm180_vm1, %v182_v59, %v178_v62  ;;  %v8289_v62 = vld [vmem:[%s11886_s8 + $0x2] ss:$0 sm:$0xff] }
 0x221   :  { %v184_v1 = vmul.f32 %v183_v63, %v166_v61  ;;  %v8288_v61 = vld [vmem:[%s11886_s8 + $0x1] ss:$0 sm:$0xff] }
 0x222   :  { %396 = vmatpush.msra.mxu2 %v7531_v60 }
 0x223   :  { %v201_v2 = vadd.f32 %v200_v47, %v184_v1 }
 0x224   :  { %397 = vmatpush.msra.mxu2 %v7530_v0 }
 0x225   :  { %7500 = vmatmul.msk.f32.vlgmr.msra.gmra.mxu1 %vm113_vm3, %v201_v2  ;;  %7507 = vmatmul.msk.f32.vlgmr.msrb.gmra.mxu2 %vm113_vm3, %v201_v2 }
 0x226   :  { %7514 = vmatmul.msk.f32.vlgmr.msrb.gmra.mxu3 %vm113_vm3, %v201_v2  ;;  %7521 = vmatmul.msk.f32.vlgmr.msrb.gmra.mxu0 %vm113_vm3, %v201_v2 }
 0x227   :  { %493 = vmatpush.msra.mxu1 %v7554_v3  ;;  %526 = vmatpush.msrb.mxu2 %v7561_v35 }
 0x228   :  { %559 = vmatpush.msrb.mxu3 %v7568_v4  ;;  %592 = vmatpush.msrb.mxu0 %v7575_v5  ;;  %v8295_v5 = vld [vmem:[%s11886_s8 + $0xb] ss:$0 sm:$0xff] }
 0x229   :  { %494 = vmatpush.msra.mxu1 %v7553_v7  ;;  %527 = vmatpush.msrb.mxu2 %v7560_v9 }
 0x22a   :  { %560 = vmatpush.msrb.mxu3 %v7567_v10  ;;  %593 = vmatpush.msrb.mxu0 %v7574_v11 }
 0x22b   :  { %495 = vmatpush.msra.mxu1 %v7552_v12  ;;  %528 = vmatpush.msrb.mxu2 %v7559_v13  ;;  %v8296_v12 = vld [vmem:[%s11886_s8 + $0x9] ss:$0 sm:$0xff] }
 0x22c   :  { %561 = vmatpush.msrb.mxu3 %v7566_v14  ;;  %594 = vmatpush.msrb.mxu0 %v7573_v15  ;;  %v8297_v14 = vld [vmem:[%s11886_s8 + $0xa] ss:$0 sm:$0xff] }
 0x22d   :  { %7508 = vmatmul.msk.f32.gmra.mxu2 %vm113_vm3, %v8919_v53  ;;  %7528 = vmatmul.msk.f32.vlgmr.msrb.gmra.mxu1 %vm113_vm3, %v201_v2 }
 0x22e   :  { %7515 = vmatmul.msk.f32.gmra.mxu3 %vm113_vm3, %v8919_v53  ;;  %7522 = vmatmul.msk.f32.gmra.mxu0 %vm113_vm3, %v8919_v53 }
 0x22f   :  { %496 = vmatpush.msra.mxu1 %v7551_v17  ;;  %529 = vmatpush.msrb.mxu2 %v7558_v18 }
 0x230   :  { %562 = vmatpush.msrb.mxu3 %v7565_v20  ;;  %595 = vmatpush.msrb.mxu0 %v7572_v21 }
 0x235   :  { %7529 = vmatmul.msk.f32.gmra.mxu1 %vm113_vm3, %v8919_v53  ;;  %7535 = vmatmul.msk.f32.vlgmr.msra.gmra.mxu2 %vm113_vm3, %v201_v2 }
 0x236   :  { %7542 = vmatmul.msk.f32.vlgmr.msra.gmra.mxu3 %vm113_vm3, %v201_v2  ;;  %7549 = vmatmul.msk.f32.vlgmr.msra.gmra.mxu0 %vm113_vm3, %v201_v2 }
 0x23d   :  { %7536 = vmatmul.msk.f32.gmra.mxu2 %vm113_vm3, %v8919_v53  ;;  %7556 = vmatmul.msk.f32.vlgmr.msra.gmra.mxu1 %vm113_vm3, %v201_v2 }
 0x23e   :  { %7543 = vmatmul.msk.f32.gmra.mxu3 %vm113_vm3, %v8919_v53  ;;  %7550 = vmatmul.msk.f32.gmra.mxu0 %vm113_vm3, %v8919_v53 }
 0x245   :  { %7557 = vmatmul.msk.f32.gmra.mxu1 %vm113_vm3, %v8919_v53  ;;  %7563 = vmatmul.msk.f32.vlgmr.msrb.gmra.mxu2 %vm113_vm3, %v201_v2 }
 0x246   :  { %7570 = vmatmul.msk.f32.vlgmr.msrb.gmra.mxu3 %vm113_vm3, %v201_v2  ;;  %7577 = vmatmul.msk.f32.vlgmr.msrb.gmra.mxu0 %vm113_vm3, %v201_v2 }
 0x24d   :  { %7564 = vmatmul.msk.f32.gmra.mxu2 %vm113_vm3, %v8919_v53 }
 0x24e   :  { %7571 = vmatmul.msk.f32.gmra.mxu3 %vm113_vm3, %v8919_v53  ;;  %7578 = vmatmul.msk.f32.gmra.mxu0 %vm113_vm3, %v8919_v53  ;;  %v8294_v53 = vld [vmem:[%s11886_s8 + $0x8] ss:$0 sm:$0xff] }
 0x2a0   :  { %v237_v22 = vpop.f32.mrf.mxu2 }
 0x2a1   :  { %v238_v56 = vadd.f32 %v8286_v40, %v237_v22 }
 0x2a2   :  { %v234_v23 = vpop.f32.mrf.mxu1 }
 0x2a3   :  { %v333_v24 = vpop.f32.mrf.mxu0  ;;  %v235_v43 = vadd.f32 %v8286_v40, %v234_v23 }
 0x2a4   :  { %v334_v58 = vadd.f32 %v8287_v48, %v333_v24 }
 0x2a8   :  { %v267_v25 = vpop.f32.mrf.mxu2 }
 0x2a9   :  { %v300_v26 = vpop.f32.mrf.mxu3  ;;  %v268_v2 = vadd.f32 %v8288_v61, %v267_v25 }
 0x2aa   :  { %v366_v28 = vpop.f32.mrf.mxu1  ;;  %v301_v35 = vadd.f32 %v8289_v62, %v300_v26 }
 0x2ab   :  { %v336_v31 = vpop.f32.mrf.mxu0  ;;  %v367_v39 = vadd.f32 %v8290_v33, %v366_v28 }
 0x2ac   :  { %v337_v7 = vadd.f32 %v8287_v48, %v336_v31  ;;  %v55_v31 = vld [vmem:[%s11880_s2] sm:$0xff] }
 0x2b0   :  { %v270_v32 = vpop.f32.mrf.mxu2 }
 0x2b1   :  { %v9021_v34 = vpop.f32.mrf.mxu3  ;;  %v271_v13 = vadd.f32 %v8288_v61, %v270_v32 }
 0x2b2   :  { %v369_v36 = vpop.f32.mrf.mxu1  ;;  %v304_v17 = vadd.f32 %v8289_v62, %v9021_v34 }
 0x2b3   :  { %v370_v37 = vadd.f32 %v8290_v33, %v369_v36  ;;  %v465_v38 = vpop.f32.mrf.mxu0 }
 0x2b4   :  { %v466_v50 = vadd.f32 %v8291_v44, %v465_v38 }
 0x2b5   :  { %7579 = vmatpush.xpose.msk.msrb.mxu1 %vm603_vm2, %v370_v37 }
 0x2b8   :  { %v399_v41 = vpop.f32.mrf.mxu2 }
 0x2b9   :  { %v432_v42 = vpop.f32.mrf.mxu3  ;;  %7580 = vmatpush.xpose.msk.msrb.mxu1 %vm603_vm2, %v367_v39  ;;  %v400_v63 = vadd.f32 %v8292_v49, %v399_v41 }
 0x2ba   :  { %v498_v45 = vpop.f32.mrf.mxu1  ;;  %v433_v1 = vadd.f32 %v8293_v51, %v432_v42 }
 0x2bb   :  { %v468_v46 = vpop.f32.mrf.mxu0  ;;  %v499_v0 = vadd.f32 %v8294_v53, %v498_v45 }
 0x2bc   :  { %v469_v47 = vadd.f32 %v8291_v44, %v468_v46  ;;  %7581 = vmatmul.msk.f32.vlgmr.msrb.gmra.mxu1 %vm603_vm2, %v235_v43  ;;  %v56_v43 = vld [vmem:[%s11880_s2 + $0x8] sm:$0xff] }
 0x2be   :  { %7591 = vmatpush.xpose.msk.msra.mxu0 %vm603_vm2, %v469_v47 }
 0x2c0   :  { %v402_v52 = vpop.f32.mrf.mxu2 }
 0x2c1   :  { %v403_v54 = vadd.f32 %v8292_v49, %v402_v52  ;;  %v435_v55 = vpop.f32.mrf.mxu3 }
 0x2c2   :  { %v436_v57 = vadd.f32 %v8293_v51, %v435_v55  ;;  %7592 = vmatpush.xpose.msk.msra.mxu0 %vm603_vm2, %v466_v50  ;;  %v501_v30 = vpop.f32.mrf.mxu1 }
 0x2c3   :  { %v502_v59 = vadd.f32 %v8294_v53, %v501_v30  ;;  %v597_v60 = vpop.f32.mrf.mxu0  ;;  %7583 = vmatpush.xpose.msk.msra.mxu2 %vm603_vm2, %v403_v54 }
 0x2c4   :  { %7587 = vmatpush.xpose.msk.msra.mxu3 %vm603_vm2, %v436_v57  ;;  %7582 = vmatmul.msk.f32.gmra.mxu1 %vm603_vm2, %v238_v56  ;;  %v598_v11 = vadd.f32 %v8295_v5, %v597_v60 }
 0x2c5   :  { %7593 = vmatmul.msk.f32.vlgmr.msra.gmra.mxu0 %vm603_vm2, %v334_v58  ;;  %972 = vmatpush.msra.mxu1 %v502_v59 }
 0x2c7   :  { %7584 = vmatpush.xpose.msk.msra.mxu2 %vm603_vm2, %v400_v63  ;;  %973 = vmatpush.msra.mxu1 %v499_v0 }
 0x2c8   :  { %7588 = vmatpush.xpose.msk.msra.mxu3 %vm603_vm2, %v433_v1  ;;  %v531_v3 = vpop.f32.mrf.mxu2 }
 0x2c9   :  { %v564_v4 = vpop.f32.mrf.mxu3  ;;  %v532_v22 = vadd.f32 %v8296_v12, %v531_v3 }
 0x2ca   :  { %7585 = vmatmul.msk.f32.vlgmr.msra.gmra.mxu2 %vm603_vm2, %v268_v2  ;;  %v565_v23 = vadd.f32 %v8297_v14, %v564_v4 }
 0x2cb   :  { %v600_v9 = vpop.f32.mrf.mxu0  ;;  %7589 = vmatmul.msk.f32.vlgmr.msra.gmra.mxu3 %vm603_vm2, %v301_v35 }
 0x2cc   :  { %v601_v10 = vadd.f32 %v8295_v5, %v600_v9 }
 0x2cd   :  { %7594 = vmatmul.msk.f32.gmra.mxu0 %vm603_vm2, %v337_v7 }
 0x2ce   :  { %1059 = vmatpush.msrb.mxu0 %v601_v10 }
 0x2d0   :  { %1060 = vmatpush.msrb.mxu0 %v598_v11  ;;  %v534_v15 = vpop.f32.mrf.mxu2 }
 0x2d1   :  { %v535_v18 = vadd.f32 %v8296_v12, %v534_v15  ;;  %v567_v20 = vpop.f32.mrf.mxu3 }
 0x2d2   :  { %v568_v21 = vadd.f32 %v8297_v14, %v567_v20  ;;  %7586 = vmatmul.msk.f32.gmra.mxu2 %vm603_vm2, %v271_v13 }
 0x2d3   :  { %7590 = vmatmul.msk.f32.gmra.mxu3 %vm603_vm2, %v304_v17  ;;  %1001 = vmatpush.msrb.mxu2 %v535_v18 }
 0x2d4   :  { %1030 = vmatpush.msrb.mxu3 %v568_v21 }
 0x2d5   :  { %1002 = vmatpush.msrb.mxu2 %v532_v22 }
 0x2d6   :  { %1031 = vmatpush.msrb.mxu3 %v565_v23 }
 0x339   :  { %v633_v32 = vpop.f32.mrf.mxu1 }
 0x33a   :  { %v744_v37 = vmul.f32 0.35355338, %v633_v32 }
 0x33c   :  { %v752_v44 = vadd.f32 %v744_v37, %v55_v31 }
 0x33e   :  { %v760_v49 = vsel %vm79_vm0, %v752_v44, -inf }
 0x341   :  { %v636_v51 = vpop.f32.mrf.mxu1 }
 0x342   :  { %v738_v40 = vpop.f32.mrf.mxu0  ;;  %v745_v54 = vmul.f32 0.35355338, %v636_v51 }
 0x343   :  { %v750_v48 = vmul.f32 0.35355338, %v738_v40 }
 0x344   :  { %v753_v30 = vadd.f32 %v745_v54, %v56_v43 }
 0x345   :  { %v758_v52 = vadd.f32 %v750_v48, %v55_v31 }
 0x346   :  { %v763_v59 = vsel %vm79_vm0, %v753_v30, -inf }
 0x347   :  { %v778_v57 = vsel %vm79_vm0, %v758_v52, -inf }
 0x34a   :  { %v741_v53 = vpop.f32.mrf.mxu0 }
 0x34b   :  { %v751_v56 = vmul.f32 0.35355338, %v741_v53 }
 0x34d   :  { %v668_v24 = vpop.f32.mrf.mxu2  ;;  %v759_v58 = vadd.f32 %v751_v56, %v56_v43 }
 0x34e   :  { %v746_v25 = vmul.f32 0.35355338, %v668_v24  ;;  %v703_v26 = vpop.f32.mrf.mxu3 }
 0x34f   :  { %v748_v28 = vmul.f32 0.35355338, %v703_v26  ;;  %v781_v60 = vsel %vm79_vm0, %v759_v58, -inf }
 0x350   :  { %v754_v33 = vadd.f32 %v746_v25, %v55_v31 }
 0x351   :  { %v756_v34 = vadd.f32 %v748_v28, %v55_v31 }
 0x352   :  { %v766_v36 = vsel %vm79_vm0, %v754_v33, -inf }
 0x353   :  { %v772_v38 = vsel %vm79_vm0, %v756_v34, -inf  ;;  %767 = vmax.xlane.f32.xlu0 %v766_v36 }
 0x354   :  { %773 = vmax.xlane.f32.xlu1 %v772_v38 }
 0x355   :  { %v671_v39 = vpop.f32.mrf.mxu2 }
 0x356   :  { %v747_v41 = vmul.f32 0.35355338, %v671_v39  ;;  %v706_v42 = vpop.f32.mrf.mxu3 }
 0x357   :  { %v749_v46 = vmul.f32 0.35355338, %v706_v42 }
 0x358   :  { %v755_v45 = vadd.f32 %v747_v41, %v56_v43 }
 0x359   :  { %v757_v50 = vadd.f32 %v749_v46, %v56_v43 }
 0x35a   :  { %v769_v47 = vsel %vm79_vm0, %v755_v45, -inf }
 0x35b   :  { %770 = vmax.xlane.f32.xlu2 %v769_v47  ;;  %v775_v55 = vsel %vm79_vm0, %v757_v50, -inf }
 0x35c   :  { %761 = vmax.xlane.f32.xlu1 %v760_v49 }
 0x363   :  { %776 = vmax.xlane.f32.xlu2 %v775_v55 }
 0x364   :  { %779 = vmax.xlane.f32.xlu1 %v778_v57 }
 0x36b   :  { %764 = vmax.xlane.f32.xlu2 %v763_v59 }
 0x36c   :  { %782 = vmax.xlane.f32.xlu1 %v781_v60 }
 0x3c6   :  { %v768_v61 = vpop.xlane.xlu0 %767 }
 0x3c7   :  { %v774_v62 = vpop.xlane.xlu1 %773  ;;  %v786_v63 = vsub.f32 %v754_v33, %v768_v61 }
 0x3c8   :  { %v788_v0 = vsub.f32 %v756_v34, %v774_v62 }
 0x3c9   :  { %v796_v1 = vmul.f32 1.442695, %v786_v63 }
 0x3ca   :  { %v800_v2 = vmul.f32 1.442695, %v788_v0 }
 0x3cb   :  { %8368 = vpow2.f32 %v796_v1 }
 0x3cc   :  { %8370 = vpow2.f32 %v800_v2 }
 0x3ce   :  { %v771_v3 = vpop.xlane.xlu2 %770 }
 0x3cf   :  { %v787_v35 = vsub.f32 %v755_v45, %v771_v3  ;;  %v762_v4 = vpop.xlane.xlu1 %761 }
 0x3d0   :  { %v784_v5 = vsub.f32 %v752_v44, %v762_v4 }
 0x3d1   :  { %v9087_v7 = vpop.eup %8368  ;;  %v798_v9 = vmul.f32 1.442695, %v787_v35 }
 0x3d2   :  { %v9089_v10 = vpop.eup %8370  ;;  %v792_v11 = vmul.f32 1.442695, %v784_v5  ;;  %v814_v12 = vsel %vm79_vm0, %v9087_v7, 0.0 }
 0x3d3   :  { %8372 = vpow2.f32 %v798_v9  ;;  %v820_v13 = vsel %vm79_vm0, %v9089_v10, 0.0  ;;  %815 = vadd.xlane.f32.xlu2 %v814_v12 }
 0x3d4   :  { %8374 = vpow2.f32 %v792_v11  ;;  %821 = vadd.xlane.f32.xlu1 %v820_v13 }
 0x3d6   :  { %v777_v14 = vpop.xlane.xlu2 %776 }
 0x3d7   :  { %v789_v15 = vsub.f32 %v757_v50, %v777_v14  ;;  %v780_v17 = vpop.xlane.xlu1 %779 }
 0x3d8   :  { %v790_v18 = vsub.f32 %v758_v52, %v780_v17 }
 0x3d9   :  { %v9095_v20 = vpop.eup %8372  ;;  %v802_v21 = vmul.f32 1.442695, %v789_v15 }
 0x3da   :  { %v9097_v22 = vpop.eup %8374  ;;  %v804_v23 = vmul.f32 1.442695, %v790_v18  ;;  %v817_v24 = vsel %vm79_vm0, %v9095_v20, 0.0 }
 0x3db   :  { %8376 = vpow2.f32 %v802_v21  ;;  %v808_v25 = vsel %vm79_vm0, %v9097_v22, 0.0  ;;  %818 = vadd.xlane.f32.xlu2 %v817_v24 }
 0x3dc   :  { %8378 = vpow2.f32 %v804_v23  ;;  %809 = vadd.xlane.f32.xlu1 %v808_v25 }
 0x3de   :  { %v765_v26 = vpop.xlane.xlu2 %764 }
 0x3df   :  { %v783_v28 = vpop.xlane.xlu1 %782  ;;  %v785_v31 = vsub.f32 %v753_v30, %v765_v26 }
 0x3e0   :  { %v791_v32 = vsub.f32 %v759_v58, %v783_v28 }
 0x3e1   :  { %v9103_v33 = vpop.eup %8376  ;;  %v794_v34 = vmul.f32 1.442695, %v785_v31 }
 0x3e2   :  { %v9105_v36 = vpop.eup %8378  ;;  %v806_v37 = vmul.f32 1.442695, %v791_v32  ;;  %v823_v38 = vsel %vm79_vm0, %v9103_v33, 0.0 }
 0x3e3   :  { %8380 = vpow2.f32 %v794_v34  ;;  %v826_v39 = vsel %vm79_vm0, %v9105_v36, 0.0  ;;  %824 = vadd.xlane.f32.xlu2 %v823_v38 }
 0x3e4   :  { %8382 = vpow2.f32 %v806_v37  ;;  %827 = vadd.xlane.f32.xlu0 %v826_v39 }
 0x3e9   :  { %v9111_v40 = vpop.eup %8380 }
 0x3ea   :  { %v9113_v41 = vpop.eup %8382  ;;  %v811_v42 = vsel %vm79_vm0, %v9111_v40, 0.0 }
 0x3eb   :  { %v829_v43 = vsel %vm79_vm0, %v9113_v41, 0.0  ;;  %812 = vadd.xlane.f32.xlu1 %v811_v42 }
 0x3ec   :  { %830 = vadd.xlane.f32.xlu2 %v829_v43 }
 0x446   :  { %v816_v44 = vpop.xlane.xlu2 %815 }
 0x447   :  { %v822_v45 = vpop.xlane.xlu1 %821  ;;  %8384 = vrcp.f32 %v816_v44  ;;  %v871_v54 = vand.u32 2147483647, %v816_v44  ;;  %vm867_vm6 = vweird.f32 %v816_v44  ;;  %v873_v59 = vand.u32 2147483648, %v816_v44 }
 0x448   :  { %8386 = vrcp.f32 %v822_v45  ;;  %v901_v55 = vand.u32 2147483647, %v822_v45  ;;  %v903_v56 = vand.u32 2147483648, %v822_v45  ;;  %vm897_vm7 = vweird.f32 %v822_v45 }
 0x449   :  { %vm9128_vm11 = vcmp.eq.f32.partialorder %v871_v54, 8.507059e+37  ;;  %v874_v12 = vor.u32 1.1754944e-38, %v873_v59 }
 0x44a   :  { %vm902_vm10 = vcmp.eq.f32.partialorder %v901_v55, 8.507059e+37  ;;  %v904_v0 = vor.u32 1.1754944e-38, %v903_v56 }
 0x44d   :  { %v8385_v46 = vpop.eup %8384 }
 0x44e   :  { %v8387_v47 = vpop.eup %8386  ;;  %v863_v48 = vmul.f32 %v8385_v46, %v816_v44  ;;  %v9119_v49 = vpop.xlane.xlu2 %818  ;;  %vm868_vm4 = vweird.f32 %v8385_v46 }
 0x44f   :  { %v893_v50 = vmul.f32 %v8387_v47, %v822_v45  ;;  %v810_v51 = vpop.xlane.xlu1 %809  ;;  %8388 = vrcp.f32 %v9119_v49  ;;  %vm898_vm5 = vweird.f32 %v8387_v47  ;;  %vm9124_vm8 = vmor %vm867_vm6, %vm868_vm4  ;;  %v888_v18 = vand.u32 2147483648, %v9119_v49 }
 0x450   :  { %v864_v52 = vsub.f32 1.0, %v863_v48  ;;  %8390 = vrcp.f32 %v810_v51  ;;  %vm899_vm9 = vmor %vm897_vm7, %vm898_vm5  ;;  %v841_v15 = vand.u32 2147483647, %v810_v51  ;;  %v843_v17 = vand.u32 2147483648, %v810_v51 }
 0x451   :  { %v894_v53 = vsub.f32 1.0, %v893_v50  ;;  %vm882_vm14 = vweird.f32 %v9119_v49  ;;  %v886_v31 = vand.u32 2147483647, %v9119_v49  ;;  %vm837_vm15 = vweird.f32 %v810_v51 }
 0x452   :  { %v865_v57 = vmul.f32 %v8385_v46, %v864_v52  ;;  %vm842_vm5 = vcmp.eq.f32.partialorder %v841_v15, 8.507059e+37  ;;  %v889_v38 = vor.u32 1.1754944e-38, %v888_v18 }
 0x453   :  { %v895_v30 = vmul.f32 %v8387_v47, %v894_v53  ;;  %vm887_vm6 = vcmp.eq.f32.partialorder %v886_v31, 8.507059e+37 }
 0x454   :  { %v866_v58 = vadd.f32 %v8385_v46, %v865_v57 }
 0x455   :  { %v9122_v60 = vpop.eup %8388  ;;  %v896_v61 = vadd.f32 %v8387_v47, %v895_v30 }
 0x456   :  { %v8391_v63 = vpop.eup %8390  ;;  %v878_v2 = vmul.f32 %v9122_v60, %v9119_v49  ;;  %v9134_v3 = vpop.xlane.xlu2 %824  ;;  %v870_v4 = vsel %vm9124_vm8, %v8385_v46, %v866_v58  ;;  %vm883_vm12 = vweird.f32 %v9122_v60 }
 0x457   :  { %v900_v35 = vsel %vm899_vm9, %v8387_v47, %v896_v61  ;;  %v833_v5 = vmul.f32 %v8391_v63, %v810_v51  ;;  %v9138_v9 = vpop.xlane.xlu0 %827  ;;  %8392 = vrcp.f32 %v9134_v3  ;;  %v875_v23 = vsel %vm9128_vm11, %v874_v12, %v870_v4  ;;  %vm9154_vm1 = vmor %vm882_vm14, %vm883_vm12 }
 0x458   :  { %v905_v11 = vsel %vm902_vm10, %v904_v0, %v900_v35  ;;  %v879_v13 = vsub.f32 1.0, %v878_v2  ;;  %8394 = vrcp.f32 %v9138_v9  ;;  %vm838_vm13 = vweird.f32 %v8391_v63 }
 0x459   :  { %v834_v14 = vsub.f32 1.0, %v833_v5  ;;  %v906_v24 = vmul.f32 %v9089_v10, %v905_v11  ;;  %v876_v26 = vmul.f32 %v9087_v7, %v875_v23  ;;  %vm839_vm4 = vmor %vm837_vm15, %vm838_vm13  ;;  %v844_v7 = vor.u32 1.1754944e-38, %v843_v17 }
 0x45a   :  { %v880_v21 = vmul.f32 %v9122_v60, %v879_v13  ;;  %v933_v48 = vand.u32 2147483648, %v9138_v9  ;;  %v918_v51 = vand.u32 2147483648, %v9134_v3  ;;  %v916_v52 = vand.u32 2147483647, %v9134_v3 }
 0x45b   :  { %v835_v25 = vmul.f32 %v8391_v63, %v834_v14  ;;  %7599 = vmatmul.msk.f32.vlgmr.msrb.gmra.mxu3 %vm79_vm0, %v906_v24  ;;  %7597 = vmatmul.msk.f32.vlgmr.msrb.gmra.mxu2 %vm79_vm0, %v876_v26  ;;  %v931_v57 = vand.u32 2147483647, %v9138_v9  ;;  %vm912_vm9 = vweird.f32 %v9134_v3  ;;  %vm927_vm10 = vweird.f32 %v9138_v9 }
 0x45c   :  { %v881_v28 = vadd.f32 %v9122_v60, %v880_v21  ;;  %v919_v61 = vor.u32 1.1754944e-38, %v918_v51  ;;  %vm917_vm13 = vcmp.eq.f32.partialorder %v916_v52, 8.507059e+37 }
 0x45d   :  { %v8393_v32 = vpop.eup %8392  ;;  %v836_v34 = vadd.f32 %v8391_v63, %v835_v25  ;;  %vm932_vm14 = vcmp.eq.f32.partialorder %v931_v57, 8.507059e+37 }
 0x45e   :  { %v8395_v37 = vpop.eup %8394  ;;  %v908_v39 = vmul.f32 %v8393_v32, %v9134_v3  ;;  %v9159_v42 = vpop.xlane.xlu1 %812  ;;  %v885_v46 = vsel %vm9154_vm1, %v9122_v60, %v881_v28  ;;  %vm913_vm7 = vweird.f32 %v8393_v32 }
 0x45f   :  { %v840_v43 = vsel %vm839_vm4, %v8391_v63, %v836_v34  ;;  %v923_v44 = vmul.f32 %v8395_v37, %v9138_v9  ;;  %8396 = vrcp.f32 %v9159_v42  ;;  %v9163_v45 = vpop.xlane.xlu2 %830  ;;  %v890_v55 = vsel %vm887_vm6, %v889_v38, %v885_v46  ;;  %vm914_vm11 = vmor %vm912_vm9, %vm913_vm7  ;;  %v7608_v34 = vld [vmem:[%s11887_s9 + $0x10] sm:$0xff] }
 0x460   :  { %v845_v47 = vsel %vm842_vm5, %v844_v7, %v840_v43  ;;  %v909_v49 = vsub.f32 1.0, %v908_v39  ;;  %8398 = vrcp.f32 %v9163_v45  ;;  %vm928_vm8 = vweird.f32 %v8395_v37  ;;  %1157 = vmatpush.msra.mxu3 %v7608_v34 }
 0x461   :  { %v924_v50 = vsub.f32 1.0, %v923_v44  ;;  %v846_v54 = vmul.f32 %v9097_v22, %v845_v47  ;;  %v891_v30 = vmul.f32 %v9095_v20, %v890_v55  ;;  %vm929_vm12 = vmor %vm927_vm10, %vm928_vm8  ;;  %v934_v22 = vor.u32 1.1754944e-38, %v933_v48 }
 0x462   :  { %v910_v53 = vmul.f32 %v8393_v32, %v909_v49  ;;  %v858_v5 = vand.u32 2147483648, %v9159_v42  ;;  %v856_v13 = vand.u32 2147483647, %v9159_v42  ;;  %vm852_vm1 = vweird.f32 %v9159_v42 }
 0x463   :  { %v925_v56 = vmul.f32 %v8395_v37, %v924_v50  ;;  %7595 = vmatmul.msk.f32.vlgmr.msra.gmra.mxu1 %vm79_vm0, %v846_v54  ;;  %7598 = vmatmul.msk.f32.gmra.mxu2 %vm79_vm0, %v891_v30  ;;  %v948_v14 = vand.u32 2147483648, %v9163_v45  ;;  %vm942_vm6 = vweird.f32 %v9163_v45 }
 0x464   :  { %v911_v58 = vadd.f32 %v8393_v32, %v910_v53  ;;  %v859_v18 = vor.u32 1.1754944e-38, %v858_v5  ;;  %vm857_vm7 = vcmp.eq.f32.partialorder %v856_v13, 8.507059e+37  ;;  %v1287_v5 = vld [vmem:[%s11888_s10 + $0x18] sm:$0xff]  ;;  %v1285_v13 = vld [vmem:[%s11888_s10 + $0x8] sm:$0xff] }
 0x465   :  { %v8397_v59 = vpop.eup %8396  ;;  %v926_v60 = vadd.f32 %v8395_v37, %v925_v56  ;;  %v949_v23 = vor.u32 1.1754944e-38, %v948_v14  ;;  %v1284_v14 = vld [vmem:[%s11888_s10] sm:$0xff] }
 0x466   :  { %v848_v62 = vmul.f32 %v8397_v59, %v9159_v42  ;;  %v915_v63 = vsel %vm914_vm11, %v8393_v32, %v911_v58  ;;  %v8399_v20 = vpop.eup %8398  ;;  %vm853_vm15 = vweird.f32 %v8397_v59  ;;  %v7605_v32 = vld [vmem:[%s11887_s9 + $0x8] sm:$0xff] }
 0x467   :  { %v930_v0 = vsel %vm929_vm12, %v8395_v37, %v926_v60  ;;  %v920_v1 = vsel %vm917_vm13, %v919_v61, %v915_v63  ;;  %v938_v35 = vmul.f32 %v8399_v20, %v9163_v45  ;;  %vm943_vm4 = vweird.f32 %v8399_v20  ;;  %vm854_vm5 = vmor %vm852_vm1, %vm853_vm15  ;;  %1124 = vmatpush.msra.mxu2 %v7605_v32 }
 0x468   :  { %v935_v2 = vsel %vm932_vm14, %v934_v22, %v930_v0  ;;  %v849_v3 = vsub.f32 1.0, %v848_v62  ;;  %v921_v4 = vmul.f32 %v9103_v33, %v920_v1  ;;  %v946_v33 = vand.u32 2147483647, %v9163_v45  ;;  %vm944_vm8 = vmor %vm942_vm6, %vm943_vm4 }
 0x469   :  { %v936_v9 = vmul.f32 %v9105_v36, %v935_v2  ;;  %v939_v12 = vsub.f32 1.0, %v938_v35  ;;  %v1098_v45 = vperm.slane %v8896_v29, 4 }
 0x46a   :  { %v850_v11 = vmul.f32 %v8397_v59, %v849_v3  ;;  %7600 = vmatmul.msk.f32.gmra.mxu3 %vm79_vm0, %v921_v4  ;;  %vm947_vm9 = vcmp.eq.f32.partialorder %v946_v33, 8.507059e+37 }
 0x46b   :  { %7601 = vmatmul.msk.f32.vlgmr.msrb.gmra.mxu0 %vm79_vm0, %v936_v9  ;;  %v940_v15 = vmul.f32 %v8399_v20, %v939_v12  ;;  %v1286_v9 = vld [vmem:[%s11888_s10 + $0x10] sm:$0xff] }
 0x46c   :  { %v851_v17 = vadd.f32 %v8397_v59, %v850_v11 }
 0x46d   :  { %v941_v21 = vadd.f32 %v8399_v20, %v940_v15 }
 0x46e   :  { %v855_v36 = vsel %vm854_vm5, %v8397_v59, %v851_v17 }
 0x46f   :  { %v860_v24 = vsel %vm857_vm7, %v859_v18, %v855_v36  ;;  %v945_v26 = vsel %vm944_vm8, %v8399_v20, %v941_v21 }
 0x470   :  { %v861_v25 = vmul.f32 %v9111_v40, %v860_v24  ;;  %v950_v28 = vsel %vm947_vm9, %v949_v23, %v945_v26  ;;  %v1068_v40 = vld [vmem:[%s11887_s9] sm:$0xff]  ;;  %vm1329_vm9 = vcmask 523264  }
 0x471   :  { %v951_v31 = vmul.f32 %v9113_v41, %v950_v28  ;;  %1090 = vmatpush.msrb.mxu1 %v1068_v40  ;;  %v7611_v41 = vld [vmem:[%s11887_s9 + $0x18] sm:$0xff] }
 0x472   :  { %7596 = vmatmul.msk.f32.gmra.mxu1 %vm79_vm0, %v861_v25  ;;  %1190 = vmatpush.msra.mxu0 %v7611_v41 }
 0x473   :  { %7602 = vmatmul.msk.f32.gmra.mxu0 %vm79_vm0, %v951_v31  ;;  %1307 = vmatpush.msra.mxu1 %v1287_v5 }
 0x475   :  { %1308 = vmatpush.msra.mxu1 %v1286_v9 }
 0x477   :  { %1309 = vmatpush.msra.mxu1 %v1285_v13 }
 0x479   :  { %1310 = vmatpush.msra.mxu1 %v1284_v14 }
 0x4de   :  { %v1033_v10 = vpop.f32.mrf.mxu3  ;;  %v1004_v37 = vpop.f32.mrf.mxu2 }
 0x4df   :  { %7609 = vmatmul.msk.f32.vlgmr.msra.gmra.mxu3 %vm603_vm2, %v1033_v10  ;;  %7606 = vmatmul.msk.f32.vlgmr.msra.gmra.mxu2 %vm603_vm2, %v1004_v37  ;;  %v1327_v37 = vld [vmem:[%s11889_s11 + $0x38] sm:$0xff] }
 0x4e0   :  { %v975_v7 = vpop.f32.mrf.mxu1  ;;  %1344 = vmatpush.msrb.mxu2 %v1327_v37 }
 0x4e1   :  { %7603 = vmatmul.msk.f32.vlgmr.msrb.gmra.mxu1 %vm603_vm2, %v975_v7  ;;  %v1326_v7 = vld [vmem:[%s11889_s11 + $0x30] sm:$0xff] }
 0x4e2   :  { %1345 = vmatpush.msrb.mxu2 %v1326_v7 }
 0x4e6   :  { %v1007_v38 = vpop.f32.mrf.mxu2 }
 0x4e7   :  { %7607 = vmatmul.msk.f32.gmra.mxu2 %vm603_vm2, %v1007_v38 }
 0x4e8   :  { %v1062_v39 = vpop.f32.mrf.mxu0 }
 0x4e9   :  { %7612 = vmatmul.msk.f32.vlgmr.msra.gmra.mxu0 %vm603_vm2, %v1062_v39  ;;  %v1325_v39 = vld [vmem:[%s11889_s11 + $0x28] sm:$0xff] }
 0x4ea   :  { %1346 = vmatpush.msrb.mxu2 %v1325_v39 }
 0x4ed   :  { %v1036_v42 = vpop.f32.mrf.mxu3 }
 0x4ee   :  { %7610 = vmatmul.msk.f32.gmra.mxu3 %vm603_vm2, %v1036_v42 }
 0x4ef   :  { %v978_v43 = vpop.f32.mrf.mxu1 }
 0x4f0   :  { %7604 = vmatmul.msk.f32.gmra.mxu1 %vm603_vm2, %v978_v43  ;;  %v1065_v44 = vpop.f32.mrf.mxu0  ;;  %v1324_v43 = vld [vmem:[%s11889_s11 + $0x20] sm:$0xff] }
 0x4f1   :  { %7613 = vmatmul.msk.f32.gmra.mxu0 %vm603_vm2, %v1065_v44  ;;  %1347 = vmatpush.msrb.mxu2 %v1324_v43 }
 0x55e   :  { %v1092_v46 = vpop.f32.mrf.mxu1 }
 0x55f   :  { %v1099_v47 = vadd.f32 %v1098_v45, %v1092_v46 }
 0x562   :  { %v1126_v48 = vpop.f32.mrf.mxu2  ;;  %v1159_v50 = vpop.f32.mrf.mxu3 }
 0x563   :  { %v1132_v49 = vadd.f32 %v1126_v48, %v1099_v47  ;;  %v1323_v47 = vld [vmem:[%s11889_s11 + $0x18] sm:$0xff] }
 0x564   :  { %1348 = vmatpush.msrb.mxu2 %v1323_v47 }
 0x565   :  { %v1165_v52 = vadd.f32 %v1159_v50, %v1132_v49 }
 0x566   :  { %v1192_v51 = vpop.f32.mrf.mxu0 }
 0x567   :  { %v1198_v53 = vadd.f32 %v1192_v51, %v1165_v52 }
 0x569   :  { %v9217_v54 = vadd.f32 %v1198_v53, %v8798_v19  ;;  %v9270_v53 = vld [vmem:[%s11890_s12] sm:$0xff] }
 0x56a   :  { %v1129_v30 = vpop.f32.mrf.mxu2 }
 0x56b   :  { %v1202_v55 = vsel %vm113_vm3, %v9217_v54, 0.0 }
 0x56c   :  { %1203 = vadd.xlane.f32.xlu0 %v1202_v55  ;;  %v1246_v55 = vperm.slane %v9270_v53, 2 }
 0x56d   :  { %v1095_v56 = vpop.f32.mrf.mxu1 }
 0x56e   :  { %v1100_v57 = vadd.f32 %v1098_v45, %v1095_v56  ;;  %v1195_v60 = vpop.f32.mrf.mxu0 }
 0x570   :  { %v1133_v58 = vadd.f32 %v1129_v30, %v1100_v57 }
 0x571   :  { %v1162_v29 = vpop.f32.mrf.mxu3 }
 0x572   :  { %v1166_v59 = vadd.f32 %v1162_v29, %v1133_v58 }
 0x574   :  { %v1199_v61 = vadd.f32 %v1195_v60, %v1166_v59 }
 0x576   :  { %v9222_v22 = vadd.f32 %v1199_v61, %v8794_v16  ;;  %v1281_v61 = vperm.slane %v9270_v53, 3 }
 0x578   :  { %v1205_v62 = vsel %vm113_vm3, %v9222_v22, 0.0 }
 0x579   :  { %1206 = vadd.xlane.f32.xlu1 %v1205_v62 }
 0x5df   :  { %v1204_v19 = vpop.xlane.xlu0 %1203 }
 0x5e0   :  { %v1208_v63 = vmul.f32 %v1204_v19, %v8802_v27 }
 0x5e2   :  { %v9228_v20 = vsub.f32 %v9217_v54, %v1208_v63 }
 0x5e4   :  { %v1212_v0 = vmul.f32 %v9228_v20, %v9228_v20  ;;  %v1247_v59 = vmul.f32 %v1246_v55, %v9228_v20 }
 0x5e6   :  { %v1214_v1 = vsel %vm113_vm3, %v1212_v0, 0.0 }
 0x5e7   :  { %1215 = vadd.xlane.f32.xlu2 %v1214_v1 }
 0x5ec   :  { %v1207_v2 = vpop.xlane.xlu1 %1206 }
 0x5ed   :  { %v1209_v16 = vmul.f32 %v1207_v2, %v8802_v27 }
 0x5ef   :  { %v9235_v3 = vsub.f32 %v9222_v22, %v1209_v16 }
 0x5f1   :  { %v1213_v35 = vmul.f32 %v9235_v3, %v9235_v3  ;;  %v1248_v9 = vmul.f32 %v1246_v55, %v9235_v3  ;;  %v1320_v3 = vld [vmem:[%s11889_s11] sm:$0xff]  ;;  %v7635_v55 = vld [vmem:[%s11885_s7 + $0x1d8] sm:$0xff] }
 0x5f2   :  { %1537 = vmatpush.msrb.mxu1 %v7635_v55  ;;  %v1405_v55 = vperm.slane %v9270_v53, 6 }
 0x5f3   :  { %v1217_v4 = vsel %vm113_vm3, %v1213_v35, 0.0 }
 0x5f4   :  { %1218 = vadd.xlane.f32.xlu0 %v1217_v4 }
 0x65a   :  { %v1216_v11 = vpop.xlane.xlu2 %1215 }
 0x65b   :  { %v1220_v12 = vmul.f32 0.032258064, %v1216_v11 }
 0x65d   :  { %8400 = vrsqrt.f32 %v1220_v12  ;;  %vm1229_vm10 = vcmp.eq.f32.partialorder %v1220_v12, inf  ;;  %v1232_v28 = vand.u32 2147483648, %v1220_v12  ;;  %vm1231_vm11 = vcmp.eq.f32.partialorder %v1220_v12, 0.0 }
 0x663   :  { %v8401_v15 = vpop.eup %8400 }
 0x664   :  { %v1223_v17 = vmul.f32 %v8401_v15, %v1220_v12 }
 0x666   :  { %v1224_v18 = vmul.f32 %v8401_v15, %v1223_v17  ;;  %v1321_v17 = vld [vmem:[%s11889_s11 + $0x8] sm:$0xff] }
 0x667   :  { %v1219_v33 = vpop.xlane.xlu0 %1218 }
 0x668   :  { %v1221_v36 = vmul.f32 0.032258064, %v1219_v33  ;;  %v1225_v21 = vmul.f32 0.5, %v1224_v18  ;;  %v53_v33 = vld [vmem:[%s11891_s13] sm:$0xf] }
 0x669   :  { %v1288_v18 = vperm.slane %v53_v33, 0 }
 0x66a   :  { %8402 = vrsqrt.f32 %v1221_v36  ;;  %v1226_v23 = vsub.f32 1.5, %v1225_v21  ;;  %vm1241_vm12 = vcmp.eq.f32.partialorder %v1221_v36, inf  ;;  %v1244_v46 = vand.u32 2147483648, %v1221_v36 }
 0x66b   :  { %vm1243_vm13 = vcmp.eq.f32.partialorder %v1221_v36, 0.0 }
 0x66c   :  { %v1227_v24 = vmul.f32 %v8401_v15, %v1226_v23  ;;  %v1322_v15 = vld [vmem:[%s11889_s11 + $0x10] sm:$0xff] }
 0x66d   :  { %1349 = vmatpush.msrb.mxu2 %v1322_v15 }
 0x66e   :  { %v1228_v26 = vmul.f32 %v1227_v24, %v1220_v12 }
 0x66f   :  { %1350 = vmatpush.msrb.mxu2 %v1321_v17 }
 0x670   :  { %v8403_v25 = vpop.eup %8402  ;;  %v1230_v32 = vsel %vm1229_vm10, %v1220_v12, %v1228_v26 }
 0x671   :  { %v1235_v31 = vmul.f32 %v8403_v25, %v1221_v36  ;;  %v1233_v34 = vsel %vm1231_vm11, %v1232_v28, %v1230_v32  ;;  %1351 = vmatpush.msrb.mxu2 %v1320_v3  ;;  %v1328_v28 = vperm.slane %v9270_v53, 5 }
 0x672   :  { %v1249_v41 = vadd.f32 1e-06, %v1233_v34 }
 0x673   :  { %v1236_v40 = vmul.f32 %v8403_v25, %v1235_v31 }
 0x674   :  { %8404 = vrcp.f32 %v1249_v41  ;;  %v1262_v56 = vand.u32 2147483648, %v1249_v41  ;;  %v1260_v30 = vand.u32 2147483647, %v1249_v41  ;;  %vm1256_vm15 = vweird.f32 %v1249_v41 }
 0x675   :  { %v1237_v10 = vmul.f32 0.5, %v1236_v40 }
 0x676   :  { %v1263_v29 = vor.u32 1.1754944e-38, %v1262_v56  ;;  %vm1261_vm4 = vcmp.eq.f32.partialorder %v1260_v30, 8.507059e+37 }
 0x677   :  { %v1238_v38 = vsub.f32 1.5, %v1237_v10 }
 0x679   :  { %v1239_v42 = vmul.f32 %v8403_v25, %v1238_v38 }
 0x67a   :  { %v8405_v45 = vpop.eup %8404 }
 0x67b   :  { %v1240_v44 = vmul.f32 %v1239_v42, %v1221_v36  ;;  %v1252_v48 = vmul.f32 %v8405_v45, %v1249_v41  ;;  %vm1257_vm14 = vweird.f32 %v8405_v45 }
 0x67c   :  { %vm1258_vm1 = vmor %vm1256_vm15, %vm1257_vm14 }
 0x67d   :  { %v1242_v49 = vsel %vm1241_vm12, %v1221_v36, %v1240_v44  ;;  %v1253_v51 = vsub.f32 1.0, %v1252_v48 }
 0x67e   :  { %v1245_v50 = vsel %vm1243_vm13, %v1244_v46, %v1242_v49 }
 0x67f   :  { %v1250_v52 = vadd.f32 1e-06, %v1245_v50  ;;  %v1254_v57 = vmul.f32 %v8405_v45, %v1253_v51  ;;  %v7621_v51 = vld [vmem:[%s11885_s7 + $0x198] sm:$0xff] }
 0x680   :  { %1471 = vmatpush.msrb.mxu3 %v7621_v51 }
 0x681   :  { %8406 = vrcp.f32 %v1250_v52  ;;  %v1255_v58 = vadd.f32 %v8405_v45, %v1254_v57  ;;  %v1277_v16 = vand.u32 2147483648, %v1250_v52  ;;  %v1275_v4 = vand.u32 2147483647, %v1250_v52  ;;  %v7642_v57 = vld [vmem:[%s11885_s7 + $0x1f8] sm:$0xff] }
 0x682   :  { %vm1271_vm6 = vweird.f32 %v1250_v52  ;;  %1570 = vmatpush.msra.mxu2 %v7642_v57 }
 0x683   :  { %v1259_v60 = vsel %vm1258_vm1, %v8405_v45, %v1255_v58  ;;  %v1278_v20 = vor.u32 1.1754944e-38, %v1277_v16  ;;  %vm1276_vm8 = vcmp.eq.f32.partialorder %v1275_v4, 8.507059e+37  ;;  %v7620_v58 = vld [vmem:[%s11885_s7 + $0x190] sm:$0xff]  ;;  %v7618_v16 = vld [vmem:[%s11885_s7 + $0x180] sm:$0xff] }
 0x684   :  { %v1264_v62 = vsel %vm1261_vm4, %v1263_v29, %v1259_v60  ;;  %v7627_v29 = vld [vmem:[%s11885_s7 + $0x1b0] sm:$0xff]  ;;  %1472 = vmatpush.msrb.mxu3 %v7620_v58  ;;  %v7632_v4 = vld [vmem:[%s11885_s7 + $0x1c0] sm:$0xff] }
 0x685   :  { %v1265_v63 = vmul.f32 %v1264_v62, %v1247_v59  ;;  %v7634_v59 = vld [vmem:[%s11885_s7 + $0x1d0] sm:$0xff] }
 0x686   :  { %v7641_v62 = vld [vmem:[%s11885_s7 + $0x1f0] sm:$0xff]  ;;  %1538 = vmatpush.msrb.mxu1 %v7634_v59  ;;  %v1440_v59 = vperm.slane %v9270_v53, 7 }
 0x687   :  { %v8407_v19 = vpop.eup %8406  ;;  %v1282_v1 = vadd.f32 %v1281_v61, %v1265_v63  ;;  %1571 = vmatpush.msra.mxu2 %v7641_v62  ;;  %v7626_v63 = vld [vmem:[%s11885_s7 + $0x1a8] sm:$0xff] }
 0x688   :  { %v1267_v0 = vmul.f32 %v8407_v19, %v1250_v52  ;;  %vm1272_vm5 = vweird.f32 %v8407_v19  ;;  %v7628_v52 = vld [vmem:[%s11885_s7 + $0x1b8] sm:$0xff] }
 0x689   :  { %7614 = vmatmul.msk.f32.vlgmr.msra.gmra.mxu1 %vm113_vm3, %v1282_v1  ;;  %vm1273_vm7 = vmor %vm1271_vm6, %vm1272_vm5  ;;  %1504 = vmatpush.msrb.mxu0 %v7628_v52 }
 0x68a   :  { %v1268_v2 = vsub.f32 1.0, %v1267_v0  ;;  %v7633_v0 = vld [vmem:[%s11885_s7 + $0x1c8] sm:$0xff] }
 0x68b   :  { %1505 = vmatpush.msrb.mxu0 %v7627_v29  ;;  %1539 = vmatpush.msrb.mxu1 %v7633_v0 }
 0x68c   :  { %v1269_v35 = vmul.f32 %v8407_v19, %v1268_v2  ;;  %v7640_v2 = vld [vmem:[%s11885_s7 + $0x1e8] sm:$0xff] }
 0x68d   :  { %1506 = vmatpush.msrb.mxu0 %v7626_v63  ;;  %1572 = vmatpush.msra.mxu2 %v7640_v2 }
 0x68e   :  { %v1270_v5 = vadd.f32 %v8407_v19, %v1269_v35  ;;  %v7625_v35 = vld [vmem:[%s11885_s7 + $0x1a0] sm:$0xff]  ;;  %1540 = vmatpush.msrb.mxu1 %v7632_v4  ;;  %v7698_v4 = vld [vmem:[%s11885_s7 + $0x2f8] sm:$0xff] }
 0x68f   :  { %1507 = vmatpush.msrb.mxu0 %v7625_v35  ;;  %v7684_v35 = vld [vmem:[%s11885_s7 + $0x2b8] sm:$0xff] }
 0x690   :  { %v1274_v11 = vsel %vm1273_vm7, %v8407_v19, %v1270_v5  ;;  %v7619_v19 = vld [vmem:[%s11885_s7 + $0x188] sm:$0xff] }
 0x691   :  { %v1279_v12 = vsel %vm1276_vm8, %v1278_v20, %v1274_v11  ;;  %1473 = vmatpush.msrb.mxu3 %v7619_v19  ;;  %v7639_v20 = vld [vmem:[%s11885_s7 + $0x1e0] sm:$0xff] }
 0x692   :  { %v1280_v13 = vmul.f32 %v1279_v12, %v1248_v9  ;;  %1573 = vmatpush.msra.mxu2 %v7639_v20 }
 0x693   :  { %1474 = vmatpush.msrb.mxu3 %v7618_v16  ;;  %v7677_v16 = vld [vmem:[%s11885_s7 + $0x298] sm:$0xff] }
 0x694   :  { %v1283_v14 = vadd.f32 %v1281_v61, %v1280_v13 }
 0x696   :  { %7615 = vmatmul.msk.f32.gmra.mxu1 %vm113_vm3, %v1283_v14 }
 0x706   :  { %v1312_v36 = vpop.f32.mrf.mxu1 }
 0x707   :  { %v1313_v21 = vadd.f32 %v1312_v36, %v1288_v18 }
 0x709   :  { %v1318_v23 = vmax.f32 %v1313_v21, 0.0  ;;  %v7649_v21 = vld [vmem:[%s11885_s7 + $0x218] sm:$0xff] }
 0x70a   :  { %1603 = vmatpush.msra.mxu3 %v7649_v21 }
 0x70b   :  { %7616 = vmatmul.msk.f32.vlgmr.msrb.gmra.mxu2 %vm1329_vm9, %v1318_v23  ;;  %v7656_v23 = vld [vmem:[%s11885_s7 + $0x238] sm:$0xff] }
 0x70c   :  { %1636 = vmatpush.msra.mxu0 %v7656_v23  ;;  %v7674_v23 = vld [vmem:[%s11885_s7 + $0x280] sm:$0xff] }
 0x713   :  { %v1315_v24 = vpop.f32.mrf.mxu1 }
 0x714   :  { %v1316_v25 = vadd.f32 %v1315_v24, %v1288_v18  ;;  %v7663_v24 = vld [vmem:[%s11885_s7 + $0x258] sm:$0xff] }
 0x715   :  { %1669 = vmatpush.msra.mxu1 %v7663_v24  ;;  %v7681_v24 = vld [vmem:[%s11885_s7 + $0x2a0] sm:$0xff] }
 0x716   :  { %v1319_v26 = vmax.f32 %v1316_v25, 0.0  ;;  %v7670_v25 = vld [vmem:[%s11885_s7 + $0x278] sm:$0xff] }
 0x717   :  { %1702 = vmatpush.msrb.mxu2 %v7670_v25 }
 0x718   :  { %7617 = vmatmul.msk.f32.gmra.mxu2 %vm1329_vm9, %v1319_v26  ;;  %v7648_v26 = vld [vmem:[%s11885_s7 + $0x210] sm:$0xff] }
 0x719   :  { %1604 = vmatpush.msra.mxu3 %v7648_v26  ;;  %v7688_v26 = vld [vmem:[%s11885_s7 + $0x2c0] sm:$0xff] }
 0x78e   :  { %v1353_v31 = vpop.f32.mrf.mxu2 }
 0x78f   :  { %v1354_v32 = vadd.f32 %v1353_v31, %v1328_v28 }
 0x791   :  { %v9294_v34 = vadd.f32 %v1354_v32, %v9217_v54  ;;  %v7662_v32 = vld [vmem:[%s11885_s7 + $0x250] sm:$0xff] }
 0x792   :  { %1670 = vmatpush.msra.mxu1 %v7662_v32 }
 0x793   :  { %v1361_v40 = vsel %vm113_vm3, %v9294_v34, 0.0 }
 0x794   :  { %1362 = vadd.xlane.f32.xlu1 %v1361_v40  ;;  %v7669_v40 = vld [vmem:[%s11885_s7 + $0x270] sm:$0xff] }
 0x795   :  { %1703 = vmatpush.msrb.mxu2 %v7669_v40 }
 0x79b   :  { %v1356_v41 = vpop.f32.mrf.mxu2 }
 0x79c   :  { %v1357_v10 = vadd.f32 %v1356_v41, %v1328_v28  ;;  %v7655_v28 = vld [vmem:[%s11885_s7 + $0x230] sm:$0xff]  ;;  %v7647_v41 = vld [vmem:[%s11885_s7 + $0x208] sm:$0xff] }
 0x79d   :  { %1637 = vmatpush.msra.mxu0 %v7655_v28  ;;  %1605 = vmatpush.msra.mxu3 %v7647_v41 }
 0x79e   :  { %v9299_v37 = vadd.f32 %v1357_v10, %v9222_v22  ;;  %v7654_v10 = vld [vmem:[%s11885_s7 + $0x228] sm:$0xff] }
 0x79f   :  { %1638 = vmatpush.msra.mxu0 %v7654_v10 }
 0x7a0   :  { %v1364_v7 = vsel %vm113_vm3, %v9299_v37, 0.0 }
 0x7a1   :  { %1365 = vadd.xlane.f32.xlu2 %v1364_v7  ;;  %v7661_v7 = vld [vmem:[%s11885_s7 + $0x248] sm:$0xff] }
 0x7a2   :  { %1671 = vmatpush.msra.mxu1 %v7661_v7 }
 0x807   :  { %v1363_v38 = vpop.xlane.xlu1 %1362 }
 0x808   :  { %v1367_v39 = vmul.f32 %v1363_v38, %v8802_v27  ;;  %v7668_v38 = vld [vmem:[%s11885_s7 + $0x268] sm:$0xff] }
 0x809   :  { %1704 = vmatpush.msrb.mxu2 %v7668_v38 }
 0x80a   :  { %v9305_v42 = vsub.f32 %v9294_v34, %v1367_v39 }
 0x80c   :  { %v1371_v54 = vmul.f32 %v9305_v42, %v9305_v42 }
 0x80e   :  { %v1373_v43 = vsel %vm113_vm3, %v1371_v54, 0.0  ;;  %v7646_v54 = vld [vmem:[%s11885_s7 + $0x200] sm:$0xff] }
 0x80f   :  { %1374 = vadd.xlane.f32.xlu0 %v1373_v43  ;;  %v7653_v43 = vld [vmem:[%s11885_s7 + $0x220] sm:$0xff]  ;;  %1606 = vmatpush.msra.mxu3 %v7646_v54 }
 0x810   :  { %1639 = vmatpush.msra.mxu0 %v7653_v43 }
 0x814   :  { %v1366_v44 = vpop.xlane.xlu2 %1365 }
 0x815   :  { %v1368_v22 = vmul.f32 %v1366_v44, %v8802_v27 }
 0x817   :  { %v9312_v45 = vsub.f32 %v9299_v37, %v1368_v22 }
 0x819   :  { %v1372_v46 = vmul.f32 %v9312_v45, %v9312_v45 }
 0x81b   :  { %v1376_v47 = vsel %vm113_vm3, %v1372_v46, 0.0  ;;  %v7660_v46 = vld [vmem:[%s11885_s7 + $0x240] sm:$0xff] }
 0x81c   :  { %1377 = vadd.xlane.f32.xlu1 %v1376_v47  ;;  %v7667_v47 = vld [vmem:[%s11885_s7 + $0x260] sm:$0xff]  ;;  %1672 = vmatpush.msra.mxu1 %v7660_v46  ;;  %v8302_v46 = vld [vmem:[%s11886_s8 + $0x11] ss:$0 sm:$0xff] }
 0x81d   :  { %1705 = vmatpush.msrb.mxu2 %v7667_v47 }
 0x882   :  { %v1375_v48 = vpop.xlane.xlu0 %1374 }
 0x883   :  { %v1379_v49 = vmul.f32 0.032258064, %v1375_v48 }
 0x885   :  { %8408 = vrsqrt.f32 %v1379_v49  ;;  %vm1388_vm10 = vcmp.eq.f32.partialorder %v1379_v49, inf  ;;  %v1391_v13 = vand.u32 2147483648, %v1379_v49  ;;  %vm1390_vm11 = vcmp.eq.f32.partialorder %v1379_v49, 0.0 }
 0x88b   :  { %v8409_v50 = vpop.eup %8408 }
 0x88c   :  { %v1382_v56 = vmul.f32 %v8409_v50, %v1379_v49 }
 0x88e   :  { %v1383_v60 = vmul.f32 %v8409_v50, %v1382_v56 }
 0x88f   :  { %v1378_v30 = vpop.xlane.xlu1 %1377 }
 0x890   :  { %v9338_v61 = vmul.f32 0.032258064, %v1378_v30  ;;  %v1384_v1 = vmul.f32 0.5, %v1383_v60  ;;  %v1406_v60 = vmul.f32 %v1405_v55, %v9305_v42  ;;  %v7691_v42 = vld [vmem:[%s11885_s7 + $0x2d8] sm:$0xff] }
 0x892   :  { %8410 = vrsqrt.f32 %v9338_v61  ;;  %v1385_v5 = vsub.f32 1.5, %v1384_v1  ;;  %vm1400_vm12 = vcmp.eq.f32.partialorder %v9338_v61, inf  ;;  %v1403_v22 = vand.u32 2147483648, %v9338_v61 }
 0x893   :  { %vm1402_vm13 = vcmp.eq.f32.partialorder %v9338_v61, 0.0 }
 0x894   :  { %v1386_v9 = vmul.f32 %v8409_v50, %v1385_v5 }
 0x896   :  { %v1387_v12 = vmul.f32 %v1386_v9, %v1379_v49  ;;  %v7676_v9 = vld [vmem:[%s11885_s7 + $0x290] sm:$0xff] }
 0x898   :  { %v8411_v11 = vpop.eup %8410  ;;  %v1389_v15 = vsel %vm1388_vm10, %v1379_v49, %v1387_v12  ;;  %v7690_v12 = vld [vmem:[%s11885_s7 + $0x2d0] sm:$0xff] }
 0x899   :  { %v1394_v14 = vmul.f32 %v8411_v11, %v9338_v61  ;;  %v1392_v17 = vsel %vm1390_vm11, %v1391_v13, %v1389_v15  ;;  %v7697_v13 = vld [vmem:[%s11885_s7 + $0x2f0] sm:$0xff]  ;;  %v7675_v15 = vld [vmem:[%s11885_s7 + $0x288] sm:$0xff] }
 0x89a   :  { %v1408_v33 = vadd.f32 1e-06, %v1392_v17  ;;  %v7682_v17 = vld [vmem:[%s11885_s7 + $0x2a8] sm:$0xff] }
 0x89b   :  { %v1395_v3 = vmul.f32 %v8411_v11, %v1394_v14 }
 0x89c   :  { %8412 = vrcp.f32 %v1408_v33  ;;  %v1421_v56 = vand.u32 2147483648, %v1408_v33  ;;  %v1419_v30 = vand.u32 2147483647, %v1408_v33  ;;  %vm1415_vm15 = vweird.f32 %v1408_v33 }
 0x89d   :  { %v1396_v18 = vmul.f32 0.5, %v1395_v3 }
 0x89e   :  { %v1422_v29 = vor.u32 1.1754944e-38, %v1421_v56  ;;  %vm1420_vm4 = vcmp.eq.f32.partialorder %v1419_v30, 8.507059e+37  ;;  %v8299_v56 = vld [vmem:[%s11886_s8 + $0xe] ss:$0 sm:$0xff]  ;;  %v8304_v30 = vld [vmem:[%s11886_s8 + $0x10] ss:$0 sm:$0xff] }
 0x89f   :  { %v1397_v36 = vsub.f32 1.5, %v1396_v18  ;;  %v7696_v18 = vld [vmem:[%s11885_s7 + $0x2e8] sm:$0xff] }
 0x8a1   :  { %v1398_v31 = vmul.f32 %v8411_v11, %v1397_v36  ;;  %v7683_v11 = vld [vmem:[%s11885_s7 + $0x2b0] sm:$0xff]  ;;  %v1407_v36 = vmul.f32 %v1405_v55, %v9312_v45  ;;  %v7695_v45 = vld [vmem:[%s11885_s7 + $0x2e0] sm:$0xff]  ;;  %v8298_v55 = vld [vmem:[%s11886_s8 + $0xd] ss:$0 sm:$0xff] }
 0x8a2   :  { %v8413_v44 = vpop.eup %8412 }
 0x8a3   :  { %v1399_v39 = vmul.f32 %v1398_v31, %v9338_v61  ;;  %v1411_v48 = vmul.f32 %v8413_v44, %v1408_v33  ;;  %vm1416_vm14 = vweird.f32 %v8413_v44  ;;  %v7689_v33 = vld [vmem:[%s11885_s7 + $0x2c8] sm:$0xff] }
 0x8a4   :  { %vm1417_vm1 = vmor %vm1415_vm15, %vm1416_vm14 }
 0x8a5   :  { %v1401_v49 = vsel %vm1400_vm12, %v9338_v61, %v1399_v39  ;;  %v1412_v51 = vsub.f32 1.0, %v1411_v48  ;;  %v8303_v48 = vld [vmem:[%s11886_s8 + $0x12] ss:$0 sm:$0xff] }
 0x8a6   :  { %v1404_v50 = vsel %vm1402_vm13, %v1403_v22, %v1401_v49 }
 0x8a7   :  { %v1409_v52 = vadd.f32 1e-06, %v1404_v50  ;;  %v1413_v57 = vmul.f32 %v8413_v44, %v1412_v51 }
 0x8a9   :  { %8414 = vrcp.f32 %v1409_v52  ;;  %v1414_v58 = vadd.f32 %v8413_v44, %v1413_v57  ;;  %v1436_v53 = vand.u32 2147483648, %v1409_v52  ;;  %v1434_v20 = vand.u32 2147483647, %v1409_v52 }
 0x8aa   :  { %vm1430_vm6 = vweird.f32 %v1409_v52 }
 0x8ab   :  { %v1418_v61 = vsel %vm1417_vm1, %v8413_v44, %v1414_v58  ;;  %v1437_v3 = vor.u32 1.1754944e-38, %v1436_v53  ;;  %vm1435_vm8 = vcmp.eq.f32.partialorder %v1434_v20, 8.507059e+37  ;;  %v8306_v20 = vld [vmem:[%s11886_s8 + $0x15] ss:$0 sm:$0xff] }
 0x8ac   :  { %v1423_v62 = vsel %vm1420_vm4, %v1422_v29, %v1418_v61  ;;  %v8305_v29 = vld [vmem:[%s11886_s8 + $0x13] ss:$0 sm:$0xff] }
 0x8ad   :  { %v1424_v63 = vmul.f32 %v1423_v62, %v1406_v60 }
 0x8af   :  { %v8415_v19 = vpop.eup %8414  ;;  %v9425_v1 = vadd.f32 %v1440_v59, %v1424_v63 }
 0x8b0   :  { %v1426_v0 = vmul.f32 %v8415_v19, %v1409_v52  ;;  %vm1431_vm5 = vweird.f32 %v8415_v19 }
 0x8b1   :  { %7623 = vmatmul.msk.f32.vlgmr.msrb.gmra.mxu3 %vm113_vm3, %v9425_v1  ;;  %7630 = vmatmul.msk.f32.vlgmr.msrb.gmra.mxu0 %vm113_vm3, %v9425_v1  ;;  %vm1432_vm7 = vmor %vm1430_vm6, %vm1431_vm5 }
 0x8b2   :  { %v1427_v2 = vsub.f32 1.0, %v1426_v0  ;;  %7637 = vmatmul.msk.f32.vlgmr.msrb.gmra.mxu1 %vm113_vm3, %v9425_v1  ;;  %7644 = vmatmul.msk.f32.vlgmr.msra.gmra.mxu2 %vm113_vm3, %v9425_v1 }
 0x8b3   :  { %1735 = vmatpush.msrb.mxu3 %v7677_v16  ;;  %1768 = vmatpush.msrb.mxu0 %v7684_v35  ;;  %v8301_v16 = vld [vmem:[%s11886_s8 + $0xf] ss:$0 sm:$0xff] }
 0x8b4   :  { %v1428_v5 = vmul.f32 %v8415_v19, %v1427_v2  ;;  %1801 = vmatpush.msrb.mxu1 %v7691_v42  ;;  %1834 = vmatpush.msra.mxu2 %v7698_v4  ;;  %v8300_v2 = vld [vmem:[%s11886_s8 + $0xc] ss:$0 sm:$0xff] }
 0x8b5   :  { %1736 = vmatpush.msrb.mxu3 %v7676_v9  ;;  %1769 = vmatpush.msrb.mxu0 %v7683_v11 }
 0x8b6   :  { %v1429_v14 = vadd.f32 %v8415_v19, %v1428_v5  ;;  %1802 = vmatpush.msrb.mxu1 %v7690_v12  ;;  %1835 = vmatpush.msra.mxu2 %v7697_v13  ;;  %v8307_v12 = vld [vmem:[%s11886_s8 + $0x16] ss:$0 sm:$0xff] }
 0x8b7   :  { %1737 = vmatpush.msrb.mxu3 %v7675_v15  ;;  %1770 = vmatpush.msrb.mxu0 %v7682_v17 }
 0x8b8   :  { %v1433_v21 = vsel %vm1432_vm7, %v8415_v19, %v1429_v14  ;;  %1803 = vmatpush.msrb.mxu1 %v7689_v33  ;;  %1836 = vmatpush.msra.mxu2 %v7696_v18 }
 0x8b9   :  { %v1438_v25 = vsel %vm1435_vm8, %v1437_v3, %v1433_v21  ;;  %1738 = vmatpush.msrb.mxu3 %v7674_v23  ;;  %1771 = vmatpush.msrb.mxu0 %v7681_v24  ;;  %v8309_v23 = vld [vmem:[%s11886_s8 + $0x17] ss:$0 sm:$0xff] }
 0x8ba   :  { %v1439_v28 = vmul.f32 %v1438_v25, %v1407_v36  ;;  %1804 = vmatpush.msrb.mxu1 %v7688_v26  ;;  %1837 = vmatpush.msra.mxu2 %v7695_v45  ;;  %v8308_v36 = vld [vmem:[%s11886_s8 + $0x14] ss:$0 sm:$0xff] }
 0x8bc   :  { %v1442_v31 = vadd.f32 %v1440_v59, %v1439_v28 }
 0x8be   :  { %7624 = vmatmul.msk.f32.gmra.mxu3 %vm113_vm3, %v1442_v31  ;;  %7631 = vmatmul.msk.f32.gmra.mxu0 %vm113_vm3, %v1442_v31 }
 0x8bf   :  { %7638 = vmatmul.msk.f32.gmra.mxu1 %vm113_vm3, %v1442_v31  ;;  %7645 = vmatmul.msk.f32.gmra.mxu2 %vm113_vm3, %v1442_v31 }
 0x8c6   :  { %7651 = vmatmul.msk.f32.vlgmr.msra.gmra.mxu3 %vm113_vm3, %v9425_v1  ;;  %7658 = vmatmul.msk.f32.vlgmr.msra.gmra.mxu0 %vm113_vm3, %v9425_v1 }
 0x8c7   :  { %7665 = vmatmul.msk.f32.vlgmr.msra.gmra.mxu1 %vm113_vm3, %v9425_v1  ;;  %7672 = vmatmul.msk.f32.vlgmr.msrb.gmra.mxu2 %vm113_vm3, %v9425_v1 }
 0x8ce   :  { %7652 = vmatmul.msk.f32.gmra.mxu3 %vm113_vm3, %v1442_v31  ;;  %7659 = vmatmul.msk.f32.gmra.mxu0 %vm113_vm3, %v1442_v31 }
 0x8cf   :  { %7666 = vmatmul.msk.f32.gmra.mxu1 %vm113_vm3, %v1442_v31  ;;  %7673 = vmatmul.msk.f32.gmra.mxu2 %vm113_vm3, %v1442_v31 }
 0x8d6   :  { %7679 = vmatmul.msk.f32.vlgmr.msrb.gmra.mxu3 %vm113_vm3, %v9425_v1  ;;  %7686 = vmatmul.msk.f32.vlgmr.msrb.gmra.mxu0 %vm113_vm3, %v9425_v1 }
 0x8d7   :  { %7693 = vmatmul.msk.f32.vlgmr.msrb.gmra.mxu1 %vm113_vm3, %v9425_v1  ;;  %7700 = vmatmul.msk.f32.vlgmr.msra.gmra.mxu2 %vm113_vm3, %v9425_v1 }
 0x8de   :  { %7680 = vmatmul.msk.f32.gmra.mxu3 %vm113_vm3, %v1442_v31  ;;  %7687 = vmatmul.msk.f32.gmra.mxu0 %vm113_vm3, %v1442_v31 }
 0x8df   :  { %7694 = vmatmul.msk.f32.gmra.mxu1 %vm113_vm3, %v1442_v31  ;;  %7701 = vmatmul.msk.f32.gmra.mxu2 %vm113_vm3, %v1442_v31 }
 0x92e   :  { %v1509_v32 = vpop.f32.mrf.mxu0 }
 0x92f   :  { %v1542_v40 = vpop.f32.mrf.mxu1  ;;  %v1510_v62 = vadd.f32 %v8298_v55, %v1509_v32 }
 0x930   :  { %v1543_v0 = vadd.f32 %v8299_v56, %v1542_v40 }
 0x934   :  { %v1476_v41 = vpop.f32.mrf.mxu3 }
 0x935   :  { %v1575_v10 = vpop.f32.mrf.mxu2  ;;  %v1477_v42 = vadd.f32 %v8300_v2, %v1476_v41 }
 0x936   :  { %v1576_v5 = vadd.f32 %v8301_v16, %v1575_v10 }
 0x93b   :  { %v1512_v7 = vpop.f32.mrf.mxu0 }
 0x93c   :  { %v1545_v38 = vpop.f32.mrf.mxu1  ;;  %v1513_v11 = vadd.f32 %v8298_v55, %v1512_v7 }
 0x93d   :  { %v1546_v14 = vadd.f32 %v8299_v56, %v1545_v38 }
 0x941   :  { %v1479_v39 = vpop.f32.mrf.mxu3 }
 0x942   :  { %v9513_v54 = vpop.f32.mrf.mxu2  ;;  %v1480_v21 = vadd.f32 %v8300_v2, %v1479_v39 }
 0x943   :  { %v1641_v43 = vpop.f32.mrf.mxu0  ;;  %v1579_v25 = vadd.f32 %v8301_v16, %v9513_v54  ;;  %v8649_v54 = vld [vmem:[%s11880_s2] sm:$0xff] }
 0x944   :  { %v1674_v44 = vpop.f32.mrf.mxu1  ;;  %v1642_v57 = vadd.f32 %v8302_v46, %v1641_v43 }
 0x945   :  { %v1675_v58 = vadd.f32 %v8303_v48, %v1674_v44 }
 0x949   :  { %v1608_v22 = vpop.f32.mrf.mxu3 }
 0x94a   :  { %v1707_v47 = vpop.f32.mrf.mxu2  ;;  %v1609_v35 = vadd.f32 %v8304_v30, %v1608_v22 }
 0x94b   :  { %v1644_v49 = vpop.f32.mrf.mxu0  ;;  %v1708_v53 = vadd.f32 %v8305_v29, %v1707_v47 }
 0x94c   :  { %v1645_v50 = vadd.f32 %v8302_v46, %v1644_v49  ;;  %v1677_v51 = vpop.f32.mrf.mxu1 }
 0x94d   :  { %v1678_v52 = vadd.f32 %v8303_v48, %v1677_v51 }
 0x94e   :  { %7706 = vmatpush.xpose.msk.msra.mxu0 %vm603_vm2, %v1645_v50 }
 0x94f   :  { %7710 = vmatpush.xpose.msk.msra.mxu1 %vm603_vm2, %v1678_v52 }
 0x951   :  { %v1611_v59 = vpop.f32.mrf.mxu3 }
 0x952   :  { %v1612_v60 = vadd.f32 %v8304_v30, %v1611_v59  ;;  %v1710_v61 = vpop.f32.mrf.mxu2  ;;  %7707 = vmatpush.xpose.msk.msra.mxu0 %vm603_vm2, %v1642_v57  ;;  %v8650_v57 = vld [vmem:[%s11880_s2 + $0x8] sm:$0xff] }
 0x953   :  { %v1711_v19 = vadd.f32 %v8305_v29, %v1710_v61  ;;  %7711 = vmatpush.xpose.msk.msra.mxu1 %vm603_vm2, %v1675_v58  ;;  %v1773_v63 = vpop.f32.mrf.mxu0 }
 0x954   :  { %v1806_v1 = vpop.f32.mrf.mxu1  ;;  %7702 = vmatpush.xpose.msk.msra.mxu3 %vm603_vm2, %v1612_v60  ;;  %v1774_v33 = vadd.f32 %v8306_v20, %v1773_v63 }
 0x955   :  { %7714 = vmatpush.xpose.msk.msrb.mxu2 %vm603_vm2, %v1711_v19  ;;  %7708 = vmatmul.msk.f32.vlgmr.msra.gmra.mxu0 %vm603_vm2, %v1510_v62  ;;  %v1807_v18 = vadd.f32 %v8307_v12, %v1806_v1 }
 0x956   :  { %7712 = vmatmul.msk.f32.vlgmr.msra.gmra.mxu1 %vm603_vm2, %v1543_v0 }
 0x958   :  { %7703 = vmatpush.xpose.msk.msra.mxu3 %vm603_vm2, %v1609_v35 }
 0x959   :  { %7715 = vmatpush.xpose.msk.msrb.mxu2 %vm603_vm2, %v1708_v53  ;;  %v1740_v4 = vpop.f32.mrf.mxu3 }
 0x95a   :  { %v1839_v9 = vpop.f32.mrf.mxu2  ;;  %v1741_v31 = vadd.f32 %v8308_v36, %v1740_v4 }
 0x95b   :  { %v1776_v13 = vpop.f32.mrf.mxu0  ;;  %7704 = vmatmul.msk.f32.vlgmr.msra.gmra.mxu3 %vm603_vm2, %v1477_v42  ;;  %v1840_v32 = vadd.f32 %v8309_v23, %v1839_v9 }
 0x95c   :  { %v1777_v15 = vadd.f32 %v8306_v20, %v1776_v13  ;;  %v1809_v17 = vpop.f32.mrf.mxu1  ;;  %7716 = vmatmul.msk.f32.vlgmr.msrb.gmra.mxu2 %vm603_vm2, %v1576_v5 }
 0x95d   :  { %v1810_v3 = vadd.f32 %v8307_v12, %v1809_v17  ;;  %7709 = vmatmul.msk.f32.gmra.mxu0 %vm603_vm2, %v1513_v11 }
 0x95e   :  { %7713 = vmatmul.msk.f32.gmra.mxu1 %vm603_vm2, %v1546_v14  ;;  %2242 = vmatpush.msrb.mxu0 %v1777_v15 }
 0x95f   :  { %2271 = vmatpush.msrb.mxu1 %v1810_v3 }
 0x960   :  { %2243 = vmatpush.msrb.mxu0 %v1774_v33 }
 0x961   :  { %2272 = vmatpush.msrb.mxu1 %v1807_v18  ;;  %v1743_v24 = vpop.f32.mrf.mxu3 }
 0x962   :  { %v1744_v26 = vadd.f32 %v8308_v36, %v1743_v24  ;;  %v1842_v45 = vpop.f32.mrf.mxu2 }
 0x963   :  { %v1843_v28 = vadd.f32 %v8309_v23, %v1842_v45  ;;  %7705 = vmatmul.msk.f32.gmra.mxu3 %vm603_vm2, %v1480_v21 }
 0x964   :  { %7717 = vmatmul.msk.f32.gmra.mxu2 %vm603_vm2, %v1579_v25  ;;  %2213 = vmatpush.msrb.mxu3 %v1744_v26 }
 0x965   :  { %2300 = vmatpush.msra.mxu2 %v1843_v28 }
 0x966   :  { %2214 = vmatpush.msrb.mxu3 %v1741_v31 }
 0x967   :  { %2301 = vmatpush.msra.mxu2 %v1840_v32 }
 0x9d2   :  { %v1909_v40 = vpop.f32.mrf.mxu0 }
 0x9d3   :  { %v1944_v10 = vpop.f32.mrf.mxu1  ;;  %v1987_v22 = vmul.f32 0.35355338, %v1909_v40 }
 0x9d4   :  { %v1989_v29 = vmul.f32 0.35355338, %v1944_v10 }
 0x9d5   :  { %v1995_v51 = vadd.f32 %v8649_v54, %v1987_v22 }
 0x9d6   :  { %v1997_v0 = vadd.f32 %v8649_v54, %v1989_v29 }
 0x9d7   :  { %v2007_v60 = vsel %vm79_vm0, %v1995_v51, -inf }
 0x9d8   :  { %v2013_v16 = vsel %vm79_vm0, %v1997_v0, -inf }
 0x9da   :  { %v1912_v52 = vpop.f32.mrf.mxu0 }
 0x9db   :  { %v1947_v56 = vpop.f32.mrf.mxu1  ;;  %v1988_v59 = vmul.f32 0.35355338, %v1912_v52 }
 0x9dc   :  { %v1990_v62 = vmul.f32 0.35355338, %v1947_v56 }
 0x9dd   :  { %v1996_v63 = vadd.f32 %v8650_v57, %v1988_v59 }
 0x9de   :  { %v1874_v41 = vpop.f32.mrf.mxu3  ;;  %v1998_v1 = vadd.f32 %v8650_v57, %v1990_v62 }
 0x9df   :  { %v1985_v7 = vmul.f32 0.35355338, %v1874_v41  ;;  %v1979_v38 = vpop.f32.mrf.mxu2  ;;  %v2010_v2 = vsel %vm79_vm0, %v1996_v63, -inf }
 0x9e0   :  { %v1991_v39 = vmul.f32 0.35355338, %v1979_v38  ;;  %v2016_v35 = vsel %vm79_vm0, %v1998_v1, -inf }
 0x9e1   :  { %v1993_v43 = vadd.f32 %v8649_v54, %v1985_v7 }
 0x9e2   :  { %v1999_v44 = vadd.f32 %v8649_v54, %v1991_v39 }
 0x9e3   :  { %v2001_v46 = vsel %vm79_vm0, %v1993_v43, -inf }
 0x9e4   :  { %v2019_v47 = vsel %vm79_vm0, %v1999_v44, -inf  ;;  %2002 = vmax.xlane.f32.xlu2 %v2001_v46 }
 0x9e5   :  { %2020 = vmax.xlane.f32.xlu0 %v2019_v47 }
 0x9e6   :  { %v1877_v48 = vpop.f32.mrf.mxu3 }
 0x9e7   :  { %v1986_v49 = vmul.f32 0.35355338, %v1877_v48  ;;  %v1982_v50 = vpop.f32.mrf.mxu2 }
 0x9e8   :  { %v1992_v55 = vmul.f32 0.35355338, %v1982_v50 }
 0x9e9   :  { %v1994_v30 = vadd.f32 %v8650_v57, %v1986_v49 }
 0x9ea   :  { %v2000_v58 = vadd.f32 %v8650_v57, %v1992_v55 }
 0x9eb   :  { %v2004_v61 = vsel %vm79_vm0, %v1994_v30, -inf }
 0x9ec   :  { %v2022_v19 = vsel %vm79_vm0, %v2000_v58, -inf  ;;  %2008 = vmax.xlane.f32.xlu2 %v2007_v60  ;;  %2005 = vmax.xlane.f32.xlu1 %v2004_v61 }
 0x9ed   :  { %2023 = vmax.xlane.f32.xlu0 %v2022_v19 }
 0x9f4   :  { %2011 = vmax.xlane.f32.xlu2 %v2010_v2  ;;  %2014 = vmax.xlane.f32.xlu1 %v2013_v16 }
 0x9f5   :  { %2017 = vmax.xlane.f32.xlu0 %v2016_v35 }
 0xa57   :  { %v2003_v53 = vpop.xlane.xlu2 %2002 }
 0xa58   :  { %v2021_v42 = vpop.xlane.xlu0 %2020  ;;  %v2025_v4 = vsub.f32 %v1993_v43, %v2003_v53 }
 0xa59   :  { %v2031_v5 = vsub.f32 %v1999_v44, %v2021_v42 }
 0xa5a   :  { %v2033_v20 = vmul.f32 1.442695, %v2025_v4  ;;  %v2687_v4 = vld [vmem:[%s11879_s1 + $0x8] sm:$0xff] }
 0xa5b   :  { %v2045_v9 = vmul.f32 1.442695, %v2031_v5  ;;  %v7726_v5 = vld [vmem:[%s11887_s9 + $0x20] sm:$0xff] }
 0xa5c   :  { %8416 = vpow2.f32 %v2033_v20  ;;  %2332 = vmatpush.msra.mxu3 %v7726_v5 }
 0xa5d   :  { %8418 = vpow2.f32 %v2045_v9 }
 0xa5f   :  { %v2009_v11 = vpop.xlane.xlu2 %2008  ;;  %v2006_v12 = vpop.xlane.xlu1 %2005 }
 0xa60   :  { %v2024_v13 = vpop.xlane.xlu0 %2023  ;;  %v2027_v14 = vsub.f32 %v1995_v51, %v2009_v11  ;;  %v2026_v15 = vsub.f32 %v1994_v30, %v2006_v12  ;;  %v2686_v51 = vld [vmem:[%s11879_s1] sm:$0xff] }
 0xa61   :  { %v2032_v17 = vsub.f32 %v2000_v58, %v2024_v13 }
 0xa62   :  { %v9582_v3 = vpop.eup %8416  ;;  %v2037_v33 = vmul.f32 1.442695, %v2027_v14  ;;  %v2035_v18 = vmul.f32 1.442695, %v2026_v15 }
 0xa63   :  { %v9584_v36 = vpop.eup %8418  ;;  %v2047_v21 = vmul.f32 1.442695, %v2032_v17  ;;  %v2049_v23 = vsel %vm79_vm0, %v9582_v3, 0.0 }
 0xa64   :  { %8420 = vpow2.f32 %v2037_v33  ;;  %v2067_v24 = vsel %vm79_vm0, %v9584_v36, 0.0  ;;  %2050 = vadd.xlane.f32.xlu1 %v2049_v23 }
 0xa65   :  { %8422 = vpow2.f32 %v2047_v21  ;;  %2068 = vadd.xlane.f32.xlu2 %v2067_v24 }
 0xa66   :  { %8424 = vpow2.f32 %v2035_v18 }
 0xa67   :  { %v2012_v25 = vpop.xlane.xlu2 %2011  ;;  %v2015_v26 = vpop.xlane.xlu1 %2014 }
 0xa68   :  { %v2018_v45 = vpop.xlane.xlu0 %2017  ;;  %v2028_v28 = vsub.f32 %v1996_v63, %v2012_v25  ;;  %v2029_v31 = vsub.f32 %v1997_v0, %v2015_v26 }
 0xa69   :  { %v2030_v32 = vsub.f32 %v1998_v1, %v2018_v45 }
 0xa6a   :  { %v9590_v40 = vpop.eup %8420  ;;  %v2039_v41 = vmul.f32 1.442695, %v2028_v28  ;;  %v2041_v10 = vmul.f32 1.442695, %v2029_v31 }
 0xa6b   :  { %v9592_v7 = vpop.eup %8422  ;;  %v2043_v38 = vmul.f32 1.442695, %v2030_v32  ;;  %v2055_v39 = vsel %vm79_vm0, %v9590_v40, 0.0 }
 0xa6c   :  { %v9596_v54 = vpop.eup %8424  ;;  %8426 = vpow2.f32 %v2039_v41  ;;  %v2070_v43 = vsel %vm79_vm0, %v9592_v7, 0.0  ;;  %2056 = vadd.xlane.f32.xlu1 %v2055_v39 }
 0xa6d   :  { %8428 = vpow2.f32 %v2043_v38  ;;  %2071 = vadd.xlane.f32.xlu2 %v2070_v43  ;;  %v2052_v44 = vsel %vm79_vm0, %v9596_v54, 0.0 }
 0xa6e   :  { %8430 = vpow2.f32 %v2041_v10  ;;  %2053 = vadd.xlane.f32.xlu0 %v2052_v44 }
 0xa72   :  { %v9602_v22 = vpop.eup %8426 }
 0xa73   :  { %v9604_v46 = vpop.eup %8428  ;;  %v2058_v47 = vsel %vm79_vm0, %v9602_v22, 0.0 }
 0xa74   :  { %v9608_v48 = vpop.eup %8430  ;;  %v2064_v49 = vsel %vm79_vm0, %v9604_v46, 0.0  ;;  %2059 = vadd.xlane.f32.xlu1 %v2058_v47 }
 0xa75   :  { %2065 = vadd.xlane.f32.xlu2 %v2064_v49  ;;  %v2061_v50 = vsel %vm79_vm0, %v9608_v48, 0.0 }
 0xa76   :  { %2062 = vadd.xlane.f32.xlu0 %v2061_v50 }
 0xa8a   :  { %2692 = vperm.xlu0 %8284, %v2686_v51  }
 0xa8d   :  { %2695 = vperm.xlu1 %8285, %v2687_v4  }
 0xad7   :  { %v2051_v52 = vpop.xlane.xlu1 %2050 }
 0xad8   :  { %v2069_v55 = vpop.xlane.xlu2 %2068  ;;  %8432 = vrcp.f32 %v2051_v52  ;;  %v2082_v61 = vand.u32 2147483647, %v2051_v52  ;;  %v2084_v62 = vand.u32 2147483648, %v2051_v52  ;;  %vm2078_vm11 = vweird.f32 %v2051_v52 }
 0xad9   :  { %8434 = vrcp.f32 %v2069_v55  ;;  %v2172_v0 = vand.u32 2147483647, %v2069_v55  ;;  %v2174_v1 = vand.u32 2147483648, %v2069_v55  ;;  %vm2168_vm10 = vweird.f32 %v2069_v55 }
 0xada   :  { %vm9631_vm14 = vcmp.eq.f32.partialorder %v2082_v61, 8.507059e+37  ;;  %v2085_v13 = vor.u32 1.1754944e-38, %v2084_v62 }
 0xadb   :  { %vm9643_vm15 = vcmp.eq.f32.partialorder %v2172_v0, 8.507059e+37  ;;  %v2175_v12 = vor.u32 1.1754944e-38, %v2174_v1 }
 0xade   :  { %v8433_v56 = vpop.eup %8432 }
 0xadf   :  { %v9617_v57 = vpop.eup %8434  ;;  %v2074_v30 = vmul.f32 %v8433_v56, %v2051_v52  ;;  %v9619_v58 = vpop.xlane.xlu1 %2056  ;;  %vm2079_vm12 = vweird.f32 %v8433_v56 }
 0xae0   :  { %v2164_v29 = vmul.f32 %v9617_v57, %v2069_v55  ;;  %v9622_v59 = vpop.xlane.xlu2 %2071  ;;  %8436 = vrcp.f32 %v9619_v58  ;;  %vm2169_vm13 = vweird.f32 %v9617_v57  ;;  %vm9651_vm1 = vmor %vm2078_vm11, %vm2079_vm12  ;;  %vm2108_vm5 = vweird.f32 %v9619_v58 }
 0xae1   :  { %v2075_v60 = vsub.f32 1.0, %v2074_v30  ;;  %8438 = vrcp.f32 %v9622_v59  ;;  %v9626_v19 = vpop.xlane.xlu0 %2053  ;;  %v2187_v42 = vand.u32 2147483647, %v9622_v59  ;;  %vm2183_vm4 = vweird.f32 %v9622_v59  ;;  %vm9662_vm6 = vmor %vm2168_vm10, %vm2169_vm13 }
 0xae2   :  { %v2165_v63 = vsub.f32 1.0, %v2164_v29  ;;  %8440 = vrcp.f32 %v9626_v19  ;;  %v2189_v17 = vand.u32 2147483648, %v9622_v59  ;;  %vm2093_vm7 = vweird.f32 %v9626_v19 }
 0xae3   :  { %v2076_v2 = vmul.f32 %v8433_v56, %v2075_v60  ;;  %v2099_v25 = vand.u32 2147483648, %v9626_v19  ;;  %vm9677_vm8 = vcmp.eq.f32.partialorder %v2187_v42, 8.507059e+37  ;;  %v2112_v39 = vand.u32 2147483647, %v9619_v58 }
 0xae4   :  { %v2166_v16 = vmul.f32 %v9617_v57, %v2165_v63  ;;  %v2114_v43 = vand.u32 2147483648, %v9619_v58  ;;  %v2190_v52 = vor.u32 1.1754944e-38, %v2189_v17 }
 0xae5   :  { %v2077_v35 = vadd.f32 %v8433_v56, %v2076_v2  ;;  %vm2113_vm13 = vcmp.eq.f32.partialorder %v2112_v39, 8.507059e+37 }
 0xae6   :  { %v8437_v20 = vpop.eup %8436  ;;  %v2167_v9 = vadd.f32 %v9617_v57, %v2166_v16  ;;  %v2115_v29 = vor.u32 1.1754944e-38, %v2114_v43 }
 0xae7   :  { %v9647_v14 = vpop.eup %8438  ;;  %v2104_v33 = vmul.f32 %v8437_v20, %v9619_v58  ;;  %v2081_v23 = vsel %vm9651_vm1, %v8433_v56, %v2077_v35  ;;  %v9685_v10 = vpop.xlane.xlu1 %2059  ;;  %vm2109_vm10 = vweird.f32 %v8437_v20  ;;  %v2100_v58 = vor.u32 1.1754944e-38, %v2099_v25 }
 0xae8   :  { %v8441_v18 = vpop.eup %8440  ;;  %v2179_v24 = vmul.f32 %v9647_v14, %v9622_v59  ;;  %v9672_v26 = vpop.xlane.xlu2 %2065  ;;  %v2171_v45 = vsel %vm9662_vm6, %v9617_v57, %v2167_v9  ;;  %v2086_v44 = vsel %vm9631_vm14, %v2085_v13, %v2081_v23  ;;  %vm2184_vm11 = vweird.f32 %v9647_v14  ;;  %vm2110_vm12 = vmor %vm2108_vm5, %vm2109_vm10 }
 0xae9   :  { %v2089_v31 = vmul.f32 %v8441_v18, %v9626_v19  ;;  %v2105_v32 = vsub.f32 1.0, %v2104_v33  ;;  %8442 = vrcp.f32 %v9672_v26  ;;  %v9683_v41 = vpop.xlane.xlu0 %2062  ;;  %v2176_v50 = vsel %vm9643_vm15, %v2175_v12, %v2171_v45  ;;  %vm9706_vm14 = vmor %vm2183_vm4, %vm2184_vm11 }
 0xaea   :  { %v2180_v38 = vsub.f32 1.0, %v2179_v24  ;;  %8444 = vrcp.f32 %v9683_v41  ;;  %v2097_v57 = vand.u32 2147483647, %v9626_v19  ;;  %v2087_v60 = vmul.f32 %v9582_v3, %v2086_v44 }
 0xaeb   :  { %v2090_v47 = vsub.f32 1.0, %v2089_v31  ;;  %v2106_v49 = vmul.f32 %v8437_v20, %v2105_v32  ;;  %8446 = vrcp.f32 %v9685_v10  ;;  %v2177_v0 = vmul.f32 %v9584_v36, %v2176_v50  ;;  %v7754_v50 = vld [vmem:[%s11883_s5 + $0x10] sm:$0xff] }
 0xaec   :  { %v2181_v51 = vmul.f32 %v9647_v14, %v2180_v38  ;;  %vm2094_vm15 = vweird.f32 %v8441_v18  ;;  %7718 = vmatmul.msk.f32.vlgmr.msrb.gmra.mxu3 %vm79_vm0, %v2087_v60  ;;  %vm2098_vm4 = vcmp.eq.f32.partialorder %v2097_v57, 8.507059e+37  ;;  %v2142_v11 = vand.u32 2147483647, %v9683_v41 }
 0xaed   :  { %v2091_v55 = vmul.f32 %v8441_v18, %v2090_v47  ;;  %v2107_v56 = vadd.f32 %v8437_v20, %v2106_v49  ;;  %vm2095_vm1 = vmor %vm2093_vm7, %vm2094_vm15  ;;  %7724 = vmatmul.msk.f32.vlgmr.msra.gmra.mxu2 %vm79_vm0, %v2177_v0  ;;  %v2144_v12 = vand.u32 2147483648, %v9683_v41  ;;  %vm2138_vm6 = vweird.f32 %v9683_v41 }
 0xaee   :  { %v2182_v30 = vadd.f32 %v9647_v14, %v2181_v51  ;;  %v2129_v33 = vand.u32 2147483648, %v9685_v10  ;;  %v2127_v23 = vand.u32 2147483647, %v9685_v10  ;;  %vm2143_vm10 = vcmp.eq.f32.partialorder %v2142_v11, 8.507059e+37 }
 0xaef   :  { %v9702_v61 = vpop.eup %8442  ;;  %v2111_v63 = vsel %vm2110_vm12, %v8437_v20, %v2107_v56  ;;  %v2092_v1 = vadd.f32 %v8441_v18, %v2091_v55  ;;  %v2145_v24 = vor.u32 1.1754944e-38, %v2144_v12  ;;  %vm2123_vm11 = vweird.f32 %v9685_v10 }
 0xaf0   :  { %v8445_v2 = vpop.eup %8444  ;;  %v2116_v16 = vsel %vm2113_vm13, %v2115_v29, %v2111_v63  ;;  %v2149_v35 = vmul.f32 %v9702_v61, %v9672_v26  ;;  %v2186_v3 = vsel %vm9706_vm14, %v9647_v14, %v2182_v30  ;;  %vm2154_vm12 = vweird.f32 %v9702_v61 }
 0xaf1   :  { %v2134_v59 = vmul.f32 %v8445_v2, %v9683_v41  ;;  %v2096_v36 = vsel %vm2095_vm1, %v8441_v18, %v2092_v1  ;;  %v2117_v53 = vmul.f32 %v9590_v40, %v2116_v16  ;;  %v8447_v42 = vpop.eup %8446  ;;  %v2191_v20 = vsel %vm9677_vm8, %v2190_v52, %v2186_v3  ;;  %v9782_v1 = vld [vmem:[%s11890_s12 + $0x8] sm:$0xff] }
 0xaf2   :  { %v2150_v4 = vsub.f32 1.0, %v2149_v35  ;;  %v2101_v5 = vsel %vm2098_vm4, %v2100_v58, %v2096_v36  ;;  %v2119_v9 = vmul.f32 %v8447_v42, %v9685_v10  ;;  %vm2139_vm5 = vweird.f32 %v8445_v2 }
 0xaf3   :  { %v2135_v19 = vsub.f32 1.0, %v2134_v59  ;;  %7720 = vmatmul.msk.f32.vlgmr.msrb.gmra.mxu0 %vm79_vm0, %v2117_v53  ;;  %v2102_v13 = vmul.f32 %v9596_v54, %v2101_v5  ;;  %v2192_v17 = vmul.f32 %v9592_v7, %v2191_v20  ;;  %vm2124_vm7 = vweird.f32 %v8447_v42  ;;  %vm2140_vm8 = vmor %vm2138_vm6, %vm2139_vm5 }
 0xaf4   :  { %v2151_v40 = vmul.f32 %v9702_v61, %v2150_v4  ;;  %v2120_v15 = vsub.f32 1.0, %v2119_v9  ;;  %vm2153_vm13 = vweird.f32 %v9672_v26  ;;  %v2159_v45 = vand.u32 2147483648, %v9672_v26  ;;  %vm2125_vm14 = vmor %vm2123_vm11, %vm2124_vm7 }
 0xaf5   :  { %v2136_v14 = vmul.f32 %v8445_v2, %v2135_v19  ;;  %7719 = vmatmul.msk.f32.gmra.mxu3 %vm79_vm0, %v2102_v13  ;;  %7725 = vmatmul.msk.f32.gmra.mxu2 %vm79_vm0, %v2192_v17  ;;  %v2130_v31 = vor.u32 1.1754944e-38, %v2129_v33  ;;  %vm2128_vm15 = vcmp.eq.f32.partialorder %v2127_v23, 8.507059e+37  ;;  %v2157_v10 = vand.u32 2147483647, %v9672_v26  ;;  %vm2155_vm1 = vmor %vm2153_vm13, %vm2154_vm12  ;;  %v7732_v26 = vld [vmem:[%s11887_s9 + $0x30] sm:$0xff]  ;;  %v8651_v33 = vld [vmem:[%s11884_s6] sm:$0xff] }
 0xaf6   :  { %v2121_v21 = vmul.f32 %v8447_v42, %v2120_v15  ;;  %v2152_v25 = vadd.f32 %v9702_v61, %v2151_v40  ;;  %v2160_v44 = vor.u32 1.1754944e-38, %v2159_v45  ;;  %2399 = vmatpush.msra.mxu1 %v7732_v26 }
 0xaf7   :  { %v2137_v18 = vadd.f32 %v8445_v2, %v2136_v14  ;;  %vm2158_vm4 = vcmp.eq.f32.partialorder %v2157_v10, 8.507059e+37 }
 0xaf8   :  { %v2122_v7 = vadd.f32 %v8447_v42, %v2121_v21  ;;  %v2156_v43 = vsel %vm2155_vm1, %v9702_v61, %v2152_v25 }
 0xaf9   :  { %v2141_v54 = vsel %vm2140_vm8, %v8445_v2, %v2137_v18  ;;  %v2161_v47 = vsel %vm2158_vm4, %v2160_v44, %v2156_v43  ;;  %v2340_v2 = vperm.slane %v9782_v1, 2  ;;  %v7741_v43 = vld [vmem:[%s11888_s10 + $0x38] sm:$0xff]  ;;  %v7740_v44 = vld [vmem:[%s11888_s10 + $0x30] sm:$0xff] }
 0xafa   :  { %v2146_v28 = vsel %vm2143_vm10, %v2145_v24, %v2141_v54  ;;  %v2126_v32 = vsel %vm2125_vm14, %v8447_v42, %v2122_v7  ;;  %v2162_v49 = vmul.f32 %v9604_v46, %v2161_v47  ;;  %v7755_v46 = vld [vmem:[%s11883_s5 + $0x18] sm:$0xff]  ;;  %2550 = vmatpush.msrb.mxu3 %v7741_v43  ;;  %s7484_s5 = sshll.u32 %s11892_s14, 4  ;;  %s7485_s5 = int_to_ptr.hbm [resolvable:$true] %s7484_s5 }
 0xafb   :  { %v2147_v41 = vmul.f32 %v9608_v48, %v2146_v28  ;;  %v2131_v38 = vsel %vm2128_vm15, %v2130_v31, %v2126_v32  ;;  %v7735_v48 = vld [vmem:[%s11887_s9 + $0x38] sm:$0xff] }
 0xafc   :  { %v2132_v39 = vmul.f32 %v9602_v22, %v2131_v38  ;;  %2432 = vmatpush.msrb.mxu2 %v7735_v48  ;;  %v7729_v22 = vld [vmem:[%s11887_s9 + $0x28] sm:$0xff]  ;;  %v2693_v61 = vpop.permute.xlu0 %2692  ;;  %2551 = vmatpush.msrb.mxu3 %v7740_v44  ;;  %v7738_v48 = vld [vmem:[%s11888_s10 + $0x20] sm:$0xff] }
 0xafd   :  { %7722 = vmatmul.msk.f32.vlgmr.msrb.gmra.mxu1 %vm79_vm0, %v2147_v41  ;;  %2366 = vmatpush.msra.mxu0 %v7729_v22  ;;  %vm2697_vm5 = vcmp.eq.s32.totalorder %v2693_v61, %v8783_v6 }
 0xafe   :  { %7721 = vmatmul.msk.f32.gmra.mxu0 %vm79_vm0, %v2132_v39  ;;  %2723 = vmatpush.msrb.mxu1 %v7755_v46  ;;  %v7756_v62 = vsel %vm2697_vm5, 1.0, %v8691_v8 }
 0xaff   :  { %v2696_v63 = vpop.permute.xlu1 %2695 }
 0xb00   :  { %2724 = vmatpush.msrb.mxu1 %v7754_v50  ;;  %vm2698_vm6 = vcmp.eq.s32.totalorder %v2696_v63, %v8783_v6 }
 0xb01   :  { %v7757_v0 = vsel %vm2698_vm6, 1.0, %v8691_v8 }
 0xb05   :  { %7723 = vmatmul.msk.f32.gmra.mxu1 %vm79_vm0, %v2162_v49  ;;  %v7739_v49 = vld [vmem:[%s11888_s10 + $0x28] sm:$0xff] }
 0xb06   :  { %2552 = vmatpush.msrb.mxu3 %v7739_v49 }
 0xb08   :  { %2553 = vmatpush.msrb.mxu3 %v7738_v48 }
 0xb6f   :  { %v2216_v52 = vpop.f32.mrf.mxu3 }
 0xb70   :  { %v2245_v51 = vpop.f32.mrf.mxu0  ;;  %v2303_v55 = vpop.f32.mrf.mxu2  ;;  %7727 = vmatmul.msk.f32.vlgmr.msra.gmra.mxu3 %vm603_vm2, %v2216_v52 }
 0xb71   :  { %7730 = vmatmul.msk.f32.vlgmr.msra.gmra.mxu0 %vm603_vm2, %v2245_v51  ;;  %7736 = vmatmul.msk.f32.vlgmr.msrb.gmra.mxu2 %vm603_vm2, %v2303_v55 }
 0xb78   :  { %v2219_v57 = vpop.f32.mrf.mxu3  ;;  %v2306_v30 = vpop.f32.mrf.mxu2 }
 0xb79   :  { %7728 = vmatmul.msk.f32.gmra.mxu3 %vm603_vm2, %v2219_v57  ;;  %7737 = vmatmul.msk.f32.gmra.mxu2 %vm603_vm2, %v2306_v30 }
 0xb7a   :  { %v2274_v56 = vpop.f32.mrf.mxu1 }
 0xb7b   :  { %7733 = vmatmul.msk.f32.vlgmr.msra.gmra.mxu1 %vm603_vm2, %v2274_v56  ;;  %v2248_v29 = vpop.f32.mrf.mxu0 }
 0xb7c   :  { %7731 = vmatmul.msk.f32.gmra.mxu0 %vm603_vm2, %v2248_v29 }
 0xb82   :  { %v2277_v60 = vpop.f32.mrf.mxu1 }
 0xb83   :  { %7734 = vmatmul.msk.f32.gmra.mxu1 %vm603_vm2, %v2277_v60 }
 0xb8b   :  { %7758 = vmatmul.msk.f32.vlgmr.msrb.gmra.mxu1 %vm79_vm0, %v7756_v62 }
 0xb93   :  { %7759 = vmatmul.msk.f32.gmra.mxu1 %vm79_vm0, %v7757_v0 }
 0xbee   :  { %v2368_v58 = vpop.f32.mrf.mxu0 }
 0xbf3   :  { %v2334_v16 = vpop.f32.mrf.mxu3 }
 0xbf4   :  { %v2341_v35 = vadd.f32 %v2340_v2, %v2334_v16  ;;  %v2434_v36 = vpop.f32.mrf.mxu2 }
 0xbf6   :  { %v2374_v59 = vadd.f32 %v2368_v58, %v2341_v35 }
 0xbf8   :  { %v2401_v3 = vpop.f32.mrf.mxu1 }
 0xbf9   :  { %v2407_v53 = vadd.f32 %v2401_v3, %v2374_v59  ;;  %v2371_v20 = vpop.f32.mrf.mxu0 }
 0xbfb   :  { %v2440_v42 = vadd.f32 %v2434_v36, %v2407_v53 }
 0xbfc   :  { %v2337_v6 = vpop.f32.mrf.mxu3  ;;  %v2437_v12 = vpop.f32.mrf.mxu2 }
 0xbfd   :  { %v2342_v4 = vadd.f32 %v2340_v2, %v2337_v6  ;;  %v9786_v5 = vadd.f32 %v2440_v42, %v9294_v34 }
 0xbff   :  { %v2375_v19 = vadd.f32 %v2371_v20, %v2342_v4  ;;  %v2444_v9 = vsel %vm113_vm3, %v9786_v5, 0.0 }
 0xc00   :  { %v2404_v8 = vpop.f32.mrf.mxu1  ;;  %2445 = vadd.xlane.f32.xlu2 %v2444_v9 }
 0xc01   :  { %v2408_v11 = vadd.f32 %v2404_v8, %v2375_v19 }
 0xc03   :  { %v2441_v13 = vadd.f32 %v2437_v12, %v2408_v11 }
 0xc05   :  { %v9791_v14 = vadd.f32 %v2441_v13, %v9299_v37 }
 0xc07   :  { %v2447_v15 = vsel %vm113_vm3, %v9791_v14, 0.0 }
 0xc08   :  { %v2726_v40 = vpop.f32.mrf.mxu1  ;;  %2448 = vadd.xlane.f32.xlu2 %v2447_v15 }
 0xc09   :  { %v2732_v32 = vmul.f32 5.656854, %v2726_v40 }
 0xc0b   :  { %v9816_v10 = vadd.f32 %v8651_v33, %v2732_v32 }
 0xc0d   :  { %v2736_v38 = vsel %vm113_vm3, %v9816_v10, 0.0 }
 0xc10   :  { %v2729_v17 = vpop.f32.mrf.mxu1 }
 0xc11   :  { %v2733_v34 = vmul.f32 5.656854, %v2729_v17 }
 0xc13   :  { %v9798_v18 = vadd.f32 %v8651_v33, %v2733_v34  ;;  %v2488_v34 = vperm.slane %v9782_v1, 0 }
 0xc15   :  { %v2739_v21 = vsel %vm113_vm3, %v9798_v18, 0.0 }
 0xc16   :  { %2740 = vadd.xlane.f32.xlu1 %v2739_v21 }
 0xc73   :  { %v2446_v23 = vpop.xlane.xlu2 %2445 }
 0xc74   :  { %v2450_v37 = vmul.f32 %v2446_v23, %v8802_v27 }
 0xc76   :  { %v9804_v24 = vsub.f32 %v9786_v5, %v2450_v37 }
 0xc78   :  { %v2454_v54 = vmul.f32 %v9804_v24, %v9804_v24 }
 0xc7a   :  { %v2456_v7 = vsel %vm113_vm3, %v2454_v54, 0.0 }
 0xc7b   :  { %2457 = vadd.xlane.f32.xlu0 %v2456_v7  ;;  %v2449_v25 = vpop.xlane.xlu2 %2448  ;;  %v2489_v7 = vmul.f32 %v2488_v34, %v9804_v24 }
 0xc7c   :  { %v2451_v45 = vmul.f32 %v2449_v25, %v8802_v27 }
 0xc7e   :  { %v9811_v28 = vsub.f32 %v9791_v14, %v2451_v45 }
 0xc80   :  { %v2455_v31 = vmul.f32 %v9811_v28, %v9811_v28 }
 0xc82   :  { %v2459_v41 = vsel %vm113_vm3, %v2455_v31, 0.0  ;;  %v2523_v31 = vperm.slane %v9782_v1, 1 }
 0xc83   :  { %2460 = vadd.xlane.f32.xlu2 %v2459_v41 }
 0xc89   :  { %v2741_v55 = vpop.xlane.xlu1 %2740 }
 0xc8a   :  { %v2743_v62 = vmul.f32 %v2741_v55, %v8802_v27 }
 0xc8b   :  { %2737 = vadd.xlane.f32.xlu2 %v2736_v38 }
 0xc8c   :  { %v9840_v59 = vsub.f32 %v9798_v18, %v2743_v62  ;;  %v7748_v62 = vld [vmem:[%s11889_s11 + $0x60] sm:$0xff] }
 0xc8e   :  { %v2747_v8 = vmul.f32 %v9840_v59, %v9840_v59 }
 0xc90   :  { %v2751_v11 = vsel %vm113_vm3, %v2747_v8, 0.0  ;;  %v7769_v8 = vld [vmem:[%s11885_s7 + $0x330] sm:$0xff] }
 0xcee   :  { %v2458_v39 = vpop.xlane.xlu0 %2457 }
 0xcef   :  { %v2462_v47 = vmul.f32 0.032258064, %v2458_v39 }
 0xcf1   :  { %8448 = vrsqrt.f32 %v2462_v47  ;;  %vm2471_vm7 = vcmp.eq.f32.partialorder %v2462_v47, inf  ;;  %v2474_v58 = vand.u32 2147483648, %v2462_v47  ;;  %vm2473_vm8 = vcmp.eq.f32.partialorder %v2462_v47, 0.0 }
 0xcf6   :  { %v2461_v22 = vpop.xlane.xlu2 %2460 }
 0xcf7   :  { %v8449_v26 = vpop.eup %8448  ;;  %v2463_v46 = vmul.f32 0.032258064, %v2461_v22  ;;  %v2490_v22 = vmul.f32 %v2488_v34, %v9811_v28 }
 0xcf8   :  { %v2465_v50 = vmul.f32 %v8449_v26, %v2462_v47 }
 0xcf9   :  { %8450 = vrsqrt.f32 %v2463_v46  ;;  %vm2483_vm10 = vcmp.eq.f32.partialorder %v2463_v46, inf  ;;  %v2486_v19 = vand.u32 2147483648, %v2463_v46  ;;  %vm2485_vm11 = vcmp.eq.f32.partialorder %v2463_v46, 0.0 }
 0xcfa   :  { %v2466_v51 = vmul.f32 %v8449_v26, %v2465_v50 }
 0xcfc   :  { %v2467_v52 = vmul.f32 0.5, %v2466_v51 }
 0xcfe   :  { %v2468_v56 = vsub.f32 1.5, %v2467_v52  ;;  %v2738_v57 = vpop.xlane.xlu2 %2737 }
 0xcff   :  { %v8451_v30 = vpop.eup %8450  ;;  %v2742_v29 = vmul.f32 %v2738_v57, %v8802_v27  ;;  %v7750_v57 = vld [vmem:[%s11889_s11 + $0x70] sm:$0xff] }
 0xd00   :  { %v2469_v60 = vmul.f32 %v8449_v26, %v2468_v56  ;;  %v2477_v61 = vmul.f32 %v8451_v30, %v2463_v46  ;;  %v7751_v56 = vld [vmem:[%s11889_s11 + $0x78] sm:$0xff] }
 0xd01   :  { %v9835_v63 = vsub.f32 %v9816_v10, %v2742_v29  ;;  %2587 = vmatpush.msrb.mxu0 %v7751_v56  ;;  %v7809_v56 = vld [vmem:[%s11885_s7 + $0x3e0] sm:$0xff] }
 0xd02   :  { %v2470_v0 = vmul.f32 %v2469_v60, %v2462_v47  ;;  %v2478_v2 = vmul.f32 %v8451_v30, %v2477_v61 }
 0xd03   :  { %v2746_v16 = vmul.f32 %v9835_v63, %v9835_v63  ;;  %2588 = vmatpush.msrb.mxu0 %v7750_v57 }
 0xd04   :  { %v2472_v35 = vsel %vm2471_vm7, %v2462_v47, %v2470_v0  ;;  %v2479_v3 = vmul.f32 0.5, %v2478_v2  ;;  %v7747_v2 = vld [vmem:[%s11889_s11 + $0x58] sm:$0xff] }
 0xd05   :  { %v2475_v36 = vsel %vm2473_vm8, %v2474_v58, %v2472_v35  ;;  %v2748_v53 = vsel %vm113_vm3, %v2746_v16, 0.0  ;;  %v7746_v16 = vld [vmem:[%s11889_s11 + $0x50] sm:$0xff]  ;;  %v7763_v35 = vld [vmem:[%s11885_s7 + $0x318] sm:$0xff] }
 0xd06   :  { %v2491_v42 = vadd.f32 1e-06, %v2475_v36  ;;  %v2480_v6 = vsub.f32 1.5, %v2479_v3  ;;  %2749 = vadd.xlane.f32.xlu2 %v2748_v53  ;;  %v7770_v3 = vld [vmem:[%s11885_s7 + $0x338] sm:$0xff]  ;;  %2846 = vmatpush.msra.mxu2 %v7763_v35  ;;  %v2780_v35 = vperm.slane %v9782_v1, 4 }
 0xd07   :  { %v7784_v36 = vld [vmem:[%s11885_s7 + $0x378] sm:$0xff]  ;;  %2879 = vmatpush.msra.mxu3 %v7770_v3 }
 0xd08   :  { %8452 = vrcp.f32 %v2491_v42  ;;  %v2481_v4 = vmul.f32 %v8451_v30, %v2480_v6  ;;  %v2504_v33 = vand.u32 2147483648, %v2491_v42  ;;  %v2502_v23 = vand.u32 2147483647, %v2491_v42  ;;  %v7749_v30 = vld [vmem:[%s11889_s11 + $0x68] sm:$0xff]  ;;  %2945 = vmatpush.msra.mxu1 %v7784_v36 }
 0xd09   :  { %vm2498_vm13 = vweird.f32 %v2491_v42  ;;  %2589 = vmatpush.msrb.mxu0 %v7749_v30  ;;  %2880 = vmatpush.msra.mxu3 %v7769_v8  ;;  %v2781_v8 = vmul.f32 %v2780_v35, %v9835_v63 }
 0xd0a   :  { %v2482_v20 = vmul.f32 %v2481_v4, %v2463_v46  ;;  %v2505_v25 = vor.u32 1.1754944e-38, %v2504_v33  ;;  %vm2503_vm15 = vcmp.eq.f32.partialorder %v2502_v23, 8.507059e+37  ;;  %v7762_v4 = vld [vmem:[%s11885_s7 + $0x310] sm:$0xff]  ;;  %v7760_v33 = vld [vmem:[%s11885_s7 + $0x300] sm:$0xff] }
 0xd0b   :  { %2590 = vmatpush.msrb.mxu0 %v7748_v62  ;;  %2847 = vmatpush.msra.mxu2 %v7762_v4  ;;  %v7781_v23 = vld [vmem:[%s11885_s7 + $0x360] sm:$0xff]  ;;  %v2815_v4 = vperm.slane %v9782_v1, 5  ;;  %v7804_v1 = vld [vmem:[%s11885_s7 + $0x3d0] sm:$0xff] }
 0xd0c   :  { %v2484_v9 = vsel %vm2483_vm10, %v2463_v46, %v2482_v20  ;;  %v7783_v20 = vld [vmem:[%s11885_s7 + $0x370] sm:$0xff] }
 0xd0d   :  { %v2487_v12 = vsel %vm2485_vm11, %v2486_v19, %v2484_v9  ;;  %2591 = vmatpush.msrb.mxu0 %v7747_v2  ;;  %2946 = vmatpush.msra.mxu1 %v7783_v20  ;;  %v8652_v2 = vld [vmem:[%s11891_s13] sm:$0xf] }
 0xd0e   :  { %v8453_v13 = vpop.eup %8452  ;;  %2752 = vadd.xlane.f32.xlu2 %v2751_v11  ;;  %v2492_v40 = vadd.f32 1e-06, %v2487_v12  ;;  %v7744_v11 = vld [vmem:[%s11889_s11 + $0x40] sm:$0xff]  ;;  %v7761_v12 = vld [vmem:[%s11885_s7 + $0x308] sm:$0xff] }
 0xd0f   :  { %v2494_v15 = vmul.f32 %v8453_v13, %v2491_v42  ;;  %vm2499_vm12 = vweird.f32 %v8453_v13  ;;  %2592 = vmatpush.msrb.mxu0 %v7746_v16  ;;  %v7745_v42 = vld [vmem:[%s11889_s11 + $0x48] sm:$0xff]  ;;  %2848 = vmatpush.msra.mxu2 %v7761_v12  ;;  %v7805_v12 = vld [vmem:[%s11885_s7 + $0x3d8] sm:$0xff] }
 0xd10   :  { %8454 = vrcp.f32 %v2492_v40  ;;  %vm2500_vm14 = vmor %vm2498_vm13, %vm2499_vm12  ;;  %v2519_v43 = vand.u32 2147483648, %v2492_v40  ;;  %v2517_v49 = vand.u32 2147483647, %v2492_v40  ;;  %vm2513_vm4 = vweird.f32 %v2492_v40 }
 0xd11   :  { %v2495_v17 = vsub.f32 1.0, %v2494_v15  ;;  %2593 = vmatpush.msrb.mxu0 %v7745_v42  ;;  %2849 = vmatpush.msra.mxu2 %v7760_v33  ;;  %v7819_v33 = vld [vmem:[%s11885_s7 + $0x418] sm:$0xff] }
 0xd12   :  { %v2520_v24 = vor.u32 1.1754944e-38, %v2519_v43  ;;  %vm2518_vm6 = vcmp.eq.f32.partialorder %v2517_v49, 8.507059e+37  ;;  %v7775_v43 = vld [vmem:[%s11885_s7 + $0x348] sm:$0xff] }
 0xd13   :  { %v2496_v21 = vmul.f32 %v8453_v13, %v2495_v17  ;;  %2594 = vmatpush.msrb.mxu0 %v7744_v11 }
 0xd15   :  { %v2497_v37 = vadd.f32 %v8453_v13, %v2496_v21  ;;  %v7767_v21 = vld [vmem:[%s11885_s7 + $0x320] sm:$0xff] }
 0xd16   :  { %v8455_v54 = vpop.eup %8454 }
 0xd17   :  { %v2501_v45 = vsel %vm2500_vm14, %v8453_v13, %v2497_v37  ;;  %v2509_v32 = vmul.f32 %v8455_v54, %v2492_v40  ;;  %vm2514_vm1 = vweird.f32 %v8455_v54  ;;  %v7768_v13 = vld [vmem:[%s11885_s7 + $0x328] sm:$0xff] }
 0xd18   :  { %v2506_v41 = vsel %vm2503_vm15, %v2505_v25, %v2501_v45  ;;  %vm2515_vm5 = vmor %vm2513_vm4, %vm2514_vm1  ;;  %v7782_v40 = vld [vmem:[%s11885_s7 + $0x368] sm:$0xff]  ;;  %2881 = vmatpush.msra.mxu3 %v7768_v13 }
 0xd19   :  { %v2507_v38 = vmul.f32 %v2506_v41, %v2489_v7  ;;  %v2510_v39 = vsub.f32 1.0, %v2509_v32  ;;  %2947 = vmatpush.msra.mxu1 %v7782_v40  ;;  %v7777_v7 = vld [vmem:[%s11885_s7 + $0x358] sm:$0xff]  ;;  %v7776_v32 = vld [vmem:[%s11885_s7 + $0x350] sm:$0xff] }
 0xd1a   :  { %2882 = vmatpush.msra.mxu3 %v7767_v21  ;;  %2912 = vmatpush.msra.mxu0 %v7777_v7  ;;  %v7791_v41 = vld [vmem:[%s11885_s7 + $0x398] sm:$0xff] }
 0xd1b   :  { %v2524_v44 = vadd.f32 %v2523_v31, %v2507_v38  ;;  %v2511_v47 = vmul.f32 %v8455_v54, %v2510_v39  ;;  %2948 = vmatpush.msra.mxu1 %v7781_v23  ;;  %v7798_v38 = vld [vmem:[%s11885_s7 + $0x3b8] sm:$0xff]  ;;  %2978 = vmatpush.msrb.mxu2 %v7791_v41  ;;  %v7839_v41 = vld [vmem:[%s11885_s7 + $0x470] sm:$0xff] }
 0xd1c   :  { %2913 = vmatpush.msra.mxu0 %v7776_v32  ;;  %v7812_v39 = vld [vmem:[%s11885_s7 + $0x3f8] sm:$0xff] }
 0xd1d   :  { %7742 = vmatmul.msk.f32.vlgmr.msrb.gmra.mxu3 %vm113_vm3, %v2524_v44  ;;  %v2512_v48 = vadd.f32 %v8455_v54, %v2511_v47  ;;  %v7790_v44 = vld [vmem:[%s11885_s7 + $0x390] sm:$0xff]  ;;  %3077 = vmatpush.msrb.mxu1 %v7812_v39  ;;  %v7826_v21 = vld [vmem:[%s11885_s7 + $0x438] sm:$0xff] }
 0xd1e   :  { %3011 = vmatpush.msrb.mxu3 %v7798_v38  ;;  %v7797_v47 = vld [vmem:[%s11885_s7 + $0x3b0] sm:$0xff]  ;;  %2914 = vmatpush.msra.mxu0 %v7775_v43  ;;  %v2782_v38 = vmul.f32 %v2780_v35, %v9840_v59  ;;  %v7824_v59 = vld [vmem:[%s11885_s7 + $0x428] sm:$0xff] }
 0xd1f   :  { %v2516_v26 = vsel %vm2515_vm5, %v8455_v54, %v2512_v48  ;;  %v7811_v48 = vld [vmem:[%s11885_s7 + $0x3f0] sm:$0xff]  ;;  %2979 = vmatpush.msrb.mxu2 %v7790_v44  ;;  %v7802_v44 = vld [vmem:[%s11885_s7 + $0x3c0] sm:$0xff] }
 0xd20   :  { %v2521_v46 = vsel %vm2518_vm6, %v2520_v24, %v2516_v26  ;;  %v7774_v24 = vld [vmem:[%s11885_s7 + $0x340] sm:$0xff]  ;;  %3012 = vmatpush.msrb.mxu3 %v7797_v47  ;;  %v7796_v26 = vld [vmem:[%s11885_s7 + $0x3a8] sm:$0xff]  ;;  %3078 = vmatpush.msrb.mxu1 %v7811_v48 }
 0xd21   :  { %v2522_v50 = vmul.f32 %v2521_v46, %v2490_v22  ;;  %v7789_v22 = vld [vmem:[%s11885_s7 + $0x388] sm:$0xff]  ;;  %2915 = vmatpush.msra.mxu0 %v7774_v24 }
 0xd22   :  { %v7810_v46 = vld [vmem:[%s11885_s7 + $0x3e8] sm:$0xff]  ;;  %2980 = vmatpush.msrb.mxu2 %v7789_v22  ;;  %3013 = vmatpush.msrb.mxu3 %v7796_v26  ;;  %v7816_v22 = vld [vmem:[%s11885_s7 + $0x400] sm:$0xff] }
 0xd23   :  { %v2525_v51 = vadd.f32 %v2523_v31, %v2522_v50  ;;  %3079 = vmatpush.msrb.mxu1 %v7810_v46  ;;  %v7817_v47 = vld [vmem:[%s11885_s7 + $0x408] sm:$0xff]  ;;  %v7823_v46 = vld [vmem:[%s11885_s7 + $0x420] sm:$0xff] }
 0xd24   :  { %v7838_v48 = vld [vmem:[%s11885_s7 + $0x468] sm:$0xff] }
 0xd25   :  { %7743 = vmatmul.msk.f32.gmra.mxu3 %vm113_vm3, %v2525_v51  ;;  %v7788_v51 = vld [vmem:[%s11885_s7 + $0x380] sm:$0xff]  ;;  %3080 = vmatpush.msrb.mxu1 %v7809_v56 }
 0xd26   :  { %2981 = vmatpush.msrb.mxu2 %v7788_v51  ;;  %v7833_v51 = vld [vmem:[%s11885_s7 + $0x458] sm:$0xff]  ;;  %v7830_v56 = vld [vmem:[%s11885_s7 + $0x440] sm:$0xff] }
 0xd79   :  { %v2750_v52 = vpop.xlane.xlu2 %2749 }
 0xd7a   :  { %v2754_v55 = vmul.f32 0.032258064, %v2750_v52  ;;  %v7795_v52 = vld [vmem:[%s11885_s7 + $0x3a0] sm:$0xff] }
 0xd7b   :  { %3014 = vmatpush.msrb.mxu3 %v7795_v52  ;;  %v7832_v52 = vld [vmem:[%s11885_s7 + $0x450] sm:$0xff] }
 0xd7c   :  { %8456 = vrsqrt.f32 %v2754_v55  ;;  %vm2763_vm7 = vcmp.eq.f32.partialorder %v2754_v55, inf  ;;  %v2766_v34 = vand.u32 2147483648, %v2754_v55  ;;  %vm2765_vm8 = vcmp.eq.f32.partialorder %v2754_v55, 0.0 }
 0xd81   :  { %v2753_v28 = vpop.xlane.xlu2 %2752 }
 0xd82   :  { %v8457_v29 = vpop.eup %8456  ;;  %v9861_v60 = vmul.f32 0.032258064, %v2753_v28 }
 0xd83   :  { %v2757_v61 = vmul.f32 %v8457_v29, %v2754_v55 }
 0xd84   :  { %8458 = vrsqrt.f32 %v9861_v60  ;;  %vm2775_vm10 = vcmp.eq.f32.partialorder %v9861_v60, inf  ;;  %vm2777_vm11 = vcmp.eq.f32.partialorder %v9861_v60, 0.0 }
 0xd85   :  { %v2758_v0 = vmul.f32 %v8457_v29, %v2757_v61 }
 0xd87   :  { %v2759_v58 = vmul.f32 0.5, %v2758_v0 }
 0xd89   :  { %v2760_v53 = vsub.f32 1.5, %v2759_v58  ;;  %v2531_v58 = vperm.slane %v8652_v2, 1 }
 0xd8a   :  { %v8459_v6 = vpop.eup %8458 }
 0xd8b   :  { %v2761_v19 = vmul.f32 %v8457_v29, %v2760_v53  ;;  %v2769_v9 = vmul.f32 %v8459_v6, %v9861_v60 }
 0xd8d   :  { %v2762_v15 = vmul.f32 %v2761_v19, %v2754_v55  ;;  %v2770_v17 = vmul.f32 %v8459_v6, %v2769_v9 }
 0xd8f   :  { %v2764_v37 = vsel %vm2763_vm7, %v2754_v55, %v2762_v15  ;;  %v2771_v54 = vmul.f32 0.5, %v2770_v17  ;;  %v2778_v55 = vand.u32 2147483648, %v9861_v60 }
 0xd90   :  { %v2767_v25 = vsel %vm2765_vm8, %v2766_v34, %v2764_v37  ;;  %v7840_v37 = vld [vmem:[%s11885_s7 + $0x478] sm:$0xff] }
 0xd91   :  { %v9919_v45 = vadd.f32 1e-06, %v2767_v25  ;;  %v2772_v31 = vsub.f32 1.5, %v2771_v54  ;;  %v7803_v54 = vld [vmem:[%s11885_s7 + $0x3c8] sm:$0xff] }
 0xd93   :  { %8460 = vrcp.f32 %v9919_v45  ;;  %v2773_v49 = vmul.f32 %v8459_v6, %v2772_v31  ;;  %v2796_v0 = vand.u32 2147483648, %v9919_v45  ;;  %vm2790_vm13 = vweird.f32 %v9919_v45  ;;  %v7825_v31 = vld [vmem:[%s11885_s7 + $0x430] sm:$0xff] }
 0xd95   :  { %v2774_v50 = vmul.f32 %v2773_v49, %v9861_v60  ;;  %v2797_v53 = vor.u32 1.1754944e-38, %v2796_v0 }
 0xd97   :  { %v2776_v57 = vsel %vm2775_vm10, %v9861_v60, %v2774_v50  ;;  %v2794_v60 = vand.u32 2147483647, %v9919_v45  ;;  %v7837_v50 = vld [vmem:[%s11885_s7 + $0x460] sm:$0xff] }
 0xd98   :  { %v2779_v30 = vsel %vm2777_vm11, %v2778_v55, %v2776_v57  ;;  %v7831_v55 = vld [vmem:[%s11885_s7 + $0x448] sm:$0xff] }
 0xd99   :  { %v8461_v28 = vpop.eup %8460  ;;  %v2784_v61 = vadd.f32 1e-06, %v2779_v30  ;;  %vm2795_vm15 = vcmp.eq.f32.partialorder %v2794_v60, 8.507059e+37 }
 0xd9a   :  { %v2786_v29 = vmul.f32 %v8461_v28, %v9919_v45  ;;  %vm2791_vm12 = vweird.f32 %v8461_v28  ;;  %v7818_v45 = vld [vmem:[%s11885_s7 + $0x410] sm:$0xff] }
 0xd9b   :  { %8462 = vrcp.f32 %v2784_v61  ;;  %vm2792_vm14 = vmor %vm2790_vm13, %vm2791_vm12  ;;  %v2811_v17 = vand.u32 2147483648, %v2784_v61  ;;  %v2809_v34 = vand.u32 2147483647, %v2784_v61  ;;  %vm2805_vm4 = vweird.f32 %v2784_v61 }
 0xd9c   :  { %v2787_v62 = vsub.f32 1.0, %v2786_v29 }
 0xd9d   :  { %v2812_v32 = vor.u32 1.1754944e-38, %v2811_v17  ;;  %vm2810_vm6 = vcmp.eq.f32.partialorder %v2809_v34, 8.507059e+37  ;;  %v8311_v17 = vld [vmem:[%s11886_s8 + $0x18] ss:$0 sm:$0xff] }
 0xd9e   :  { %v2788_v16 = vmul.f32 %v8461_v28, %v2787_v62 }
 0xda0   :  { %v2789_v3 = vadd.f32 %v8461_v28, %v2788_v16  ;;  %v2555_v36 = vpop.f32.mrf.mxu3 }
 0xda1   :  { %v2556_v42 = vadd.f32 %v2555_v36, %v2531_v58  ;;  %v8463_v6 = vpop.eup %8462  ;;  %v8314_v36 = vld [vmem:[%s11886_s8 + $0x1f] ss:$0 sm:$0xff] }
 0xda2   :  { %v2793_v20 = vsel %vm2792_vm14, %v8461_v28, %v2789_v3  ;;  %v2801_v9 = vmul.f32 %v8463_v6, %v2784_v61  ;;  %vm2806_vm1 = vweird.f32 %v8463_v6 }
 0xda3   :  { %v2798_v19 = vsel %vm2795_vm15, %v2797_v53, %v2793_v20  ;;  %v2561_v11 = vmax.f32 %v2556_v42, 0.0  ;;  %vm2807_vm5 = vmor %vm2805_vm4, %vm2806_vm1  ;;  %v8316_v20 = vld [vmem:[%s11886_s8 + $0x1d] ss:$0 sm:$0xff] }
 0xda4   :  { %v2799_v13 = vmul.f32 %v2798_v19, %v2781_v8  ;;  %v2802_v40 = vsub.f32 1.0, %v2801_v9  ;;  %v8315_v8 = vld [vmem:[%s11886_s8 + $0x1c] ss:$0 sm:$0xff] }
 0xda5   :  { %7752 = vmatmul.msk.f32.vlgmr.msrb.gmra.mxu0 %vm1329_vm9, %v2561_v11 }
 0xda6   :  { %v9986_v15 = vadd.f32 %v2815_v4, %v2799_v13  ;;  %3044 = vmatpush.msrb.mxu0 %v7805_v12  ;;  %v2803_v63 = vmul.f32 %v8463_v6, %v2802_v40 }
 0xda8   :  { %v2558_v23 = vpop.f32.mrf.mxu3  ;;  %7765 = vmatmul.msk.f32.vlgmr.msra.gmra.mxu2 %vm113_vm3, %v9986_v15  ;;  %7772 = vmatmul.msk.f32.vlgmr.msra.gmra.mxu3 %vm113_vm3, %v9986_v15  ;;  %v2804_v7 = vadd.f32 %v8463_v6, %v2803_v63 }
 0xda9   :  { %v2559_v25 = vadd.f32 %v2558_v23, %v2531_v58  ;;  %7786 = vmatmul.msk.f32.vlgmr.msra.gmra.mxu1 %vm113_vm3, %v9986_v15  ;;  %3045 = vmatpush.msrb.mxu0 %v7804_v1  ;;  %v8312_v1 = vld [vmem:[%s11886_s8 + $0x19] ss:$0 sm:$0xff] }
 0xdaa   :  { %3110 = vmatpush.msra.mxu2 %v7819_v33  ;;  %3143 = vmatpush.msra.mxu3 %v7826_v21  ;;  %v2808_v39 = vsel %vm2807_vm5, %v8463_v6, %v2804_v7  ;;  %v8317_v33 = vld [vmem:[%s11886_s8 + $0x1e] ss:$0 sm:$0xff] }
 0xdab   :  { %v2562_v43 = vmax.f32 %v2559_v25, 0.0  ;;  %3209 = vmatpush.msra.mxu1 %v7840_v37  ;;  %3046 = vmatpush.msrb.mxu0 %v7803_v54  ;;  %v2813_v49 = vsel %vm2810_vm6, %v2812_v32, %v2808_v39 }
 0xdac   :  { %3111 = vmatpush.msra.mxu2 %v7818_v45  ;;  %3144 = vmatpush.msra.mxu3 %v7825_v31  ;;  %v2814_v24 = vmul.f32 %v2813_v49, %v2782_v38  ;;  %v8313_v45 = vld [vmem:[%s11886_s8 + $0x1a] ss:$0 sm:$0xff]  ;;  %v8318_v31 = vld [vmem:[%s11886_s8 + $0x23] ss:$0 sm:$0xff]  ;;  %v8319_v49 = vld [vmem:[%s11886_s8 + $0x20] ss:$0 sm:$0xff] }
 0xdad   :  { %7753 = vmatmul.msk.f32.gmra.mxu0 %vm1329_vm9, %v2562_v43  ;;  %3210 = vmatpush.msra.mxu1 %v7839_v41 }
 0xdae   :  { %3047 = vmatpush.msrb.mxu0 %v7802_v44  ;;  %3112 = vmatpush.msra.mxu2 %v7817_v47  ;;  %v2817_v26 = vadd.f32 %v2815_v4, %v2814_v24  ;;  %v8310_v4 = vld [vmem:[%s11886_s8 + $0x1b] ss:$0 sm:$0xff] }
 0xdaf   :  { %3145 = vmatpush.msra.mxu3 %v7824_v59  ;;  %3211 = vmatpush.msra.mxu1 %v7838_v48  ;;  %v8320_v59 = vld [vmem:[%s11886_s8 + $0x21] ss:$0 sm:$0xff] }
 0xdb0   :  { %3113 = vmatpush.msra.mxu2 %v7816_v22  ;;  %7773 = vmatmul.msk.f32.gmra.mxu3 %vm113_vm3, %v2817_v26 }
 0xdb1   :  { %7766 = vmatmul.msk.f32.gmra.mxu2 %vm113_vm3, %v2817_v26  ;;  %7787 = vmatmul.msk.f32.gmra.mxu1 %vm113_vm3, %v2817_v26 }
 0xdb2   :  { %3146 = vmatpush.msra.mxu3 %v7823_v46  ;;  %3212 = vmatpush.msra.mxu1 %v7837_v50 }
 0xdb5   :  { %7779 = vmatmul.msk.f32.vlgmr.msra.gmra.mxu0 %vm113_vm3, %v9986_v15 }
 0xdb6   :  { %3176 = vmatpush.msra.mxu0 %v7833_v51 }
 0xdb8   :  { %3177 = vmatpush.msra.mxu0 %v7832_v52  ;;  %7800 = vmatmul.msk.f32.vlgmr.msrb.gmra.mxu3 %vm113_vm3, %v9986_v15 }
 0xdb9   :  { %7793 = vmatmul.msk.f32.vlgmr.msrb.gmra.mxu2 %vm113_vm3, %v9986_v15  ;;  %7814 = vmatmul.msk.f32.vlgmr.msrb.gmra.mxu1 %vm113_vm3, %v9986_v15 }
 0xdba   :  { %3178 = vmatpush.msra.mxu0 %v7831_v55  ;;  %v8321_v55 = vld [vmem:[%s11886_s8 + $0x22] ss:$0 sm:$0xff] }
 0xdbc   :  { %3179 = vmatpush.msra.mxu0 %v7830_v56 }
 0xdbd   :  { %7780 = vmatmul.msk.f32.gmra.mxu0 %vm113_vm3, %v2817_v26 }
 0xdc0   :  { %7801 = vmatmul.msk.f32.gmra.mxu3 %vm113_vm3, %v2817_v26 }
 0xdc1   :  { %7794 = vmatmul.msk.f32.gmra.mxu2 %vm113_vm3, %v2817_v26  ;;  %7815 = vmatmul.msk.f32.gmra.mxu1 %vm113_vm3, %v2817_v26 }
 0xdc5   :  { %7807 = vmatmul.msk.f32.vlgmr.msrb.gmra.mxu0 %vm113_vm3, %v9986_v15 }
 0xdc8   :  { %7828 = vmatmul.msk.f32.vlgmr.msra.gmra.mxu3 %vm113_vm3, %v9986_v15 }
 0xdc9   :  { %7821 = vmatmul.msk.f32.vlgmr.msra.gmra.mxu2 %vm113_vm3, %v9986_v15  ;;  %7842 = vmatmul.msk.f32.vlgmr.msra.gmra.mxu1 %vm113_vm3, %v9986_v15 }
 0xdcd   :  { %7808 = vmatmul.msk.f32.gmra.mxu0 %vm113_vm3, %v2817_v26 }
 0xdd0   :  { %7829 = vmatmul.msk.f32.gmra.mxu3 %vm113_vm3, %v2817_v26 }
 0xdd1   :  { %7822 = vmatmul.msk.f32.gmra.mxu2 %vm113_vm3, %v2817_v26  ;;  %7843 = vmatmul.msk.f32.gmra.mxu1 %vm113_vm3, %v2817_v26 }
 0xdd5   :  { %7835 = vmatmul.msk.f32.vlgmr.msra.gmra.mxu0 %vm113_vm3, %v9986_v15 }
 0xddd   :  { %7836 = vmatmul.msk.f32.gmra.mxu0 %vm113_vm3, %v2817_v26 }
 0xe22   :  { %v10084_v57 = vpop.f32.mrf.mxu0 }
 0xe26   :  { %v2950_v28 = vpop.f32.mrf.mxu1 }
 0xe27   :  { %v2951_v40 = vadd.f32 %v8310_v4, %v2950_v28 }
 0xe2a   :  { %v10086_v30 = vpop.f32.mrf.mxu0 }
 0xe2b   :  { %v2851_v29 = vpop.f32.mrf.mxu2  ;;  %v2884_v61 = vpop.f32.mrf.mxu3 }
 0xe2c   :  { %v2852_v37 = vadd.f32 %v8311_v17, %v2851_v29  ;;  %v2885_v54 = vadd.f32 %v8312_v1, %v2884_v61 }
 0xe2e   :  { %v2953_v62 = vpop.f32.mrf.mxu1 }
 0xe2f   :  { %v2954_v32 = vadd.f32 %v8310_v4, %v2953_v62 }
 0xe32   :  { %v2917_v0 = vpop.f32.mrf.mxu0 }
 0xe33   :  { %v2887_v58 = vpop.f32.mrf.mxu3  ;;  %v2918_v43 = vadd.f32 %v8313_v45, %v2917_v0  ;;  %v57_v0 = vld [vmem:[%s11881_s3] sm:$0xff] }
 0xe34   :  { %v2854_v2 = vpop.f32.mrf.mxu2  ;;  %v2888_v24 = vadd.f32 %v8312_v1, %v2887_v58 }
 0xe35   :  { %v2855_v48 = vadd.f32 %v8311_v17, %v2854_v2 }
 0xe36   :  { %v3082_v16 = vpop.f32.mrf.mxu1 }
 0xe37   :  { %v3083_v19 = vadd.f32 %v8314_v36, %v3082_v16 }
 0xe3a   :  { %v10088_v60 = vpop.f32.mrf.mxu0 }
 0xe3b   :  { %v3016_v3 = vpop.f32.mrf.mxu3  ;;  %v2921_v56 = vadd.f32 %v8313_v45, %v10088_v60 }
 0xe3c   :  { %v2983_v35 = vpop.f32.mrf.mxu2  ;;  %v3017_v34 = vadd.f32 %v8316_v20, %v3016_v3 }
 0xe3d   :  { %v2984_v63 = vadd.f32 %v8315_v8, %v2983_v35 }
 0xe3e   :  { %v3085_v53 = vpop.f32.mrf.mxu1 }
 0xe3f   :  { %v3086_v42 = vadd.f32 %v8314_v36, %v3085_v53 }
 0xe41   :  { %7856 = vmatpush.xpose.msk.msrb.mxu1 %vm603_vm2, %v3086_v42 }
 0xe42   :  { %v3049_v6 = vpop.f32.mrf.mxu0 }
 0xe43   :  { %v3019_v11 = vpop.f32.mrf.mxu3  ;;  %v3050_v41 = vadd.f32 %v8317_v33, %v3049_v6 }
 0xe44   :  { %v2986_v9 = vpop.f32.mrf.mxu2  ;;  %v3020_v13 = vadd.f32 %v8316_v20, %v3019_v11 }
 0xe45   :  { %v2987_v12 = vadd.f32 %v8315_v8, %v2986_v9  ;;  %7857 = vmatpush.xpose.msk.msrb.mxu1 %vm603_vm2, %v3083_v19 }
 0xe46   :  { %v3214_v15 = vpop.f32.mrf.mxu1  ;;  %7848 = vmatpush.xpose.msk.msrb.mxu3 %vm603_vm2, %v3020_v13  ;;  %v58_v13 = vld [vmem:[%s11881_s3 + $0x8] sm:$0xff] }
 0xe47   :  { %7844 = vmatpush.xpose.msk.msrb.mxu2 %vm603_vm2, %v2987_v12  ;;  %v3215_v44 = vadd.f32 %v8318_v31, %v3214_v15 }
 0xe48   :  { %7858 = vmatmul.msk.f32.vlgmr.msrb.gmra.mxu1 %vm603_vm2, %v2951_v40 }
 0xe4a   :  { %v3052_v21 = vpop.f32.mrf.mxu0  ;;  %7849 = vmatpush.xpose.msk.msrb.mxu3 %vm603_vm2, %v3017_v34 }
 0xe4b   :  { %v3053_v23 = vadd.f32 %v8317_v33, %v3052_v21  ;;  %7845 = vmatpush.xpose.msk.msrb.mxu2 %vm603_vm2, %v2984_v63  ;;  %v3148_v25 = vpop.f32.mrf.mxu3 }
 0xe4c   :  { %v3115_v7 = vpop.f32.mrf.mxu2  ;;  %v3149_v52 = vadd.f32 %v8320_v59, %v3148_v25 }
 0xe4d   :  { %7852 = vmatpush.xpose.msk.msrb.mxu0 %vm603_vm2, %v3053_v23  ;;  %7850 = vmatmul.msk.f32.vlgmr.msrb.gmra.mxu3 %vm603_vm2, %v2885_v54  ;;  %v3116_v51 = vadd.f32 %v8319_v49, %v3115_v7 }
 0xe4e   :  { %7846 = vmatmul.msk.f32.vlgmr.msrb.gmra.mxu2 %vm603_vm2, %v2852_v37  ;;  %v3217_v38 = vpop.f32.mrf.mxu1 }
 0xe4f   :  { %v3218_v39 = vadd.f32 %v8318_v31, %v3217_v38 }
 0xe50   :  { %7859 = vmatmul.msk.f32.gmra.mxu1 %vm603_vm2, %v2954_v32 }
 0xe51   :  { %7853 = vmatpush.xpose.msk.msrb.mxu0 %vm603_vm2, %v3050_v41  ;;  %3675 = vmatpush.msra.mxu1 %v3218_v39 }
 0xe52   :  { %v3181_v47 = vpop.f32.mrf.mxu0 }
 0xe53   :  { %3676 = vmatpush.msra.mxu1 %v3215_v44  ;;  %v3151_v26 = vpop.f32.mrf.mxu3  ;;  %v3182_v61 = vadd.f32 %v8321_v55, %v3181_v47 }
 0xe54   :  { %v3118_v22 = vpop.f32.mrf.mxu2  ;;  %7854 = vmatmul.msk.f32.vlgmr.msrb.gmra.mxu0 %vm603_vm2, %v2918_v43  ;;  %v3152_v50 = vadd.f32 %v8320_v59, %v3151_v26 }
 0xe55   :  { %v3119_v46 = vadd.f32 %v8319_v49, %v3118_v22  ;;  %7851 = vmatmul.msk.f32.gmra.mxu3 %vm603_vm2, %v2888_v24 }
 0xe56   :  { %7847 = vmatmul.msk.f32.gmra.mxu2 %vm603_vm2, %v2855_v48  ;;  %3617 = vmatpush.msra.mxu3 %v3152_v50 }
 0xe57   :  { %3588 = vmatpush.msra.mxu2 %v3119_v46 }
 0xe58   :  { %3618 = vmatpush.msra.mxu3 %v3149_v52 }
 0xe59   :  { %3589 = vmatpush.msra.mxu2 %v3116_v51 }
 0xe5a   :  { %v3184_v28 = vpop.f32.mrf.mxu0 }
 0xe5b   :  { %v3185_v29 = vadd.f32 %v8321_v55, %v3184_v28 }
 0xe5c   :  { %7855 = vmatmul.msk.f32.gmra.mxu0 %vm603_vm2, %v2921_v56 }
 0xe5d   :  { %3646 = vmatpush.msra.mxu0 %v3185_v29 }
 0xe5f   :  { %3647 = vmatpush.msra.mxu0 %v3182_v61 }
 0xec5   :  { %v3354_v62 = vpop.f32.mrf.mxu1 }
 0xec6   :  { %v3366_v2 = vmul.f32 0.35355338, %v3354_v62 }
 0xec8   :  { %v10146_v58 = vadd.f32 %v3366_v2, %v57_v0 }
 0xeca   :  { %v3394_v16 = vsel %vm79_vm0, %v10146_v58, -inf }
 0xecb   :  { %3395 = vmax.xlane.f32.xlu1 %v3394_v16 }
 0xecd   :  { %v3357_v23 = vpop.f32.mrf.mxu1 }
 0xece   :  { %v3367_v37 = vmul.f32 0.35355338, %v3357_v23 }
 0xed0   :  { %v3284_v35 = vpop.f32.mrf.mxu3  ;;  %v3375_v25 = vadd.f32 %v3367_v37, %v58_v13 }
 0xed1   :  { %v3249_v60 = vpop.f32.mrf.mxu2  ;;  %v3362_v36 = vmul.f32 0.35355338, %v3284_v35  ;;  %v3319_v53 = vpop.f32.mrf.mxu0 }
 0xed2   :  { %v3360_v3 = vmul.f32 0.35355338, %v3249_v60  ;;  %v3364_v17 = vmul.f32 0.35355338, %v3319_v53  ;;  %v3397_v45 = vsel %vm79_vm0, %v3375_v25, -inf }
 0xed3   :  { %v3370_v42 = vadd.f32 %v3362_v36, %v57_v0 }
 0xed4   :  { %v3368_v6 = vadd.f32 %v3360_v3, %v57_v0  ;;  %v3372_v21 = vadd.f32 %v3364_v17, %v57_v0 }
 0xed5   :  { %v3382_v4 = vsel %vm79_vm0, %v3370_v42, -inf }
 0xed6   :  { %v3376_v8 = vsel %vm79_vm0, %v3368_v6, -inf  ;;  %3383 = vmax.xlane.f32.xlu0 %v3382_v4  ;;  %v3388_v7 = vsel %vm79_vm0, %v3372_v21, -inf }
 0xed7   :  { %3377 = vmax.xlane.f32.xlu2 %v3376_v8 }
 0xed8   :  { %v3287_v19 = vpop.f32.mrf.mxu3 }
 0xed9   :  { %v3252_v20 = vpop.f32.mrf.mxu2  ;;  %v3363_v11 = vmul.f32 0.35355338, %v3287_v19  ;;  %v3322_v12 = vpop.f32.mrf.mxu0  ;;  %v10192_v19 = vld [vmem:[%s11890_s12 + $0x8] sm:$0xff] }
 0xeda   :  { %v3361_v9 = vmul.f32 0.35355338, %v3252_v20  ;;  %v3365_v1 = vmul.f32 0.35355338, %v3322_v12 }
 0xedb   :  { %v3371_v40 = vadd.f32 %v3363_v11, %v58_v13 }
 0xedc   :  { %v3369_v15 = vadd.f32 %v3361_v9, %v58_v13  ;;  %v3373_v33 = vadd.f32 %v3365_v1, %v58_v13  ;;  %v2572_v9 = vperm.slane %v10192_v19, 3 }
 0xedd   :  { %v3385_v63 = vsel %vm79_vm0, %v3371_v40, -inf }
 0xede   :  { %v3379_v34 = vsel %vm79_vm0, %v3369_v15, -inf  ;;  %3386 = vmax.xlane.f32.xlu0 %v3385_v63  ;;  %v3391_v54 = vsel %vm79_vm0, %v3373_v33, -inf  ;;  %v2597_v13 = vadd.f32 %v10084_v57, %v2572_v9 }
 0xedf   :  { %3380 = vmax.xlane.f32.xlu2 %v3379_v34 }
 0xee6   :  { %3392 = vmax.xlane.f32.xlu0 %v3391_v54 }
 0xee7   :  { %3389 = vmax.xlane.f32.xlu2 %v3388_v7 }
 0xeef   :  { %3398 = vmax.xlane.f32.xlu2 %v3397_v45 }
 0xf3e   :  { %v3396_v49 = vpop.xlane.xlu1 %3395 }
 0xf3f   :  { %v3406_v50 = vsub.f32 %v10146_v58, %v3396_v49 }
 0xf41   :  { %v3420_v55 = vmul.f32 1.442695, %v3406_v50  ;;  %v7868_v50 = vld [vmem:[%s11887_s9 + $0x40] sm:$0xff] }
 0xf42   :  { %3707 = vmatpush.msrb.mxu2 %v7868_v50 }
 0xf49   :  { %v3384_v31 = vpop.xlane.xlu0 %3383 }
 0xf4a   :  { %v3378_v32 = vpop.xlane.xlu2 %3377  ;;  %v3402_v41 = vsub.f32 %v3370_v42, %v3384_v31 }
 0xf4b   :  { %v3400_v38 = vsub.f32 %v3368_v6, %v3378_v32 }
 0xf4c   :  { %v3412_v39 = vmul.f32 1.442695, %v3402_v41 }
 0xf4d   :  { %v3408_v43 = vmul.f32 1.442695, %v3400_v38 }
 0xf4e   :  { %8464 = vpow2.f32 %v3412_v39 }
 0xf4f   :  { %8466 = vpow2.f32 %v3408_v43 }
 0xf51   :  { %v3387_v44 = vpop.xlane.xlu0 %3386 }
 0xf52   :  { %v3381_v47 = vpop.xlane.xlu2 %3380  ;;  %v3403_v59 = vsub.f32 %v3371_v40, %v3387_v44  ;;  %v10203_v40 = vadd.f32 %v2597_v13, %v9786_v5  ;;  %v7877_v13 = vld [vmem:[%s11887_s9 + $0x58] sm:$0xff] }
 0xf53   :  { %v3401_v48 = vsub.f32 %v3369_v15, %v3381_v47  ;;  %3807 = vmatpush.msrb.mxu1 %v7877_v13 }
 0xf54   :  { %v10160_v24 = vpop.eup %8464  ;;  %v3414_v22 = vmul.f32 1.442695, %v3403_v59  ;;  %v2604_v15 = vsel %vm113_vm3, %v10203_v40, 0.0 }
 0xf55   :  { %v3410_v26 = vmul.f32 1.442695, %v3401_v48  ;;  %v10162_v46 = vpop.eup %8466  ;;  %v3430_v51 = vsel %vm79_vm0, %v10160_v24, 0.0 }
 0xf56   :  { %8468 = vpow2.f32 %v3414_v22  ;;  %3431 = vadd.xlane.f32.xlu0 %v3430_v51  ;;  %v3424_v52 = vsel %vm79_vm0, %v10162_v46, 0.0  ;;  %v7871_v51 = vld [vmem:[%s11887_s9 + $0x48] sm:$0xff] }
 0xf57   :  { %8470 = vpow2.f32 %v3410_v26  ;;  %3425 = vadd.xlane.f32.xlu1 %v3424_v52  ;;  %3741 = vmatpush.msrb.mxu3 %v7871_v51 }
 0xf58   :  { %8472 = vpow2.f32 %v3420_v55 }
 0xf59   :  { %v3393_v56 = vpop.xlane.xlu0 %3392 }
 0xf5a   :  { %v3390_v28 = vpop.xlane.xlu2 %3389  ;;  %v3405_v29 = vsub.f32 %v3373_v33, %v3393_v56 }
 0xf5b   :  { %v3404_v61 = vsub.f32 %v3372_v21, %v3390_v28 }
 0xf5c   :  { %v10169_v62 = vpop.eup %8468  ;;  %v3418_v0 = vmul.f32 1.442695, %v3405_v29 }
 0xf5d   :  { %v3416_v2 = vmul.f32 1.442695, %v3404_v61  ;;  %v10171_v58 = vpop.eup %8470  ;;  %v3433_v16 = vsel %vm79_vm0, %v10169_v62, 0.0 }
 0xf5e   :  { %8474 = vpow2.f32 %v3418_v0  ;;  %v3427_v60 = vsel %vm79_vm0, %v10171_v58, 0.0  ;;  %v10177_v36 = vpop.eup %8472 }
 0xf5f   :  { %8476 = vpow2.f32 %v3416_v2  ;;  %3434 = vadd.xlane.f32.xlu1 %v3433_v16  ;;  %3428 = vadd.xlane.f32.xlu2 %v3427_v60  ;;  %v3442_v8 = vsel %vm79_vm0, %v10177_v36, 0.0 }
 0xf62   :  { %v3399_v35 = vpop.xlane.xlu2 %3398 }
 0xf63   :  { %v3407_v3 = vsub.f32 %v3375_v25, %v3399_v35 }
 0xf64   :  { %v10179_v53 = vpop.eup %8474 }
 0xf65   :  { %v3422_v42 = vmul.f32 1.442695, %v3407_v3  ;;  %v10181_v6 = vpop.eup %8476  ;;  %v3439_v4 = vsel %vm79_vm0, %v10179_v53, 0.0 }
 0xf66   :  { %v3436_v20 = vsel %vm79_vm0, %v10181_v6, 0.0 }
 0xf67   :  { %8478 = vpow2.f32 %v3422_v42  ;;  %3440 = vadd.xlane.f32.xlu1 %v3439_v4  ;;  %3443 = vadd.xlane.f32.xlu2 %v3442_v8 }
 0xf68   :  { %3437 = vadd.xlane.f32.xlu0 %v3436_v20 }
 0xf6d   :  { %v10195_v11 = vpop.eup %8478 }
 0xf6e   :  { %v3445_v12 = vsel %vm79_vm0, %v10195_v11, 0.0 }
 0xf70   :  { %3446 = vadd.xlane.f32.xlu0 %v3445_v12 }
 0xf78   :  { %2605 = vadd.xlane.f32.xlu0 %v2604_v15 }
 0xfc9   :  { %v3432_v17 = vpop.xlane.xlu0 %3431 }
 0xfca   :  { %8480 = vrcp.f32 %v3432_v17  ;;  %v3426_v1 = vpop.xlane.xlu1 %3425  ;;  %v3489_v5 = vand.u32 2147483648, %v3432_v17  ;;  %v3487_v25 = vand.u32 2147483647, %v3432_v17  ;;  %vm3483_vm10 = vweird.f32 %v3432_v17 }
 0xfcb   :  { %8482 = vrcp.f32 %v3426_v1  ;;  %v3459_v45 = vand.u32 2147483648, %v3426_v1  ;;  %v3457_v32 = vand.u32 2147483647, %v3426_v1  ;;  %vm3453_vm12 = vweird.f32 %v3426_v1 }
 0xfcc   :  { %v3490_v38 = vor.u32 1.1754944e-38, %v3489_v5  ;;  %vm3488_vm13 = vcmp.eq.f32.partialorder %v3487_v25, 8.507059e+37 }
 0xfcd   :  { %v3460_v47 = vor.u32 1.1754944e-38, %v3459_v45  ;;  %vm3458_vm15 = vcmp.eq.f32.partialorder %v3457_v32, 8.507059e+37 }
 0xfd0   :  { %v8481_v63 = vpop.eup %8480 }
 0xfd1   :  { %v8483_v34 = vpop.eup %8482  ;;  %v3479_v33 = vmul.f32 %v8481_v63, %v3432_v17  ;;  %vm3484_vm7 = vweird.f32 %v8481_v63 }
 0xfd2   :  { %v3449_v21 = vmul.f32 %v8483_v34, %v3426_v1  ;;  %v10207_v23 = vpop.xlane.xlu1 %3434  ;;  %v10209_v37 = vpop.xlane.xlu2 %3428  ;;  %vm3454_vm8 = vweird.f32 %v8483_v34  ;;  %vm3485_vm11 = vmor %vm3483_vm10, %vm3484_vm7 }
 0xfd3   :  { %v3480_v57 = vsub.f32 1.0, %v3479_v33  ;;  %8484 = vrcp.f32 %v10207_v23  ;;  %vm3455_vm14 = vmor %vm3453_vm12, %vm3454_vm8  ;;  %v3502_v16 = vand.u32 2147483647, %v10207_v23  ;;  %v3474_v35 = vand.u32 2147483648, %v10209_v37 }
 0xfd4   :  { %v3450_v54 = vsub.f32 1.0, %v3449_v21  ;;  %8486 = vrcp.f32 %v10209_v37  ;;  %v3472_v4 = vand.u32 2147483647, %v10209_v37  ;;  %vm3498_vm5 = vweird.f32 %v10207_v23 }
 0xfd5   :  { %v3481_v7 = vmul.f32 %v8481_v63, %v3480_v57  ;;  %vm10251_vm7 = vcmp.eq.f32.partialorder %v3502_v16, 8.507059e+37  ;;  %vm3468_vm8 = vweird.f32 %v10209_v37 }
 0xfd6   :  { %v3451_v31 = vmul.f32 %v8483_v34, %v3450_v54 }
 0xfd7   :  { %v3482_v41 = vadd.f32 %v8481_v63, %v3481_v7 }
 0xfd8   :  { %v3452_v39 = vadd.f32 %v8483_v34, %v3451_v31 }
 0xfd9   :  { %v10213_v43 = vpop.eup %8484  ;;  %v3486_v44 = vsel %vm3485_vm11, %v8481_v63, %v3482_v41  ;;  %v3475_v63 = vor.u32 1.1754944e-38, %v3474_v35  ;;  %vm3473_vm11 = vcmp.eq.f32.partialorder %v3472_v4, 8.507059e+37 }
 0xfda   :  { %v8487_v49 = vpop.eup %8486  ;;  %v3491_v59 = vsel %vm3488_vm13, %v3490_v38, %v3486_v44  ;;  %v3456_v48 = vsel %vm3455_vm14, %v8483_v34, %v3452_v39  ;;  %v3494_v22 = vmul.f32 %v10213_v43, %v10207_v23  ;;  %v10217_v26 = vpop.xlane.xlu1 %3440  ;;  %vm3499_vm1 = vweird.f32 %v10213_v43 }
 0xfdb   :  { %v3492_v52 = vmul.f32 %v10160_v24, %v3491_v59  ;;  %v3461_v55 = vsel %vm3458_vm15, %v3460_v47, %v3456_v48  ;;  %v3464_v56 = vmul.f32 %v8487_v49, %v10209_v37  ;;  %v10227_v28 = vpop.xlane.xlu0 %3437  ;;  %8488 = vrcp.f32 %v10217_v26  ;;  %v10231_v0 = vpop.xlane.xlu2 %3443  ;;  %vm10247_vm6 = vmor %vm3498_vm5, %vm3499_vm1 }
 0xfdc   :  { %v3462_v29 = vmul.f32 %v10162_v46, %v3461_v55  ;;  %v3495_v61 = vsub.f32 1.0, %v3494_v22  ;;  %8490 = vrcp.f32 %v10227_v28  ;;  %v3504_v46 = vand.u32 2147483648, %v10207_v23 }
 0xfdd   :  { %v3465_v2 = vsub.f32 1.0, %v3464_v56  ;;  %7862 = vmatmul.msk.f32.vlgmr.msra.gmra.mxu3 %vm79_vm0, %v3492_v52  ;;  %8492 = vrcp.f32 %v10231_v0  ;;  %vm3469_vm4 = vweird.f32 %v8487_v49  ;;  %vm3528_vm12 = vweird.f32 %v10217_v26 }
 0xfde   :  { %v3496_v24 = vmul.f32 %v10213_v43, %v3495_v61  ;;  %7860 = vmatmul.msk.f32.vlgmr.msra.gmra.mxu2 %vm79_vm0, %v3462_v29  ;;  %v3505_v1 = vor.u32 1.1754944e-38, %v3504_v46  ;;  %vm3470_vm10 = vmor %vm3468_vm8, %vm3469_vm4  ;;  %v3517_v7 = vand.u32 2147483647, %v10227_v28  ;;  %v3519_v25 = vand.u32 2147483648, %v10227_v28 }
 0xfdf   :  { %v3466_v60 = vmul.f32 %v8487_v49, %v3465_v2  ;;  %v3532_v39 = vand.u32 2147483647, %v10217_v26  ;;  %vm3513_vm14 = vweird.f32 %v10227_v28  ;;  %v3547_v59 = vand.u32 2147483647, %v10231_v0 }
 0xfe0   :  { %v3497_v3 = vadd.f32 %v10213_v43, %v3496_v24  ;;  %vm3518_vm4 = vcmp.eq.f32.partialorder %v3517_v7, 8.507059e+37  ;;  %v3520_v48 = vor.u32 1.1754944e-38, %v3519_v25  ;;  %vm3543_vm5 = vweird.f32 %v10231_v0 }
 0xfe1   :  { %v3467_v42 = vadd.f32 %v8487_v49, %v3466_v60  ;;  %v10244_v8 = vpop.eup %8488  ;;  %v3534_v52 = vand.u32 2147483648, %v10217_v26  ;;  %vm3548_vm8 = vcmp.eq.f32.partialorder %v3547_v59, 8.507059e+37 }
 0xfe2   :  { %v8491_v20 = vpop.eup %8490  ;;  %v3524_v15 = vmul.f32 %v10244_v8, %v10217_v26  ;;  %v3501_v37 = vsel %vm10247_vm6, %v10213_v43, %v3497_v3  ;;  %v3549_v43 = vand.u32 2147483648, %v10231_v0  ;;  %vm3529_vm6 = vweird.f32 %v10244_v8 }
 0xfe3   :  { %v10258_v17 = vpop.xlane.xlu0 %3446  ;;  %v3509_v34 = vmul.f32 %v8491_v20, %v10227_v28  ;;  %v8493_v33 = vpop.eup %8492  ;;  %v3471_v23 = vsel %vm3470_vm10, %v8487_v49, %v3467_v42  ;;  %vm3514_vm13 = vweird.f32 %v8491_v20  ;;  %v3506_v38 = vsel %vm10251_vm7, %v3505_v1, %v3501_v37  ;;  %vm10290_vm10 = vmor %vm3528_vm12, %vm3529_vm6 }
 0xfe4   :  { %8494 = vrcp.f32 %v10258_v17  ;;  %v3525_v21 = vsub.f32 1.0, %v3524_v15  ;;  %v3539_v5 = vmul.f32 %v8493_v33, %v10231_v0  ;;  %v3476_v54 = vsel %vm3473_vm11, %v3475_v63, %v3471_v23  ;;  %vm3515_vm1 = vmor %vm3513_vm14, %vm3514_vm13 }
 0xfe5   :  { %v3510_v57 = vsub.f32 1.0, %v3509_v34  ;;  %v3477_v45 = vmul.f32 %v10171_v58, %v3476_v54  ;;  %v3507_v44 = vmul.f32 %v10169_v62, %v3506_v38  ;;  %vm3544_vm15 = vweird.f32 %v8493_v33 }
 0xfe6   :  { %v3526_v31 = vmul.f32 %v10244_v8, %v3525_v21  ;;  %v3540_v41 = vsub.f32 1.0, %v3539_v5  ;;  %vm3545_vm7 = vmor %vm3543_vm5, %vm3544_vm15  ;;  %v3550_v56 = vor.u32 1.1754944e-38, %v3549_v43  ;;  %v3564_v0 = vand.u32 2147483648, %v10258_v17  ;;  %v50_v21 = vld [vmem:[%s11890_s12 + $0x10] sm:$0xff] }
 0xfe7   :  { %v3511_v32 = vmul.f32 %v8491_v20, %v3510_v57  ;;  %7861 = vmatmul.msk.f32.gmra.mxu2 %vm79_vm0, %v3477_v45  ;;  %7863 = vmatmul.msk.f32.gmra.mxu3 %vm79_vm0, %v3507_v44  ;;  %v3562_v60 = vand.u32 2147483647, %v10258_v17  ;;  %v3535_v35 = vor.u32 1.1754944e-38, %v3534_v52  ;;  %vm3558_vm12 = vweird.f32 %v10258_v17 }
 0xfe8   :  { %v3541_v58 = vmul.f32 %v8493_v33, %v3540_v41  ;;  %v3527_v50 = vadd.f32 %v10244_v8, %v3526_v31  ;;  %vm3533_vm13 = vcmp.eq.f32.partialorder %v3532_v39, 8.507059e+37  ;;  %v3565_v26 = vor.u32 1.1754944e-38, %v3564_v0 }
 0xfe9   :  { %v3512_v49 = vadd.f32 %v8491_v20, %v3511_v32  ;;  %vm3563_vm15 = vcmp.eq.f32.partialorder %v3562_v60, 8.507059e+37  ;;  %v3715_v23 = vperm.slane %v50_v21, 2  ;;  %v2600_v39 = vadd.f32 %v10086_v30, %v2572_v9  ;;  %v7890_v21 = vld [vmem:[%s11885_s7 + $0x638] sm:$0xff] }
 0xfea   :  { %v8495_v47 = vpop.eup %8494  ;;  %v3542_v51 = vadd.f32 %v8493_v33, %v3541_v58  ;;  %3962 = vmatpush.msra.mxu3 %v7890_v21 }
 0xfeb   :  { %v3554_v22 = vmul.f32 %v8495_v47, %v10258_v17  ;;  %v3516_v62 = vsel %vm3515_vm1, %v8491_v20, %v3512_v49  ;;  %vm3559_vm11 = vweird.f32 %v8495_v47 }
 0xfec   :  { %v3521_v55 = vsel %vm3518_vm4, %v3520_v48, %v3516_v62  ;;  %v3546_v61 = vsel %vm3545_vm7, %v8493_v33, %v3542_v51  ;;  %vm3560_vm14 = vmor %vm3558_vm12, %vm3559_vm11 }
 0xfed   :  { %v3555_v28 = vsub.f32 1.0, %v3554_v22  ;;  %v3522_v29 = vmul.f32 %v10181_v6, %v3521_v55  ;;  %v3551_v24 = vsel %vm3548_vm8, %v3550_v56, %v3546_v61  ;;  %v3531_v6 = vsel %vm10290_vm10, %v10244_v8, %v3527_v50  ;;  %v7874_v8 = vld [vmem:[%s11887_s9 + $0x50] sm:$0xff] }
 0xfee   :  { %v3552_v46 = vmul.f32 %v10177_v36, %v3551_v24  ;;  %v3536_v42 = vsel %vm3533_vm13, %v3535_v35, %v3531_v6  ;;  %3774 = vmatpush.msrb.mxu0 %v7874_v8 }
 0xfef   :  { %v3556_v16 = vmul.f32 %v8495_v47, %v3555_v28  ;;  %7864 = vmatmul.msk.f32.vlgmr.msra.gmra.mxu0 %vm79_vm0, %v3522_v29  ;;  %v3537_v36 = vmul.f32 %v10179_v53, %v3536_v42 }
 0xff0   :  { %7866 = vmatmul.msk.f32.vlgmr.msra.gmra.mxu1 %vm79_vm0, %v3552_v46 }
 0xff1   :  { %v3557_v3 = vadd.f32 %v8495_v47, %v3556_v16 }
 0xff3   :  { %v3561_v4 = vsel %vm3560_vm14, %v8495_v47, %v3557_v3  ;;  %v2606_v47 = vpop.xlane.xlu0 %2605 }
 0xff4   :  { %v3566_v20 = vsel %vm3563_vm15, %v3565_v26, %v3561_v4  ;;  %v2610_v48 = vmul.f32 %v2606_v47, %v8802_v27 }
 0xff5   :  { %v3567_v12 = vmul.f32 %v10195_v11, %v3566_v20 }
 0xff6   :  { %v10337_v30 = vsub.f32 %v10203_v40, %v2610_v48  ;;  %v7894_v48 = vld [vmem:[%s11885_s7 + $0x640] sm:$0xff] }
 0xff7   :  { %7865 = vmatmul.msk.f32.gmra.mxu0 %vm79_vm0, %v3537_v36 }
 0xff8   :  { %7867 = vmatmul.msk.f32.gmra.mxu1 %vm79_vm0, %v3567_v12  ;;  %v2614_v52 = vmul.f32 %v10337_v30, %v10337_v30 }
 0xffa   :  { %v2616_v55 = vsel %vm113_vm3, %v2614_v52, 0.0 }
0x1060   :  { %v3620_v15 = vpop.f32.mrf.mxu3 }
0x1061   :  { %v3591_v17 = vpop.f32.mrf.mxu2  ;;  %7872 = vmatmul.msk.f32.vlgmr.msrb.gmra.mxu3 %vm603_vm2, %v3620_v15 }
0x1062   :  { %7869 = vmatmul.msk.f32.vlgmr.msrb.gmra.mxu2 %vm603_vm2, %v3591_v17 }
0x106a   :  { %v3594_v53 = vpop.f32.mrf.mxu2  ;;  %v3623_v1 = vpop.f32.mrf.mxu3 }
0x106b   :  { %7870 = vmatmul.msk.f32.gmra.mxu2 %vm603_vm2, %v3594_v53  ;;  %7873 = vmatmul.msk.f32.gmra.mxu3 %vm603_vm2, %v3623_v1 }
0x106c   :  { %v3649_v11 = vpop.f32.mrf.mxu0 }
0x106d   :  { %7875 = vmatmul.msk.f32.vlgmr.msrb.gmra.mxu0 %vm603_vm2, %v3649_v11  ;;  %v3678_v63 = vpop.f32.mrf.mxu1 }
0x106e   :  { %7878 = vmatmul.msk.f32.vlgmr.msrb.gmra.mxu1 %vm603_vm2, %v3678_v63 }
0x1074   :  { %v3652_v34 = vpop.f32.mrf.mxu0 }
0x1075   :  { %7876 = vmatmul.msk.f32.gmra.mxu0 %vm603_vm2, %v3652_v34  ;;  %v3681_v33 = vpop.f32.mrf.mxu1 }
0x1076   :  { %7879 = vmatmul.msk.f32.gmra.mxu1 %vm603_vm2, %v3681_v33  ;;  %v7883_v33 = vld [vmem:[%s11885_s7 + $0x618] sm:$0xff] }
0x1077   :  { %3929 = vmatpush.msra.mxu2 %v7883_v33  ;;  %v7930_v33 = vld [vmem:[%s11885_s7 + $0x6e8] sm:$0xff] }
0x10e4   :  { %v3743_v5 = vpop.f32.mrf.mxu3 }
0x10e5   :  { %v3709_v37 = vpop.f32.mrf.mxu2 }
0x10e6   :  { %v3716_v57 = vadd.f32 %v3715_v23, %v3709_v37 }
0x10e8   :  { %v3749_v54 = vadd.f32 %v3743_v5, %v3716_v57  ;;  %v7904_v57 = vld [vmem:[%s11885_s7 + $0x678] sm:$0xff] }
0x10e9   :  { %4028 = vmatpush.msra.mxu1 %v7904_v57  ;;  %v7915_v57 = vld [vmem:[%s11885_s7 + $0x6a0] sm:$0xff] }
0x10ea   :  { %v3776_v7 = vpop.f32.mrf.mxu0 }
0x10eb   :  { %v3782_v25 = vadd.f32 %v3776_v7, %v3749_v54  ;;  %v3809_v45 = vpop.f32.mrf.mxu1  ;;  %v7882_v54 = vld [vmem:[%s11885_s7 + $0x610] sm:$0xff] }
0x10ec   :  { %v7889_v7 = vld [vmem:[%s11885_s7 + $0x630] sm:$0xff]  ;;  %3930 = vmatpush.msra.mxu2 %v7882_v54 }
0x10ed   :  { %v3815_v31 = vadd.f32 %v3809_v45, %v3782_v25  ;;  %v7896_v25 = vld [vmem:[%s11885_s7 + $0x650] sm:$0xff]  ;;  %3963 = vmatpush.msra.mxu3 %v7889_v7  ;;  %v7922_v7 = vld [vmem:[%s11885_s7 + $0x6c0] sm:$0xff] }
0x10ee   :  { %v3712_v41 = vpop.f32.mrf.mxu2  ;;  %v3746_v43 = vpop.f32.mrf.mxu3 }
0x10ef   :  { %v10324_v32 = vadd.f32 %v3815_v31, %v9816_v10  ;;  %v3717_v38 = vadd.f32 %v3715_v23, %v3712_v41  ;;  %v2603_v10 = vadd.f32 %v2600_v39, %v9791_v14  ;;  %v7897_v23 = vld [vmem:[%s11885_s7 + $0x658] sm:$0xff]  ;;  %v7903_v31 = vld [vmem:[%s11885_s7 + $0x670] sm:$0xff]  ;;  %v7881_v41 = vld [vmem:[%s11885_s7 + $0x608] sm:$0xff] }
0x10f0   :  { %3995 = vmatpush.msra.mxu0 %v7897_v23  ;;  %4029 = vmatpush.msra.mxu1 %v7903_v31  ;;  %v7895_v39 = vld [vmem:[%s11885_s7 + $0x648] sm:$0xff] }
0x10f1   :  { %v3819_v44 = vsel %vm113_vm3, %v10324_v32, 0.0  ;;  %v3750_v49 = vadd.f32 %v3746_v43, %v3717_v38  ;;  %v2607_v9 = vsel %vm113_vm3, %v2603_v10, 0.0  ;;  %v7888_v38 = vld [vmem:[%s11885_s7 + $0x628] sm:$0xff]  ;;  %3931 = vmatpush.msra.mxu2 %v7881_v41 }
0x10f2   :  { %v3779_v58 = vpop.f32.mrf.mxu0  ;;  %3820 = vadd.xlane.f32.xlu2 %v3819_v44  ;;  %3996 = vmatpush.msra.mxu0 %v7896_v25  ;;  %v7902_v44 = vld [vmem:[%s11885_s7 + $0x668] sm:$0xff]  ;;  %v7929_v25 = vld [vmem:[%s11885_s7 + $0x6e0] sm:$0xff] }
0x10f3   :  { %v3783_v59 = vadd.f32 %v3779_v58, %v3750_v49  ;;  %v3812_v22 = vpop.f32.mrf.mxu1  ;;  %3964 = vmatpush.msra.mxu3 %v7888_v38  ;;  %4030 = vmatpush.msra.mxu1 %v7902_v44  ;;  %v7880_v58 = vld [vmem:[%s11885_s7 + $0x600] sm:$0xff] }
0x10f4   :  { %3997 = vmatpush.msra.mxu0 %v7895_v39  ;;  %3932 = vmatpush.msra.mxu2 %v7880_v58  ;;  %v3863_v58 = vperm.slane %v10192_v19, 6 }
0x10f5   :  { %v3816_v50 = vadd.f32 %v3812_v22, %v3783_v59  ;;  %v7887_v59 = vld [vmem:[%s11885_s7 + $0x620] sm:$0xff] }
0x10f6   :  { %3965 = vmatpush.msra.mxu3 %v7887_v59  ;;  %3998 = vmatpush.msra.mxu0 %v7894_v48 }
0x10f7   :  { %v10334_v62 = vadd.f32 %v3816_v50, %v9798_v18 }
0x10f9   :  { %v3822_v51 = vsel %vm113_vm3, %v10334_v62, 0.0 }
0x10fa   :  { %2608 = vadd.xlane.f32.xlu2 %v2607_v9  ;;  %3823 = vadd.xlane.f32.xlu1 %v3822_v51  ;;  %v7901_v51 = vld [vmem:[%s11885_s7 + $0x660] sm:$0xff] }
0x10fb   :  { %4031 = vmatpush.msra.mxu1 %v7901_v51 }
0x1102   :  { %2617 = vadd.xlane.f32.xlu2 %v2616_v55 }
0x1165   :  { %v3821_v14 = vpop.xlane.xlu2 %3820 }
0x1166   :  { %v3825_v18 = vmul.f32 %v3821_v14, %v8802_v27 }
0x1168   :  { %v10347_v56 = vsub.f32 %v10324_v32, %v3825_v18 }
0x116a   :  { %v3829_v40 = vmul.f32 %v10347_v56, %v10347_v56 }
0x116c   :  { %v3831_v28 = vsel %vm113_vm3, %v3829_v40, 0.0 }
0x116d   :  { %v2609_v29 = vpop.xlane.xlu2 %2608  ;;  %3832 = vadd.xlane.f32.xlu1 %v3831_v28  ;;  %v3824_v0 = vpop.xlane.xlu1 %3823 }
0x116e   :  { %v2611_v61 = vmul.f32 %v2609_v29, %v8802_v27  ;;  %v3826_v2 = vmul.f32 %v3824_v0, %v8802_v27 }
0x1170   :  { %v10354_v24 = vsub.f32 %v2603_v10, %v2611_v61  ;;  %v10357_v16 = vsub.f32 %v10334_v62, %v3826_v2 }
0x1172   :  { %v2615_v60 = vmul.f32 %v10354_v24, %v10354_v24  ;;  %v3830_v46 = vmul.f32 %v10357_v16, %v10357_v16 }
0x1174   :  { %v2619_v6 = vsel %vm113_vm3, %v2615_v60, 0.0  ;;  %v3834_v35 = vsel %vm113_vm3, %v3830_v46, 0.0 }
0x1175   :  { %2620 = vadd.xlane.f32.xlu1 %v2619_v6  ;;  %3835 = vadd.xlane.f32.xlu0 %v3834_v35  ;;  %v2618_v3 = vpop.xlane.xlu2 %2617 }
0x1176   :  { %v10365_v26 = vmul.f32 0.032258064, %v2618_v3  ;;  %v7911_v3 = vld [vmem:[%s11885_s7 + $0x698] sm:$0xff] }
0x1177   :  { %4067 = vmatpush.msrb.mxu2 %v7911_v3  ;;  %v7953_v3 = vld [vmem:[%s11885_s7 + $0x758] sm:$0xff] }
0x1178   :  { %8496 = vrsqrt.f32 %v10365_v26  ;;  %vm2631_vm1 = vcmp.eq.f32.partialorder %v10365_v26, inf  ;;  %v2634_v10 = vand.u32 2147483648, %v10365_v26  ;;  %vm2633_vm4 = vcmp.eq.f32.partialorder %v10365_v26, 0.0 }
0x117e   :  { %v8497_v42 = vpop.eup %8496 }
0x117f   :  { %v2625_v4 = vmul.f32 %v8497_v42, %v10365_v26 }
0x1181   :  { %v2626_v20 = vmul.f32 %v8497_v42, %v2625_v4 }
0x1183   :  { %v2627_v12 = vmul.f32 0.5, %v2626_v20  ;;  %v7932_v20 = vld [vmem:[%s11885_s7 + $0x6f8] sm:$0xff] }
0x1184   :  { %4166 = vmatpush.msrb.mxu1 %v7932_v20 }
0x1185   :  { %v2628_v13 = vsub.f32 1.5, %v2627_v12  ;;  %v7917_v12 = vld [vmem:[%s11885_s7 + $0x6b0] sm:$0xff] }
0x1187   :  { %v2629_v53 = vmul.f32 %v8497_v42, %v2628_v13  ;;  %v7925_v42 = vld [vmem:[%s11885_s7 + $0x6d8] sm:$0xff]  ;;  %v7924_v13 = vld [vmem:[%s11885_s7 + $0x6d0] sm:$0xff] }
0x1188   :  { %4133 = vmatpush.msrb.mxu0 %v7925_v42  ;;  %v10540_v42 = vld [vmem:[%s11890_s12 + $0x18] sm:$0xff] }
0x1189   :  { %v2630_v5 = vmul.f32 %v2629_v53, %v10365_v26 }
0x118a   :  { %4134 = vmatpush.msrb.mxu0 %v7924_v13  ;;  %v3865_v13 = vmul.f32 %v3863_v58, %v10357_v16 }
0x118b   :  { %v2632_v49 = vsel %vm2631_vm1, %v10365_v26, %v2630_v5  ;;  %v7918_v26 = vld [vmem:[%s11885_s7 + $0x6b8] sm:$0xff] }
0x118c   :  { %v2635_v55 = vsel %vm2633_vm4, %v2634_v10, %v2632_v49  ;;  %4100 = vmatpush.msrb.mxu3 %v7918_v26  ;;  %v7960_v26 = vld [vmem:[%s11885_s7 + $0x778] sm:$0xff] }
0x118d   :  { %v10439_v0 = vadd.f32 1e-06, %v2635_v55 }
0x118e   :  { %4101 = vmatpush.msrb.mxu3 %v7917_v12  ;;  %v7938_v12 = vld [vmem:[%s11885_s7 + $0x710] sm:$0xff] }
0x118f   :  { %v2662_v16 = vand.u32 2147483647, %v10439_v0 }
0x11e0   :  { %v3833_v36 = vpop.xlane.xlu1 %3832 }
0x11e1   :  { %v10369_v8 = vmul.f32 0.032258064, %v3833_v36  ;;  %v7910_v36 = vld [vmem:[%s11885_s7 + $0x690] sm:$0xff] }
0x11e2   :  { %4068 = vmatpush.msrb.mxu2 %v7910_v36 }
0x11e3   :  { %8498 = vrsqrt.f32 %v10369_v8  ;;  %vm3846_vm5 = vcmp.eq.f32.partialorder %v10369_v8, inf  ;;  %v3849_v40 = vand.u32 2147483648, %v10369_v8  ;;  %vm3848_vm6 = vcmp.eq.f32.partialorder %v10369_v8, 0.0 }
0x11e8   :  { %v2621_v15 = vpop.xlane.xlu1 %2620  ;;  %v3836_v11 = vpop.xlane.xlu0 %3835 }
0x11e9   :  { %v8499_v17 = vpop.eup %8498  ;;  %v10372_v1 = vmul.f32 0.032258064, %v2621_v15  ;;  %v10375_v34 = vmul.f32 0.032258064, %v3836_v11  ;;  %v7931_v15 = vld [vmem:[%s11885_s7 + $0x6f0] sm:$0xff]  ;;  %v7916_v11 = vld [vmem:[%s11885_s7 + $0x6a8] sm:$0xff] }
0x11ea   :  { %v3840_v63 = vmul.f32 %v8499_v17, %v10369_v8  ;;  %4167 = vmatpush.msrb.mxu1 %v7931_v15  ;;  %4102 = vmatpush.msrb.mxu3 %v7916_v11  ;;  %v2664_v15 = vand.u32 2147483648, %v10439_v0  ;;  %v7952_v11 = vld [vmem:[%s11885_s7 + $0x750] sm:$0xff] }
0x11eb   :  { %8500 = vrsqrt.f32 %v10372_v1  ;;  %vm2643_vm7 = vcmp.eq.f32.partialorder %v10372_v1, inf  ;;  %v2646_v23 = vand.u32 2147483648, %v10372_v1  ;;  %vm3858_vm8 = vcmp.eq.f32.partialorder %v10375_v34, inf }
0x11ec   :  { %v3841_v37 = vmul.f32 %v8499_v17, %v3840_v63  ;;  %8502 = vrsqrt.f32 %v10375_v34  ;;  %v7923_v63 = vld [vmem:[%s11885_s7 + $0x6c8] sm:$0xff]  ;;  %v3861_v5 = vand.u32 2147483648, %v10375_v34  ;;  %vm2645_vm10 = vcmp.eq.f32.partialorder %v10372_v1, 0.0  ;;  %4168 = vmatpush.msrb.mxu1 %v7930_v33  ;;  %4103 = vmatpush.msrb.mxu3 %v7915_v57 }
0x11ed   :  { %vm3860_vm11 = vcmp.eq.f32.partialorder %v10375_v34, 0.0  ;;  %4135 = vmatpush.msrb.mxu0 %v7923_v63  ;;  %v7959_v63 = vld [vmem:[%s11885_s7 + $0x770] sm:$0xff]  ;;  %v7951_v57 = vld [vmem:[%s11885_s7 + $0x748] sm:$0xff] }
0x11ee   :  { %v3842_v45 = vmul.f32 0.5, %v3841_v37  ;;  %v7908_v37 = vld [vmem:[%s11885_s7 + $0x680] sm:$0xff]  ;;  %4169 = vmatpush.msrb.mxu1 %v7929_v25 }
0x11ef   :  { %4136 = vmatpush.msrb.mxu0 %v7922_v7 }
0x11f0   :  { %v3843_v43 = vsub.f32 1.5, %v3842_v45 }
0x11f1   :  { %v8501_v47 = vpop.eup %8500 }
0x11f2   :  { %v8503_v22 = vpop.eup %8502  ;;  %v3844_v50 = vmul.f32 %v8499_v17, %v3843_v43  ;;  %v2637_v9 = vmul.f32 %v8501_v47, %v10372_v1  ;;  %v7909_v17 = vld [vmem:[%s11885_s7 + $0x688] sm:$0xff] }
0x11f3   :  { %v3852_v52 = vmul.f32 %v8503_v22, %v10375_v34  ;;  %4069 = vmatpush.msrb.mxu2 %v7909_v17 }
0x11f4   :  { %v3845_v14 = vmul.f32 %v3844_v50, %v10369_v8  ;;  %v2638_v18 = vmul.f32 %v8501_v47, %v2637_v9 }
0x11f5   :  { %v3853_v28 = vmul.f32 %v8503_v22, %v3852_v52  ;;  %4070 = vmatpush.msrb.mxu2 %v7908_v37  ;;  %v3864_v52 = vmul.f32 %v3863_v58, %v10347_v56  ;;  %v7939_v56 = vld [vmem:[%s11885_s7 + $0x718] sm:$0xff]  ;;  %v8325_v37 = vld [vmem:[%s11886_s8 + $0x31] ss:$0 sm:$0xff] }
0x11f6   :  { %v3847_v29 = vsel %vm3846_vm5, %v10369_v8, %v3845_v14  ;;  %v2639_v61 = vmul.f32 0.5, %v2638_v18  ;;  %v3898_v14 = vperm.slane %v10192_v19, 7  ;;  %v7946_v19 = vld [vmem:[%s11885_s7 + $0x738] sm:$0xff] }
0x11f7   :  { %v3850_v2 = vsel %vm3848_vm6, %v3849_v40, %v3847_v29  ;;  %v3854_v60 = vmul.f32 0.5, %v3853_v28 }
0x11f8   :  { %v10441_v46 = vadd.f32 1e-06, %v3850_v2  ;;  %v2640_v6 = vsub.f32 1.5, %v2639_v61 }
0x11f9   :  { %v3855_v35 = vsub.f32 1.5, %v3854_v60 }
0x11fa   :  { %8504 = vrcp.f32 %v10441_v46  ;;  %v2641_v4 = vmul.f32 %v8501_v47, %v2640_v6  ;;  %v3879_v49 = vand.u32 2147483648, %v10441_v46  ;;  %v3877_v48 = vand.u32 2147483647, %v10441_v46 }
0x11fb   :  { %8506 = vrcp.f32 %v10439_v0  ;;  %v3856_v8 = vmul.f32 %v8503_v22, %v3855_v35  ;;  %vm3873_vm13 = vweird.f32 %v10441_v46 }
0x11fc   :  { %v2642_v53 = vmul.f32 %v2641_v4, %v10372_v1  ;;  %v3880_v9 = vor.u32 1.1754944e-38, %v3879_v49  ;;  %vm3878_vm15 = vcmp.eq.f32.partialorder %v3877_v48, 8.507059e+37 }
0x11fd   :  { %v3857_v21 = vmul.f32 %v3856_v8, %v10375_v34  ;;  %v7945_v8 = vld [vmem:[%s11885_s7 + $0x730] sm:$0xff] }
0x11fe   :  { %v2644_v54 = vsel %vm2643_vm7, %v10372_v1, %v2642_v53  ;;  %vm2658_vm7 = vweird.f32 %v10439_v0 }
0x11ff   :  { %v3859_v45 = vsel %vm3858_vm8, %v10375_v34, %v3857_v21  ;;  %v2647_v31 = vsel %vm2645_vm10, %v2646_v23, %v2644_v54  ;;  %v7937_v21 = vld [vmem:[%s11885_s7 + $0x708] sm:$0xff]  ;;  %v2648_v54 = vperm.slane %v10540_v42, 6 }
0x1200   :  { %v8505_v41 = vpop.eup %8504  ;;  %v10503_v38 = vadd.f32 1e-06, %v2647_v31  ;;  %v3862_v1 = vsel %vm3860_vm11, %v3861_v5, %v3859_v45  ;;  %v7944_v23 = vld [vmem:[%s11885_s7 + $0x728] sm:$0xff]  ;;  %v7936_v31 = vld [vmem:[%s11885_s7 + $0x700] sm:$0xff]  ;;  %vm2663_vm11 = vcmp.eq.f32.partialorder %v2662_v16, 8.507059e+37 }
0x1201   :  { %v10505_v39 = vpop.eup %8506  ;;  %v3869_v43 = vmul.f32 %v8505_v41, %v10441_v46  ;;  %v3867_v44 = vadd.f32 1e-06, %v3862_v1  ;;  %vm3874_vm12 = vweird.f32 %v8505_v41  ;;  %v7958_v5 = vld [vmem:[%s11885_s7 + $0x768] sm:$0xff]  ;;  %v2665_v1 = vor.u32 1.1754944e-38, %v2664_v15 }
0x1202   :  { %8508 = vrcp.f32 %v10503_v38  ;;  %v2654_v34 = vmul.f32 %v10505_v39, %v10439_v0  ;;  %vm3875_vm14 = vmor %vm3873_vm13, %vm3874_vm12  ;;  %vm2659_vm4 = vweird.f32 %v10505_v39  ;;  %v2679_v58 = vand.u32 2147483648, %v10503_v38 }
0x1203   :  { %v3870_v47 = vsub.f32 1.0, %v3869_v43  ;;  %8510 = vrcp.f32 %v3867_v44  ;;  %v3894_v46 = vand.u32 2147483648, %v3867_v44  ;;  %v3892_v35 = vand.u32 2147483647, %v3867_v44  ;;  %vm10576_vm10 = vmor %vm2658_vm7, %vm2659_vm4 }
0x1204   :  { %v2655_v50 = vsub.f32 1.0, %v2654_v34  ;;  %vm3888_vm5 = vweird.f32 %v3867_v44  ;;  %v2649_v34 = vmul.f32 %v2648_v54, %v10337_v30  ;;  %vm2673_vm13 = vweird.f32 %v10503_v38 }
0x1205   :  { %v3871_v59 = vmul.f32 %v8505_v41, %v3870_v47  ;;  %v3895_v53 = vor.u32 1.1754944e-38, %v3894_v46  ;;  %vm3893_vm8 = vcmp.eq.f32.partialorder %v3892_v35, 8.507059e+37  ;;  %v7957_v47 = vld [vmem:[%s11885_s7 + $0x760] sm:$0xff]  ;;  %v2677_v30 = vand.u32 2147483647, %v10503_v38 }
0x1206   :  { %v2656_v29 = vmul.f32 %v10505_v39, %v2655_v50  ;;  %v2680_v50 = vor.u32 1.1754944e-38, %v2679_v58  ;;  %v8326_v35 = vld [vmem:[%s11886_s8 + $0x36] ss:$0 sm:$0xff]  ;;  %v8332_v58 = vld [vmem:[%s11886_s8 + $0x38] ss:$0 sm:$0xff] }
0x1207   :  { %v3872_v22 = vadd.f32 %v8505_v41, %v3871_v59  ;;  %v2683_v59 = vperm.slane %v10540_v42, 7 }
0x1208   :  { %v10515_v10 = vpop.eup %8508  ;;  %v2657_v4 = vadd.f32 %v10505_v39, %v2656_v29 }
0x1209   :  { %v8511_v51 = vpop.eup %8510  ;;  %v3876_v55 = vsel %vm3875_vm14, %v8505_v41, %v3872_v22  ;;  %v2669_v61 = vmul.f32 %v10515_v10, %v10503_v38  ;;  %v7943_v41 = vld [vmem:[%s11885_s7 + $0x720] sm:$0xff]  ;;  %vm2674_vm12 = vweird.f32 %v10515_v10 }
0x120a   :  { %v3881_v18 = vsel %vm3878_vm15, %v3880_v9, %v3876_v55  ;;  %v3884_v40 = vmul.f32 %v8511_v51, %v3867_v44  ;;  %vm3889_vm1 = vweird.f32 %v8511_v51  ;;  %v2661_v7 = vsel %vm10576_vm10, %v10505_v39, %v2657_v4  ;;  %v7950_v44 = vld [vmem:[%s11885_s7 + $0x740] sm:$0xff]  ;;  %vm2675_vm14 = vmor %vm2673_vm13, %vm2674_vm12  ;;  %v8322_v4 = vld [vmem:[%s11886_s8 + $0x32] ss:$0 sm:$0xff] }
0x120b   :  { %v3882_v28 = vmul.f32 %v3881_v18, %v3864_v52  ;;  %v2670_v20 = vsub.f32 1.0, %v2669_v61  ;;  %vm10554_vm6 = vmor %vm3888_vm5, %vm3889_vm1  ;;  %v2666_v39 = vsel %vm2663_vm11, %v2665_v1, %v2661_v7  ;;  %vm2678_vm15 = vcmp.eq.f32.partialorder %v2677_v30, 8.507059e+37 }
0x120c   :  { %v3885_v2 = vsub.f32 1.0, %v3884_v40  ;;  %v2667_v48 = vmul.f32 %v2666_v39, %v2649_v34  ;;  %v2650_v52 = vmul.f32 %v2648_v54, %v10354_v24 }
0x120d   :  { %v3899_v60 = vadd.f32 %v3898_v14, %v3882_v28  ;;  %v2671_v25 = vmul.f32 %v10515_v10, %v2670_v20  ;;  %v8323_v20 = vld [vmem:[%s11886_s8 + $0x33] ss:$0 sm:$0xff] }
0x120e   :  { %v3886_v6 = vmul.f32 %v8511_v51, %v3885_v2  ;;  %v10615_v9 = vadd.f32 %v2683_v59, %v2667_v48 }
0x120f   :  { %7885 = vmatmul.msk.f32.vlgmr.msra.gmra.mxu2 %vm113_vm3, %v3899_v60  ;;  %7892 = vmatmul.msk.f32.vlgmr.msra.gmra.mxu3 %vm113_vm3, %v3899_v60  ;;  %v2672_v49 = vadd.f32 %v10515_v10, %v2671_v25 }
0x1210   :  { %7899 = vmatmul.msk.f32.vlgmr.msra.gmra.mxu0 %vm113_vm3, %v3899_v60  ;;  %7906 = vmatmul.msk.f32.vlgmr.msra.gmra.mxu1 %vm113_vm3, %v3899_v60  ;;  %v3887_v36 = vadd.f32 %v8511_v51, %v3886_v6 }
0x1211   :  { %4199 = vmatpush.msra.mxu2 %v7939_v56  ;;  %4232 = vmatpush.msra.mxu3 %v7946_v19  ;;  %v2676_v22 = vsel %vm2675_vm14, %v10515_v10, %v2672_v49  ;;  %v8327_v56 = vld [vmem:[%s11886_s8 + $0x37] ss:$0 sm:$0xff] }
0x1212   :  { %v3891_v33 = vsel %vm10554_vm6, %v8511_v51, %v3887_v36  ;;  %4265 = vmatpush.msra.mxu0 %v7953_v3  ;;  %4298 = vmatpush.msra.mxu1 %v7960_v26  ;;  %v2681_v51 = vsel %vm2678_vm15, %v2680_v50, %v2676_v22  ;;  %v8328_v36 = vld [vmem:[%s11886_s8 + $0x34] ss:$0 sm:$0xff] }
0x1213   :  { %v3896_v0 = vsel %vm3893_vm8, %v3895_v53, %v3891_v33  ;;  %4200 = vmatpush.msra.mxu2 %v7938_v12  ;;  %4233 = vmatpush.msra.mxu3 %v7945_v8  ;;  %v2682_v38 = vmul.f32 %v2681_v51, %v2650_v52  ;;  %v8329_v12 = vld [vmem:[%s11886_s8 + $0x35] ss:$0 sm:$0xff] }
0x1214   :  { %v3897_v45 = vmul.f32 %v3896_v0, %v3865_v13  ;;  %4266 = vmatpush.msra.mxu0 %v7952_v11  ;;  %4299 = vmatpush.msra.mxu1 %v7959_v63 }
0x1215   :  { %4201 = vmatpush.msra.mxu2 %v7937_v21  ;;  %4234 = vmatpush.msra.mxu3 %v7944_v23  ;;  %v10626_v10 = vadd.f32 %v2683_v59, %v2682_v38  ;;  %v8324_v23 = vld [vmem:[%s11886_s8 + $0x30] ss:$0 sm:$0xff]  ;;  %v8333_v59 = vld [vmem:[%s11886_s8 + $0x39] ss:$0 sm:$0xff] }
0x1216   :  { %v3900_v43 = vadd.f32 %v3898_v14, %v3897_v45  ;;  %4267 = vmatpush.msra.mxu0 %v7951_v57  ;;  %4300 = vmatpush.msra.mxu1 %v7958_v5  ;;  %v8330_v45 = vld [vmem:[%s11886_s8 + $0x3a] ss:$0 sm:$0xff] }
0x1217   :  { %4202 = vmatpush.msra.mxu2 %v7936_v31  ;;  %4235 = vmatpush.msra.mxu3 %v7943_v41  ;;  %v8331_v31 = vld [vmem:[%s11886_s8 + $0x3b] ss:$0 sm:$0xff] }
0x1218   :  { %7886 = vmatmul.msk.f32.gmra.mxu2 %vm113_vm3, %v3900_v43  ;;  %7893 = vmatmul.msk.f32.gmra.mxu3 %vm113_vm3, %v3900_v43 }
0x1219   :  { %7900 = vmatmul.msk.f32.gmra.mxu0 %vm113_vm3, %v3900_v43  ;;  %7907 = vmatmul.msk.f32.gmra.mxu1 %vm113_vm3, %v3900_v43 }
0x121a   :  { %4268 = vmatpush.msra.mxu0 %v7950_v44  ;;  %4301 = vmatpush.msra.mxu1 %v7957_v47 }
0x1220   :  { %7913 = vmatmul.msk.f32.vlgmr.msrb.gmra.mxu2 %vm113_vm3, %v10615_v9  ;;  %7920 = vmatmul.msk.f32.vlgmr.msrb.gmra.mxu3 %vm113_vm3, %v10615_v9 }
0x1221   :  { %7927 = vmatmul.msk.f32.vlgmr.msrb.gmra.mxu0 %vm113_vm3, %v10615_v9  ;;  %7934 = vmatmul.msk.f32.vlgmr.msrb.gmra.mxu1 %vm113_vm3, %v10615_v9 }
0x1228   :  { %7914 = vmatmul.msk.f32.gmra.mxu2 %vm113_vm3, %v10626_v10  ;;  %7921 = vmatmul.msk.f32.gmra.mxu3 %vm113_vm3, %v10626_v10 }
0x1229   :  { %7928 = vmatmul.msk.f32.gmra.mxu0 %vm113_vm3, %v10626_v10  ;;  %7935 = vmatmul.msk.f32.gmra.mxu1 %vm113_vm3, %v10626_v10 }
0x1230   :  { %7941 = vmatmul.msk.f32.vlgmr.msra.gmra.mxu2 %vm113_vm3, %v10615_v9  ;;  %7948 = vmatmul.msk.f32.vlgmr.msra.gmra.mxu3 %vm113_vm3, %v10615_v9 }
0x1231   :  { %7955 = vmatmul.msk.f32.vlgmr.msra.gmra.mxu0 %vm113_vm3, %v10615_v9  ;;  %7962 = vmatmul.msk.f32.vlgmr.msra.gmra.mxu1 %vm113_vm3, %v10615_v9 }
0x1238   :  { %7942 = vmatmul.msk.f32.gmra.mxu2 %vm113_vm3, %v10626_v10  ;;  %7949 = vmatmul.msk.f32.gmra.mxu3 %vm113_vm3, %v10626_v10 }
0x1239   :  { %7956 = vmatmul.msk.f32.gmra.mxu0 %vm113_vm3, %v10626_v10  ;;  %7963 = vmatmul.msk.f32.gmra.mxu1 %vm113_vm3, %v10626_v10 }
0x128d   :  { %v4000_v24 = vpop.f32.mrf.mxu0  ;;  %v4033_v55 = vpop.f32.mrf.mxu1 }
0x128e   :  { %v4001_v63 = vadd.f32 %v8322_v4, %v4000_v24  ;;  %v4034_v16 = vadd.f32 %v8323_v20, %v4033_v55 }
0x1292   :  { %v3934_v14 = vpop.f32.mrf.mxu2  ;;  %v3967_v18 = vpop.f32.mrf.mxu3 }
0x1293   :  { %v3935_v5 = vadd.f32 %v8324_v23, %v3934_v14  ;;  %v3968_v54 = vadd.f32 %v8325_v37, %v3967_v18 }
0x1296   :  { %v4003_v40 = vpop.f32.mrf.mxu0  ;;  %v4036_v28 = vpop.f32.mrf.mxu1 }
0x1297   :  { %v4004_v41 = vadd.f32 %v8322_v4, %v4003_v40  ;;  %v4037_v1 = vadd.f32 %v8323_v20, %v4036_v28 }
0x129b   :  { %v3937_v29 = vpop.f32.mrf.mxu2  ;;  %v3970_v61 = vpop.f32.mrf.mxu3 }
0x129c   :  { %v3938_v48 = vadd.f32 %v8324_v23, %v3937_v29  ;;  %v3971_v30 = vadd.f32 %v8325_v37, %v3970_v61  ;;  %v59_v61 = vld [vmem:[%s11882_s4] sm:$0xff] }
0x129e   :  { %v4138_v2 = vpop.f32.mrf.mxu0  ;;  %v4171_v60 = vpop.f32.mrf.mxu1 }
0x129f   :  { %v4139_v8 = vadd.f32 %v8326_v35, %v4138_v2  ;;  %v4172_v13 = vadd.f32 %v8327_v56, %v4171_v60 }
0x12a3   :  { %v4072_v46 = vpop.f32.mrf.mxu2  ;;  %v4105_v6 = vpop.f32.mrf.mxu3 }
0x12a4   :  { %v4073_v0 = vadd.f32 %v8328_v36, %v4072_v46  ;;  %v4106_v57 = vadd.f32 %v8329_v12, %v4105_v6 }
0x12a6   :  { %v4141_v19 = vpop.f32.mrf.mxu0  ;;  %v4174_v3 = vpop.f32.mrf.mxu1 }
0x12a7   :  { %v4142_v26 = vadd.f32 %v8326_v35, %v4141_v19  ;;  %v4175_v42 = vadd.f32 %v8327_v56, %v4174_v3 }
0x12a9   :  { %7972 = vmatpush.xpose.msk.msrb.mxu0 %vm603_vm2, %v4142_v26  ;;  %7976 = vmatpush.xpose.msk.msrb.mxu1 %vm603_vm2, %v4175_v42 }
0x12ab   :  { %v4075_v15 = vpop.f32.mrf.mxu2  ;;  %v4108_v17 = vpop.f32.mrf.mxu3 }
0x12ac   :  { %v4076_v53 = vadd.f32 %v8328_v36, %v4075_v15  ;;  %v4109_v11 = vadd.f32 %v8329_v12, %v4108_v17  ;;  %v60_v36 = vld [vmem:[%s11882_s4 + $0x8] sm:$0xff] }
0x12ad   :  { %7973 = vmatpush.xpose.msk.msrb.mxu0 %vm603_vm2, %v4139_v8  ;;  %7977 = vmatpush.xpose.msk.msrb.mxu1 %vm603_vm2, %v4172_v13 }
0x12ae   :  { %v4270_v33 = vpop.f32.mrf.mxu0  ;;  %v4303_v21 = vpop.f32.mrf.mxu1  ;;  %7964 = vmatpush.xpose.msk.msrb.mxu2 %vm603_vm2, %v4076_v53  ;;  %7968 = vmatpush.xpose.msk.msrb.mxu3 %vm603_vm2, %v4109_v11 }
0x12af   :  { %v4271_v34 = vadd.f32 %v8330_v45, %v4270_v33  ;;  %v4304_v49 = vadd.f32 %v8331_v31, %v4303_v21 }
0x12b0   :  { %7974 = vmatmul.msk.f32.vlgmr.msrb.gmra.mxu0 %vm603_vm2, %v4001_v63  ;;  %7978 = vmatmul.msk.f32.vlgmr.msrb.gmra.mxu1 %vm603_vm2, %v4034_v16 }
0x12b2   :  { %7965 = vmatpush.xpose.msk.msrb.mxu2 %vm603_vm2, %v4073_v0  ;;  %7969 = vmatpush.xpose.msk.msrb.mxu3 %vm603_vm2, %v4106_v57 }
0x12b3   :  { %v4204_v7 = vpop.f32.mrf.mxu2  ;;  %v4237_v25 = vpop.f32.mrf.mxu3 }
0x12b4   :  { %v4205_v38 = vadd.f32 %v8332_v58, %v4204_v7  ;;  %v4238_v24 = vadd.f32 %v8333_v59, %v4237_v25 }
0x12b5   :  { %7966 = vmatmul.msk.f32.vlgmr.msrb.gmra.mxu2 %vm603_vm2, %v3935_v5  ;;  %7970 = vmatmul.msk.f32.vlgmr.msrb.gmra.mxu3 %vm603_vm2, %v3968_v54 }
0x12b6   :  { %v4273_v43 = vpop.f32.mrf.mxu0  ;;  %v4306_v39 = vpop.f32.mrf.mxu1 }
0x12b7   :  { %v4274_v44 = vadd.f32 %v8330_v45, %v4273_v43  ;;  %v4307_v47 = vadd.f32 %v8331_v31, %v4306_v39 }
0x12b8   :  { %7975 = vmatmul.msk.f32.gmra.mxu0 %vm603_vm2, %v4004_v41  ;;  %7979 = vmatmul.msk.f32.gmra.mxu1 %vm603_vm2, %v4037_v1 }
0x12b9   :  { %4735 = vmatpush.msra.mxu0 %v4274_v44  ;;  %4764 = vmatpush.msra.mxu1 %v4307_v47 }
0x12bb   :  { %4736 = vmatpush.msra.mxu0 %v4271_v34  ;;  %4765 = vmatpush.msra.mxu1 %v4304_v49  ;;  %v4207_v22 = vpop.f32.mrf.mxu2  ;;  %v4240_v50 = vpop.f32.mrf.mxu3 }
0x12bc   :  { %v4208_v51 = vadd.f32 %v8332_v58, %v4207_v22  ;;  %v4241_v52 = vadd.f32 %v8333_v59, %v4240_v50 }
0x12bd   :  { %7967 = vmatmul.msk.f32.gmra.mxu2 %vm603_vm2, %v3938_v48  ;;  %7971 = vmatmul.msk.f32.gmra.mxu3 %vm603_vm2, %v3971_v30 }
0x12be   :  { %4677 = vmatpush.msra.mxu2 %v4208_v51  ;;  %4706 = vmatpush.msra.mxu3 %v4241_v52 }
0x12c0   :  { %4678 = vmatpush.msra.mxu2 %v4205_v38  ;;  %4707 = vmatpush.msra.mxu3 %v4238_v24 }
0x132d   :  { %v4408_v55 = vpop.f32.mrf.mxu0  ;;  %v4443_v14 = vpop.f32.mrf.mxu1 }
0x132e   :  { %v4453_v46 = vmul.f32 0.35355338, %v4408_v55  ;;  %v4455_v63 = vmul.f32 0.35355338, %v4443_v14 }
0x1330   :  { %v4461_v3 = vadd.f32 %v4453_v46, %v59_v61  ;;  %v4463_v21 = vadd.f32 %v4455_v63, %v59_v61 }
0x1332   :  { %v4477_v13 = vsel %vm79_vm0, %v4461_v3, -inf  ;;  %v4483_v0 = vsel %vm79_vm0, %v4463_v21, -inf }
0x1335   :  { %v4411_v4 = vpop.f32.mrf.mxu0  ;;  %v4446_v20 = vpop.f32.mrf.mxu1 }
0x1336   :  { %v4454_v15 = vmul.f32 0.35355338, %v4411_v4  ;;  %v4456_v17 = vmul.f32 0.35355338, %v4446_v20 }
0x1338   :  { %v4338_v18 = vpop.f32.mrf.mxu2  ;;  %v4373_v40 = vpop.f32.mrf.mxu3  ;;  %v4464_v16 = vadd.f32 %v4456_v17, %v60_v36  ;;  %v4462_v33 = vadd.f32 %v4454_v15, %v60_v36 }
0x1339   :  { %v4449_v28 = vmul.f32 0.35355338, %v4338_v18  ;;  %v4451_v29 = vmul.f32 0.35355338, %v4373_v40 }
0x133a   :  { %v4486_v23 = vsel %vm79_vm0, %v4464_v16, -inf  ;;  %v4480_v37 = vsel %vm79_vm0, %v4462_v33, -inf }
0x133b   :  { %v4459_v2 = vadd.f32 %v4451_v29, %v59_v61  ;;  %v4457_v60 = vadd.f32 %v4449_v28, %v59_v61 }
0x133d   :  { %v4471_v6 = vsel %vm79_vm0, %v4459_v2, -inf  ;;  %v4465_v35 = vsel %vm79_vm0, %v4457_v60, -inf }
0x133e   :  { %4472 = vmax.xlane.f32.xlu2 %v4471_v6  ;;  %4466 = vmax.xlane.f32.xlu0 %v4465_v35 }
0x1340   :  { %v4341_v56 = vpop.f32.mrf.mxu2  ;;  %v4376_v19 = vpop.f32.mrf.mxu3 }
0x1341   :  { %v4450_v26 = vmul.f32 0.35355338, %v4341_v56  ;;  %v4452_v42 = vmul.f32 0.35355338, %v4376_v19 }
0x1343   :  { %v4460_v12 = vadd.f32 %v4452_v42, %v60_v36  ;;  %v4458_v8 = vadd.f32 %v4450_v26, %v60_v36 }
0x1345   :  { %v4474_v53 = vsel %vm79_vm0, %v4460_v12, -inf  ;;  %v4468_v11 = vsel %vm79_vm0, %v4458_v8, -inf }
0x1346   :  { %4478 = vmax.xlane.f32.xlu2 %v4477_v13  ;;  %4475 = vmax.xlane.f32.xlu0 %v4474_v53 }
0x1347   :  { %4469 = vmax.xlane.f32.xlu1 %v4468_v11 }
0x134e   :  { %4487 = vmax.xlane.f32.xlu2 %v4486_v23  ;;  %4481 = vmax.xlane.f32.xlu0 %v4480_v37 }
0x134f   :  { %4484 = vmax.xlane.f32.xlu1 %v4483_v0 }
0x13b1   :  { %v4473_v57 = vpop.xlane.xlu2 %4472  ;;  %v4467_v5 = vpop.xlane.xlu0 %4466 }
0x13b2   :  { %v4491_v54 = vsub.f32 %v4459_v2, %v4473_v57  ;;  %v4489_v7 = vsub.f32 %v4457_v60, %v4467_v5 }
0x13b4   :  { %v4501_v25 = vmul.f32 1.442695, %v4491_v54  ;;  %v4497_v45 = vmul.f32 1.442695, %v4489_v7 }
0x13b6   :  { %8512 = vpow2.f32 %v4501_v25 }
0x13b7   :  { %8514 = vpow2.f32 %v4497_v45 }
0x13b9   :  { %v4479_v31 = vpop.xlane.xlu2 %4478  ;;  %v4476_v41 = vpop.xlane.xlu0 %4475 }
0x13ba   :  { %v4493_v1 = vsub.f32 %v4461_v3, %v4479_v31  ;;  %v4492_v43 = vsub.f32 %v4460_v12, %v4476_v41  ;;  %v4470_v39 = vpop.xlane.xlu1 %4469 }
0x13bb   :  { %v4490_v44 = vsub.f32 %v4458_v8, %v4470_v39  ;;  %v7988_v39 = vld [vmem:[%s11887_s9 + $0x80] sm:$0xff] }
0x13bc   :  { %v10718_v47 = vpop.eup %8512  ;;  %v4505_v34 = vmul.f32 1.442695, %v4493_v1  ;;  %v4503_v49 = vmul.f32 1.442695, %v4492_v43  ;;  %4796 = vmatpush.msrb.mxu2 %v7988_v39 }
0x13bd   :  { %v10720_v58 = vpop.eup %8514  ;;  %v4499_v59 = vmul.f32 1.442695, %v4490_v44  ;;  %v4519_v48 = vsel %vm79_vm0, %v10718_v47, 0.0  ;;  %v7991_v44 = vld [vmem:[%s11887_s9 + $0x88] sm:$0xff] }
0x13be   :  { %8516 = vpow2.f32 %v4505_v34  ;;  %4520 = vadd.xlane.f32.xlu0 %v4519_v48  ;;  %v4513_v30 = vsel %vm79_vm0, %v10720_v58, 0.0  ;;  %4830 = vmatpush.msrb.mxu3 %v7991_v44 }
0x13bf   :  { %8518 = vpow2.f32 %v4503_v49  ;;  %4514 = vadd.xlane.f32.xlu1 %v4513_v30 }
0x13c0   :  { %8520 = vpow2.f32 %v4499_v59 }
0x13c1   :  { %v4488_v22 = vpop.xlane.xlu2 %4487  ;;  %v4482_v50 = vpop.xlane.xlu0 %4481 }
0x13c2   :  { %v4496_v51 = vsub.f32 %v4464_v16, %v4488_v22  ;;  %v4494_v52 = vsub.f32 %v4462_v33, %v4482_v50  ;;  %v4485_v38 = vpop.xlane.xlu1 %4484 }
0x13c3   :  { %v4495_v24 = vsub.f32 %v4463_v21, %v4485_v38 }
0x13c4   :  { %v10726_v55 = vpop.eup %8516  ;;  %v4511_v14 = vmul.f32 1.442695, %v4496_v51  ;;  %v4507_v18 = vmul.f32 1.442695, %v4494_v52 }
0x13c5   :  { %v10728_v40 = vpop.eup %8518  ;;  %v4509_v28 = vmul.f32 1.442695, %v4495_v24  ;;  %v4525_v29 = vsel %vm79_vm0, %v10726_v55, 0.0 }
0x13c6   :  { %v10732_v61 = vpop.eup %8520  ;;  %8522 = vpow2.f32 %v4511_v14  ;;  %4526 = vadd.xlane.f32.xlu0 %v4525_v29  ;;  %v4522_v2 = vsel %vm79_vm0, %v10728_v40, 0.0 }
0x13c7   :  { %8524 = vpow2.f32 %v4507_v18  ;;  %4523 = vadd.xlane.f32.xlu1 %v4522_v2  ;;  %v4516_v60 = vsel %vm79_vm0, %v10732_v61, 0.0 }
0x13c8   :  { %8526 = vpow2.f32 %v4509_v28  ;;  %4517 = vadd.xlane.f32.xlu2 %v4516_v60 }
0x13cc   :  { %v10738_v46 = vpop.eup %8522 }
0x13cd   :  { %v10740_v6 = vpop.eup %8524  ;;  %v4534_v35 = vsel %vm79_vm0, %v10738_v46, 0.0 }
0x13ce   :  { %v10744_v56 = vpop.eup %8526  ;;  %4535 = vadd.xlane.f32.xlu0 %v4534_v35  ;;  %v4528_v19 = vsel %vm79_vm0, %v10740_v6, 0.0 }
0x13cf   :  { %4529 = vadd.xlane.f32.xlu1 %v4528_v19  ;;  %v4531_v3 = vsel %vm79_vm0, %v10744_v56, 0.0 }
0x13d0   :  { %4532 = vadd.xlane.f32.xlu2 %v4531_v3 }
0x1431   :  { %v4521_v26 = vpop.xlane.xlu0 %4520 }
0x1432   :  { %8528 = vrcp.f32 %v4521_v26  ;;  %v4515_v42 = vpop.xlane.xlu1 %4514  ;;  %v4576_v17 = vand.u32 2147483647, %v4521_v26  ;;  %v4578_v11 = vand.u32 2147483648, %v4521_v26  ;;  %vm4572_vm5 = vweird.f32 %v4521_v26 }
0x1433   :  { %8530 = vrcp.f32 %v4515_v42  ;;  %v4546_v16 = vand.u32 2147483647, %v4515_v42  ;;  %v4548_v21 = vand.u32 2147483648, %v4515_v42  ;;  %vm4542_vm6 = vweird.f32 %v4515_v42 }
0x1434   :  { %vm4577_vm8 = vcmp.eq.f32.partialorder %v4576_v17, 8.507059e+37  ;;  %v4579_v5 = vor.u32 1.1754944e-38, %v4578_v11 }
0x1435   :  { %vm10763_vm10 = vcmp.eq.f32.partialorder %v4546_v16, 8.507059e+37  ;;  %v4549_v41 = vor.u32 1.1754944e-38, %v4548_v21 }
0x1438   :  { %v8529_v4 = vpop.eup %8528 }
0x1439   :  { %v8531_v20 = vpop.eup %8530  ;;  %v4568_v36 = vmul.f32 %v8529_v4, %v4521_v26  ;;  %v10750_v12 = vpop.xlane.xlu0 %4526  ;;  %vm4573_vm1 = vweird.f32 %v8529_v4 }
0x143a   :  { %v4538_v8 = vmul.f32 %v8531_v20, %v4515_v42  ;;  %8532 = vrcp.f32 %v10750_v12  ;;  %v10753_v13 = vpop.xlane.xlu1 %4523  ;;  %vm4543_vm4 = vweird.f32 %v8531_v20  ;;  %vm10759_vm7 = vmor %vm4572_vm5, %vm4573_vm1  ;;  %vm4602_vm12 = vweird.f32 %v10750_v12 }
0x143b   :  { %v4569_v15 = vsub.f32 1.0, %v4568_v36  ;;  %v10755_v53 = vpop.xlane.xlu2 %4517  ;;  %8534 = vrcp.f32 %v10753_v13  ;;  %vm10771_vm11 = vmor %vm4542_vm6, %vm4543_vm4  ;;  %v4608_v48 = vand.u32 2147483648, %v10750_v12  ;;  %v4606_v14 = vand.u32 2147483647, %v10750_v12 }
0x143c   :  { %v4539_v63 = vsub.f32 1.0, %v4538_v8  ;;  %8536 = vrcp.f32 %v10755_v53  ;;  %vm4557_vm14 = vweird.f32 %v10755_v53  ;;  %v4561_v2 = vand.u32 2147483647, %v10755_v53 }
0x143d   :  { %v4570_v33 = vmul.f32 %v8529_v4, %v4569_v15  ;;  %v4563_v60 = vand.u32 2147483648, %v10755_v53  ;;  %v4609_v19 = vor.u32 1.1754944e-38, %v4608_v48  ;;  %v4593_v42 = vand.u32 2147483648, %v10753_v13 }
0x143e   :  { %v4540_v23 = vmul.f32 %v8531_v20, %v4539_v63  ;;  %vm4607_vm5 = vcmp.eq.f32.partialorder %v4606_v14, 8.507059e+37  ;;  %v4591_v36 = vand.u32 2147483647, %v10753_v13 }
0x143f   :  { %v4571_v37 = vadd.f32 %v8529_v4, %v4570_v33  ;;  %v4594_v33 = vor.u32 1.1754944e-38, %v4593_v42 }
0x1440   :  { %v8533_v0 = vpop.eup %8532  ;;  %v4541_v54 = vadd.f32 %v8531_v20, %v4540_v23 }
0x1441   :  { %v10767_v25 = vpop.eup %8534  ;;  %v4575_v45 = vsel %vm10759_vm7, %v8529_v4, %v4571_v37  ;;  %v4598_v1 = vmul.f32 %v8533_v0, %v10750_v12  ;;  %v10777_v43 = vpop.xlane.xlu0 %4535  ;;  %vm4603_vm13 = vweird.f32 %v8533_v0  ;;  %v4564_v12 = vor.u32 1.1754944e-38, %v4563_v60 }
0x1442   :  { %v8537_v34 = vpop.eup %8536  ;;  %v4580_v49 = vsel %vm4577_vm8, %v4579_v5, %v4575_v45  ;;  %v4545_v59 = vsel %vm10771_vm11, %v8531_v20, %v4541_v54  ;;  %v4583_v30 = vmul.f32 %v10767_v25, %v10753_v13  ;;  %8538 = vrcp.f32 %v10777_v43  ;;  %vm4604_vm1 = vmor %vm4602_vm12, %vm4603_vm13 }
0x1443   :  { %v4581_v22 = vmul.f32 %v10718_v47, %v4580_v49  ;;  %v4550_v50 = vsel %vm10763_vm10, %v4549_v41, %v4545_v59  ;;  %v4599_v51 = vsub.f32 1.0, %v4598_v1  ;;  %v4553_v52 = vmul.f32 %v8537_v34, %v10755_v53  ;;  %v10794_v38 = vpop.xlane.xlu2 %4532  ;;  %v10800_v47 = vpop.xlane.xlu1 %4529 }
0x1444   :  { %v4551_v24 = vmul.f32 %v10720_v58, %v4550_v50  ;;  %v4584_v18 = vsub.f32 1.0, %v4583_v30  ;;  %8540 = vrcp.f32 %v10794_v38  ;;  %vm4558_vm15 = vweird.f32 %v8537_v34 }
0x1445   :  { %v4600_v28 = vmul.f32 %v8533_v0, %v4599_v51  ;;  %v4554_v29 = vsub.f32 1.0, %v4553_v52  ;;  %7982 = vmatmul.msk.f32.vlgmr.msra.gmra.mxu3 %vm79_vm0, %v4581_v22  ;;  %vm4588_vm4 = vweird.f32 %v10767_v25  ;;  %8542 = vrcp.f32 %v10800_v47  ;;  %vm4559_vm6 = vmor %vm4557_vm14, %vm4558_vm15 }
0x1446   :  { %v4585_v58 = vmul.f32 %v10767_v25, %v4584_v18  ;;  %7980 = vmatmul.msk.f32.vlgmr.msra.gmra.mxu2 %vm79_vm0, %v4551_v24  ;;  %vm4587_vm7 = vweird.f32 %v10753_v13  ;;  %vm4562_vm8 = vcmp.eq.f32.partialorder %v4561_v2, 8.507059e+37  ;;  %vm4592_vm11 = vcmp.eq.f32.partialorder %v4591_v36, 8.507059e+37 }
0x1447   :  { %v4601_v35 = vadd.f32 %v8533_v0, %v4600_v28  ;;  %v4555_v3 = vmul.f32 %v8537_v34, %v4554_v29  ;;  %vm4589_vm10 = vmor %vm4587_vm7, %vm4588_vm4  ;;  %v4636_v54 = vand.u32 2147483647, %v10794_v38  ;;  %v4638_v7 = vand.u32 2147483648, %v10794_v38 }
0x1448   :  { %v4586_v26 = vadd.f32 %v10767_v25, %v4585_v58  ;;  %v10815_v8 = vpop.eup %8538  ;;  %vm4632_vm13 = vweird.f32 %v10794_v38  ;;  %v4623_v41 = vand.u32 2147483648, %v10800_v47  ;;  %v4621_v44 = vand.u32 2147483647, %v10800_v47 }
0x1449   :  { %v4605_v4 = vsel %vm4604_vm1, %v8533_v0, %v4601_v35  ;;  %v4556_v20 = vadd.f32 %v8537_v34, %v4555_v3  ;;  %v4643_v11 = vmul.f32 %v10815_v8, %v10777_v43  ;;  %vm4637_vm1 = vcmp.eq.f32.partialorder %v4636_v54, 8.507059e+37  ;;  %v10867_v3 = vld [vmem:[%s11890_s12 + $0x10] sm:$0xff] }
0x144a   :  { %v4610_v15 = vsel %vm4607_vm5, %v4609_v19, %v4605_v4  ;;  %v8541_v16 = vpop.eup %8540  ;;  %v4590_v23 = vsel %vm4589_vm10, %v10767_v25, %v4586_v26  ;;  %vm4617_vm4 = vweird.f32 %v10800_v47  ;;  %vm4648_vm5 = vweird.f32 %v10815_v8 }
0x144b   :  { %v4611_v17 = vmul.f32 %v10726_v55, %v4610_v15  ;;  %v4560_v63 = vsel %vm4559_vm6, %v8537_v34, %v4556_v20  ;;  %v4644_v37 = vsub.f32 1.0, %v4643_v11  ;;  %v4628_v53 = vmul.f32 %v8541_v16, %v10794_v38  ;;  %v8543_v55 = vpop.eup %8542 }
0x144c   :  { %v4565_v21 = vsel %vm4562_vm8, %v4564_v12, %v4560_v63  ;;  %v4595_v13 = vsel %vm4592_vm11, %v4594_v33, %v4590_v23  ;;  %v4613_v5 = vmul.f32 %v8543_v55, %v10800_v47  ;;  %vm4633_vm12 = vweird.f32 %v8541_v16 }
0x144d   :  { %v4566_v0 = vmul.f32 %v10732_v61, %v4565_v21  ;;  %7984 = vmatmul.msk.f32.vlgmr.msra.gmra.mxu0 %vm79_vm0, %v4611_v17  ;;  %v4629_v57 = vsub.f32 1.0, %v4628_v53  ;;  %v4596_v25 = vmul.f32 %v10728_v40, %v4595_v13  ;;  %v4645_v45 = vmul.f32 %v10815_v8, %v4644_v37  ;;  %vm4634_vm15 = vmor %vm4632_vm13, %vm4633_vm12 }
0x144e   :  { %v4614_v61 = vsub.f32 1.0, %v4613_v5  ;;  %vm4618_vm14 = vweird.f32 %v8543_v55  ;;  %v4639_v34 = vor.u32 1.1754944e-38, %v4638_v7  ;;  %vm4647_vm6 = vweird.f32 %v10777_v43 }
0x144f   :  { %7981 = vmatmul.msk.f32.gmra.mxu2 %vm79_vm0, %v4566_v0  ;;  %v4630_v31 = vmul.f32 %v8541_v16, %v4629_v57  ;;  %7983 = vmatmul.msk.f32.gmra.mxu3 %vm79_vm0, %v4596_v25  ;;  %v4646_v40 = vadd.f32 %v10815_v8, %v4645_v45  ;;  %v4653_v48 = vand.u32 2147483648, %v10777_v43  ;;  %vm4619_vm7 = vmor %vm4617_vm4, %vm4618_vm14  ;;  %v4624_v22 = vor.u32 1.1754944e-38, %v4623_v41 }
0x1450   :  { %v4615_v39 = vmul.f32 %v8543_v55, %v4614_v61  ;;  %v4651_v50 = vand.u32 2147483647, %v10777_v43  ;;  %vm4622_vm8 = vcmp.eq.f32.partialorder %v4621_v44, 8.507059e+37  ;;  %vm4649_vm10 = vmor %vm4647_vm6, %vm4648_vm5  ;;  %v4804_v26 = vperm.slane %v10867_v3, 3 }
0x1451   :  { %v4631_v1 = vadd.f32 %v8541_v16, %v4630_v31  ;;  %v4650_v14 = vsel %vm4649_vm10, %v10815_v8, %v4646_v40  ;;  %v4654_v18 = vor.u32 1.1754944e-38, %v4653_v48  ;;  %v8001_v40 = vld [vmem:[%s11888_s10 + $0x48] sm:$0xff] }
0x1452   :  { %v4616_v59 = vadd.f32 %v8543_v55, %v4615_v39  ;;  %vm4652_vm11 = vcmp.eq.f32.partialorder %v4651_v50, 8.507059e+37  ;;  %v8002_v39 = vld [vmem:[%s11888_s10 + $0x50] sm:$0xff] }
0x1453   :  { %v4635_v49 = vsel %vm4634_vm15, %v8541_v16, %v4631_v1  ;;  %v4655_v28 = vsel %vm4652_vm11, %v4654_v18, %v4650_v14  ;;  %v8003_v1 = vld [vmem:[%s11888_s10 + $0x58] sm:$0xff] }
0x1454   :  { %v4640_v30 = vsel %vm4637_vm1, %v4639_v34, %v4635_v49  ;;  %v4620_v52 = vsel %vm4619_vm7, %v8543_v55, %v4616_v59  ;;  %v4656_v29 = vmul.f32 %v10738_v46, %v4655_v28  ;;  %5014 = vmatpush.msra.mxu2 %v8003_v1  ;;  %v8000_v49 = vld [vmem:[%s11888_s10 + $0x40] sm:$0xff] }
0x1455   :  { %v4641_v51 = vmul.f32 %v10744_v56, %v4640_v30  ;;  %v4625_v38 = vsel %vm4622_vm8, %v4624_v22, %v4620_v52  ;;  %v7994_v56 = vld [vmem:[%s11887_s9 + $0x90] sm:$0xff] }
0x1456   :  { %v4626_v24 = vmul.f32 %v10740_v6, %v4625_v38  ;;  %4863 = vmatpush.msrb.mxu0 %v7994_v56  ;;  %v7997_v6 = vld [vmem:[%s11887_s9 + $0x98] sm:$0xff]  ;;  %5015 = vmatpush.msra.mxu2 %v8002_v39 }
0x1457   :  { %7986 = vmatmul.msk.f32.vlgmr.msra.gmra.mxu1 %vm79_vm0, %v4641_v51 }
0x1458   :  { %7985 = vmatmul.msk.f32.gmra.mxu0 %vm79_vm0, %v4626_v24  ;;  %4896 = vmatpush.msrb.mxu1 %v7997_v6 }
0x1459   :  { %5016 = vmatpush.msra.mxu2 %v8001_v40 }
0x145b   :  { %5017 = vmatpush.msra.mxu2 %v8000_v49 }
0x145f   :  { %7987 = vmatmul.msk.f32.gmra.mxu1 %vm79_vm0, %v4656_v29 }
0x14c8   :  { %v4709_v43 = vpop.f32.mrf.mxu3 }
0x14c9   :  { %v4680_v47 = vpop.f32.mrf.mxu2  ;;  %7992 = vmatmul.msk.f32.vlgmr.msrb.gmra.mxu3 %vm603_vm2, %v4709_v43 }
0x14ca   :  { %7989 = vmatmul.msk.f32.vlgmr.msrb.gmra.mxu2 %vm603_vm2, %v4680_v47  ;;  %v4738_v2 = vpop.f32.mrf.mxu0 }
0x14cb   :  { %7995 = vmatmul.msk.f32.vlgmr.msrb.gmra.mxu0 %vm603_vm2, %v4738_v2  ;;  %v8013_v2 = vld [vmem:[%s11889_s11 + $0xb8] sm:$0xff] }
0x14cc   :  { %5051 = vmatpush.msra.mxu3 %v8013_v2 }
0x14d2   :  { %v4683_v46 = vpop.f32.mrf.mxu2  ;;  %v4712_v60 = vpop.f32.mrf.mxu3 }
0x14d3   :  { %7990 = vmatmul.msk.f32.gmra.mxu2 %vm603_vm2, %v4683_v46  ;;  %7993 = vmatmul.msk.f32.gmra.mxu3 %vm603_vm2, %v4712_v60  ;;  %v8012_v46 = vld [vmem:[%s11889_s11 + $0xb0] sm:$0xff] }
0x14d4   :  { %v4767_v58 = vpop.f32.mrf.mxu1  ;;  %5052 = vmatpush.msra.mxu3 %v8012_v46 }
0x14d5   :  { %7998 = vmatmul.msk.f32.vlgmr.msrb.gmra.mxu1 %vm603_vm2, %v4767_v58  ;;  %v4741_v35 = vpop.f32.mrf.mxu0  ;;  %v8011_v58 = vld [vmem:[%s11889_s11 + $0xa8] sm:$0xff] }
0x14d6   :  { %7996 = vmatmul.msk.f32.gmra.mxu0 %vm603_vm2, %v4741_v35  ;;  %5053 = vmatpush.msra.mxu3 %v8011_v58 }
0x14dc   :  { %v4770_v19 = vpop.f32.mrf.mxu1 }
0x14dd   :  { %7999 = vmatmul.msk.f32.gmra.mxu1 %vm603_vm2, %v4770_v19  ;;  %v8010_v19 = vld [vmem:[%s11889_s11 + $0xa0] sm:$0xff] }
0x14de   :  { %5054 = vmatpush.msra.mxu3 %v8010_v19 }
0x1548   :  { %v4865_v8 = vpop.f32.mrf.mxu0 }
0x154c   :  { %v4832_v20 = vpop.f32.mrf.mxu3 }
0x154d   :  { %v4798_v42 = vpop.f32.mrf.mxu2 }
0x154e   :  { %v4805_v4 = vadd.f32 %v4804_v26, %v4798_v42 }
0x1550   :  { %v4838_v36 = vadd.f32 %v4832_v20, %v4805_v4  ;;  %v8009_v4 = vld [vmem:[%s11889_s11 + $0x98] sm:$0xff] }
0x1551   :  { %5055 = vmatpush.msra.mxu3 %v8009_v4 }
0x1552   :  { %v4871_v15 = vadd.f32 %v4865_v8, %v4838_v36  ;;  %v4898_v12 = vpop.f32.mrf.mxu1 }
0x1553   :  { %v4868_v37 = vpop.f32.mrf.mxu0 }
0x1554   :  { %v4904_v17 = vadd.f32 %v4898_v12, %v4871_v15 }
0x1556   :  { %v4801_v11 = vpop.f32.mrf.mxu2  ;;  %v10871_v63 = vadd.f32 %v4904_v17, %v10324_v32  ;;  %v4835_v33 = vpop.f32.mrf.mxu3 }
0x1557   :  { %v4806_v16 = vadd.f32 %v4804_v26, %v4801_v11 }
0x1558   :  { %v4908_v21 = vsel %vm113_vm3, %v10871_v63, 0.0 }
0x1559   :  { %v4839_v23 = vadd.f32 %v4835_v33, %v4806_v16  ;;  %4909 = vadd.xlane.f32.xlu2 %v4908_v21  ;;  %v4952_v16 = vperm.slane %v10867_v3, 0 }
0x155a   :  { %v4901_v0 = vpop.f32.mrf.mxu1 }
0x155b   :  { %v4872_v53 = vadd.f32 %v4868_v37, %v4839_v23 }
0x155d   :  { %v4905_v55 = vadd.f32 %v4901_v0, %v4872_v53 }
0x155f   :  { %v10876_v13 = vadd.f32 %v4905_v55, %v10334_v62 }
0x1561   :  { %v4911_v57 = vsel %vm113_vm3, %v10876_v13, 0.0 }
0x1562   :  { %4912 = vadd.xlane.f32.xlu1 %v4911_v57  ;;  %v4987_v57 = vperm.slane %v10867_v3, 1 }
0x15cc   :  { %v4910_v32 = vpop.xlane.xlu2 %4909 }
0x15cd   :  { %v4914_v5 = vmul.f32 %v4910_v32, %v8802_v27 }
0x15cf   :  { %v10882_v54 = vsub.f32 %v10871_v63, %v4914_v5 }
0x15d1   :  { %v4918_v7 = vmul.f32 %v10882_v54, %v10882_v54  ;;  %v4953_v0 = vmul.f32 %v4952_v16, %v10882_v54 }
0x15d3   :  { %v4920_v25 = vsel %vm113_vm3, %v4918_v7, 0.0 }
0x15d4   :  { %4921 = vadd.xlane.f32.xlu0 %v4920_v25 }
0x15d5   :  { %v4913_v45 = vpop.xlane.xlu1 %4912 }
0x15d6   :  { %v4915_v62 = vmul.f32 %v4913_v45, %v8802_v27 }
0x15d8   :  { %v10889_v31 = vsub.f32 %v10876_v13, %v4915_v62 }
0x15da   :  { %v4919_v61 = vmul.f32 %v10889_v31, %v10889_v31  ;;  %v4954_v54 = vmul.f32 %v4952_v16, %v10889_v31  ;;  %v8006_v31 = vld [vmem:[%s11889_s11 + $0x80] sm:$0xff] }
0x15dc   :  { %v4923_v41 = vsel %vm113_vm3, %v4919_v61, 0.0 }
0x15dd   :  { %4924 = vadd.xlane.f32.xlu2 %v4923_v41 }
0x1647   :  { %v4922_v44 = vpop.xlane.xlu0 %4921 }
0x1648   :  { %v4926_v34 = vmul.f32 0.032258064, %v4922_v44 }
0x164a   :  { %8544 = vrsqrt.f32 %v4926_v34  ;;  %vm4935_vm12 = vcmp.eq.f32.partialorder %v4926_v34, inf  ;;  %v4938_v28 = vand.u32 2147483648, %v4926_v34  ;;  %vm4937_vm13 = vcmp.eq.f32.partialorder %v4926_v34, 0.0 }
0x1650   :  { %v8545_v59 = vpop.eup %8544  ;;  %v4925_v48 = vpop.xlane.xlu2 %4924 }
0x1651   :  { %v4929_v30 = vmul.f32 %v8545_v59, %v4926_v34  ;;  %v4927_v22 = vmul.f32 0.032258064, %v4925_v48  ;;  %v8007_v48 = vld [vmem:[%s11889_s11 + $0x88] sm:$0xff] }
0x1653   :  { %v4930_v50 = vmul.f32 %v8545_v59, %v4929_v30  ;;  %8546 = vrsqrt.f32 %v4927_v22  ;;  %vm4947_vm14 = vcmp.eq.f32.partialorder %v4927_v22, inf  ;;  %v4950_v42 = vand.u32 2147483648, %v4927_v22  ;;  %v8655_v30 = vld [vmem:[%s11891_s13] sm:$0xf] }
0x1654   :  { %vm4949_vm15 = vcmp.eq.f32.partialorder %v4927_v22, 0.0 }
0x1655   :  { %v4931_v51 = vmul.f32 0.5, %v4930_v50 }
0x1657   :  { %v4932_v52 = vsub.f32 1.5, %v4931_v51 }
0x1659   :  { %v8547_v38 = vpop.eup %8546  ;;  %v4933_v24 = vmul.f32 %v8545_v59, %v4932_v52  ;;  %v8008_v59 = vld [vmem:[%s11889_s11 + $0x90] sm:$0xff] }
0x165a   :  { %v4941_v14 = vmul.f32 %v8547_v38, %v4927_v22  ;;  %5056 = vmatpush.msra.mxu3 %v8008_v59 }
0x165b   :  { %v4934_v18 = vmul.f32 %v4933_v24, %v4926_v34 }
0x165c   :  { %v4942_v29 = vmul.f32 %v8547_v38, %v4941_v14  ;;  %5057 = vmatpush.msra.mxu3 %v8007_v48 }
0x165d   :  { %v4936_v56 = vsel %vm4935_vm12, %v4926_v34, %v4934_v18  ;;  %v5036_v18 = vperm.slane %v10867_v3, 4 }
0x165e   :  { %v4939_v6 = vsel %vm4937_vm13, %v4938_v28, %v4936_v56  ;;  %v4943_v43 = vmul.f32 0.5, %v4942_v29  ;;  %5058 = vmatpush.msra.mxu3 %v8006_v31 }
0x165f   :  { %v4955_v47 = vadd.f32 1e-06, %v4939_v6 }
0x1660   :  { %v4944_v60 = vsub.f32 1.5, %v4943_v43 }
0x1661   :  { %8548 = vrcp.f32 %v4955_v47  ;;  %v4968_v11 = vand.u32 2147483648, %v4955_v47  ;;  %v4966_v21 = vand.u32 2147483647, %v4955_v47  ;;  %vm4962_vm4 = vweird.f32 %v4955_v47 }
0x1662   :  { %v4945_v35 = vmul.f32 %v8547_v38, %v4944_v60 }
0x1663   :  { %v4969_v37 = vor.u32 1.1754944e-38, %v4968_v11  ;;  %vm4967_vm6 = vcmp.eq.f32.partialorder %v4966_v21, 8.507059e+37  ;;  %v8026_v21 = vld [vmem:[%s11885_s7 + $0x4b8] sm:$0xff] }
0x1664   :  { %v4946_v26 = vmul.f32 %v4945_v35, %v4927_v22  ;;  %5211 = vmatpush.msra.mxu1 %v8026_v21 }
0x1666   :  { %v4948_v20 = vsel %vm4947_vm14, %v4927_v22, %v4946_v26  ;;  %v4995_v22 = vperm.slane %v8655_v30, 2 }
0x1667   :  { %v8549_v36 = vpop.eup %8548  ;;  %v4951_v8 = vsel %vm4949_vm15, %v4950_v42, %v4948_v20 }
0x1668   :  { %v4958_v15 = vmul.f32 %v8549_v36, %v4955_v47  ;;  %v4956_v12 = vadd.f32 1e-06, %v4951_v8  ;;  %vm4963_vm1 = vweird.f32 %v8549_v36 }
0x1669   :  { %vm4964_vm5 = vmor %vm4962_vm4, %vm4963_vm1 }
0x166a   :  { %v4959_v17 = vsub.f32 1.0, %v4958_v15  ;;  %8550 = vrcp.f32 %v4956_v12  ;;  %v4983_v62 = vand.u32 2147483648, %v4956_v12  ;;  %v4981_v41 = vand.u32 2147483647, %v4956_v12 }
0x166b   :  { %vm4977_vm8 = vweird.f32 %v4956_v12 }
0x166c   :  { %v4960_v33 = vmul.f32 %v8549_v36, %v4959_v17  ;;  %v4984_v39 = vor.u32 1.1754944e-38, %v4983_v62  ;;  %vm4982_vm11 = vcmp.eq.f32.partialorder %v4981_v41, 8.507059e+37  ;;  %v8038_v41 = vld [vmem:[%s11885_s7 + $0x4e8] sm:$0xff] }
0x166e   :  { %v4961_v23 = vadd.f32 %v8549_v36, %v4960_v33  ;;  %v8019_v33 = vld [vmem:[%s11885_s7 + $0x498] sm:$0xff] }
0x166f   :  { %5178 = vmatpush.msra.mxu0 %v8019_v33  ;;  %v5112_v33 = vperm.slane %v10867_v3, 5 }
0x1670   :  { %v8551_v53 = vpop.eup %8550  ;;  %v4965_v55 = vsel %vm4964_vm5, %v8549_v36, %v4961_v23  ;;  %v8033_v23 = vld [vmem:[%s11885_s7 + $0x4d8] sm:$0xff] }
0x1671   :  { %v4970_v32 = vsel %vm4967_vm6, %v4969_v37, %v4965_v55  ;;  %v4973_v5 = vmul.f32 %v8551_v53, %v4956_v12  ;;  %vm4978_vm7 = vweird.f32 %v8551_v53  ;;  %5244 = vmatpush.msrb.mxu2 %v8033_v23  ;;  %v8025_v55 = vld [vmem:[%s11885_s7 + $0x4b0] sm:$0xff] }
0x1672   :  { %v4971_v7 = vmul.f32 %v4970_v32, %v4953_v0  ;;  %vm4979_vm10 = vmor %vm4977_vm8, %vm4978_vm7  ;;  %v8018_v0 = vld [vmem:[%s11885_s7 + $0x490] sm:$0xff]  ;;  %5212 = vmatpush.msra.mxu1 %v8025_v55 }
0x1673   :  { %v4974_v25 = vsub.f32 1.0, %v4973_v5  ;;  %5179 = vmatpush.msra.mxu0 %v8018_v0  ;;  %v8039_v5 = vld [vmem:[%s11885_s7 + $0x4f0] sm:$0xff]  ;;  %v5147_v0 = vperm.slane %v10867_v3, 6  ;;  %v8082_v3 = vld [vmem:[%s11885_s7 + $0x5b8] sm:$0xff] }
0x1674   :  { %v4988_v45 = vadd.f32 %v4987_v57, %v4971_v7  ;;  %v8017_v7 = vld [vmem:[%s11885_s7 + $0x488] sm:$0xff] }
0x1675   :  { %v4975_v61 = vmul.f32 %v8551_v53, %v4974_v25  ;;  %v8024_v25 = vld [vmem:[%s11885_s7 + $0x4a8] sm:$0xff]  ;;  %5180 = vmatpush.msra.mxu0 %v8017_v7 }
0x1676   :  { %8004 = vmatmul.msk.f32.vlgmr.msra.gmra.mxu2 %vm113_vm3, %v4988_v45  ;;  %v8031_v45 = vld [vmem:[%s11885_s7 + $0x4c8] sm:$0xff]  ;;  %5213 = vmatpush.msra.mxu1 %v8024_v25 }
0x1677   :  { %v4976_v1 = vadd.f32 %v8551_v53, %v4975_v61 }
0x1679   :  { %v4980_v44 = vsel %vm4979_vm10, %v8551_v53, %v4976_v1  ;;  %v8040_v53 = vld [vmem:[%s11885_s7 + $0x4f8] sm:$0xff] }
0x167a   :  { %v4985_v34 = vsel %vm4982_vm11, %v4984_v39, %v4980_v44  ;;  %5277 = vmatpush.msrb.mxu3 %v8040_v53  ;;  %v8016_v39 = vld [vmem:[%s11885_s7 + $0x480] sm:$0xff] }
0x167b   :  { %v4986_v40 = vmul.f32 %v4985_v34, %v4954_v54  ;;  %v8023_v54 = vld [vmem:[%s11885_s7 + $0x4a0] sm:$0xff]  ;;  %5181 = vmatpush.msra.mxu0 %v8016_v39  ;;  %v8096_v39 = vld [vmem:[%s11885_s7 + $0x5f8] sm:$0xff] }
0x167c   :  { %5278 = vmatpush.msrb.mxu3 %v8039_v5  ;;  %v8030_v44 = vld [vmem:[%s11885_s7 + $0x4c0] sm:$0xff]  ;;  %5214 = vmatpush.msra.mxu1 %v8023_v54 }
0x167d   :  { %v4989_v49 = vadd.f32 %v4987_v57, %v4986_v40  ;;  %v8032_v57 = vld [vmem:[%s11885_s7 + $0x4d0] sm:$0xff]  ;;  %v8037_v40 = vld [vmem:[%s11885_s7 + $0x4e0] sm:$0xff] }
0x167e   :  { %5245 = vmatpush.msrb.mxu2 %v8032_v57  ;;  %5279 = vmatpush.msrb.mxu3 %v8038_v41 }
0x167f   :  { %8005 = vmatmul.msk.f32.gmra.mxu2 %vm113_vm3, %v4989_v49 }
0x1680   :  { %5246 = vmatpush.msrb.mxu2 %v8031_v45  ;;  %5280 = vmatpush.msrb.mxu3 %v8037_v40 }
0x1682   :  { %5247 = vmatpush.msrb.mxu2 %v8030_v44  ;;  %v8074_v44 = vld [vmem:[%s11885_s7 + $0x590] sm:$0xff] }
0x16f9   :  { %v5019_v50 = vpop.f32.mrf.mxu2 }
0x16fa   :  { %v5020_v51 = vadd.f32 %v5019_v50, %v4995_v22 }
0x16fc   :  { %v5025_v52 = vmax.f32 %v5020_v51, 0.0  ;;  %v8047_v51 = vld [vmem:[%s11885_s7 + $0x518] sm:$0xff] }
0x16fd   :  { %5310 = vmatpush.msrb.mxu0 %v8047_v51  ;;  %v8087_v51 = vld [vmem:[%s11885_s7 + $0x5c8] sm:$0xff] }
0x16fe   :  { %8014 = vmatmul.msk.f32.vlgmr.msra.gmra.mxu3 %vm1329_vm9, %v5025_v52  ;;  %v8054_v52 = vld [vmem:[%s11885_s7 + $0x538] sm:$0xff] }
0x16ff   :  { %5343 = vmatpush.msrb.mxu1 %v8054_v52 }
0x1702   :  { %v5022_v38 = vpop.f32.mrf.mxu2 }
0x1703   :  { %v5023_v24 = vadd.f32 %v5022_v38, %v4995_v22  ;;  %v8061_v38 = vld [vmem:[%s11885_s7 + $0x558] sm:$0xff] }
0x1704   :  { %5376 = vmatpush.msra.mxu2 %v8061_v38  ;;  %v8072_v38 = vld [vmem:[%s11885_s7 + $0x580] sm:$0xff] }
0x1705   :  { %v5026_v14 = vmax.f32 %v5023_v24, 0.0  ;;  %v8068_v24 = vld [vmem:[%s11885_s7 + $0x578] sm:$0xff] }
0x1706   :  { %5409 = vmatpush.msra.mxu3 %v8068_v24  ;;  %v8079_v24 = vld [vmem:[%s11885_s7 + $0x5a0] sm:$0xff] }
0x1707   :  { %8015 = vmatmul.msk.f32.gmra.mxu3 %vm1329_vm9, %v5026_v14  ;;  %v8046_v14 = vld [vmem:[%s11885_s7 + $0x510] sm:$0xff] }
0x1708   :  { %5311 = vmatpush.msrb.mxu0 %v8046_v14 }
0x1781   :  { %v5060_v28 = vpop.f32.mrf.mxu3 }
0x1782   :  { %v5061_v29 = vadd.f32 %v5060_v28, %v5036_v18 }
0x1784   :  { %v10943_v56 = vadd.f32 %v5061_v29, %v10871_v63  ;;  %v8060_v29 = vld [vmem:[%s11885_s7 + $0x550] sm:$0xff] }
0x1785   :  { %5377 = vmatpush.msra.mxu2 %v8060_v29 }
0x1786   :  { %v5068_v6 = vsel %vm113_vm3, %v10943_v56, 0.0 }
0x1787   :  { %5069 = vadd.xlane.f32.xlu1 %v5068_v6  ;;  %v8067_v6 = vld [vmem:[%s11885_s7 + $0x570] sm:$0xff] }
0x1788   :  { %5410 = vmatpush.msra.mxu3 %v8067_v6 }
0x178a   :  { %v5063_v43 = vpop.f32.mrf.mxu3 }
0x178b   :  { %v5064_v47 = vadd.f32 %v5063_v43, %v5036_v18  ;;  %v8053_v18 = vld [vmem:[%s11885_s7 + $0x530] sm:$0xff]  ;;  %v8045_v43 = vld [vmem:[%s11885_s7 + $0x508] sm:$0xff] }
0x178c   :  { %5344 = vmatpush.msrb.mxu1 %v8053_v18  ;;  %5312 = vmatpush.msrb.mxu0 %v8045_v43  ;;  %v8086_v18 = vld [vmem:[%s11885_s7 + $0x5c0] sm:$0xff] }
0x178d   :  { %v10948_v2 = vadd.f32 %v5064_v47, %v10876_v13  ;;  %v8052_v47 = vld [vmem:[%s11885_s7 + $0x528] sm:$0xff] }
0x178e   :  { %5345 = vmatpush.msrb.mxu1 %v8052_v47 }
0x178f   :  { %v5071_v46 = vsel %vm113_vm3, %v10948_v2, 0.0 }
0x1790   :  { %5072 = vadd.xlane.f32.xlu0 %v5071_v46  ;;  %v8059_v46 = vld [vmem:[%s11885_s7 + $0x548] sm:$0xff] }
0x1791   :  { %5378 = vmatpush.msra.mxu2 %v8059_v46 }
0x17fa   :  { %v5070_v60 = vpop.xlane.xlu1 %5069 }
0x17fb   :  { %v5074_v58 = vmul.f32 %v5070_v60, %v8802_v27  ;;  %v8066_v60 = vld [vmem:[%s11885_s7 + $0x568] sm:$0xff] }
0x17fc   :  { %5411 = vmatpush.msra.mxu3 %v8066_v60 }
0x17fd   :  { %v10954_v35 = vsub.f32 %v10943_v56, %v5074_v58 }
0x17ff   :  { %v5078_v63 = vmul.f32 %v10954_v35, %v10954_v35  ;;  %v5113_v55 = vmul.f32 %v5112_v33, %v10954_v35  ;;  %v8089_v35 = vld [vmem:[%s11885_s7 + $0x5d8] sm:$0xff] }
0x1801   :  { %v5080_v19 = vsel %vm113_vm3, %v5078_v63, 0.0  ;;  %v8044_v63 = vld [vmem:[%s11885_s7 + $0x500] sm:$0xff] }
0x1802   :  { %5081 = vadd.xlane.f32.xlu2 %v5080_v19  ;;  %v8051_v19 = vld [vmem:[%s11885_s7 + $0x520] sm:$0xff]  ;;  %5313 = vmatpush.msrb.mxu0 %v8044_v63 }
0x1803   :  { %v5073_v26 = vpop.xlane.xlu0 %5072  ;;  %5346 = vmatpush.msrb.mxu1 %v8051_v19 }
0x1804   :  { %v5075_v13 = vmul.f32 %v5073_v26, %v8802_v27 }
0x1806   :  { %v10961_v42 = vsub.f32 %v10948_v2, %v5075_v13  ;;  %v8058_v13 = vld [vmem:[%s11885_s7 + $0x540] sm:$0xff] }
0x1807   :  { %5379 = vmatpush.msra.mxu2 %v8058_v13  ;;  %v8338_v13 = vld [vmem:[%s11886_s8 + $0x28] ss:$0 sm:$0xff] }
0x1808   :  { %v5079_v4 = vmul.f32 %v10961_v42, %v10961_v42 }
0x180a   :  { %v5083_v20 = vsel %vm113_vm3, %v5079_v4, 0.0  ;;  %v8065_v4 = vld [vmem:[%s11885_s7 + $0x560] sm:$0xff] }
0x180b   :  { %5084 = vadd.xlane.f32.xlu1 %v5083_v20  ;;  %5412 = vmatpush.msra.mxu3 %v8065_v4  ;;  %v8339_v4 = vld [vmem:[%s11886_s8 + $0x29] ss:$0 sm:$0xff] }
0x1875   :  { %v5082_v36 = vpop.xlane.xlu2 %5081 }
0x1876   :  { %v5086_v8 = vmul.f32 0.032258064, %v5082_v36 }
0x1878   :  { %8552 = vrsqrt.f32 %v5086_v8  ;;  %vm5095_vm12 = vcmp.eq.f32.partialorder %v5086_v8, inf  ;;  %v5098_v49 = vand.u32 2147483648, %v5086_v8  ;;  %vm5097_vm13 = vcmp.eq.f32.partialorder %v5086_v8, 0.0 }
0x187e   :  { %v8553_v15 = vpop.eup %8552  ;;  %v5085_v12 = vpop.xlane.xlu1 %5084 }
0x187f   :  { %v5089_v17 = vmul.f32 %v8553_v15, %v5086_v8  ;;  %v10966_v11 = vmul.f32 0.032258064, %v5085_v12 }
0x1881   :  { %v5090_v16 = vmul.f32 %v8553_v15, %v5089_v17  ;;  %8554 = vrsqrt.f32 %v10966_v11  ;;  %vm5107_vm14 = vcmp.eq.f32.partialorder %v10966_v11, inf  ;;  %v5110_v26 = vand.u32 2147483648, %v10966_v11 }
0x1882   :  { %vm5109_vm15 = vcmp.eq.f32.partialorder %v10966_v11, 0.0 }
0x1883   :  { %v5091_v37 = vmul.f32 0.5, %v5090_v16 }
0x1885   :  { %v5092_v32 = vsub.f32 1.5, %v5091_v37 }
0x1887   :  { %v8555_v62 = vpop.eup %8554  ;;  %v5093_v61 = vmul.f32 %v8553_v15, %v5092_v32 }
0x1888   :  { %v5101_v1 = vmul.f32 %v8555_v62, %v10966_v11 }
0x1889   :  { %v5094_v34 = vmul.f32 %v5093_v61, %v5086_v8 }
0x188a   :  { %v5102_v59 = vmul.f32 %v8555_v62, %v5101_v1  ;;  %v8075_v1 = vld [vmem:[%s11885_s7 + $0x598] sm:$0xff] }
0x188b   :  { %v5096_v48 = vsel %vm5095_vm12, %v5086_v8, %v5094_v34  ;;  %v8081_v34 = vld [vmem:[%s11885_s7 + $0x5b0] sm:$0xff] }
0x188c   :  { %v5099_v31 = vsel %vm5097_vm13, %v5098_v49, %v5096_v48  ;;  %v5103_v30 = vmul.f32 0.5, %v5102_v59  ;;  %v8088_v49 = vld [vmem:[%s11885_s7 + $0x5d0] sm:$0xff]  ;;  %v5114_v48 = vmul.f32 %v5112_v33, %v10961_v42  ;;  %v8094_v42 = vld [vmem:[%s11885_s7 + $0x5e8] sm:$0xff]  ;;  %v8335_v33 = vld [vmem:[%s11886_s8 + $0x25] ss:$0 sm:$0xff] }
0x188d   :  { %v5115_v22 = vadd.f32 1e-06, %v5099_v31  ;;  %v8095_v59 = vld [vmem:[%s11885_s7 + $0x5f0] sm:$0xff] }
0x188e   :  { %v5104_v50 = vsub.f32 1.5, %v5103_v30  ;;  %v8073_v30 = vld [vmem:[%s11885_s7 + $0x588] sm:$0xff] }
0x188f   :  { %8556 = vrcp.f32 %v5115_v22  ;;  %v5128_v16 = vand.u32 2147483648, %v5115_v22  ;;  %v5126_v23 = vand.u32 2147483647, %v5115_v22  ;;  %vm5122_vm4 = vweird.f32 %v5115_v22 }
0x1890   :  { %v5105_v28 = vmul.f32 %v8555_v62, %v5104_v50 }
0x1891   :  { %vm5127_vm6 = vcmp.eq.f32.partialorder %v5126_v23, 8.507059e+37 }
0x1892   :  { %v5106_v58 = vmul.f32 %v5105_v28, %v10966_v11  ;;  %v8093_v28 = vld [vmem:[%s11885_s7 + $0x5e0] sm:$0xff] }
0x1894   :  { %v5108_v20 = vsel %vm5107_vm14, %v10966_v11, %v5106_v58  ;;  %v5129_v11 = vor.u32 1.1754944e-38, %v5128_v16  ;;  %v8334_v16 = vld [vmem:[%s11886_s8 + $0x24] ss:$0 sm:$0xff] }
0x1895   :  { %v8557_v36 = vpop.eup %8556  ;;  %v5111_v8 = vsel %vm5109_vm15, %v5110_v26, %v5108_v20 }
0x1896   :  { %v5118_v15 = vmul.f32 %v8557_v36, %v5115_v22  ;;  %v5116_v12 = vadd.f32 1e-06, %v5111_v8  ;;  %vm5123_vm1 = vweird.f32 %v8557_v36  ;;  %v8080_v22 = vld [vmem:[%s11885_s7 + $0x5a8] sm:$0xff] }
0x1897   :  { %vm5124_vm5 = vmor %vm5122_vm4, %vm5123_vm1 }
0x1898   :  { %v5119_v17 = vsub.f32 1.0, %v5118_v15  ;;  %8558 = vrcp.f32 %v5116_v12  ;;  %v5143_v62 = vand.u32 2147483648, %v5116_v12  ;;  %v5141_v41 = vand.u32 2147483647, %v5116_v12 }
0x1899   :  { %vm5137_vm8 = vweird.f32 %v5116_v12 }
0x189a   :  { %v5120_v21 = vmul.f32 %v8557_v36, %v5119_v17  ;;  %v5144_v40 = vor.u32 1.1754944e-38, %v5143_v62  ;;  %vm5142_vm11 = vcmp.eq.f32.partialorder %v5141_v41, 8.507059e+37  ;;  %v8337_v62 = vld [vmem:[%s11886_s8 + $0x27] ss:$0 sm:$0xff] }
0x189c   :  { %v5121_v37 = vadd.f32 %v8557_v36, %v5120_v21 }
0x189e   :  { %v8559_v53 = vpop.eup %8558  ;;  %v5125_v57 = vsel %vm5124_vm5, %v8557_v36, %v5121_v37  ;;  %v8340_v37 = vld [vmem:[%s11886_s8 + $0x2a] ss:$0 sm:$0xff] }
0x189f   :  { %v5130_v32 = vsel %vm5127_vm6, %v5129_v11, %v5125_v57  ;;  %v5133_v5 = vmul.f32 %v8559_v53, %v5116_v12  ;;  %vm5138_vm7 = vweird.f32 %v8559_v53  ;;  %v8341_v11 = vld [vmem:[%s11886_s8 + $0x2b] ss:$0 sm:$0xff] }
0x18a0   :  { %v5131_v7 = vmul.f32 %v5130_v32, %v5113_v55  ;;  %vm5139_vm10 = vmor %vm5137_vm8, %vm5138_vm7 }
0x18a1   :  { %v5134_v25 = vsub.f32 1.0, %v5133_v5 }
0x18a2   :  { %v11074_v45 = vadd.f32 %v5147_v0, %v5131_v7 }
0x18a3   :  { %v5135_v61 = vmul.f32 %v8559_v53, %v5134_v25 }
0x18a4   :  { %8021 = vmatmul.msk.f32.vlgmr.msra.gmra.mxu0 %vm113_vm3, %v11074_v45  ;;  %8028 = vmatmul.msk.f32.vlgmr.msra.gmra.mxu1 %vm113_vm3, %v11074_v45 }
0x18a5   :  { %v5136_v54 = vadd.f32 %v8559_v53, %v5135_v61  ;;  %8035 = vmatmul.msk.f32.vlgmr.msrb.gmra.mxu2 %vm113_vm3, %v11074_v45  ;;  %8042 = vmatmul.msk.f32.vlgmr.msrb.gmra.mxu3 %vm113_vm3, %v11074_v45 }
0x18a6   :  { %5442 = vmatpush.msra.mxu0 %v8075_v1  ;;  %5475 = vmatpush.msra.mxu1 %v8082_v3 }
0x18a7   :  { %v5140_v31 = vsel %vm5139_vm10, %v8559_v53, %v5136_v54  ;;  %5508 = vmatpush.msrb.mxu2 %v8089_v35  ;;  %5541 = vmatpush.msrb.mxu3 %v8096_v39  ;;  %v8342_v35 = vld [vmem:[%s11886_s8 + $0x2c] ss:$0 sm:$0xff]  ;;  %v8343_v39 = vld [vmem:[%s11886_s8 + $0x2d] ss:$0 sm:$0xff] }
0x18a8   :  { %v5145_v50 = vsel %vm5142_vm11, %v5144_v40, %v5140_v31  ;;  %5443 = vmatpush.msra.mxu0 %v8074_v44  ;;  %5476 = vmatpush.msra.mxu1 %v8081_v34 }
0x18a9   :  { %v5146_v52 = vmul.f32 %v5145_v50, %v5114_v48  ;;  %5509 = vmatpush.msrb.mxu2 %v8088_v49  ;;  %5542 = vmatpush.msrb.mxu3 %v8095_v59  ;;  %v8344_v50 = vld [vmem:[%s11886_s8 + $0x2e] ss:$0 sm:$0xff] }
0x18aa   :  { %5444 = vmatpush.msra.mxu0 %v8073_v30  ;;  %5477 = vmatpush.msra.mxu1 %v8080_v22 }
0x18ab   :  { %v5149_v14 = vadd.f32 %v5147_v0, %v5146_v52  ;;  %5510 = vmatpush.msrb.mxu2 %v8087_v51  ;;  %5543 = vmatpush.msrb.mxu3 %v8094_v42  ;;  %v8345_v51 = vld [vmem:[%s11886_s8 + $0x2f] ss:$0 sm:$0xff] }
0x18ac   :  { %5445 = vmatpush.msra.mxu0 %v8072_v38  ;;  %5478 = vmatpush.msra.mxu1 %v8079_v24 }
0x18ad   :  { %8022 = vmatmul.msk.f32.gmra.mxu0 %vm113_vm3, %v5149_v14  ;;  %8029 = vmatmul.msk.f32.gmra.mxu1 %vm113_vm3, %v5149_v14 }
0x18ae   :  { %8036 = vmatmul.msk.f32.gmra.mxu2 %vm113_vm3, %v5149_v14  ;;  %8043 = vmatmul.msk.f32.gmra.mxu3 %vm113_vm3, %v5149_v14 }
0x18af   :  { %5511 = vmatpush.msrb.mxu2 %v8086_v18  ;;  %5544 = vmatpush.msrb.mxu3 %v8093_v28 }
0x18b5   :  { %8049 = vmatmul.msk.f32.vlgmr.msrb.gmra.mxu0 %vm113_vm3, %v11074_v45  ;;  %8056 = vmatmul.msk.f32.vlgmr.msrb.gmra.mxu1 %vm113_vm3, %v11074_v45 }
0x18b6   :  { %8063 = vmatmul.msk.f32.vlgmr.msra.gmra.mxu2 %vm113_vm3, %v11074_v45  ;;  %8070 = vmatmul.msk.f32.vlgmr.msra.gmra.mxu3 %vm113_vm3, %v11074_v45 }
0x18bd   :  { %8050 = vmatmul.msk.f32.gmra.mxu0 %vm113_vm3, %v5149_v14  ;;  %8057 = vmatmul.msk.f32.gmra.mxu1 %vm113_vm3, %v5149_v14 }
0x18be   :  { %8064 = vmatmul.msk.f32.gmra.mxu2 %vm113_vm3, %v5149_v14  ;;  %8071 = vmatmul.msk.f32.gmra.mxu3 %vm113_vm3, %v5149_v14 }
0x18c5   :  { %8077 = vmatmul.msk.f32.vlgmr.msra.gmra.mxu0 %vm113_vm3, %v11074_v45  ;;  %8084 = vmatmul.msk.f32.vlgmr.msra.gmra.mxu1 %vm113_vm3, %v11074_v45 }
0x18c6   :  { %8091 = vmatmul.msk.f32.vlgmr.msrb.gmra.mxu2 %vm113_vm3, %v11074_v45  ;;  %8098 = vmatmul.msk.f32.vlgmr.msrb.gmra.mxu3 %vm113_vm3, %v11074_v45  ;;  %v8336_v45 = vld [vmem:[%s11886_s8 + $0x26] ss:$0 sm:$0xff] }
0x18cd   :  { %8078 = vmatmul.msk.f32.gmra.mxu0 %vm113_vm3, %v5149_v14  ;;  %8085 = vmatmul.msk.f32.gmra.mxu1 %vm113_vm3, %v5149_v14 }
0x18ce   :  { %8092 = vmatmul.msk.f32.gmra.mxu2 %vm113_vm3, %v5149_v14  ;;  %8099 = vmatmul.msk.f32.gmra.mxu3 %vm113_vm3, %v5149_v14 }
0x1921   :  { %v5183_v29 = vpop.f32.mrf.mxu0  ;;  %v5216_v6 = vpop.f32.mrf.mxu1 }
0x1922   :  { %v5184_v7 = vadd.f32 %v8334_v16, %v5183_v29  ;;  %v5217_v25 = vadd.f32 %v8335_v33, %v5216_v6 }
0x1928   :  { %v5249_v43 = vpop.f32.mrf.mxu2  ;;  %v5282_v47 = vpop.f32.mrf.mxu3 }
0x1929   :  { %v5250_v1 = vadd.f32 %v8336_v45, %v5249_v43  ;;  %v5283_v3 = vadd.f32 %v8337_v62, %v5282_v47  ;;  %v8656_v47 = vld [vmem:[%s11881_s3] sm:$0xff] }
0x192a   :  { %v5186_v46 = vpop.f32.mrf.mxu0  ;;  %v5219_v60 = vpop.f32.mrf.mxu1 }
0x192b   :  { %v5187_v34 = vadd.f32 %v8334_v16, %v5186_v46  ;;  %v5220_v59 = vadd.f32 %v8335_v33, %v5219_v60 }
0x1931   :  { %v11161_v58 = vpop.f32.mrf.mxu2  ;;  %v11163_v63 = vpop.f32.mrf.mxu3 }
0x1932   :  { %v5315_v19 = vpop.f32.mrf.mxu0  ;;  %v5348_v26 = vpop.f32.mrf.mxu1  ;;  %v5253_v42 = vadd.f32 %v8336_v45, %v11161_v58  ;;  %v5286_v52 = vadd.f32 %v8337_v62, %v11163_v63 }
0x1933   :  { %v5316_v21 = vadd.f32 %v8338_v13, %v5315_v19  ;;  %v5349_v23 = vadd.f32 %v8339_v4, %v5348_v26 }
0x1939   :  { %v5381_v20 = vpop.f32.mrf.mxu2  ;;  %v5414_v36 = vpop.f32.mrf.mxu3 }
0x193a   :  { %v5318_v8 = vpop.f32.mrf.mxu0  ;;  %v5351_v15 = vpop.f32.mrf.mxu1  ;;  %v5382_v61 = vadd.f32 %v8340_v37, %v5381_v20  ;;  %v5415_v41 = vadd.f32 %v8341_v11, %v5414_v36 }
0x193b   :  { %v5319_v12 = vadd.f32 %v8338_v13, %v5318_v8  ;;  %v5352_v17 = vadd.f32 %v8339_v4, %v5351_v15 }
0x193d   :  { %8100 = vmatpush.xpose.msk.msrb.mxu0 %vm603_vm2, %v5319_v12  ;;  %8104 = vmatpush.xpose.msk.msrb.mxu1 %vm603_vm2, %v5352_v17 }
0x1941   :  { %v5384_v53 = vpop.f32.mrf.mxu2  ;;  %v5417_v0 = vpop.f32.mrf.mxu3  ;;  %8101 = vmatpush.xpose.msk.msrb.mxu0 %vm603_vm2, %v5316_v21  ;;  %8105 = vmatpush.xpose.msk.msrb.mxu1 %vm603_vm2, %v5349_v23 }
0x1942   :  { %v5385_v55 = vadd.f32 %v8340_v37, %v5384_v53  ;;  %v5418_v57 = vadd.f32 %v8341_v11, %v5417_v0  ;;  %v5447_v32 = vpop.f32.mrf.mxu0  ;;  %v5480_v5 = vpop.f32.mrf.mxu1  ;;  %v8657_v11 = vld [vmem:[%s11881_s3 + $0x8] sm:$0xff] }
0x1943   :  { %v5448_v30 = vadd.f32 %v8342_v35, %v5447_v32  ;;  %v5481_v22 = vadd.f32 %v8343_v39, %v5480_v5 }
0x1944   :  { %8108 = vmatpush.xpose.msk.msra.mxu2 %vm603_vm2, %v5385_v55  ;;  %8112 = vmatpush.xpose.msk.msra.mxu3 %vm603_vm2, %v5418_v57 }
0x1945   :  { %8102 = vmatmul.msk.f32.vlgmr.msrb.gmra.mxu0 %vm603_vm2, %v5184_v7  ;;  %8106 = vmatmul.msk.f32.vlgmr.msrb.gmra.mxu1 %vm603_vm2, %v5217_v25 }
0x1948   :  { %8109 = vmatpush.xpose.msk.msra.mxu2 %vm603_vm2, %v5382_v61  ;;  %8113 = vmatpush.xpose.msk.msra.mxu3 %vm603_vm2, %v5415_v41 }
0x1949   :  { %v5513_v54 = vpop.f32.mrf.mxu2  ;;  %v5546_v44 = vpop.f32.mrf.mxu3 }
0x194a   :  { %v5450_v40 = vpop.f32.mrf.mxu0  ;;  %v5483_v49 = vpop.f32.mrf.mxu1  ;;  %v5514_v28 = vadd.f32 %v8344_v50, %v5513_v54  ;;  %v5547_v29 = vadd.f32 %v8345_v51, %v5546_v44 }
0x194b   :  { %v5451_v48 = vadd.f32 %v8342_v35, %v5450_v40  ;;  %v5484_v31 = vadd.f32 %v8343_v39, %v5483_v49  ;;  %8110 = vmatmul.msk.f32.vlgmr.msra.gmra.mxu2 %vm603_vm2, %v5250_v1  ;;  %8114 = vmatmul.msk.f32.vlgmr.msra.gmra.mxu3 %vm603_vm2, %v5283_v3 }
0x194d   :  { %8103 = vmatmul.msk.f32.gmra.mxu0 %vm603_vm2, %v5187_v34  ;;  %8107 = vmatmul.msk.f32.gmra.mxu1 %vm603_vm2, %v5220_v59 }
0x194e   :  { %5920 = vmatpush.msra.mxu0 %v5451_v48  ;;  %5949 = vmatpush.msra.mxu1 %v5484_v31 }
0x1950   :  { %5921 = vmatpush.msra.mxu0 %v5448_v30  ;;  %5950 = vmatpush.msra.mxu1 %v5481_v22 }
0x1951   :  { %v5516_v38 = vpop.f32.mrf.mxu2  ;;  %v5549_v24 = vpop.f32.mrf.mxu3 }
0x1952   :  { %v5517_v14 = vadd.f32 %v8344_v50, %v5516_v38  ;;  %v5550_v18 = vadd.f32 %v8345_v51, %v5549_v24 }
0x1953   :  { %8111 = vmatmul.msk.f32.gmra.mxu2 %vm603_vm2, %v5253_v42  ;;  %8115 = vmatmul.msk.f32.gmra.mxu3 %vm603_vm2, %v5286_v52 }
0x1954   :  { %5978 = vmatpush.msrb.mxu2 %v5517_v14  ;;  %6007 = vmatpush.msrb.mxu3 %v5550_v18 }
0x1956   :  { %5979 = vmatpush.msrb.mxu2 %v5514_v28  ;;  %6008 = vmatpush.msrb.mxu3 %v5547_v29 }
0x19c2   :  { %v5581_v6 = vpop.f32.mrf.mxu0  ;;  %v5616_v58 = vpop.f32.mrf.mxu1 }
0x19c3   :  { %v5692_v43 = vmul.f32 0.35355338, %v5581_v6  ;;  %v5694_v36 = vmul.f32 0.35355338, %v5616_v58 }
0x19c5   :  { %v5700_v46 = vadd.f32 %v8656_v47, %v5692_v43  ;;  %v5702_v16 = vadd.f32 %v8656_v47, %v5694_v36 }
0x19c7   :  { %v5708_v60 = vsel %vm79_vm0, %v5700_v46, -inf  ;;  %v5714_v55 = vsel %vm79_vm0, %v5702_v16, -inf }
0x19c8   :  { %5709 = vmax.xlane.f32.xlu1 %v5708_v60 }
0x19ca   :  { %v5584_v23 = vpop.f32.mrf.mxu0  ;;  %v5619_v37 = vpop.f32.mrf.mxu1 }
0x19cb   :  { %v5693_v57 = vmul.f32 0.35355338, %v5584_v23  ;;  %v5695_v32 = vmul.f32 0.35355338, %v5619_v37 }
0x19cd   :  { %v5703_v25 = vadd.f32 %v8657_v11, %v5695_v32  ;;  %v5701_v45 = vadd.f32 %v8657_v11, %v5693_v57 }
0x19ce   :  { %v5651_v63 = vpop.f32.mrf.mxu2  ;;  %v5686_v19 = vpop.f32.mrf.mxu3 }
0x19cf   :  { %v5696_v26 = vmul.f32 0.35355338, %v5651_v63  ;;  %v5698_v13 = vmul.f32 0.35355338, %v5686_v19  ;;  %v5717_v62 = vsel %vm79_vm0, %v5703_v25, -inf  ;;  %v5711_v61 = vsel %vm79_vm0, %v5701_v45, -inf }
0x19d1   :  { %v5706_v4 = vadd.f32 %v8656_v47, %v5698_v13  ;;  %v5704_v20 = vadd.f32 %v8656_v47, %v5696_v26 }
0x19d3   :  { %v5726_v8 = vsel %vm79_vm0, %v5706_v4, -inf  ;;  %v5720_v15 = vsel %vm79_vm0, %v5704_v20, -inf }
0x19d4   :  { %5727 = vmax.xlane.f32.xlu2 %v5726_v8  ;;  %5721 = vmax.xlane.f32.xlu0 %v5720_v15 }
0x19d6   :  { %v5654_v12 = vpop.f32.mrf.mxu2  ;;  %v5689_v17 = vpop.f32.mrf.mxu3 }
0x19d7   :  { %v5697_v33 = vmul.f32 0.35355338, %v5654_v12  ;;  %v5699_v21 = vmul.f32 0.35355338, %v5689_v17 }
0x19d9   :  { %v5705_v53 = vadd.f32 %v8657_v11, %v5697_v33  ;;  %v5707_v0 = vadd.f32 %v8657_v11, %v5699_v21 }
0x19db   :  { %v5723_v5 = vsel %vm79_vm0, %v5705_v53, -inf  ;;  %v5729_v7 = vsel %vm79_vm0, %v5707_v0, -inf }
0x19dc   :  { %5724 = vmax.xlane.f32.xlu0 %v5723_v5  ;;  %5715 = vmax.xlane.f32.xlu2 %v5714_v55 }
0x19dd   :  { %5730 = vmax.xlane.f32.xlu1 %v5729_v7 }
0x19e4   :  { %5718 = vmax.xlane.f32.xlu2 %v5717_v62  ;;  %5712 = vmax.xlane.f32.xlu0 %v5711_v61 }
0x1a3b   :  { %v5710_v41 = vpop.xlane.xlu1 %5709 }
0x1a3c   :  { %v5732_v1 = vsub.f32 %v5700_v46, %v5710_v41 }
0x1a3e   :  { %v5740_v3 = vmul.f32 1.442695, %v5732_v1 }
0x1a40   :  { %8560 = vpow2.f32 %v5740_v3 }
0x1a46   :  { %v11233_v35 = vpop.eup %8560 }
0x1a47   :  { %v5728_v39 = vpop.xlane.xlu2 %5727  ;;  %v5722_v54 = vpop.xlane.xlu0 %5721  ;;  %v5756_v44 = vsel %vm79_vm0, %v11233_v35, 0.0 }
0x1a48   :  { %v5738_v34 = vsub.f32 %v5706_v4, %v5728_v39  ;;  %v5736_v40 = vsub.f32 %v5704_v20, %v5722_v54  ;;  %5757 = vadd.xlane.f32.xlu2 %v5756_v44 }
0x1a4a   :  { %v5752_v49 = vmul.f32 1.442695, %v5738_v34  ;;  %v5748_v59 = vmul.f32 1.442695, %v5736_v40 }
0x1a4c   :  { %8562 = vpow2.f32 %v5752_v49 }
0x1a4d   :  { %8564 = vpow2.f32 %v5748_v59 }
0x1a4f   :  { %v5725_v48 = vpop.xlane.xlu0 %5724  ;;  %v5716_v31 = vpop.xlane.xlu2 %5715 }
0x1a50   :  { %v5737_v30 = vsub.f32 %v5705_v53, %v5725_v48  ;;  %v5734_v22 = vsub.f32 %v5702_v16, %v5716_v31  ;;  %v5731_v50 = vpop.xlane.xlu1 %5730 }
0x1a51   :  { %v5739_v51 = vsub.f32 %v5707_v0, %v5731_v50 }
0x1a52   :  { %v11237_v42 = vpop.eup %8562  ;;  %v5750_v52 = vmul.f32 1.442695, %v5737_v30  ;;  %v5744_v38 = vmul.f32 1.442695, %v5734_v22 }
0x1a53   :  { %v11239_v24 = vpop.eup %8564  ;;  %v5754_v14 = vmul.f32 1.442695, %v5739_v51  ;;  %v5774_v18 = vsel %vm79_vm0, %v11237_v42, 0.0 }
0x1a54   :  { %8566 = vpow2.f32 %v5750_v52  ;;  %v5768_v28 = vsel %vm79_vm0, %v11239_v24, 0.0  ;;  %5775 = vadd.xlane.f32.xlu0 %v5774_v18 }
0x1a55   :  { %8568 = vpow2.f32 %v5744_v38  ;;  %5769 = vadd.xlane.f32.xlu1 %v5768_v28 }
0x1a56   :  { %8570 = vpow2.f32 %v5754_v14 }
0x1a57   :  { %v5719_v29 = vpop.xlane.xlu2 %5718  ;;  %v5713_v6 = vpop.xlane.xlu0 %5712 }
0x1a58   :  { %v5735_v43 = vsub.f32 %v5703_v25, %v5719_v29  ;;  %v5733_v47 = vsub.f32 %v5701_v45, %v5713_v6 }
0x1a5a   :  { %v11245_v46 = vpop.eup %8566  ;;  %v5746_v60 = vmul.f32 1.442695, %v5735_v43  ;;  %v5742_v58 = vmul.f32 1.442695, %v5733_v47 }
0x1a5b   :  { %v11247_v63 = vpop.eup %8568  ;;  %v5771_v19 = vsel %vm79_vm0, %v11245_v46, 0.0 }
0x1a5c   :  { %v11251_v26 = vpop.eup %8570  ;;  %8572 = vpow2.f32 %v5746_v60  ;;  %v5762_v13 = vsel %vm79_vm0, %v11247_v63, 0.0 }
0x1a5d   :  { %8574 = vpow2.f32 %v5742_v58  ;;  %5772 = vadd.xlane.f32.xlu1 %v5771_v19  ;;  %v5777_v4 = vsel %vm79_vm0, %v11251_v26, 0.0  ;;  %5763 = vadd.xlane.f32.xlu0 %v5762_v13 }
0x1a5e   :  { %5778 = vadd.xlane.f32.xlu2 %v5777_v4 }
0x1a62   :  { %v11257_v20 = vpop.eup %8572 }
0x1a63   :  { %v11259_v36 = vpop.eup %8574  ;;  %v5765_v8 = vsel %vm79_vm0, %v11257_v20, 0.0 }
0x1a64   :  { %v5759_v15 = vsel %vm79_vm0, %v11259_v36, 0.0 }
0x1a65   :  { %5766 = vadd.xlane.f32.xlu0 %v5765_v8  ;;  %5760 = vadd.xlane.f32.xlu1 %v5759_v15 }
0x1abb   :  { %v5758_v12 = vpop.xlane.xlu2 %5757 }
0x1abc   :  { %8576 = vrcp.f32 %v5758_v12  ;;  %v5791_v21 = vand.u32 2147483648, %v5758_v12  ;;  %v5789_v37 = vand.u32 2147483647, %v5758_v12  ;;  %vm5785_vm13 = vweird.f32 %v5758_v12 }
0x1abe   :  { %v5792_v55 = vor.u32 1.1754944e-38, %v5791_v21  ;;  %vm5790_vm15 = vcmp.eq.f32.partialorder %v5789_v37, 8.507059e+37 }
0x1ac2   :  { %v8577_v17 = vpop.eup %8576 }
0x1ac3   :  { %v5781_v16 = vmul.f32 %v8577_v17, %v5758_v12  ;;  %vm5786_vm12 = vweird.f32 %v8577_v17 }
0x1ac4   :  { %vm5787_vm14 = vmor %vm5785_vm13, %vm5786_vm12 }
0x1ac5   :  { %v5782_v33 = vsub.f32 1.0, %v5781_v16 }
0x1ac7   :  { %v5783_v23 = vmul.f32 %v8577_v17, %v5782_v33  ;;  %v5776_v11 = vpop.xlane.xlu0 %5775 }
0x1ac8   :  { %v5770_v53 = vpop.xlane.xlu1 %5769  ;;  %8578 = vrcp.f32 %v5776_v11  ;;  %v5881_v54 = vand.u32 2147483648, %v5776_v11  ;;  %v5879_v34 = vand.u32 2147483647, %v5776_v11  ;;  %vm5875_vm5 = vweird.f32 %v5776_v11 }
0x1ac9   :  { %v5784_v0 = vadd.f32 %v8577_v17, %v5783_v23  ;;  %8580 = vrcp.f32 %v5770_v53  ;;  %v5849_v49 = vand.u32 2147483647, %v5770_v53  ;;  %vm5845_vm6 = vweird.f32 %v5770_v53 }
0x1aca   :  { %v5882_v31 = vor.u32 1.1754944e-38, %v5881_v54  ;;  %vm5880_vm10 = vcmp.eq.f32.partialorder %v5879_v34, 8.507059e+37 }
0x1acb   :  { %v5788_v57 = vsel %vm5787_vm14, %v8577_v17, %v5784_v0  ;;  %vm5850_vm11 = vcmp.eq.f32.partialorder %v5849_v49, 8.507059e+37 }
0x1acc   :  { %v5793_v32 = vsel %vm5790_vm15, %v5792_v55, %v5788_v57 }
0x1acd   :  { %v5794_v5 = vmul.f32 %v11233_v35, %v5793_v32  ;;  %v5851_v35 = vand.u32 2147483648, %v5770_v53 }
0x1ace   :  { %v8579_v7 = vpop.eup %8578 }
0x1acf   :  { %v8581_v25 = vpop.eup %8580  ;;  %v5871_v45 = vmul.f32 %v8579_v7, %v5776_v11  ;;  %8116 = vmatmul.msk.f32.vlgmr.msra.gmra.mxu0 %vm79_vm0, %v5794_v5  ;;  %vm5876_vm1 = vweird.f32 %v8579_v7  ;;  %v5852_v22 = vor.u32 1.1754944e-38, %v5851_v35 }
0x1ad0   :  { %v5841_v62 = vmul.f32 %v8581_v25, %v5770_v53  ;;  %v11267_v61 = vpop.xlane.xlu1 %5772  ;;  %v11269_v41 = vpop.xlane.xlu0 %5763  ;;  %vm5846_vm4 = vweird.f32 %v8581_v25  ;;  %vm5877_vm7 = vmor %vm5875_vm5, %vm5876_vm1 }
0x1ad1   :  { %v5872_v1 = vsub.f32 1.0, %v5871_v45  ;;  %v11271_v3 = vpop.xlane.xlu2 %5778  ;;  %8582 = vrcp.f32 %v11267_v61  ;;  %vm5847_vm8 = vmor %vm5845_vm6, %vm5846_vm4  ;;  %vm5860_vm12 = vweird.f32 %v11267_v61  ;;  %v5864_v13 = vand.u32 2147483647, %v11267_v61 }
0x1ad2   :  { %v5842_v39 = vsub.f32 1.0, %v5841_v62  ;;  %8584 = vrcp.f32 %v11271_v3  ;;  %v5866_v4 = vand.u32 2147483648, %v11267_v61  ;;  %v5894_v8 = vand.u32 2147483647, %v11271_v3 }
0x1ad3   :  { %v5873_v44 = vmul.f32 %v8579_v7, %v5872_v1  ;;  %8586 = vrcp.f32 %v11269_v41  ;;  %vm5890_vm14 = vweird.f32 %v11271_v3  ;;  %v5896_v12 = vand.u32 2147483648, %v11271_v3 }
0x1ad4   :  { %v5843_v40 = vmul.f32 %v8581_v25, %v5842_v39  ;;  %v5819_v33 = vand.u32 2147483647, %v11269_v41  ;;  %v5821_v21 = vand.u32 2147483648, %v11269_v41  ;;  %v5867_v37 = vor.u32 1.1754944e-38, %v5866_v4 }
0x1ad5   :  { %v5874_v59 = vadd.f32 %v8579_v7, %v5873_v44  ;;  %vm11305_vm5 = vcmp.eq.f32.partialorder %v5894_v8, 8.507059e+37  ;;  %vm5865_vm6 = vcmp.eq.f32.partialorder %v5864_v13, 8.507059e+37  ;;  %v5897_v32 = vor.u32 1.1754944e-38, %v5896_v12  ;;  %v11363_v8 = vld [vmem:[%s11890_s12 + $0x18] sm:$0xff] }
0x1ad6   :  { %v5844_v48 = vadd.f32 %v8581_v25, %v5843_v40  ;;  %v5822_v62 = vor.u32 1.1754944e-38, %v5821_v21 }
0x1ad7   :  { %v8583_v30 = vpop.eup %8582  ;;  %v5878_v50 = vsel %vm5877_vm7, %v8579_v7, %v5874_v59  ;;  %vm5815_vm7 = vweird.f32 %v11269_v41 }
0x1ad8   :  { %v11276_v51 = vpop.eup %8584  ;;  %v5848_v52 = vsel %vm5847_vm8, %v8581_v25, %v5844_v48  ;;  %v5883_v38 = vsel %vm5880_vm10, %v5882_v31, %v5878_v50  ;;  %v5856_v14 = vmul.f32 %v8583_v30, %v11267_v61  ;;  %v11279_v18 = vpop.xlane.xlu1 %5760  ;;  %vm5861_vm13 = vweird.f32 %v8583_v30 }
0x1ad9   :  { %v5853_v28 = vsel %vm5850_vm11, %v5852_v22, %v5848_v52  ;;  %v5884_v29 = vmul.f32 %v11237_v42, %v5883_v38  ;;  %v5886_v6 = vmul.f32 %v11276_v51, %v11271_v3  ;;  %v11284_v43 = vpop.xlane.xlu0 %5766  ;;  %v8587_v47 = vpop.eup %8586  ;;  %8588 = vrcp.f32 %v11279_v18  ;;  %vm5862_vm1 = vmor %vm5860_vm12, %vm5861_vm13 }
0x1ada   :  { %v5854_v60 = vmul.f32 %v11239_v24, %v5853_v28  ;;  %v5857_v58 = vsub.f32 1.0, %v5856_v14  ;;  %v5811_v42 = vmul.f32 %v8587_v47, %v11269_v41  ;;  %8590 = vrcp.f32 %v11284_v43 }
0x1adb   :  { %v5887_v19 = vsub.f32 1.0, %v5886_v6  ;;  %8122 = vmatmul.msk.f32.vlgmr.msrb.gmra.mxu3 %vm79_vm0, %v5884_v29  ;;  %vm5891_vm15 = vweird.f32 %v11276_v51  ;;  %vm5816_vm4 = vweird.f32 %v8587_v47  ;;  %vm5820_vm11 = vcmp.eq.f32.partialorder %v5819_v33, 8.507059e+37  ;;  %v8124_v29 = vld [vmem:[%s11887_s9 + $0x60] sm:$0xff]  ;;  %v8130_v6 = vld [vmem:[%s11887_s9 + $0x70] sm:$0xff] }
0x1adc   :  { %v5858_v15 = vmul.f32 %v8583_v30, %v5857_v58  ;;  %8120 = vmatmul.msk.f32.vlgmr.msrb.gmra.mxu2 %vm79_vm0, %v5854_v60  ;;  %v5812_v17 = vsub.f32 1.0, %v5811_v42  ;;  %vm11312_vm8 = vmor %vm5890_vm14, %vm5891_vm15  ;;  %v5804_v39 = vand.u32 2147483647, %v11279_v18  ;;  %v5806_v44 = vand.u32 2147483648, %v11279_v18  ;;  %6039 = vmatpush.msrb.mxu0 %v8124_v29  ;;  %v8157_v29 = vld [vmem:[%s11885_s7 + $0x7e0] sm:$0xff] }
0x1add   :  { %v5888_v24 = vmul.f32 %v11276_v51, %v5887_v19  ;;  %vm5817_vm10 = vmor %vm5815_vm7, %vm5816_vm4  ;;  %vm5800_vm13 = vweird.f32 %v11279_v18  ;;  %v5836_v48 = vand.u32 2147483648, %v11284_v43  ;;  %v5834_v22 = vand.u32 2147483647, %v11284_v43  ;;  %6106 = vmatpush.msra.mxu2 %v8130_v6 }
0x1ade   :  { %v5859_v16 = vadd.f32 %v8583_v30, %v5858_v15  ;;  %v5813_v11 = vmul.f32 %v8587_v47, %v5812_v17  ;;  %vm5830_vm4 = vweird.f32 %v11284_v43  ;;  %v6047_v15 = vperm.slane %v11363_v8, 3 }
0x1adf   :  { %v5889_v23 = vadd.f32 %v11276_v51, %v5888_v24  ;;  %v8589_v53 = vpop.eup %8588 }
0x1ae0   :  { %v5863_v55 = vsel %vm5862_vm1, %v8583_v30, %v5859_v16  ;;  %v5814_v5 = vadd.f32 %v8587_v47, %v5813_v11  ;;  %v5796_v7 = vmul.f32 %v8589_v53, %v11279_v18  ;;  %v8591_v45 = vpop.eup %8590  ;;  %vm5801_vm12 = vweird.f32 %v8589_v53 }
0x1ae1   :  { %v5868_v25 = vsel %vm5865_vm6, %v5867_v37, %v5863_v55  ;;  %v5893_v41 = vsel %vm11312_vm8, %v11276_v51, %v5889_v23  ;;  %v5826_v54 = vmul.f32 %v8591_v45, %v11284_v43  ;;  %vm5831_vm14 = vweird.f32 %v8591_v45  ;;  %vm5802_vm15 = vmor %vm5800_vm13, %vm5801_vm12  ;;  %v8127_v43 = vld [vmem:[%s11887_s9 + $0x68] sm:$0xff] }
0x1ae2   :  { %v5869_v61 = vmul.f32 %v11245_v46, %v5868_v25  ;;  %v5818_v1 = vsel %vm5817_vm10, %v8587_v47, %v5814_v5  ;;  %v5797_v3 = vsub.f32 1.0, %v5796_v7  ;;  %v5898_v34 = vsel %vm11305_vm5, %v5897_v32, %v5893_v41  ;;  %vm5832_vm5 = vmor %vm5830_vm4, %vm5831_vm14  ;;  %6073 = vmatpush.msrb.mxu1 %v8127_v43 }
0x1ae3   :  { %v5823_v35 = vsel %vm5820_vm11, %v5822_v62, %v5818_v1  ;;  %v5827_v49 = vsub.f32 1.0, %v5826_v54  ;;  %v5899_v59 = vmul.f32 %v11251_v26, %v5898_v34  ;;  %vm5805_vm1 = vcmp.eq.f32.partialorder %v5804_v39, 8.507059e+37 }
0x1ae4   :  { %8121 = vmatmul.msk.f32.gmra.mxu2 %vm79_vm0, %v5869_v61  ;;  %v5824_v46 = vmul.f32 %v11247_v63, %v5823_v35  ;;  %v5798_v40 = vmul.f32 %v8589_v53, %v5797_v3  ;;  %v5807_v63 = vor.u32 1.1754944e-38, %v5806_v44  ;;  %v5837_v51 = vor.u32 1.1754944e-38, %v5836_v48  ;;  %v8138_v48 = vld [vmem:[%s11885_s7 + $0x790] sm:$0xff] }
0x1ae5   :  { %v5828_v30 = vmul.f32 %v8591_v45, %v5827_v49  ;;  %8123 = vmatmul.msk.f32.gmra.mxu3 %vm79_vm0, %v5899_v59  ;;  %vm5835_vm6 = vcmp.eq.f32.partialorder %v5834_v22, 8.507059e+37  ;;  %v8153_v49 = vld [vmem:[%s11885_s7 + $0x7d8] sm:$0xff]  ;;  %v8152_v22 = vld [vmem:[%s11885_s7 + $0x7d0] sm:$0xff] }
0x1ae6   :  { %v5799_v31 = vadd.f32 %v8589_v53, %v5798_v40  ;;  %8118 = vmatmul.msk.f32.vlgmr.msra.gmra.mxu1 %vm79_vm0, %v5824_v46  ;;  %v8139_v46 = vld [vmem:[%s11885_s7 + $0x798] sm:$0xff]  ;;  %6327 = vmatpush.msrb.mxu2 %v8153_v49 }
0x1ae7   :  { %v5829_v50 = vadd.f32 %v8591_v45, %v5828_v30  ;;  %v8146_v40 = vld [vmem:[%s11885_s7 + $0x7b8] sm:$0xff]  ;;  %6261 = vmatpush.msra.mxu0 %v8139_v46 }
0x1ae8   :  { %v5803_v26 = vsel %vm5802_vm15, %v8589_v53, %v5799_v31  ;;  %6294 = vmatpush.msra.mxu1 %v8146_v40  ;;  %v8160_v59 = vld [vmem:[%s11885_s7 + $0x7f8] sm:$0xff]  ;;  %v8145_v31 = vld [vmem:[%s11885_s7 + $0x7b0] sm:$0xff]  ;;  %6328 = vmatpush.msrb.mxu2 %v8152_v22 }
0x1ae9   :  { %v5808_v52 = vsel %vm5805_vm1, %v5807_v63, %v5803_v26  ;;  %v5833_v14 = vsel %vm5832_vm5, %v8591_v45, %v5829_v50  ;;  %v8159_v63 = vld [vmem:[%s11885_s7 + $0x7f0] sm:$0xff]  ;;  %v8137_v50 = vld [vmem:[%s11885_s7 + $0x788] sm:$0xff]  ;;  %6262 = vmatpush.msra.mxu0 %v8138_v48 }
0x1aea   :  { %v5809_v38 = vmul.f32 %v11259_v36, %v5808_v52  ;;  %v5838_v18 = vsel %vm5835_vm6, %v5837_v51, %v5833_v14  ;;  %v8133_v36 = vld [vmem:[%s11887_s9 + $0x78] sm:$0xff]  ;;  %6295 = vmatpush.msra.mxu1 %v8145_v31  ;;  %v8144_v51 = vld [vmem:[%s11885_s7 + $0x7a8] sm:$0xff]  ;;  %v8136_v14 = vld [vmem:[%s11885_s7 + $0x780] sm:$0xff] }
0x1aeb   :  { %v5839_v28 = vmul.f32 %v11257_v20, %v5838_v18  ;;  %6139 = vmatpush.msra.mxu3 %v8133_v36  ;;  %v8151_v52 = vld [vmem:[%s11885_s7 + $0x7c8] sm:$0xff]  ;;  %v8143_v18 = vld [vmem:[%s11885_s7 + $0x7a0] sm:$0xff]  ;;  %6263 = vmatpush.msra.mxu0 %v8137_v50  ;;  %v8659_v31 = vld [vmem:[%s11890_s12 + $0x10] sm:$0xff] }
0x1aec   :  { %8117 = vmatmul.msk.f32.gmra.mxu0 %vm79_vm0, %v5809_v38  ;;  %v8158_v38 = vld [vmem:[%s11885_s7 + $0x7e8] sm:$0xff]  ;;  %6296 = vmatpush.msra.mxu1 %v8144_v51 }
0x1aed   :  { %6360 = vmatpush.msrb.mxu3 %v8160_v59  ;;  %6329 = vmatpush.msrb.mxu2 %v8151_v52 }
0x1aee   :  { %8119 = vmatmul.msk.f32.gmra.mxu1 %vm79_vm0, %v5839_v28  ;;  %v8150_v28 = vld [vmem:[%s11885_s7 + $0x7c0] sm:$0xff]  ;;  %6264 = vmatpush.msra.mxu0 %v8136_v14 }
0x1aef   :  { %6361 = vmatpush.msrb.mxu3 %v8159_v63  ;;  %6297 = vmatpush.msra.mxu1 %v8143_v18  ;;  %v6230_v18 = vperm.slane %v11363_v8, 0 }
0x1af0   :  { %6330 = vmatpush.msrb.mxu2 %v8150_v28 }
0x1af1   :  { %6362 = vmatpush.msrb.mxu3 %v8158_v38 }
0x1af3   :  { %6363 = vmatpush.msrb.mxu3 %v8157_v29 }
0x1b4c   :  { %v5923_v20 = vpop.f32.mrf.mxu0 }
0x1b4d   :  { %8125 = vmatmul.msk.f32.vlgmr.msrb.gmra.mxu0 %vm603_vm2, %v5923_v20 }
0x1b5e   :  { %v6010_v47 = vpop.f32.mrf.mxu3 }
0x1b5f   :  { %v5981_v60 = vpop.f32.mrf.mxu2  ;;  %8134 = vmatmul.msk.f32.vlgmr.msra.gmra.mxu3 %vm603_vm2, %v6010_v47 }
0x1b60   :  { %8131 = vmatmul.msk.f32.vlgmr.msra.gmra.mxu2 %vm603_vm2, %v5981_v60 }
0x1b63   :  { %v5952_v58 = vpop.f32.mrf.mxu1 }
0x1b64   :  { %8128 = vmatmul.msk.f32.vlgmr.msrb.gmra.mxu1 %vm603_vm2, %v5952_v58 }
0x1b67   :  { %v5984_v19 = vpop.f32.mrf.mxu2 }
0x1b68   :  { %8132 = vmatmul.msk.f32.gmra.mxu2 %vm603_vm2, %v5984_v19  ;;  %v6013_v13 = vpop.f32.mrf.mxu3 }
0x1b69   :  { %v5926_v4 = vpop.f32.mrf.mxu0  ;;  %8135 = vmatmul.msk.f32.gmra.mxu3 %vm603_vm2, %v6013_v13 }
0x1b6a   :  { %8126 = vmatmul.msk.f32.gmra.mxu0 %vm603_vm2, %v5926_v4 }
0x1b6b   :  { %v5955_v42 = vpop.f32.mrf.mxu1 }
0x1b6c   :  { %8129 = vmatmul.msk.f32.gmra.mxu1 %vm603_vm2, %v5955_v42 }
0x1bca   :  { %v6041_v24 = vpop.f32.mrf.mxu0 }
0x1bcb   :  { %v6048_v12 = vadd.f32 %v6047_v15, %v6041_v24 }
0x1be1   :  { %v6075_v17 = vpop.f32.mrf.mxu1 }
0x1be2   :  { %v6081_v16 = vadd.f32 %v6075_v17, %v6048_v12  ;;  %v6141_v21 = vpop.f32.mrf.mxu3 }
0x1be3   :  { %v6108_v33 = vpop.f32.mrf.mxu2 }
0x1be4   :  { %v6114_v23 = vadd.f32 %v6108_v33, %v6081_v16 }
0x1be6   :  { %v6147_v37 = vadd.f32 %v6141_v21, %v6114_v23  ;;  %v8167_v23 = vld [vmem:[%s11885_s7 + $0x818] sm:$0xff] }
0x1be7   :  { %v6044_v11 = vpop.f32.mrf.mxu0  ;;  %6393 = vmatpush.msrb.mxu0 %v8167_v23 }
0x1be8   :  { %v11367_v53 = vadd.f32 %v6147_v37, %v10943_v56  ;;  %v6049_v0 = vadd.f32 %v6047_v15, %v6044_v11  ;;  %v8174_v37 = vld [vmem:[%s11885_s7 + $0x838] sm:$0xff] }
0x1be9   :  { %v6078_v55 = vpop.f32.mrf.mxu1  ;;  %v8181_v11 = vld [vmem:[%s11885_s7 + $0x858] sm:$0xff]  ;;  %6426 = vmatpush.msrb.mxu1 %v8174_v37  ;;  %v8207_v37 = vld [vmem:[%s11885_s7 + $0x8c8] sm:$0xff] }
0x1bea   :  { %v6082_v57 = vadd.f32 %v6078_v55, %v6049_v0  ;;  %v6151_v5 = vsel %vm113_vm3, %v11367_v53, 0.0  ;;  %v8188_v0 = vld [vmem:[%s11885_s7 + $0x878] sm:$0xff]  ;;  %v8166_v55 = vld [vmem:[%s11885_s7 + $0x810] sm:$0xff]  ;;  %6459 = vmatpush.msra.mxu2 %v8181_v11  ;;  %v8214_v11 = vld [vmem:[%s11885_s7 + $0x8e8] sm:$0xff] }
0x1beb   :  { %v6111_v32 = vpop.f32.mrf.mxu2  ;;  %6152 = vadd.xlane.f32.xlu2 %v6151_v5  ;;  %6492 = vmatpush.msra.mxu3 %v8188_v0  ;;  %v8180_v5 = vld [vmem:[%s11885_s7 + $0x850] sm:$0xff] }
0x1bec   :  { %v6115_v7 = vadd.f32 %v6111_v32, %v6082_v57  ;;  %v6144_v25 = vpop.f32.mrf.mxu3  ;;  %v8173_v57 = vld [vmem:[%s11885_s7 + $0x830] sm:$0xff]  ;;  %6394 = vmatpush.msrb.mxu0 %v8166_v55  ;;  %6460 = vmatpush.msra.mxu2 %v8180_v5  ;;  %v8192_v55 = vld [vmem:[%s11885_s7 + $0x880] sm:$0xff] }
0x1bed   :  { %6427 = vmatpush.msrb.mxu1 %v8173_v57  ;;  %v8199_v57 = vld [vmem:[%s11885_s7 + $0x8a0] sm:$0xff] }
0x1bee   :  { %v6148_v45 = vadd.f32 %v6144_v25, %v6115_v7  ;;  %v8187_v7 = vld [vmem:[%s11885_s7 + $0x870] sm:$0xff]  ;;  %v8165_v25 = vld [vmem:[%s11885_s7 + $0x808] sm:$0xff]  ;;  %v8213_v5 = vld [vmem:[%s11885_s7 + $0x8e0] sm:$0xff] }
0x1bef   :  { %6493 = vmatpush.msra.mxu3 %v8187_v7  ;;  %6395 = vmatpush.msrb.mxu0 %v8165_v25 }
0x1bf0   :  { %v11372_v62 = vadd.f32 %v6148_v45, %v10948_v2  ;;  %v8172_v45 = vld [vmem:[%s11885_s7 + $0x828] sm:$0xff] }
0x1bf1   :  { %6428 = vmatpush.msrb.mxu1 %v8172_v45 }
0x1bf2   :  { %v6154_v61 = vsel %vm113_vm3, %v11372_v62, 0.0 }
0x1bf3   :  { %6155 = vadd.xlane.f32.xlu1 %v6154_v61  ;;  %v8179_v61 = vld [vmem:[%s11885_s7 + $0x848] sm:$0xff] }
0x1bf4   :  { %6461 = vmatpush.msra.mxu2 %v8179_v61 }
0x1c5e   :  { %v6153_v56 = vpop.xlane.xlu2 %6152 }
0x1c5f   :  { %v6157_v41 = vmul.f32 %v6153_v56, %v8802_v27  ;;  %v8186_v56 = vld [vmem:[%s11885_s7 + $0x868] sm:$0xff] }
0x1c60   :  { %6494 = vmatpush.msra.mxu3 %v8186_v56 }
0x1c61   :  { %v11378_v1 = vsub.f32 %v11367_v53, %v6157_v41 }
0x1c63   :  { %v6161_v3 = vmul.f32 %v11378_v1, %v11378_v1 }
0x1c65   :  { %v6163_v39 = vsel %vm113_vm3, %v6161_v3, 0.0  ;;  %v8164_v3 = vld [vmem:[%s11885_s7 + $0x800] sm:$0xff] }
0x1c66   :  { %6164 = vadd.xlane.f32.xlu0 %v6163_v39  ;;  %v6156_v54 = vpop.xlane.xlu1 %6155  ;;  %v8171_v39 = vld [vmem:[%s11885_s7 + $0x820] sm:$0xff]  ;;  %6396 = vmatpush.msrb.mxu0 %v8164_v3 }
0x1c67   :  { %v6158_v2 = vmul.f32 %v6156_v54, %v8802_v27  ;;  %6429 = vmatpush.msrb.mxu1 %v8171_v39 }
0x1c69   :  { %v11385_v35 = vsub.f32 %v11372_v62, %v6158_v2  ;;  %v8178_v2 = vld [vmem:[%s11885_s7 + $0x840] sm:$0xff] }
0x1c6a   :  { %6462 = vmatpush.msra.mxu2 %v8178_v2  ;;  %v8350_v2 = vld [vmem:[%s11886_s8 + $0x40] ss:$0 sm:$0xff] }
0x1c6b   :  { %v6162_v44 = vmul.f32 %v11385_v35, %v11385_v35 }
0x1c6d   :  { %v6166_v34 = vsel %vm113_vm3, %v6162_v44, 0.0  ;;  %v8185_v44 = vld [vmem:[%s11885_s7 + $0x860] sm:$0xff] }
0x1c6e   :  { %6167 = vadd.xlane.f32.xlu2 %v6166_v34  ;;  %6495 = vmatpush.msra.mxu3 %v8185_v44 }
0x1cd9   :  { %v6165_v30 = vpop.xlane.xlu0 %6164 }
0x1cda   :  { %v6169_v26 = vmul.f32 0.032258064, %v6165_v30  ;;  %v6195_v30 = vperm.slane %v8659_v31, 7  ;;  %v8347_v31 = vld [vmem:[%s11886_s8 + $0x3d] ss:$0 sm:$0xff] }
0x1cdc   :  { %8592 = vrsqrt.f32 %v6169_v26  ;;  %vm6178_vm7 = vcmp.eq.f32.partialorder %v6169_v26, inf  ;;  %v6181_v24 = vand.u32 2147483648, %v6169_v26  ;;  %vm6180_vm8 = vcmp.eq.f32.partialorder %v6169_v26, 0.0 }
0x1cdd   :  { %v6196_v52 = vmul.f32 %v6195_v30, %v11378_v1  ;;  %v8202_v1 = vld [vmem:[%s11885_s7 + $0x8b8] sm:$0xff] }
0x1ce1   :  { %v6168_v6 = vpop.xlane.xlu2 %6167 }
0x1ce2   :  { %v8593_v36 = vpop.eup %8592  ;;  %v6170_v43 = vmul.f32 0.032258064, %v6168_v6 }
0x1ce3   :  { %v6172_v20 = vmul.f32 %v8593_v36, %v6169_v26 }
0x1ce4   :  { %8594 = vrsqrt.f32 %v6170_v43  ;;  %vm6190_vm10 = vcmp.eq.f32.partialorder %v6170_v43, inf  ;;  %v6193_v54 = vand.u32 2147483648, %v6170_v43  ;;  %vm6192_vm11 = vcmp.eq.f32.partialorder %v6170_v43, 0.0 }
0x1ce5   :  { %v6173_v47 = vmul.f32 %v8593_v36, %v6172_v20 }
0x1ce7   :  { %v6174_v60 = vmul.f32 0.5, %v6173_v47 }
0x1ce9   :  { %v6175_v58 = vsub.f32 1.5, %v6174_v60 }
0x1cea   :  { %v8595_v19 = vpop.eup %8594 }
0x1ceb   :  { %v6176_v13 = vmul.f32 %v8593_v36, %v6175_v58  ;;  %v6184_v4 = vmul.f32 %v8595_v19, %v6170_v43  ;;  %v8195_v58 = vld [vmem:[%s11885_s7 + $0x898] sm:$0xff] }
0x1ced   :  { %v6177_v42 = vmul.f32 %v6176_v13, %v6169_v26  ;;  %v6185_v15 = vmul.f32 %v8595_v19, %v6184_v4  ;;  %v8216_v13 = vld [vmem:[%s11885_s7 + $0x8f8] sm:$0xff] }
0x1cef   :  { %v6179_v12 = vsel %vm6178_vm7, %v6169_v26, %v6177_v42  ;;  %v6186_v17 = vmul.f32 0.5, %v6185_v15  ;;  %v8194_v42 = vld [vmem:[%s11885_s7 + $0x890] sm:$0xff] }
0x1cf0   :  { %v6182_v16 = vsel %vm6180_vm8, %v6181_v24, %v6179_v12  ;;  %v8201_v15 = vld [vmem:[%s11885_s7 + $0x8b0] sm:$0xff]  ;;  %v6197_v24 = vmul.f32 %v6195_v30, %v11385_v35  ;;  %v8200_v35 = vld [vmem:[%s11885_s7 + $0x8a8] sm:$0xff] }
0x1cf1   :  { %v6198_v33 = vadd.f32 1e-06, %v6182_v16  ;;  %v6187_v21 = vsub.f32 1.5, %v6186_v17  ;;  %v8208_v17 = vld [vmem:[%s11885_s7 + $0x8d0] sm:$0xff] }
0x1cf2   :  { %v8215_v16 = vld [vmem:[%s11885_s7 + $0x8f0] sm:$0xff] }
0x1cf3   :  { %8596 = vrcp.f32 %v6198_v33  ;;  %v6188_v32 = vmul.f32 %v8595_v19, %v6187_v21  ;;  %v6211_v22 = vand.u32 2147483648, %v6198_v33  ;;  %v6209_v50 = vand.u32 2147483647, %v6198_v33  ;;  %v8209_v19 = vld [vmem:[%s11885_s7 + $0x8d8] sm:$0xff]  ;;  %v8193_v21 = vld [vmem:[%s11885_s7 + $0x888] sm:$0xff] }
0x1cf4   :  { %vm6205_vm13 = vweird.f32 %v6198_v33 }
0x1cf5   :  { %v6189_v41 = vmul.f32 %v6188_v32, %v6170_v43  ;;  %v6212_v38 = vor.u32 1.1754944e-38, %v6211_v22  ;;  %vm6210_vm15 = vcmp.eq.f32.partialorder %v6209_v50, 8.507059e+37  ;;  %v8206_v32 = vld [vmem:[%s11885_s7 + $0x8c0] sm:$0xff] }
0x1cf6   :  { %v8353_v50 = vld [vmem:[%s11886_s8 + $0x43] ss:$0 sm:$0xff] }
0x1cf7   :  { %v6191_v34 = vsel %vm6190_vm10, %v6170_v43, %v6189_v41 }
0x1cf8   :  { %v6194_v46 = vsel %vm6192_vm11, %v6193_v54, %v6191_v34 }
0x1cf9   :  { %v8597_v40 = vpop.eup %8596  ;;  %v6199_v49 = vadd.f32 1e-06, %v6194_v46 }
0x1cfa   :  { %v6201_v59 = vmul.f32 %v8597_v40, %v6198_v33  ;;  %vm6206_vm12 = vweird.f32 %v8597_v40 }
0x1cfb   :  { %8598 = vrcp.f32 %v6199_v49  ;;  %vm6207_vm14 = vmor %vm6205_vm13, %vm6206_vm12  ;;  %v6226_v43 = vand.u32 2147483648, %v6199_v49  ;;  %v6224_v60 = vand.u32 2147483647, %v6199_v49  ;;  %vm6220_vm4 = vweird.f32 %v6199_v49 }
0x1cfc   :  { %v6202_v48 = vsub.f32 1.0, %v6201_v59 }
0x1cfd   :  { %v6227_v4 = vor.u32 1.1754944e-38, %v6226_v43  ;;  %vm6225_vm6 = vcmp.eq.f32.partialorder %v6224_v60, 8.507059e+37 }
0x1cfe   :  { %v6203_v63 = vmul.f32 %v8597_v40, %v6202_v48  ;;  %v8346_v48 = vld [vmem:[%s11886_s8 + $0x3c] ss:$0 sm:$0xff] }
0x1d00   :  { %v6204_v26 = vadd.f32 %v8597_v40, %v6203_v63  ;;  %v8352_v63 = vld [vmem:[%s11886_s8 + $0x42] ss:$0 sm:$0xff] }
0x1d01   :  { %v8599_v51 = vpop.eup %8598 }
0x1d02   :  { %v6208_v14 = vsel %vm6207_vm14, %v8597_v40, %v6204_v26  ;;  %v6216_v28 = vmul.f32 %v8599_v51, %v6199_v49  ;;  %vm6221_vm1 = vweird.f32 %v8599_v51 }
0x1d03   :  { %v6213_v29 = vsel %vm6210_vm15, %v6212_v38, %v6208_v14  ;;  %vm6222_vm5 = vmor %vm6220_vm4, %vm6221_vm1 }
0x1d04   :  { %v6214_v6 = vmul.f32 %v6213_v29, %v6196_v52  ;;  %v6217_v36 = vsub.f32 1.0, %v6216_v28 }
0x1d06   :  { %v6231_v20 = vadd.f32 %v6230_v18, %v6214_v6  ;;  %v6218_v47 = vmul.f32 %v8599_v51, %v6217_v36  ;;  %v8348_v6 = vld [vmem:[%s11886_s8 + $0x3e] ss:$0 sm:$0xff]  ;;  %v8349_v36 = vld [vmem:[%s11886_s8 + $0x3f] ss:$0 sm:$0xff] }
0x1d08   :  { %8141 = vmatmul.msk.f32.vlgmr.msra.gmra.mxu0 %vm113_vm3, %v6231_v20  ;;  %8148 = vmatmul.msk.f32.vlgmr.msra.gmra.mxu1 %vm113_vm3, %v6231_v20  ;;  %v6219_v8 = vadd.f32 %v8599_v51, %v6218_v47 }
0x1d09   :  { %8155 = vmatmul.msk.f32.vlgmr.msrb.gmra.mxu2 %vm113_vm3, %v6231_v20  ;;  %8162 = vmatmul.msk.f32.vlgmr.msrb.gmra.mxu3 %vm113_vm3, %v6231_v20 }
0x1d0a   :  { %v6223_v12 = vsel %vm6222_vm5, %v8599_v51, %v6219_v8  ;;  %6525 = vmatpush.msra.mxu0 %v8195_v58  ;;  %6558 = vmatpush.msra.mxu1 %v8202_v1  ;;  %v8354_v58 = vld [vmem:[%s11886_s8 + $0x44] ss:$0 sm:$0xff]  ;;  %v8355_v1 = vld [vmem:[%s11886_s8 + $0x45] ss:$0 sm:$0xff] }
0x1d0b   :  { %v6228_v33 = vsel %vm6225_vm6, %v6227_v4, %v6223_v12  ;;  %6591 = vmatpush.msrb.mxu2 %v8209_v19  ;;  %6624 = vmatpush.msrb.mxu3 %v8216_v13 }
0x1d0c   :  { %v6229_v23 = vmul.f32 %v6228_v33, %v6197_v24  ;;  %6526 = vmatpush.msra.mxu0 %v8194_v42  ;;  %6559 = vmatpush.msra.mxu1 %v8201_v15  ;;  %v8356_v33 = vld [vmem:[%s11886_s8 + $0x46] ss:$0 sm:$0xff] }
0x1d0d   :  { %6592 = vmatpush.msrb.mxu2 %v8208_v17  ;;  %6625 = vmatpush.msrb.mxu3 %v8215_v16 }
0x1d0e   :  { %v6232_v0 = vadd.f32 %v6230_v18, %v6229_v23  ;;  %6527 = vmatpush.msra.mxu0 %v8193_v21  ;;  %6560 = vmatpush.msra.mxu1 %v8200_v35  ;;  %v8357_v21 = vld [vmem:[%s11886_s8 + $0x47] ss:$0 sm:$0xff] }
0x1d0f   :  { %6593 = vmatpush.msrb.mxu2 %v8207_v37  ;;  %6626 = vmatpush.msrb.mxu3 %v8214_v11 }
0x1d10   :  { %8142 = vmatmul.msk.f32.gmra.mxu0 %vm113_vm3, %v6232_v0  ;;  %8149 = vmatmul.msk.f32.gmra.mxu1 %vm113_vm3, %v6232_v0 }
0x1d11   :  { %8156 = vmatmul.msk.f32.gmra.mxu2 %vm113_vm3, %v6232_v0  ;;  %8163 = vmatmul.msk.f32.gmra.mxu3 %vm113_vm3, %v6232_v0 }
0x1d12   :  { %6528 = vmatpush.msra.mxu0 %v8192_v55  ;;  %6561 = vmatpush.msra.mxu1 %v8199_v57 }
0x1d13   :  { %6594 = vmatpush.msrb.mxu2 %v8206_v32  ;;  %6627 = vmatpush.msrb.mxu3 %v8213_v5 }
0x1d18   :  { %8169 = vmatmul.msk.f32.vlgmr.msrb.gmra.mxu0 %vm113_vm3, %v10615_v9  ;;  %8176 = vmatmul.msk.f32.vlgmr.msrb.gmra.mxu1 %vm113_vm3, %v10615_v9 }
0x1d19   :  { %8183 = vmatmul.msk.f32.vlgmr.msra.gmra.mxu2 %vm113_vm3, %v10615_v9  ;;  %8190 = vmatmul.msk.f32.vlgmr.msra.gmra.mxu3 %vm113_vm3, %v10615_v9 }
0x1d20   :  { %8170 = vmatmul.msk.f32.gmra.mxu0 %vm113_vm3, %v10626_v10  ;;  %8177 = vmatmul.msk.f32.gmra.mxu1 %vm113_vm3, %v10626_v10 }
0x1d21   :  { %8184 = vmatmul.msk.f32.gmra.mxu2 %vm113_vm3, %v10626_v10  ;;  %8191 = vmatmul.msk.f32.gmra.mxu3 %vm113_vm3, %v10626_v10 }
0x1d28   :  { %8197 = vmatmul.msk.f32.vlgmr.msra.gmra.mxu0 %vm113_vm3, %v10615_v9  ;;  %8204 = vmatmul.msk.f32.vlgmr.msra.gmra.mxu1 %vm113_vm3, %v10615_v9 }
0x1d29   :  { %8211 = vmatmul.msk.f32.vlgmr.msrb.gmra.mxu2 %vm113_vm3, %v10615_v9  ;;  %8218 = vmatmul.msk.f32.vlgmr.msrb.gmra.mxu3 %vm113_vm3, %v10615_v9 }
0x1d30   :  { %8198 = vmatmul.msk.f32.gmra.mxu0 %vm113_vm3, %v10626_v10  ;;  %8205 = vmatmul.msk.f32.gmra.mxu1 %vm113_vm3, %v10626_v10 }
0x1d31   :  { %8212 = vmatmul.msk.f32.gmra.mxu2 %vm113_vm3, %v10626_v10  ;;  %8219 = vmatmul.msk.f32.gmra.mxu3 %vm113_vm3, %v10626_v10  ;;  %v8351_v10 = vld [vmem:[%s11886_s8 + $0x41] ss:$0 sm:$0xff] }
0x1d85   :  { %v6266_v7 = vpop.f32.mrf.mxu0  ;;  %v6299_v25 = vpop.f32.mrf.mxu1 }
0x1d86   :  { %v6267_v28 = vadd.f32 %v8346_v48, %v6266_v7  ;;  %v6300_v29 = vadd.f32 %v8347_v31, %v6299_v25  ;;  %v8660_v25 = vld [vmem:[%s11882_s4] sm:$0xff] }
0x1d8c   :  { %v6332_v45 = vpop.f32.mrf.mxu2  ;;  %v6365_v61 = vpop.f32.mrf.mxu3 }
0x1d8d   :  { %v6269_v56 = vpop.f32.mrf.mxu0  ;;  %v6302_v41 = vpop.f32.mrf.mxu1  ;;  %v6333_v47 = vadd.f32 %v8348_v6, %v6332_v45  ;;  %v6366_v60 = vadd.f32 %v8349_v36, %v6365_v61 }
0x1d8e   :  { %v6270_v13 = vadd.f32 %v8346_v48, %v6269_v56  ;;  %v6303_v15 = vadd.f32 %v8347_v31, %v6302_v41 }
0x1d94   :  { %v11580_v3 = vpop.f32.mrf.mxu2  ;;  %v11582_v9 = vpop.f32.mrf.mxu3 }
0x1d95   :  { %v6398_v39 = vpop.f32.mrf.mxu0  ;;  %v6431_v54 = vpop.f32.mrf.mxu1  ;;  %v6336_v35 = vadd.f32 %v8348_v6, %v11580_v3  ;;  %v6369_v23 = vadd.f32 %v8349_v36, %v11582_v9 }
0x1d96   :  { %v6399_v30 = vadd.f32 %v8350_v2, %v6398_v39  ;;  %v6432_v22 = vadd.f32 %v8351_v10, %v6431_v54 }
0x1d9c   :  { %v6464_v44 = vpop.f32.mrf.mxu2  ;;  %v6497_v34 = vpop.f32.mrf.mxu3 }
0x1d9d   :  { %v6401_v46 = vpop.f32.mrf.mxu0  ;;  %v6434_v40 = vpop.f32.mrf.mxu1  ;;  %v6465_v43 = vadd.f32 %v8352_v63, %v6464_v44  ;;  %v6498_v20 = vadd.f32 %v8353_v50, %v6497_v34 }
0x1d9e   :  { %v6402_v49 = vadd.f32 %v8350_v2, %v6401_v46  ;;  %v6435_v59 = vadd.f32 %v8351_v10, %v6434_v40 }
0x1da0   :  { %8220 = vmatpush.xpose.msk.msrb.mxu0 %vm603_vm2, %v6402_v49  ;;  %8224 = vmatpush.xpose.msk.msrb.mxu1 %vm603_vm2, %v6435_v59 }
0x1da4   :  { %v6467_v26 = vpop.f32.mrf.mxu2  ;;  %v6500_v51 = vpop.f32.mrf.mxu3  ;;  %8221 = vmatpush.xpose.msk.msrb.mxu0 %vm603_vm2, %v6399_v30  ;;  %8225 = vmatpush.xpose.msk.msrb.mxu1 %vm603_vm2, %v6432_v22  ;;  %v8661_v22 = vld [vmem:[%s11882_s4 + $0x8] sm:$0xff] }
0x1da5   :  { %v6468_v52 = vadd.f32 %v8352_v63, %v6467_v26  ;;  %v6501_v38 = vadd.f32 %v8353_v50, %v6500_v51  ;;  %v6530_v14 = vpop.f32.mrf.mxu0  ;;  %v6563_v18 = vpop.f32.mrf.mxu1 }
0x1da6   :  { %v6531_v17 = vadd.f32 %v8354_v58, %v6530_v14  ;;  %v6564_v16 = vadd.f32 %v8355_v1, %v6563_v18 }
0x1da7   :  { %8228 = vmatpush.xpose.msk.msra.mxu2 %vm603_vm2, %v6468_v52  ;;  %8232 = vmatpush.xpose.msk.msra.mxu3 %vm603_vm2, %v6501_v38 }
0x1da8   :  { %8222 = vmatmul.msk.f32.vlgmr.msrb.gmra.mxu0 %vm603_vm2, %v6267_v28  ;;  %8226 = vmatmul.msk.f32.vlgmr.msrb.gmra.mxu1 %vm603_vm2, %v6300_v29 }
0x1dab   :  { %8229 = vmatpush.xpose.msk.msra.mxu2 %vm603_vm2, %v6465_v43  ;;  %8233 = vmatpush.xpose.msk.msra.mxu3 %vm603_vm2, %v6498_v20 }
0x1dac   :  { %v6596_v8 = vpop.f32.mrf.mxu2  ;;  %v6629_v19 = vpop.f32.mrf.mxu3 }
0x1dad   :  { %v6533_v4 = vpop.f32.mrf.mxu0  ;;  %v6566_v42 = vpop.f32.mrf.mxu1  ;;  %v6597_v57 = vadd.f32 %v8356_v33, %v6596_v8  ;;  %v6630_v32 = vadd.f32 %v8357_v21, %v6629_v19 }
0x1dae   :  { %v6534_v24 = vadd.f32 %v8354_v58, %v6533_v4  ;;  %v6567_v12 = vadd.f32 %v8355_v1, %v6566_v42  ;;  %8230 = vmatmul.msk.f32.vlgmr.msra.gmra.mxu2 %vm603_vm2, %v6333_v47  ;;  %8234 = vmatmul.msk.f32.vlgmr.msra.gmra.mxu3 %vm603_vm2, %v6366_v60 }
0x1db0   :  { %8223 = vmatmul.msk.f32.gmra.mxu0 %vm603_vm2, %v6270_v13  ;;  %8227 = vmatmul.msk.f32.gmra.mxu1 %vm603_vm2, %v6303_v15 }
0x1db1   :  { %7003 = vmatpush.msra.mxu0 %v6534_v24  ;;  %7032 = vmatpush.msra.mxu1 %v6567_v12 }
0x1db3   :  { %7004 = vmatpush.msra.mxu0 %v6531_v17  ;;  %7033 = vmatpush.msra.mxu1 %v6564_v16 }
0x1db4   :  { %v6599_v37 = vpop.f32.mrf.mxu2  ;;  %v6632_v11 = vpop.f32.mrf.mxu3 }
0x1db5   :  { %v6600_v0 = vadd.f32 %v8356_v33, %v6599_v37  ;;  %v6633_v55 = vadd.f32 %v8357_v21, %v6632_v11 }
0x1db6   :  { %8231 = vmatmul.msk.f32.gmra.mxu2 %vm603_vm2, %v6336_v35  ;;  %8235 = vmatmul.msk.f32.gmra.mxu3 %vm603_vm2, %v6369_v23 }
0x1db7   :  { %7061 = vmatpush.msrb.mxu2 %v6600_v0  ;;  %7090 = vmatpush.msrb.mxu3 %v6633_v55 }
0x1db9   :  { %7062 = vmatpush.msrb.mxu2 %v6597_v57  ;;  %7091 = vmatpush.msrb.mxu3 %v6630_v32 }
0x1e25   :  { %v6664_v5 = vpop.f32.mrf.mxu0  ;;  %v6699_v56 = vpop.f32.mrf.mxu1 }
0x1e26   :  { %v6775_v7 = vmul.f32 0.35355338, %v6664_v5  ;;  %v6777_v10 = vmul.f32 0.35355338, %v6699_v56 }
0x1e28   :  { %v6783_v45 = vadd.f32 %v8660_v25, %v6775_v7  ;;  %v6785_v49 = vadd.f32 %v8660_v25, %v6777_v10 }
0x1e2a   :  { %v6791_v61 = vsel %vm79_vm0, %v6783_v45, -inf  ;;  %v6797_v26 = vsel %vm79_vm0, %v6785_v49, -inf }
0x1e2b   :  { %6792 = vmax.xlane.f32.xlu2 %v6791_v61 }
0x1e2d   :  { %v6667_v31 = vpop.f32.mrf.mxu0  ;;  %v6702_v30 = vpop.f32.mrf.mxu1 }
0x1e2e   :  { %v6776_v51 = vmul.f32 0.35355338, %v6667_v31  ;;  %v6778_v52 = vmul.f32 0.35355338, %v6702_v30 }
0x1e30   :  { %v6786_v18 = vadd.f32 %v8661_v22, %v6778_v52  ;;  %v6784_v28 = vadd.f32 %v8661_v22, %v6776_v51 }
0x1e31   :  { %v6734_v41 = vpop.f32.mrf.mxu2  ;;  %v6769_v3 = vpop.f32.mrf.mxu3 }
0x1e32   :  { %v6779_v9 = vmul.f32 0.35355338, %v6734_v41  ;;  %v6781_v39 = vmul.f32 0.35355338, %v6769_v3  ;;  %v6800_v29 = vsel %vm79_vm0, %v6786_v18, -inf  ;;  %v6794_v6 = vsel %vm79_vm0, %v6784_v28, -inf }
0x1e34   :  { %v6789_v54 = vadd.f32 %v8660_v25, %v6781_v39  ;;  %v6787_v2 = vadd.f32 %v8660_v25, %v6779_v9 }
0x1e36   :  { %v6809_v44 = vsel %vm79_vm0, %v6789_v54, -inf  ;;  %v6803_v34 = vsel %vm79_vm0, %v6787_v2, -inf }
0x1e37   :  { %6810 = vmax.xlane.f32.xlu0 %v6809_v44  ;;  %6804 = vmax.xlane.f32.xlu1 %v6803_v34 }
0x1e39   :  { %v6737_v46 = vpop.f32.mrf.mxu2  ;;  %v6772_v40 = vpop.f32.mrf.mxu3 }
0x1e3a   :  { %v6780_v59 = vmul.f32 0.35355338, %v6737_v46  ;;  %v6782_v48 = vmul.f32 0.35355338, %v6772_v40 }
0x1e3c   :  { %v6788_v63 = vadd.f32 %v8661_v22, %v6780_v59  ;;  %v6790_v50 = vadd.f32 %v8661_v22, %v6782_v48 }
0x1e3e   :  { %v6806_v38 = vsel %vm79_vm0, %v6788_v63, -inf  ;;  %v6812_v14 = vsel %vm79_vm0, %v6790_v50, -inf }
0x1e3f   :  { %6807 = vmax.xlane.f32.xlu1 %v6806_v38  ;;  %6798 = vmax.xlane.f32.xlu0 %v6797_v26 }
0x1e40   :  { %6813 = vmax.xlane.f32.xlu2 %v6812_v14 }
0x1e47   :  { %6801 = vmax.xlane.f32.xlu0 %v6800_v29  ;;  %6795 = vmax.xlane.f32.xlu1 %v6794_v6 }
0x1e9e   :  { %v6793_v36 = vpop.xlane.xlu2 %6792 }
0x1e9f   :  { %v6815_v43 = vsub.f32 %v6783_v45, %v6793_v36 }
0x1ea1   :  { %v6823_v20 = vmul.f32 1.442695, %v6815_v43 }
0x1ea3   :  { %8600 = vpow2.f32 %v6823_v20 }
0x1ea9   :  { %v11652_v47 = vpop.eup %8600 }
0x1eaa   :  { %v6811_v60 = vpop.xlane.xlu0 %6810  ;;  %v6805_v58 = vpop.xlane.xlu1 %6804  ;;  %v6839_v1 = vsel %vm79_vm0, %v11652_v47, 0.0 }
0x1eab   :  { %v6821_v8 = vsub.f32 %v6789_v54, %v6811_v60  ;;  %v6819_v19 = vsub.f32 %v6787_v2, %v6805_v58  ;;  %6840 = vadd.xlane.f32.xlu0 %v6839_v1 }
0x1ead   :  { %v6835_v13 = vmul.f32 1.442695, %v6821_v8  ;;  %v6831_v4 = vmul.f32 1.442695, %v6819_v19 }
0x1eaf   :  { %8602 = vpow2.f32 %v6835_v13 }
0x1eb0   :  { %8604 = vpow2.f32 %v6831_v4 }
0x1eb2   :  { %v6808_v42 = vpop.xlane.xlu1 %6807  ;;  %v6799_v15 = vpop.xlane.xlu0 %6798 }
0x1eb3   :  { %v6820_v24 = vsub.f32 %v6788_v63, %v6808_v42  ;;  %v6817_v12 = vsub.f32 %v6785_v49, %v6799_v15  ;;  %v6814_v17 = vpop.xlane.xlu2 %6813 }
0x1eb4   :  { %v6822_v16 = vsub.f32 %v6790_v50, %v6814_v17 }
0x1eb5   :  { %v11656_v33 = vpop.eup %8602  ;;  %v6833_v21 = vmul.f32 1.442695, %v6820_v24  ;;  %v6827_v35 = vmul.f32 1.442695, %v6817_v12 }
0x1eb6   :  { %v11658_v23 = vpop.eup %8604  ;;  %v6837_v37 = vmul.f32 1.442695, %v6822_v16  ;;  %v6857_v11 = vsel %vm79_vm0, %v11656_v33, 0.0 }
0x1eb7   :  { %8606 = vpow2.f32 %v6833_v21  ;;  %v6851_v0 = vsel %vm79_vm0, %v11658_v23, 0.0  ;;  %6858 = vadd.xlane.f32.xlu1 %v6857_v11 }
0x1eb8   :  { %8608 = vpow2.f32 %v6827_v35  ;;  %6852 = vadd.xlane.f32.xlu2 %v6851_v0 }
0x1eb9   :  { %8610 = vpow2.f32 %v6837_v37 }
0x1eba   :  { %v6802_v55 = vpop.xlane.xlu0 %6801  ;;  %v6796_v57 = vpop.xlane.xlu1 %6795 }
0x1ebb   :  { %v6818_v32 = vsub.f32 %v6786_v18, %v6802_v55  ;;  %v6816_v5 = vsub.f32 %v6784_v28, %v6796_v57 }
0x1ebd   :  { %v11664_v7 = vpop.eup %8606  ;;  %v6829_v25 = vmul.f32 1.442695, %v6818_v32  ;;  %v6825_v45 = vmul.f32 1.442695, %v6816_v5 }
0x1ebe   :  { %v11666_v61 = vpop.eup %8608  ;;  %v6854_v56 = vsel %vm79_vm0, %v11664_v7, 0.0 }
0x1ebf   :  { %v11670_v41 = vpop.eup %8610  ;;  %8612 = vpow2.f32 %v6829_v25  ;;  %v6845_v3 = vsel %vm79_vm0, %v11666_v61, 0.0 }
0x1ec0   :  { %8614 = vpow2.f32 %v6825_v45  ;;  %6855 = vadd.xlane.f32.xlu2 %v6854_v56  ;;  %v6860_v9 = vsel %vm79_vm0, %v11670_v41, 0.0  ;;  %6846 = vadd.xlane.f32.xlu1 %v6845_v3 }
0x1ec1   :  { %6861 = vadd.xlane.f32.xlu0 %v6860_v9 }
0x1ec5   :  { %v11676_v39 = vpop.eup %8612 }
0x1ec6   :  { %v11678_v54 = vpop.eup %8614  ;;  %v6848_v2 = vsel %vm79_vm0, %v11676_v39, 0.0 }
0x1ec7   :  { %v6842_v10 = vsel %vm79_vm0, %v11678_v54, 0.0 }
0x1ec8   :  { %6849 = vadd.xlane.f32.xlu1 %v6848_v2  ;;  %6843 = vadd.xlane.f32.xlu2 %v6842_v10 }
0x1f1e   :  { %v6841_v44 = vpop.xlane.xlu0 %6840 }
0x1f1f   :  { %8616 = vrcp.f32 %v6841_v44  ;;  %v6874_v49 = vand.u32 2147483648, %v6841_v44  ;;  %v6872_v48 = vand.u32 2147483647, %v6841_v44  ;;  %vm6868_vm8 = vweird.f32 %v6841_v44 }
0x1f21   :  { %v6875_v63 = vor.u32 1.1754944e-38, %v6874_v49  ;;  %vm6873_vm11 = vcmp.eq.f32.partialorder %v6872_v48, 8.507059e+37 }
0x1f25   :  { %v8617_v34 = vpop.eup %8616 }
0x1f26   :  { %v6864_v46 = vmul.f32 %v8617_v34, %v6841_v44  ;;  %vm6869_vm7 = vweird.f32 %v8617_v34 }
0x1f27   :  { %vm6870_vm10 = vmor %vm6868_vm8, %vm6869_vm7 }
0x1f28   :  { %v6865_v40 = vsub.f32 1.0, %v6864_v46 }
0x1f2a   :  { %v6866_v59 = vmul.f32 %v8617_v34, %v6865_v40  ;;  %v6859_v31 = vpop.xlane.xlu1 %6858 }
0x1f2b   :  { %v6853_v30 = vpop.xlane.xlu2 %6852  ;;  %8618 = vrcp.f32 %v6859_v31  ;;  %v6964_v20 = vand.u32 2147483648, %v6859_v31  ;;  %v6962_v58 = vand.u32 2147483647, %v6859_v31  ;;  %vm6958_vm14 = vweird.f32 %v6859_v31 }
0x1f2c   :  { %v6867_v22 = vadd.f32 %v8617_v34, %v6866_v59  ;;  %8620 = vrcp.f32 %v6853_v30  ;;  %v6932_v8 = vand.u32 2147483647, %v6853_v30  ;;  %vm6928_vm15 = vweird.f32 %v6853_v30 }
0x1f2d   :  { %v6965_v4 = vor.u32 1.1754944e-38, %v6964_v20  ;;  %vm6963_vm5 = vcmp.eq.f32.partialorder %v6962_v58, 8.507059e+37 }
0x1f2e   :  { %v6871_v50 = vsel %vm6870_vm10, %v8617_v34, %v6867_v22  ;;  %vm6933_vm6 = vcmp.eq.f32.partialorder %v6932_v8, 8.507059e+37 }
0x1f2f   :  { %v6876_v26 = vsel %vm6873_vm11, %v6875_v63, %v6871_v50 }
0x1f30   :  { %v6877_v51 = vmul.f32 %v11652_v47, %v6876_v26  ;;  %v6934_v47 = vand.u32 2147483648, %v6853_v30 }
0x1f31   :  { %v8619_v52 = vpop.eup %8618 }
0x1f32   :  { %v8621_v38 = vpop.eup %8620  ;;  %v6954_v14 = vmul.f32 %v8619_v52, %v6859_v31  ;;  %8236 = vmatmul.msk.f32.vlgmr.msra.gmra.mxu0 %vm79_vm0, %v6877_v51  ;;  %vm6959_vm12 = vweird.f32 %v8619_v52  ;;  %v6935_v15 = vor.u32 1.1754944e-38, %v6934_v47 }
0x1f33   :  { %v6924_v18 = vmul.f32 %v8621_v38, %v6853_v30  ;;  %v11686_v28 = vpop.xlane.xlu2 %6855  ;;  %v11688_v29 = vpop.xlane.xlu1 %6846  ;;  %vm6929_vm13 = vweird.f32 %v8621_v38  ;;  %vm6960_vm1 = vmor %vm6958_vm14, %vm6959_vm12 }
0x1f34   :  { %v6955_v6 = vsub.f32 1.0, %v6954_v14  ;;  %v11690_v36 = vpop.xlane.xlu0 %6861  ;;  %8622 = vrcp.f32 %v11686_v28  ;;  %vm6930_vm4 = vmor %vm6928_vm15, %vm6929_vm13  ;;  %vm6943_vm7 = vweird.f32 %v11686_v28  ;;  %v6947_v45 = vand.u32 2147483647, %v11686_v28 }
0x1f35   :  { %v6925_v43 = vsub.f32 1.0, %v6924_v18  ;;  %8624 = vrcp.f32 %v11690_v36  ;;  %v6949_v56 = vand.u32 2147483648, %v11686_v28  ;;  %v6977_v3 = vand.u32 2147483647, %v11690_v36 }
0x1f36   :  { %v6956_v60 = vmul.f32 %v8619_v52, %v6955_v6  ;;  %8626 = vrcp.f32 %v11688_v29  ;;  %vm6973_vm10 = vweird.f32 %v11690_v36  ;;  %v6979_v2 = vand.u32 2147483648, %v11690_v36 }
0x1f37   :  { %v6926_v1 = vmul.f32 %v8621_v38, %v6925_v43  ;;  %v6902_v34 = vand.u32 2147483647, %v11688_v29  ;;  %v6904_v46 = vand.u32 2147483648, %v11688_v29  ;;  %v6950_v49 = vor.u32 1.1754944e-38, %v6949_v56  ;;  %v11782_v56 = vld [vmem:[%s11890_s12 + $0x18] sm:$0xff] }
0x1f38   :  { %v6957_v19 = vadd.f32 %v8619_v52, %v6956_v60  ;;  %vm11724_vm14 = vcmp.eq.f32.partialorder %v6977_v3, 8.507059e+37  ;;  %vm6948_vm15 = vcmp.eq.f32.partialorder %v6947_v45, 8.507059e+37  ;;  %v6980_v63 = vor.u32 1.1754944e-38, %v6979_v2 }
0x1f39   :  { %v6927_v13 = vadd.f32 %v8621_v38, %v6926_v1 }
0x1f3a   :  { %v8623_v42 = vpop.eup %8622  ;;  %v6961_v24 = vsel %vm6960_vm1, %v8619_v52, %v6957_v19  ;;  %vm6898_vm1 = vweird.f32 %v11688_v29 }
0x1f3b   :  { %v11695_v12 = vpop.eup %8624  ;;  %v6931_v17 = vsel %vm6930_vm4, %v8621_v38, %v6927_v13  ;;  %v6966_v16 = vsel %vm6963_vm5, %v6965_v4, %v6961_v24  ;;  %v6939_v21 = vmul.f32 %v8623_v42, %v11686_v28  ;;  %v11698_v35 = vpop.xlane.xlu2 %6843  ;;  %vm6944_vm8 = vweird.f32 %v8623_v42 }
0x1f3c   :  { %v6936_v37 = vsel %vm6933_vm6, %v6935_v15, %v6931_v17  ;;  %v6967_v11 = vmul.f32 %v11656_v33, %v6966_v16  ;;  %v6969_v0 = vmul.f32 %v11695_v12, %v11690_v36  ;;  %v11703_v55 = vpop.xlane.xlu1 %6849  ;;  %v8627_v57 = vpop.eup %8626  ;;  %8628 = vrcp.f32 %v11698_v35  ;;  %vm6945_vm12 = vmor %vm6943_vm7, %vm6944_vm8 }
0x1f3d   :  { %v6937_v32 = vmul.f32 %v11658_v23, %v6936_v37  ;;  %v6940_v5 = vsub.f32 1.0, %v6939_v21  ;;  %v6894_v33 = vmul.f32 %v8627_v57, %v11688_v29  ;;  %8630 = vrcp.f32 %v11703_v55  ;;  %v8250_v37 = vld [vmem:[%s11887_s9 + $0xb0] sm:$0xff] }
0x1f3e   :  { %v6970_v25 = vsub.f32 1.0, %v6969_v0  ;;  %8242 = vmatmul.msk.f32.vlgmr.msrb.gmra.mxu3 %vm79_vm0, %v6967_v11  ;;  %vm6974_vm11 = vweird.f32 %v11695_v12  ;;  %vm6899_vm13 = vweird.f32 %v8627_v57  ;;  %vm6903_vm6 = vcmp.eq.f32.partialorder %v6902_v34, 8.507059e+37  ;;  %v8247_v11 = vld [vmem:[%s11887_s9 + $0xa8] sm:$0xff]  ;;  %7189 = vmatpush.msra.mxu2 %v8250_v37 }
0x1f3f   :  { %v6941_v9 = vmul.f32 %v8623_v42, %v6940_v5  ;;  %8240 = vmatmul.msk.f32.vlgmr.msrb.gmra.mxu2 %vm79_vm0, %v6937_v32  ;;  %v6895_v10 = vsub.f32 1.0, %v6894_v33  ;;  %vm11731_vm4 = vmor %vm6973_vm10, %vm6974_vm11  ;;  %v6905_v38 = vor.u32 1.1754944e-38, %v6904_v46  ;;  %v6887_v6 = vand.u32 2147483647, %v11698_v35  ;;  %7156 = vmatpush.msrb.mxu1 %v8247_v11  ;;  %v8269_v11 = vld [vmem:[%s11889_s11 + $0xf8] sm:$0xff] }
0x1f40   :  { %v6971_v23 = vmul.f32 %v11695_v12, %v6970_v25  ;;  %vm6900_vm5 = vmor %vm6898_vm1, %vm6899_vm13  ;;  %v6889_v20 = vand.u32 2147483648, %v11698_v35  ;;  %vm6883_vm8 = vweird.f32 %v11698_v35  ;;  %v6919_v8 = vand.u32 2147483648, %v11703_v55 }
0x1f41   :  { %v6942_v44 = vadd.f32 %v8623_v42, %v6941_v9  ;;  %v6896_v59 = vmul.f32 %v8627_v57, %v6895_v10  ;;  %v6917_v4 = vand.u32 2147483647, %v11703_v55  ;;  %vm6913_vm13 = vweird.f32 %v11703_v55 }
0x1f42   :  { %v6972_v40 = vadd.f32 %v11695_v12, %v6971_v23  ;;  %v8629_v48 = vpop.eup %8628  ;;  %v6920_v15 = vor.u32 1.1754944e-38, %v6919_v8  ;;  %v7130_v33 = vperm.slane %v11782_v56, 4 }
0x1f43   :  { %v6946_v30 = vsel %vm6945_vm12, %v8623_v42, %v6942_v44  ;;  %v6897_v50 = vadd.f32 %v8627_v57, %v6896_v59  ;;  %v6879_v26 = vmul.f32 %v8629_v48, %v11698_v35  ;;  %v8631_v52 = vpop.eup %8630  ;;  %vm6884_vm7 = vweird.f32 %v8629_v48  ;;  %v8244_v35 = vld [vmem:[%s11887_s9 + $0xa0] sm:$0xff] }
0x1f44   :  { %v6951_v51 = vsel %vm6948_vm15, %v6950_v49, %v6946_v30  ;;  %v6976_v18 = vsel %vm11731_vm4, %v11695_v12, %v6972_v40  ;;  %v6909_v36 = vmul.f32 %v8631_v52, %v11703_v55  ;;  %vm6914_vm10 = vweird.f32 %v8631_v52  ;;  %vm6885_vm11 = vmor %vm6883_vm8, %vm6884_vm7  ;;  %7122 = vmatpush.msrb.mxu0 %v8244_v35 }
0x1f45   :  { %v6952_v14 = vmul.f32 %v11664_v7, %v6951_v51  ;;  %v6901_v28 = vsel %vm6900_vm5, %v8627_v57, %v6897_v50  ;;  %v6880_v29 = vsub.f32 1.0, %v6879_v26  ;;  %v6981_v47 = vsel %vm11724_vm14, %v6980_v63, %v6976_v18  ;;  %vm6915_vm14 = vmor %vm6913_vm13, %vm6914_vm10 }
0x1f46   :  { %v6906_v43 = vsel %vm6903_vm6, %v6905_v38, %v6901_v28  ;;  %v6910_v58 = vsub.f32 1.0, %v6909_v36  ;;  %v6982_v1 = vmul.f32 %v11670_v41, %v6981_v47  ;;  %vm6888_vm12 = vcmp.eq.f32.partialorder %v6887_v6, 8.507059e+37  ;;  %v8258_v47 = vld [vmem:[%s11888_s10 + $0x70] sm:$0xff] }
0x1f47   :  { %8241 = vmatmul.msk.f32.gmra.mxu2 %vm79_vm0, %v6952_v14  ;;  %v6907_v7 = vmul.f32 %v11666_v61, %v6906_v43  ;;  %v6881_v60 = vmul.f32 %v8629_v48, %v6880_v29  ;;  %v6890_v61 = vor.u32 1.1754944e-38, %v6889_v20  ;;  %vm6918_vm15 = vcmp.eq.f32.partialorder %v6917_v4, 8.507059e+37  ;;  %v8259_v20 = vld [vmem:[%s11888_s10 + $0x78] sm:$0xff] }
0x1f48   :  { %v6911_v13 = vmul.f32 %v8631_v52, %v6910_v58  ;;  %8243 = vmatmul.msk.f32.gmra.mxu3 %vm79_vm0, %v6982_v1  ;;  %7340 = vmatpush.msra.mxu0 %v8259_v20  ;;  %v8256_v1 = vld [vmem:[%s11888_s10 + $0x60] sm:$0xff] }
0x1f49   :  { %v6882_v19 = vadd.f32 %v8629_v48, %v6881_v60  ;;  %8238 = vmatmul.msk.f32.vlgmr.msra.gmra.mxu1 %vm79_vm0, %v6907_v7  ;;  %v8257_v60 = vld [vmem:[%s11888_s10 + $0x68] sm:$0xff] }
0x1f4a   :  { %v6912_v42 = vadd.f32 %v8631_v52, %v6911_v13  ;;  %7341 = vmatpush.msra.mxu0 %v8258_v47  ;;  %7377 = vmatpush.msra.mxu1 %v8269_v11 }
0x1f4b   :  { %v6886_v41 = vsel %vm6885_vm11, %v8629_v48, %v6882_v19 }
0x1f4c   :  { %v6891_v24 = vsel %vm6888_vm12, %v6890_v61, %v6886_v41  ;;  %v6916_v17 = vsel %vm6915_vm14, %v8631_v52, %v6912_v42  ;;  %7342 = vmatpush.msra.mxu0 %v8257_v60 }
0x1f4d   :  { %v6892_v12 = vmul.f32 %v11678_v54, %v6891_v24  ;;  %v6921_v16 = vsel %vm6918_vm15, %v6920_v15, %v6916_v17  ;;  %v8253_v54 = vld [vmem:[%s11887_s9 + $0xb8] sm:$0xff] }
0x1f4e   :  { %v6922_v21 = vmul.f32 %v11676_v39, %v6921_v16  ;;  %7222 = vmatpush.msra.mxu3 %v8253_v54  ;;  %7343 = vmatpush.msra.mxu0 %v8256_v1  ;;  %v8263_v1 = vld [vmem:[%s11889_s11 + $0xc8] sm:$0xff] }
0x1f4f   :  { %8237 = vmatmul.msk.f32.gmra.mxu0 %vm79_vm0, %v6892_v12 }
0x1f51   :  { %8239 = vmatmul.msk.f32.gmra.mxu1 %vm79_vm0, %v6922_v21 }
0x1faf   :  { %v7006_v39 = vpop.f32.mrf.mxu0 }
0x1fb0   :  { %8245 = vmatmul.msk.f32.vlgmr.msrb.gmra.mxu0 %vm603_vm2, %v7006_v39  ;;  %v8268_v39 = vld [vmem:[%s11889_s11 + $0xf0] sm:$0xff] }
0x1fb1   :  { %7378 = vmatpush.msra.mxu1 %v8268_v39 }
0x1fc1   :  { %v7093_v0 = vpop.f32.mrf.mxu3 }
0x1fc2   :  { %v7064_v55 = vpop.f32.mrf.mxu2  ;;  %8254 = vmatmul.msk.f32.vlgmr.msra.gmra.mxu3 %vm603_vm2, %v7093_v0 }
0x1fc3   :  { %8251 = vmatmul.msk.f32.vlgmr.msra.gmra.mxu2 %vm603_vm2, %v7064_v55 }
0x1fc6   :  { %v7035_v57 = vpop.f32.mrf.mxu1 }
0x1fc7   :  { %8248 = vmatmul.msk.f32.vlgmr.msrb.gmra.mxu1 %vm603_vm2, %v7035_v57  ;;  %v8267_v57 = vld [vmem:[%s11889_s11 + $0xe8] sm:$0xff] }
0x1fc8   :  { %7379 = vmatpush.msra.mxu1 %v8267_v57 }
0x1fca   :  { %v7067_v32 = vpop.f32.mrf.mxu2 }
0x1fcb   :  { %8252 = vmatmul.msk.f32.gmra.mxu2 %vm603_vm2, %v7067_v32  ;;  %v7096_v5 = vpop.f32.mrf.mxu3 }
0x1fcc   :  { %v7009_v25 = vpop.f32.mrf.mxu0  ;;  %8255 = vmatmul.msk.f32.gmra.mxu3 %vm603_vm2, %v7096_v5  ;;  %v8266_v5 = vld [vmem:[%s11889_s11 + $0xe0] sm:$0xff] }
0x1fcd   :  { %8246 = vmatmul.msk.f32.gmra.mxu0 %vm603_vm2, %v7009_v25  ;;  %7380 = vmatpush.msra.mxu1 %v8266_v5 }
0x1fce   :  { %v7038_v45 = vpop.f32.mrf.mxu1 }
0x1fcf   :  { %8249 = vmatmul.msk.f32.gmra.mxu1 %vm603_vm2, %v7038_v45 }
0x202d   :  { %v7124_v3 = vpop.f32.mrf.mxu0 }
0x202e   :  { %v7131_v9 = vadd.f32 %v7130_v33, %v7124_v3 }
0x2044   :  { %v7158_v23 = vpop.f32.mrf.mxu1 }
0x2045   :  { %v7164_v2 = vadd.f32 %v7158_v23, %v7131_v9  ;;  %v7224_v44 = vpop.f32.mrf.mxu3 }
0x2046   :  { %v7191_v10 = vpop.f32.mrf.mxu2 }
0x2047   :  { %v7197_v34 = vadd.f32 %v7191_v10, %v7164_v2 }
0x2049   :  { %v7230_v46 = vadd.f32 %v7224_v44, %v7197_v34  ;;  %v7278_v34 = vperm.slane %v11782_v56, 1 }
0x204a   :  { %v7127_v40 = vpop.f32.mrf.mxu0 }
0x204b   :  { %v11786_v49 = vadd.f32 %v7230_v46, %v11367_v53  ;;  %v7132_v59 = vadd.f32 %v7130_v33, %v7127_v40  ;;  %v8265_v33 = vld [vmem:[%s11889_s11 + $0xd8] sm:$0xff] }
0x204c   :  { %v7161_v48 = vpop.f32.mrf.mxu1  ;;  %7381 = vmatpush.msra.mxu1 %v8265_v33 }
0x204d   :  { %v7165_v31 = vadd.f32 %v7161_v48, %v7132_v59  ;;  %v7234_v22 = vsel %vm113_vm3, %v11786_v49, 0.0 }
0x204e   :  { %v7194_v30 = vpop.f32.mrf.mxu2  ;;  %7235 = vadd.xlane.f32.xlu0 %v7234_v22 }
0x204f   :  { %v7198_v63 = vadd.f32 %v7194_v30, %v7165_v31  ;;  %v7227_v50 = vpop.f32.mrf.mxu3 }
0x2051   :  { %v7231_v26 = vadd.f32 %v7227_v50, %v7198_v63  ;;  %v7313_v50 = vperm.slane %v11782_v56, 2 }
0x2053   :  { %v11791_v51 = vadd.f32 %v7231_v26, %v11372_v62 }
0x2055   :  { %v7237_v52 = vsel %vm113_vm3, %v11791_v51, 0.0 }
0x2056   :  { %7238 = vadd.xlane.f32.xlu2 %v7237_v52 }
0x20c1   :  { %v7236_v53 = vpop.xlane.xlu0 %7235 }
0x20c2   :  { %v7240_v38 = vmul.f32 %v7236_v53, %v8802_v27 }
0x20c4   :  { %v11797_v14 = vsub.f32 %v11786_v49, %v7240_v38 }
0x20c6   :  { %v7244_v18 = vmul.f32 %v11797_v14, %v11797_v14  ;;  %v7279_v30 = vmul.f32 %v7278_v34, %v11797_v14 }
0x20c8   :  { %v7246_v28 = vsel %vm113_vm3, %v7244_v18, 0.0 }
0x20c9   :  { %7247 = vadd.xlane.f32.xlu1 %v7246_v28  ;;  %v7239_v29 = vpop.xlane.xlu2 %7238 }
0x20ca   :  { %v7241_v62 = vmul.f32 %v7239_v29, %v8802_v27 }
0x20cc   :  { %v11804_v6 = vsub.f32 %v11791_v51, %v7241_v62 }
0x20ce   :  { %v7245_v36 = vmul.f32 %v11804_v6, %v11804_v6 }
0x20d0   :  { %v7249_v43 = vsel %vm113_vm3, %v7245_v36, 0.0 }
0x20d1   :  { %7250 = vadd.xlane.f32.xlu0 %v7249_v43  ;;  %v7280_v43 = vmul.f32 %v7278_v34, %v11804_v6  ;;  %v8262_v6 = vld [vmem:[%s11889_s11 + $0xc0] sm:$0xff] }
0x213c   :  { %v7248_v7 = vpop.xlane.xlu1 %7247 }
0x213d   :  { %v7252_v58 = vmul.f32 0.032258064, %v7248_v7 }
0x213f   :  { %8632 = vrsqrt.f32 %v7252_v58  ;;  %vm7261_vm0 = vcmp.eq.f32.partialorder %v7252_v58, inf  ;;  %v7264_v21 = vand.u32 2147483648, %v7252_v58  ;;  %vm7263_vm2 = vcmp.eq.f32.partialorder %v7252_v58, 0.0 }
0x2144   :  { %v7251_v8 = vpop.xlane.xlu0 %7250 }
0x2145   :  { %v8633_v19 = vpop.eup %8632  ;;  %v7253_v13 = vmul.f32 0.032258064, %v7251_v8  ;;  %v8663_v8 = vld [vmem:[%s11891_s13] sm:$0xf] }
0x2146   :  { %v7255_v4 = vmul.f32 %v8633_v19, %v7252_v58 }
0x2147   :  { %8634 = vrsqrt.f32 %v7253_v13  ;;  %vm7273_vm1 = vcmp.eq.f32.partialorder %v7253_v13, inf  ;;  %v7276_v45 = vand.u32 2147483648, %v7253_v13  ;;  %vm7275_vm4 = vcmp.eq.f32.partialorder %v7253_v13, 0.0 }
0x2148   :  { %v7256_v61 = vmul.f32 %v8633_v19, %v7255_v4 }
0x214a   :  { %v7257_v42 = vmul.f32 0.5, %v7256_v61 }
0x214c   :  { %v7258_v41 = vsub.f32 1.5, %v7257_v42 }
0x214d   :  { %v8635_v15 = vpop.eup %8634 }
0x214e   :  { %v7259_v24 = vmul.f32 %v8633_v19, %v7258_v41  ;;  %v7267_v12 = vmul.f32 %v8635_v15, %v7253_v13  ;;  %v7321_v19 = vperm.slane %v8663_v8, 3 }
0x2150   :  { %v7260_v17 = vmul.f32 %v7259_v24, %v7252_v58  ;;  %v7268_v16 = vmul.f32 %v8635_v15, %v7267_v12  ;;  %v7362_v24 = vperm.slane %v11782_v56, 5 }
0x2152   :  { %v7262_v35 = vsel %vm7261_vm0, %v7252_v58, %v7260_v17  ;;  %v7269_v37 = vmul.f32 0.5, %v7268_v16  ;;  %v8264_v58 = vld [vmem:[%s11889_s11 + $0xd0] sm:$0xff] }
0x2153   :  { %v7265_v54 = vsel %vm7263_vm2, %v7264_v21, %v7262_v35  ;;  %7382 = vmatpush.msra.mxu1 %v8264_v58 }
0x2154   :  { %v7281_v0 = vadd.f32 1e-06, %v7265_v54  ;;  %v7270_v55 = vsub.f32 1.5, %v7269_v37 }
0x2155   :  { %7383 = vmatpush.msra.mxu1 %v8263_v1 }
0x2156   :  { %8636 = vrcp.f32 %v7281_v0  ;;  %v7271_v32 = vmul.f32 %v8635_v15, %v7270_v55  ;;  %v7294_v46 = vand.u32 2147483648, %v7281_v0  ;;  %v7292_v59 = vand.u32 2147483647, %v7281_v0 }
0x2157   :  { %vm7288_vm6 = vweird.f32 %v7281_v0  ;;  %7384 = vmatpush.msra.mxu1 %v8262_v6 }
0x2158   :  { %v7272_v25 = vmul.f32 %v7271_v32, %v7253_v13  ;;  %v7295_v22 = vor.u32 1.1754944e-38, %v7294_v46  ;;  %vm7293_vm8 = vcmp.eq.f32.partialorder %v7292_v59, 8.507059e+37 }
0x215a   :  { %v7274_v3 = vsel %vm7273_vm1, %v7253_v13, %v7272_v25 }
0x215b   :  { %v7277_v9 = vsel %vm7275_vm4, %v7276_v45, %v7274_v3 }
0x215c   :  { %v8637_v23 = vpop.eup %8636  ;;  %v7282_v2 = vadd.f32 1e-06, %v7277_v9 }
0x215d   :  { %v7284_v10 = vmul.f32 %v8637_v23, %v7281_v0  ;;  %vm7289_vm5 = vweird.f32 %v8637_v23 }
0x215e   :  { %8638 = vrcp.f32 %v7282_v2  ;;  %vm7290_vm7 = vmor %vm7288_vm6, %vm7289_vm5  ;;  %v7309_v18 = vand.u32 2147483648, %v7282_v2  ;;  %v7307_v62 = vand.u32 2147483647, %v7282_v2  ;;  %vm7303_vm11 = vweird.f32 %v7282_v2 }
0x215f   :  { %v7285_v44 = vsub.f32 1.0, %v7284_v10 }
0x2160   :  { %v7310_v14 = vor.u32 1.1754944e-38, %v7309_v18  ;;  %vm7308_vm13 = vcmp.eq.f32.partialorder %v7307_v62, 8.507059e+37 }
0x2161   :  { %v7286_v40 = vmul.f32 %v8637_v23, %v7285_v44 }
0x2163   :  { %v7287_v48 = vadd.f32 %v8637_v23, %v7286_v40 }
0x2164   :  { %v8639_v31 = vpop.eup %8638 }
0x2165   :  { %v7291_v63 = vsel %vm7290_vm7, %v8637_v23, %v7287_v48  ;;  %v7299_v26 = vmul.f32 %v8639_v31, %v7282_v2  ;;  %vm7304_vm10 = vweird.f32 %v8639_v31 }
0x2166   :  { %v7296_v52 = vsel %vm7293_vm8, %v7295_v22, %v7291_v63  ;;  %vm7305_vm12 = vmor %vm7303_vm11, %vm7304_vm10 }
0x2167   :  { %v7297_v53 = vmul.f32 %v7296_v52, %v7279_v30  ;;  %v7300_v38 = vsub.f32 1.0, %v7299_v26 }
0x2169   :  { %v7314_v28 = vadd.f32 %v7313_v50, %v7297_v53  ;;  %v7301_v29 = vmul.f32 %v8639_v31, %v7300_v38 }
0x216b   :  { %8260 = vmatmul.msk.f32.vlgmr.msra.gmra.mxu0 %vm113_vm3, %v7314_v28  ;;  %v7302_v36 = vadd.f32 %v8639_v31, %v7301_v29 }
0x216d   :  { %v7306_v20 = vsel %vm7305_vm12, %v8639_v31, %v7302_v36 }
0x216e   :  { %v7311_v47 = vsel %vm7308_vm13, %v7310_v14, %v7306_v20  ;;  %v52_v14 = vld [vmem:[%s11890_s12 + $0x20] sm:$0x3]  ;;  %s8693_s12 = smov [#allocation2]  }
0x216f   :  { %v7312_v7 = vmul.f32 %v7311_v47, %v7280_v43  ;;  %v7438_v47 = vperm.slane %v52_v14, 0  ;;  %v7473_v6 = vperm.slane %v52_v14, 1  ;;  %s7482_s30 = sshll.u32 %s8693_s12, 4  ;;  %s7483_s30 = int_to_ptr.vmem [resolvable:$true] %s7482_s30 }
0x2171   :  { %v7315_v60 = vadd.f32 %v7313_v50, %v7312_v7 }
0x2173   :  { %8261 = vmatmul.msk.f32.gmra.mxu0 %vm113_vm3, %v7315_v60 }
0x21e8   :  { %v7345_v13 = vpop.f32.mrf.mxu0 }
0x21e9   :  { %v7346_v4 = vadd.f32 %v7345_v13, %v7321_v19 }
0x21eb   :  { %v7351_v61 = vmax.f32 %v7346_v4, 0.0 }
0x21ed   :  { %8270 = vmatmul.msk.f32.vlgmr.msra.gmra.mxu1 %vm1329_vm9, %v7351_v61 }
0x21f0   :  { %v7348_v42 = vpop.f32.mrf.mxu0 }
0x21f1   :  { %v7349_v41 = vadd.f32 %v7348_v42, %v7321_v19 }
0x21f3   :  { %v7352_v15 = vmax.f32 %v7349_v41, 0.0 }
0x21f5   :  { %8271 = vmatmul.msk.f32.gmra.mxu1 %vm1329_vm9, %v7352_v15 }
0x226a   :  { %v7386_v12 = vpop.f32.mrf.mxu1 }
0x226b   :  { %v7387_v17 = vadd.f32 %v7386_v12, %v7362_v24 }
0x226d   :  { %v7392_v16 = vadd.f32 %v7387_v17, %v11786_v49 }
0x226f   :  { %v7394_v21 = vsel %vm113_vm3, %v7392_v16, 0.0 }
0x2270   :  { %7395 = vadd.xlane.f32.xlu2 %v7394_v21 }
0x2272   :  { %v7389_v35 = vpop.f32.mrf.mxu1 }
0x2273   :  { %v7390_v37 = vadd.f32 %v7389_v35, %v7362_v24 }
0x2275   :  { %v7393_v54 = vadd.f32 %v7390_v37, %v11791_v51 }
0x2277   :  { %v7397_v11 = vsel %vm113_vm3, %v7393_v54, 0.0 }
0x2278   :  { %7398 = vadd.xlane.f32.xlu1 %v7397_v11 }
0x22e3   :  { %v7396_v39 = vpop.xlane.xlu2 %7395 }
0x22e4   :  { %v7400_v0 = vmul.f32 %v7396_v39, %v8802_v27 }
0x22e6   :  { %v7402_v55 = vsub.f32 %v7392_v16, %v7400_v0 }
0x22e8   :  { %v7404_v57 = vmul.f32 %v7402_v55, %v7402_v55  ;;  %v7439_v19 = vmul.f32 %v7438_v47, %v7402_v55 }
0x22ea   :  { %v7406_v56 = vsel %vm113_vm3, %v7404_v57, 0.0 }
0x22eb   :  { %v7399_v32 = vpop.xlane.xlu1 %7398  ;;  %7407 = vadd.xlane.f32.xlu0 %v7406_v56 }
0x22ec   :  { %v7401_v49 = vmul.f32 %v7399_v32, %v8802_v27 }
0x22ee   :  { %v11864_v5 = vsub.f32 %v7393_v54, %v7401_v49 }
0x22f0   :  { %v7405_v25 = vmul.f32 %v11864_v5, %v11864_v5  ;;  %v7440_v35 = vmul.f32 %v7438_v47, %v11864_v5 }
0x22f2   :  { %v7409_v51 = vsel %vm113_vm3, %v7405_v25, 0.0 }
0x22f3   :  { %7410 = vadd.xlane.f32.xlu2 %v7409_v51 }
0x235e   :  { %v7408_v45 = vpop.xlane.xlu0 %7407 }
0x235f   :  { %v7412_v33 = vmul.f32 0.032258064, %v7408_v45 }
0x2361   :  { %8640 = vrsqrt.f32 %v7412_v33  ;;  %vm7421_vm9 = vcmp.eq.f32.partialorder %v7412_v33, inf  ;;  %v7424_v31 = vand.u32 2147483648, %v7412_v33  ;;  %vm7423_vm14 = vcmp.eq.f32.partialorder %v7412_v33, 0.0 }
0x2366   :  { %v7411_v3 = vpop.xlane.xlu2 %7410 }
0x2367   :  { %v8641_v9 = vpop.eup %8640  ;;  %v7413_v23 = vmul.f32 0.032258064, %v7411_v3 }
0x2368   :  { %v7415_v2 = vmul.f32 %v8641_v9, %v7412_v33 }
0x2369   :  { %8642 = vrsqrt.f32 %v7413_v23  ;;  %vm7433_vm15 = vcmp.eq.f32.partialorder %v7413_v23, inf  ;;  %v7436_v38 = vand.u32 2147483648, %v7413_v23  ;;  %vm7435_vm0 = vcmp.eq.f32.partialorder %v7413_v23, 0.0 }
0x236a   :  { %v7416_v10 = vmul.f32 %v8641_v9, %v7415_v2 }
0x236c   :  { %v7417_v44 = vmul.f32 0.5, %v7416_v10 }
0x236e   :  { %v7418_v34 = vsub.f32 1.5, %v7417_v44 }
0x236f   :  { %v8643_v27 = vpop.eup %8642 }
0x2370   :  { %v7419_v46 = vmul.f32 %v8641_v9, %v7418_v34  ;;  %v7427_v40 = vmul.f32 %v8643_v27, %v7413_v23 }
0x2372   :  { %v7420_v59 = vmul.f32 %v7419_v46, %v7412_v33  ;;  %v7428_v48 = vmul.f32 %v8643_v27, %v7427_v40 }
0x2374   :  { %v7422_v30 = vsel %vm7421_vm9, %v7412_v33, %v7420_v59  ;;  %v7429_v22 = vmul.f32 0.5, %v7428_v48 }
0x2375   :  { %v7425_v63 = vsel %vm7423_vm14, %v7424_v31, %v7422_v30 }
0x2376   :  { %v7441_v50 = vadd.f32 1e-06, %v7425_v63  ;;  %v7430_v26 = vsub.f32 1.5, %v7429_v22 }
0x2378   :  { %8644 = vrcp.f32 %v7441_v50  ;;  %v7431_v52 = vmul.f32 %v8643_v27, %v7430_v26  ;;  %v7454_v20 = vand.u32 2147483648, %v7441_v50  ;;  %v7452_v60 = vand.u32 2147483647, %v7441_v50 }
0x2379   :  { %vm7448_vm1 = vweird.f32 %v7441_v50 }
0x237a   :  { %v7432_v53 = vmul.f32 %v7431_v52, %v7413_v23  ;;  %v7455_v8 = vor.u32 1.1754944e-38, %v7454_v20  ;;  %vm7453_vm5 = vcmp.eq.f32.partialorder %v7452_v60, 8.507059e+37 }
0x237c   :  { %v7434_v18 = vsel %vm7433_vm15, %v7413_v23, %v7432_v53 }
0x237d   :  { %v7437_v28 = vsel %vm7435_vm0, %v7436_v38, %v7434_v18 }
0x237e   :  { %v8645_v29 = vpop.eup %8644  ;;  %v7442_v62 = vadd.f32 1e-06, %v7437_v28 }
0x237f   :  { %v7444_v36 = vmul.f32 %v8645_v29, %v7441_v50  ;;  %vm7449_vm2 = vweird.f32 %v8645_v29 }
0x2380   :  { %8646 = vrcp.f32 %v7442_v62  ;;  %vm7450_vm4 = vmor %vm7448_vm1, %vm7449_vm2  ;;  %v7469_v15 = vand.u32 2147483648, %v7442_v62  ;;  %v7467_v12 = vand.u32 2147483647, %v7442_v62  ;;  %vm7463_vm7 = vweird.f32 %v7442_v62 }
0x2381   :  { %v7445_v43 = vsub.f32 1.0, %v7444_v36 }
0x2382   :  { %v7470_v21 = vor.u32 1.1754944e-38, %v7469_v15  ;;  %vm7468_vm10 = vcmp.eq.f32.partialorder %v7467_v12, 8.507059e+37 }
0x2383   :  { %v7446_v7 = vmul.f32 %v8645_v29, %v7445_v43 }
0x2385   :  { %v7447_v58 = vadd.f32 %v8645_v29, %v7446_v7 }
0x2386   :  { %v8647_v1 = vpop.eup %8646 }
0x2387   :  { %v7451_v13 = vsel %vm7450_vm4, %v8645_v29, %v7447_v58  ;;  %v7459_v4 = vmul.f32 %v8647_v1, %v7442_v62  ;;  %vm7464_vm6 = vweird.f32 %v8647_v1 }
0x2388   :  { %v7456_v61 = vsel %vm7453_vm5, %v7455_v8, %v7451_v13  ;;  %vm7465_vm8 = vmor %vm7463_vm7, %vm7464_vm6 }
0x2389   :  { %v7457_v42 = vmul.f32 %v7456_v61, %v7439_v19  ;;  %v7460_v41 = vsub.f32 1.0, %v7459_v4 }
0x238b   :  { %v7461_v24 = vmul.f32 %v8647_v1, %v7460_v41  ;;  %v7474_v17 = vadd.f32 %v7473_v6, %v7457_v42 }
0x238d   :  { %v7462_v16 = vadd.f32 %v8647_v1, %v7461_v24  ;;  %7476 = vst.msk [vmem:[#allocation2] sm:$0xff] %vm113_vm3, %v7474_v17 }
0x238f   :  { %v7466_v37 = vsel %vm7465_vm8, %v8647_v1, %v7462_v16 }
0x2390   :  { %v7471_v54 = vsel %vm7468_vm10, %v7470_v21, %v7466_v37 }
0x2391   :  { %v7472_v11 = vmul.f32 %v7471_v54, %v7440_v35 }
0x2393   :  { %v7475_v39 = vadd.f32 %v7473_v6, %v7472_v11 }
0x2395   :  { %7477 = vst.msk [vmem:[#allocation2 + $0x8] sm:$0xff] %vm113_vm3, %v7475_v39 }
0x2396   :  { %7490 = dma.vmem_to_hbm [thread:$0]  %s7483_s30, 256, %s7485_s5, [#allocation3], %s8694_s17, %s8694_s17, %s8695_s18  }
0x2397   :  { %8688 = dma.done.wait [#allocation3], 256  }
0x2398   :  { %8689 = vsyncadd [#allocation3], 4294967040 }
0x2399   :  { %7495 = vsyncpa [#allocation3], 1 }

</bundles_post_ra>
